<compile_context>
chip_gen: v7x
topology: tpu7x:2x2x1
jax: 0.10.0
libtpu: 0.0.40
codegen_flags: <defaults>
</compile_context>

<pallas_src>
import functools

import jax
import jax.numpy as jnp
from jax.experimental import pallas as pl
from jax.experimental.pallas import tpu as pltpu


_HEAD_NP = 128  # lane-dense padded width of each latent head (mu / logvar)


def _round_up(x, m):
    return (x + m - 1) // m * m


def _pick_tn(N, Mp):
    """N tile: lane-dense (multiple of 128) when possible; prefer 128 for the
    tiny-M deep layers (better v5e store behaviour, more v7x parallel tiles)."""
    cands = (128, 256) if Mp <= 32 else (256, 128)
    for c in cands:
        if N % c == 0:
            return c
    return N  # full extent (e.g. conv0's N=64)


def _pick_tm(Mp, n_tiles_n):
    """M tile (Mp is a multiple of 16).  If the N grid already has >=2 tiles,
    just take the largest 16-multiple tile; otherwise force >=2 M tiles so the
    parallel-grid product is >=2 (v7x megacore occupancy)."""
    if n_tiles_n >= 2:
        for c in (256, 128, 64, 32, 16):
            if Mp % c == 0:
                return c
        return Mp
    for c in (256, 128, 64, 32, 16, 8):
        if Mp % c == 0 and Mp // c >= 2:
            return c
    return Mp


# ----------------------------------------------------------------------------
# Pallas kernels
# ----------------------------------------------------------------------------
def _matmul_bias_act_kernel(x_ref, w_ref, b_ref, o_ref, *, apply_relu):
    """Single full-K MXU pass; bias (+ReLU) fused; f32 accumulation."""
    acc = jnp.dot(x_ref[...], w_ref[...], preferred_element_type=jnp.float32)
    out = acc + b_ref[...]
    if apply_relu:
        out = jnp.maximum(out, 0.0)
    o_ref[...] = out.astype(o_ref.dtype)


def _head_reparam_kernel(x_ref, w_ref, b_ref, eps_ref, z_ref, mu_ref, lv_ref):
    """Merged fc_mu|fc_logvar matmul (one weight, one MXU pass) + fused
    reparameterization z = mu + eps * exp(0.5*logvar)."""
    acc = jnp.dot(x_ref[...], w_ref[...], preferred_element_type=jnp.float32)
    acc = acc + b_ref[...]
    mu = acc[:, :_HEAD_NP]
    lv = acc[:, _HEAD_NP:]
    mu_ref[...] = mu
    lv_ref[...] = lv
    z_ref[...] = mu + eps_ref[...] * jnp.exp(0.5 * lv)


# ----------------------------------------------------------------------------
# Matmul wrappers
# ----------------------------------------------------------------------------
def matmul_bias_act(x, w, b, *, relu, out_dtype):
    """x: (M, K) bf16, w: (K, N) bf16, b: (1, N) f32 -> (M, N) out_dtype."""
    M, K = x.shape
    Kw, N = w.shape
    assert K == Kw

    Mp = _round_up(M, 16)  # bf16 packs 16 rows per sublane group
    if Mp != M:
        x = jnp.pad(x, ((0, Mp - M), (0, 0)))

    tn = _pick_tn(N, Mp)
    tm = _pick_tm(Mp, N // tn)
    grid = (Mp // tm, N // tn)

    cost = pl.CostEstimate(
        flops=2 * Mp * N * K,
        transcendentals=0,
        bytes_accessed=int(Mp * K * 2 + K * N * 2 + N * 4
                           + Mp * N * jnp.dtype(out_dtype).itemsize),
    )

    out = pl.pallas_call(
        functools.partial(_matmul_bias_act_kernel, apply_relu=relu),
        out_shape=jax.ShapeDtypeStruct((Mp, N), out_dtype),
        grid=grid,
        in_specs=[
            pl.BlockSpec((tm, K), lambda i, j: (i, 0)),
            pl.BlockSpec((K, tn), lambda i, j: (0, j)),
            pl.BlockSpec((1, tn), lambda i, j: (0, j)),
        ],
        out_specs=pl.BlockSpec((tm, tn), lambda i, j: (i, j)),
        compiler_params=pltpu.CompilerParams(
            dimension_semantics=("parallel", "parallel")
        ),
        cost_estimate=cost,
    )(x, w, b)

    return out[:M] if Mp != M else out


# ----------------------------------------------------------------------------
# im2col (NHWC) + layer wrappers
# ----------------------------------------------------------------------------
def _im2col_nhwc(x, k, stride, pad):
    """x: (B, H, W, C) -> patches (B*Ho*Wo, k*k*C); patch order = (ki, kj, c)."""
    B, H, W, C = x.shape
    Ho = (H + 2 * pad - k) // stride + 1
    Wo = (W + 2 * pad - k) // stride + 1
    xp = jnp.pad(x, ((0, 0), (pad, pad), (pad, pad), (0, 0)))
    slabs = []
    for i in range(k):
        for j in range(k):
            slabs.append(
                xp[:, i : i + Ho * stride : stride, j : j + Wo * stride : stride, :]
            )
    cols = jnp.concatenate(slabs, axis=-1)  # (B, Ho, Wo, k*k*C)
    return cols.reshape(B * Ho * Wo, k * k * C), Ho, Wo


def conv_layer(x_nhwc, p, *, k, stride, pad, relu):
    """Conv2d(+ReLU) in NHWC; returns NHWC bf16 activations."""
    B = x_nhwc.shape[0]
    cols, Ho, Wo = _im2col_nhwc(x_nhwc, k, stride, pad)
    Kp = p["w"].shape[0]
    if cols.shape[1] != Kp:  # conv0: K padded 48 -> 128 for lane alignment
        cols = jnp.pad(cols, ((0, 0), (0, Kp - cols.shape[1])))
    out = matmul_bias_act(cols.astype(jnp.bfloat16), p["w"], p["b"],
                          relu=relu, out_dtype=jnp.bfloat16)
    return out.reshape(B, Ho, Wo, -1)


def heads_reparam(h_nhwc, p_heads, eps, *, latent_dim):
    """Merged fc_mu + fc_logvar (3x3, s=1, p=1 convs) + reparameterization.

    h_nhwc: (B, Ho, Wo, C) bf16; eps: (B*Ho*Wo, latent_dim) f32 ~ N(0,1).
    Returns (z, mu, logvar), each (B*Ho*Wo, latent_dim) f32.
    """
    cols, _, _ = _im2col_nhwc(h_nhwc, 3, 1, 1)
    cols = cols.astype(jnp.bfloat16)
    M, K = cols.shape
    w, b = p_heads["w"], p_heads["b"]  # (K, 2*128) bf16, (1, 2*128) f32

    Mp = _round_up(M, 16)
    if Mp != M:
        cols = jnp.pad(cols, ((0, Mp - M), (0, 0)))
    eps_p = jnp.zeros((Mp, _HEAD_NP), jnp.float32).at[:M, :latent_dim].set(eps)

    # N (256 = mu|logvar) must stay whole so the epilogue sees both halves;
    # split M into >=2 tiles instead for v7x megacore occupancy.
    tm = _pick_tm(Mp, 1)
    grid = (Mp // tm,)

    cost = pl.CostEstimate(
        flops=2 * Mp * (2 * _HEAD_NP) * K + 6 * Mp * _HEAD_NP,
        transcendentals=Mp * _HEAD_NP,
        bytes_accessed=int(Mp * K * 2 + K * 2 * _HEAD_NP * 2 + 2 * _HEAD_NP * 4
                           + 4 * Mp * _HEAD_NP * 4),
    )

    z, mu, lv = pl.pallas_call(
        _head_reparam_kernel,
        out_shape=tuple(
            jax.ShapeDtypeStruct((Mp, _HEAD_NP), jnp.float32) for _ in range(3)
        ),
        grid=grid,
        in_specs=[
            pl.BlockSpec((tm, K), lambda i: (i, 0)),
            pl.BlockSpec((K, 2 * _HEAD_NP), lambda i: (0, 0)),
            pl.BlockSpec((1, 2 * _HEAD_NP), lambda i: (0, 0)),
            pl.BlockSpec((tm, _HEAD_NP), lambda i: (i, 0)),
        ],
        out_specs=tuple(
            pl.BlockSpec((tm, _HEAD_NP), lambda i: (i, 0)) for _ in range(3)
        ),
        compiler_params=pltpu.CompilerParams(
            dimension_semantics=("parallel",)
        ),
        cost_estimate=cost,
    )(cols, w, b, eps_p)

    return (z[:M, :latent_dim], mu[:M, :latent_dim], lv[:M, :latent_dim])


# ----------------------------------------------------------------------------
# Parameters (PyTorch layout) + one-time matmul-layout prep
# ----------------------------------------------------------------------------
def init_encoder_params(key, in_channels=3, latent_dim=4):
    """Deterministic init matching the PyTorch module's parameter shapes."""
    specs = [
        ("conv0", 64, in_channels, 4),
        ("conv1", 128, 64, 4),
        ("conv2", 256, 128, 4),
        ("conv3", 512, 256, 4),
        ("fc_mu", latent_dim, 512, 3),
        ("fc_logvar", latent_dim, 512, 3),
    ]
    params = {}
    for name, out_c, in_c, k in specs:
        key, kw_, kb_ = jax.random.split(key, 3)
        fan_in = in_c * k * k
        scale = 1.0 / jnp.sqrt(jnp.float32(fan_in))
        params[name] = {
            "w": jax.random.uniform(
                kw_, (out_c, in_c, k, k), jnp.float32, -scale, scale
            ),
            "b": jax.random.uniform(kb_, (out_c,), jnp.float32, -scale, scale),
        }
    return params


def _conv_w_to_matmul(w):
    """(O, C, kh, kw) -> (kh*kw*C, O), matching the (ki, kj, c) im2col order."""
    O, C, kh, kw = w.shape
    return w.transpose(0, 2, 3, 1).reshape(O, kh * kw * C).T


def prepare_encoder_params(raw):
    """One-time weight prep, hoisted out of the forward pass:
      * conv weights -> matmul layout, K zero-padded to a multiple of 128,
        cast to bf16; biases as (1, N) f32.
      * fc_mu / fc_logvar padded to 128 lanes each and CONCATENATED along N
        into one (K, 256) weight / (1, 256) bias for the merged head kernel.
    """
    prepped = {}
    for name in ("conv0", "conv1", "conv2", "conv3"):
        w, b = raw[name]["w"], raw[name]["b"]
        wm = _conv_w_to_matmul(w)
        K = wm.shape[0]
        Kp = _round_up(K, 128)
        if Kp != K:
            wm = jnp.pad(wm, ((0, Kp - K), (0, 0)))
        prepped[name] = {
            "w": wm.astype(jnp.bfloat16),
            "b": b.reshape(1, -1).astype(jnp.float32),
        }

    def _head(name):
        wm = _conv_w_to_matmul(raw[name]["w"]).astype(jnp.float32)  # (K, L)
        K, L = wm.shape
        wp = jnp.zeros((K, _HEAD_NP), jnp.float32).at[:, :L].set(wm)
        bp = jnp.zeros((1, _HEAD_NP), jnp.float32).at[:, :L].set(
            raw[name]["b"].reshape(1, -1).astype(jnp.float32)
        )
        return wp, bp

    wmu, bmu = _head("fc_mu")
    wlv, blv = _head("fc_logvar")
    prepped["heads"] = {
        "w": jnp.concatenate([wmu, wlv], axis=1).astype(jnp.bfloat16),
        "b": jnp.concatenate([bmu, blv], axis=1),
    }
    return prepped


# ----------------------------------------------------------------------------
# Encoder forward
# ----------------------------------------------------------------------------
def encoder_forward(params, x_nchw, eps_key, *, latent_dim=4):
    # NCHW -> NHWC exactly once; bf16 MXU inputs throughout.
    x = jnp.transpose(x_nchw, (0, 2, 3, 1)).astype(jnp.bfloat16)

    h = conv_layer(x, params["conv0"], k=4, stride=2, pad=1, relu=True)
    h = conv_layer(h, params["conv1"], k=4, stride=2, pad=1, relu=True)
    h = conv_layer(h, params["conv2"], k=4, stride=2, pad=1, relu=True)
    h = conv_layer(h, params["conv3"], k=4, stride=2, pad=1, relu=True)

    B, Ho, Wo, _ = h.shape
    # eps ~ N(0,1), like torch.randn_like(std); generated outside the kernel.
    eps = jax.random.normal(eps_key, (B * Ho * Wo, latent_dim), jnp.float32)
    z, mu, logvar = heads_reparam(h, params["heads"], eps, latent_dim=latent_dim)

    def to_nchw(a):
        return a.reshape(B, Ho, Wo, latent_dim).transpose(0, 3, 1, 2)

    return to_nchw(z), to_nchw(mu), to_nchw(logvar)


# ----------------------------------------------------------------------------
# Pure-JAX f32 reference (for a loose numerical sanity check)
# ----------------------------------------------------------------------------
def _ref_conv(x, w, b, stride, pad):
    y = jax.lax.conv_general_dilated(
        x, w, window_strides=(stride, stride),
        padding=((pad, pad), (pad, pad)),
        dimension_numbers=("NCHW", "OIHW", "NCHW"))
    return y + b.reshape(1, -1, 1, 1)


def encoder_reference_mu_logvar(raw, x):
    h = x
    for name in ("conv0", "conv1", "conv2", "conv3"):
        h = jax.nn.relu(_ref_conv(h, raw[name]["w"], raw[name]["b"], 2, 1))
    mu = _ref_conv(h, raw["fc_mu"]["w"], raw["fc_mu"]["b"], 1, 1)
    lv = _ref_conv(h, raw["fc_logvar"]["w"], raw["fc_logvar"]["b"], 1, 1)
    return mu, lv


if __name__ == "__main__":
    key = jax.random.PRNGKey(0)
    k_param, k_input, k_eps = jax.random.split(key, 3)

    in_channels, latent_dim = 3, 4
    B, H, W = 2, 32, 32  # 4 stride-2 convs -> 2x2 latent feature map

    raw_params = init_encoder_params(k_param, in_channels, latent_dim)
    params = prepare_encoder_params(raw_params)  # hoisted weight prep
    x = jax.random.normal(k_input, (B, in_channels, H, W), jnp.float32)

    fwd = jax.jit(functools.partial(encoder_forward, latent_dim=latent_dim))
    z, mu, logvar = fwd(params, x, k_eps)
    jax.block_until_ready((z, mu, logvar))

    assert z.shape == (B, latent_dim, H // 16, W // 16)
    assert mu.shape == z.shape and logvar.shape == z.shape
    assert bool(jnp.all(jnp.isfinite(z))) and bool(jnp.all(jnp.isfinite(mu)))

    # Loose check against an f32 XLA reference (bf16 MXU inputs / bf16
    # inter-layer activations cause a small, expected deviation).
    mu_ref, lv_ref = encoder_reference_mu_logvar(raw_params, x)

    def rel_err(a, b):
        a = a.astype(jnp.float32)
        b = b.astype(jnp.float32)
        return float(jnp.linalg.norm(a - b) / (jnp.linalg.norm(b) + 1e-12))

    assert rel_err(mu, mu_ref) < 0.2, ("mu rel err", rel_err(mu, mu_ref))
    assert rel_err(logvar, lv_ref) < 0.2, ("logvar rel err", rel_err(logvar, lv_ref))

    print("KERNEL_OK")
</pallas_src>

<mosaic_0001>
module attributes {stable_mosaic.version = 11 : i64} {
  func.func @_matmul_bias_act_kernel(%arg0: i32, %arg1: i32, %arg2: memref<256x128xbf16, #tpu.memory_space<vmem>>, %arg3: memref<128x64xbf16, #tpu.memory_space<vmem>>, %arg4: memref<1x64xf32, #tpu.memory_space<vmem>>, %arg5: memref<256x64xbf16, #tpu.memory_space<vmem>>) attributes {dimension_semantics = [#tpu.dimension_semantics<parallel>, #tpu.dimension_semantics<parallel>], iteration_bounds = array<i64: 2, 1>, scalar_prefetch = 0 : i64, scratch_operands = 0 : i64, tpu.core_type = #tpu.core_type<tc>, window_params = [{transform_indices = @transform_0, window_bounds = array<i64: 256, 128>}, {transform_indices = @transform_1, window_bounds = array<i64: 128, 64>}, {transform_indices = @transform_2, window_bounds = array<i64: 1, 64>}, {transform_indices = @transform_3, window_bounds = array<i64: 256, 64>}]} {
    %c0 = arith.constant 0 : index
    %c0_0 = arith.constant 0 : index
    %0 = vector.load %arg2[%c0, %c0_0] : memref<256x128xbf16, #tpu.memory_space<vmem>>, vector<256x128xbf16>
    %c0_1 = arith.constant 0 : index
    %c0_2 = arith.constant 0 : index
    %1 = vector.load %arg3[%c0_1, %c0_2] : memref<128x64xbf16, #tpu.memory_space<vmem>>, vector<128x64xbf16>
    %cst = arith.constant dense<0.000000e+00> : vector<256x64xf32>
    %2 = tpu.matmul %0, %1, %cst {dimension_numbers = #tpu.dot_dimension_numbers<[1], [0], [0], [1], [0, 0, 1, 1], [], []>} : vector<256x128xbf16>, vector<128x64xbf16>, vector<256x64xf32> -> vector<256x64xf32>
    %c0_3 = arith.constant 0 : index
    %c0_4 = arith.constant 0 : index
    %3 = vector.load %arg4[%c0_3, %c0_4] : memref<1x64xf32, #tpu.memory_space<vmem>>, vector<1x64xf32>
    %4 = vector.broadcast %3 : vector<1x64xf32> to vector<256x64xf32>
    %5 = arith.addf %2, %4 : vector<256x64xf32>
    %cst_5 = arith.constant 0.000000e+00 : f32
    %6 = vector.broadcast %cst_5 : f32 to vector<256x64xf32>
    %7 = arith.maximumf %5, %6 : vector<256x64xf32>
    %8 = arith.truncf %7 : vector<256x64xf32> to vector<256x64xbf16>
    %c0_6 = arith.constant 0 : index
    %c0_7 = arith.constant 0 : index
    %9 = vector.load %arg5[%c0_6, %c0_7] : memref<256x64xbf16, #tpu.memory_space<vmem>>, vector<256x64xbf16>
    tpu.vector_store %arg5[%c0_6, %c0_7], %8 {strides = array<i32>} : memref<256x64xbf16, #tpu.memory_space<vmem>>, vector<256x64xbf16>,
    return
  }
  func.func @transform_0(%arg0: i32, %arg1: i32) -> (i32, i32) {
    %c0_i32 = arith.constant 0 : i32
    %c0_i32_0 = arith.constant 0 : i32
    return %arg0, %c0_i32 : i32, i32
  }
  func.func @transform_1(%arg0: i32, %arg1: i32) -> (i32, i32) {
    %c0_i32 = arith.constant 0 : i32
    %c0_i32_0 = arith.constant 0 : i32
    return %c0_i32, %arg1 : i32, i32
  }
  func.func @transform_2(%arg0: i32, %arg1: i32) -> (i32, i32) {
    %c0_i32 = arith.constant 0 : i32
    %c0_i32_0 = arith.constant 0 : i32
    return %c0_i32, %arg1 : i32, i32
  }
  func.func @transform_3(%arg0: i32, %arg1: i32) -> (i32, i32) {
    %c0_i32 = arith.constant 0 : i32
    return %arg0, %arg1 : i32, i32
  }
}

module attributes {stable_mosaic.version = 11 : i64} {
  func.func @_matmul_bias_act_kernel(%arg0: i32, %arg1: i32, %arg2: memref<64x1024xbf16, #tpu.memory_space<vmem>>, %arg3: memref<1024x128xbf16, #tpu.memory_space<vmem>>, %arg4: memref<1x128xf32, #tpu.memory_space<vmem>>, %arg5: memref<64x128xbf16, #tpu.memory_space<vmem>>) attributes {dimension_semantics = [#tpu.dimension_semantics<parallel>, #tpu.dimension_semantics<parallel>], iteration_bounds = array<i64: 2, 1>, scalar_prefetch = 0 : i64, scratch_operands = 0 : i64, tpu.core_type = #tpu.core_type<tc>, window_params = [{transform_indices = @transform_0, window_bounds = array<i64: 64, 1024>}, {transform_indices = @transform_1, window_bounds = array<i64: 1024, 128>}, {transform_indices = @transform_2, window_bounds = array<i64: 1, 128>}, {transform_indices = @transform_3, window_bounds = array<i64: 64, 128>}]} {
    %c0 = arith.constant 0 : index
    %c0_0 = arith.constant 0 : index
    %0 = vector.load %arg2[%c0, %c0_0] : memref<64x1024xbf16, #tpu.memory_space<vmem>>, vector<64x1024xbf16>
    %c0_1 = arith.constant 0 : index
    %c0_2 = arith.constant 0 : index
    %1 = vector.load %arg3[%c0_1, %c0_2] : memref<1024x128xbf16, #tpu.memory_space<vmem>>, vector<1024x128xbf16>
    %cst = arith.constant dense<0.000000e+00> : vector<64x128xf32>
    %2 = tpu.matmul %0, %1, %cst {dimension_numbers = #tpu.dot_dimension_numbers<[1], [0], [0], [1], [0, 0, 1, 1], [], []>} : vector<64x1024xbf16>, vector<1024x128xbf16>, vector<64x128xf32> -> vector<64x128xf32>
    %c0_3 = arith.constant 0 : index
    %c0_4 = arith.constant 0 : index
    %3 = vector.load %arg4[%c0_3, %c0_4] : memref<1x128xf32, #tpu.memory_space<vmem>>, vector<1x128xf32>
    %4 = vector.broadcast %3 : vector<1x128xf32> to vector<64x128xf32>
    %5 = arith.addf %2, %4 : vector<64x128xf32>
    %cst_5 = arith.constant 0.000000e+00 : f32
    %6 = vector.broadcast %cst_5 : f32 to vector<64x128xf32>
    %7 = arith.maximumf %5, %6 : vector<64x128xf32>
    %8 = arith.truncf %7 : vector<64x128xf32> to vector<64x128xbf16>
    %c0_6 = arith.constant 0 : index
    %c0_7 = arith.constant 0 : index
    %9 = vector.load %arg5[%c0_6, %c0_7] : memref<64x128xbf16, #tpu.memory_space<vmem>>, vector<64x128xbf16>
    tpu.vector_store %arg5[%c0_6, %c0_7], %8 {strides = array<i32>} : memref<64x128xbf16, #tpu.memory_space<vmem>>, vector<64x128xbf16>,
    return
  }
  func.func @transform_0(%arg0: i32, %arg1: i32) -> (i32, i32) {
    %c0_i32 = arith.constant 0 : i32
    %c0_i32_0 = arith.constant 0 : i32
    return %arg0, %c0_i32 : i32, i32
  }
  func.func @transform_1(%arg0: i32, %arg1: i32) -> (i32, i32) {
    %c0_i32 = arith.constant 0 : i32
    %c0_i32_0 = arith.constant 0 : i32
    return %c0_i32, %arg1 : i32, i32
  }
  func.func @transform_2(%arg0: i32, %arg1: i32) -> (i32, i32) {
    %c0_i32 = arith.constant 0 : i32
    %c0_i32_0 = arith.constant 0 : i32
    return %c0_i32, %arg1 : i32, i32
  }
  func.func @transform_3(%arg0: i32, %arg1: i32) -> (i32, i32) {
    %c0_i32 = arith.constant 0 : i32
    return %arg0, %arg1 : i32, i32
  }
}

module attributes {stable_mosaic.version = 11 : i64} {
  func.func @_matmul_bias_act_kernel(%arg0: i32, %arg1: i32, %arg2: memref<32x2048xbf16, #tpu.memory_space<vmem>>, %arg3: memref<2048x128xbf16, #tpu.memory_space<vmem>>, %arg4: memref<1x128xf32, #tpu.memory_space<vmem>>, %arg5: memref<32x128xbf16, #tpu.memory_space<vmem>>) attributes {dimension_semantics = [#tpu.dimension_semantics<parallel>, #tpu.dimension_semantics<parallel>], iteration_bounds = array<i64: 1, 2>, scalar_prefetch = 0 : i64, scratch_operands = 0 : i64, tpu.core_type = #tpu.core_type<tc>, window_params = [{transform_indices = @transform_0, window_bounds = array<i64: 32, 2048>}, {transform_indices = @transform_1, window_bounds = array<i64: 2048, 128>}, {transform_indices = @transform_2, window_bounds = array<i64: 1, 128>}, {transform_indices = @transform_3, window_bounds = array<i64: 32, 128>}]} {
    %c0 = arith.constant 0 : index
    %c0_0 = arith.constant 0 : index
    %0 = vector.load %arg2[%c0, %c0_0] : memref<32x2048xbf16, #tpu.memory_space<vmem>>, vector<32x2048xbf16>
    %c0_1 = arith.constant 0 : index
    %c0_2 = arith.constant 0 : index
    %1 = vector.load %arg3[%c0_1, %c0_2] : memref<2048x128xbf16, #tpu.memory_space<vmem>>, vector<2048x128xbf16>
    %cst = arith.constant dense<0.000000e+00> : vector<32x128xf32>
    %2 = tpu.matmul %0, %1, %cst {dimension_numbers = #tpu.dot_dimension_numbers<[1], [0], [0], [1], [0, 0, 1, 1], [], []>} : vector<32x2048xbf16>, vector<2048x128xbf16>, vector<32x128xf32> -> vector<32x128xf32>
    %c0_3 = arith.constant 0 : index
    %c0_4 = arith.constant 0 : index
    %3 = vector.load %arg4[%c0_3, %c0_4] : memref<1x128xf32, #tpu.memory_space<vmem>>, vector<1x128xf32>
    %4 = vector.broadcast %3 : vector<1x128xf32> to vector<32x128xf32>
    %5 = arith.addf %2, %4 : vector<32x128xf32>
    %cst_5 = arith.constant 0.000000e+00 : f32
    %6 = vector.broadcast %cst_5 : f32 to vector<32x128xf32>
    %7 = arith.maximumf %5, %6 : vector<32x128xf32>
    %8 = arith.truncf %7 : vector<32x128xf32> to vector<32x128xbf16>
    %c0_6 = arith.constant 0 : index
    %c0_7 = arith.constant 0 : index
    %9 = vector.load %arg5[%c0_6, %c0_7] : memref<32x128xbf16, #tpu.memory_space<vmem>>, vector<32x128xbf16>
    tpu.vector_store %arg5[%c0_6, %c0_7], %8 {strides = array<i32>} : memref<32x128xbf16, #tpu.memory_space<vmem>>, vector<32x128xbf16>,
    return
  }
  func.func @transform_0(%arg0: i32, %arg1: i32) -> (i32, i32) {
    %c0_i32 = arith.constant 0 : i32
    %c0_i32_0 = arith.constant 0 : i32
    return %arg0, %c0_i32 : i32, i32
  }
  func.func @transform_1(%arg0: i32, %arg1: i32) -> (i32, i32) {
    %c0_i32 = arith.constant 0 : i32
    %c0_i32_0 = arith.constant 0 : i32
    return %c0_i32, %arg1 : i32, i32
  }
  func.func @transform_2(%arg0: i32, %arg1: i32) -> (i32, i32) {
    %c0_i32 = arith.constant 0 : i32
    %c0_i32_0 = arith.constant 0 : i32
    return %c0_i32, %arg1 : i32, i32
  }
  func.func @transform_3(%arg0: i32, %arg1: i32) -> (i32, i32) {
    %c0_i32 = arith.constant 0 : i32
    return %arg0, %arg1 : i32, i32
  }
}

module attributes {stable_mosaic.version = 11 : i64} {
  func.func @_matmul_bias_act_kernel(%arg0: i32, %arg1: i32, %arg2: memref<16x4096xbf16, #tpu.memory_space<vmem>>, %arg3: memref<4096x128xbf16, #tpu.memory_space<vmem>>, %arg4: memref<1x128xf32, #tpu.memory_space<vmem>>, %arg5: memref<16x128xbf16, #tpu.memory_space<vmem>>) attributes {dimension_semantics = [#tpu.dimension_semantics<parallel>, #tpu.dimension_semantics<parallel>], iteration_bounds = array<i64: 1, 4>, scalar_prefetch = 0 : i64, scratch_operands = 0 : i64, tpu.core_type = #tpu.core_type<tc>, window_params = [{transform_indices = @transform_0, window_bounds = array<i64: 16, 4096>}, {transform_indices = @transform_1, window_bounds = array<i64: 4096, 128>}, {transform_indices = @transform_2, window_bounds = array<i64: 1, 128>}, {transform_indices = @transform_3, window_bounds = array<i64: 16, 128>}]} {
    %c0 = arith.constant 0 : index
    %c0_0 = arith.constant 0 : index
    %0 = vector.load %arg2[%c0, %c0_0] : memref<16x4096xbf16, #tpu.memory_space<vmem>>, vector<16x4096xbf16>
    %c0_1 = arith.constant 0 : index
    %c0_2 = arith.constant 0 : index
    %1 = vector.load %arg3[%c0_1, %c0_2] : memref<4096x128xbf16, #tpu.memory_space<vmem>>, vector<4096x128xbf16>
    %cst = arith.constant dense<0.000000e+00> : vector<16x128xf32>
    %2 = tpu.matmul %0, %1, %cst {dimension_numbers = #tpu.dot_dimension_numbers<[1], [0], [0], [1], [0, 0, 1, 1], [], []>} : vector<16x4096xbf16>, vector<4096x128xbf16>, vector<16x128xf32> -> vector<16x128xf32>
    %c0_3 = arith.constant 0 : index
    %c0_4 = arith.constant 0 : index
    %3 = vector.load %arg4[%c0_3, %c0_4] : memref<1x128xf32, #tpu.memory_space<vmem>>, vector<1x128xf32>
    %4 = vector.broadcast %3 : vector<1x128xf32> to vector<16x128xf32>
    %5 = arith.addf %2, %4 : vector<16x128xf32>
    %cst_5 = arith.constant 0.000000e+00 : f32
    %6 = vector.broadcast %cst_5 : f32 to vector<16x128xf32>
    %7 = arith.maximumf %5, %6 : vector<16x128xf32>
    %8 = arith.truncf %7 : vector<16x128xf32> to vector<16x128xbf16>
    %c0_6 = arith.constant 0 : index
    %c0_7 = arith.constant 0 : index
    %9 = vector.load %arg5[%c0_6, %c0_7] : memref<16x128xbf16, #tpu.memory_space<vmem>>, vector<16x128xbf16>
    tpu.vector_store %arg5[%c0_6, %c0_7], %8 {strides = array<i32>} : memref<16x128xbf16, #tpu.memory_space<vmem>>, vector<16x128xbf16>,
    return
  }
  func.func @transform_0(%arg0: i32, %arg1: i32) -> (i32, i32) {
    %c0_i32 = arith.constant 0 : i32
    %c0_i32_0 = arith.constant 0 : i32
    return %arg0, %c0_i32 : i32, i32
  }
  func.func @transform_1(%arg0: i32, %arg1: i32) -> (i32, i32) {
    %c0_i32 = arith.constant 0 : i32
    %c0_i32_0 = arith.constant 0 : i32
    return %c0_i32, %arg1 : i32, i32
  }
  func.func @transform_2(%arg0: i32, %arg1: i32) -> (i32, i32) {
    %c0_i32 = arith.constant 0 : i32
    %c0_i32_0 = arith.constant 0 : i32
    return %c0_i32, %arg1 : i32, i32
  }
  func.func @transform_3(%arg0: i32, %arg1: i32) -> (i32, i32) {
    %c0_i32 = arith.constant 0 : i32
    return %arg0, %arg1 : i32, i32
  }
}

module attributes {stable_mosaic.version = 11 : i64} {
  func.func @_head_reparam_kernel(%arg0: i32, %arg1: memref<8x4608xbf16, #tpu.memory_space<vmem>>, %arg2: memref<4608x256xbf16, #tpu.memory_space<vmem>>, %arg3: memref<1x256xf32, #tpu.memory_space<vmem>>, %arg4: memref<8x128xf32, #tpu.memory_space<vmem>>, %arg5: memref<8x128xf32, #tpu.memory_space<vmem>>, %arg6: memref<8x128xf32, #tpu.memory_space<vmem>>, %arg7: memref<8x128xf32, #tpu.memory_space<vmem>>) attributes {dimension_semantics = [#tpu.dimension_semantics<parallel>], iteration_bounds = array<i64: 2>, scalar_prefetch = 0 : i64, scratch_operands = 0 : i64, tpu.core_type = #tpu.core_type<tc>, window_params = [{transform_indices = @transform_0, window_bounds = array<i64: 8, 4608>}, {pipeline_mode = #tpu.pipeline_mode<synchronous>, transform_indices = @transform_1, window_bounds = array<i64: 4608, 256>}, {pipeline_mode = #tpu.pipeline_mode<synchronous>, transform_indices = @transform_2, window_bounds = array<i64: 1, 256>}, {transform_indices = @transform_3, window_bounds = array<i64: 8, 128>}, {transform_indices = @transform_4, window_bounds = array<i64: 8, 128>}, {transform_indices = @transform_5, window_bounds = array<i64: 8, 128>}, {transform_indices = @transform_6, window_bounds = array<i64: 8, 128>}]} {
    %c0 = arith.constant 0 : index
    %c0_0 = arith.constant 0 : index
    %0 = vector.load %arg1[%c0, %c0_0] : memref<8x4608xbf16, #tpu.memory_space<vmem>>, vector<8x4608xbf16>
    %c0_1 = arith.constant 0 : index
    %c0_2 = arith.constant 0 : index
    %1 = vector.load %arg2[%c0_1, %c0_2] : memref<4608x256xbf16, #tpu.memory_space<vmem>>, vector<4608x256xbf16>
    %cst = arith.constant dense<0.000000e+00> : vector<8x256xf32>
    %2 = tpu.matmul %0, %1, %cst {dimension_numbers = #tpu.dot_dimension_numbers<[1], [0], [0], [1], [0, 0, 1, 1], [], []>} : vector<8x4608xbf16>, vector<4608x256xbf16>, vector<8x256xf32> -> vector<8x256xf32>
    %c0_3 = arith.constant 0 : index
    %c0_4 = arith.constant 0 : index
    %3 = vector.load %arg3[%c0_3, %c0_4] : memref<1x256xf32, #tpu.memory_space<vmem>>, vector<1x256xf32>
    %4 = vector.broadcast %3 : vector<1x256xf32> to vector<8x256xf32>
    %5 = arith.addf %2, %4 : vector<8x256xf32>
    %6 = vector.extract_strided_slice %5 {offsets = [0, 0], sizes = [8, 128], strides = [1, 1]} : vector<8x256xf32> to vector<8x128xf32>
    %7 = vector.extract_strided_slice %5 {offsets = [0, 128], sizes = [8, 128], strides = [1, 1]} : vector<8x256xf32> to vector<8x128xf32>
    %c0_5 = arith.constant 0 : index
    %c0_6 = arith.constant 0 : index
    %8 = vector.load %arg6[%c0_5, %c0_6] : memref<8x128xf32, #tpu.memory_space<vmem>>, vector<8x128xf32>
    tpu.vector_store %arg6[%c0_5, %c0_6], %6 {strides = array<i32>} : memref<8x128xf32, #tpu.memory_space<vmem>>, vector<8x128xf32>,
    %c0_7 = arith.constant 0 : index
    %c0_8 = arith.constant 0 : index
    %9 = vector.load %arg7[%c0_7, %c0_8] : memref<8x128xf32, #tpu.memory_space<vmem>>, vector<8x128xf32>
    tpu.vector_store %arg7[%c0_7, %c0_8], %7 {strides = array<i32>} : memref<8x128xf32, #tpu.memory_space<vmem>>, vector<8x128xf32>,
    %c0_9 = arith.constant 0 : index
    %c0_10 = arith.constant 0 : index
    %10 = vector.load %arg4[%c0_9, %c0_10] : memref<8x128xf32, #tpu.memory_space<vmem>>, vector<8x128xf32>
    %cst_11 = arith.constant 5.000000e-01 : f32
    %11 = vector.broadcast %cst_11 : f32 to vector<8x128xf32>
    %12 = arith.mulf %11, %7 : vector<8x128xf32>
    %13 = math.exp %12 : vector<8x128xf32>
    %14 = arith.mulf %10, %13 : vector<8x128xf32>
    %15 = arith.addf %6, %14 : vector<8x128xf32>
    %c0_12 = arith.constant 0 : index
    %c0_13 = arith.constant 0 : index
    %16 = vector.load %arg5[%c0_12, %c0_13] : memref<8x128xf32, #tpu.memory_space<vmem>>, vector<8x128xf32>
    tpu.vector_store %arg5[%c0_12, %c0_13], %15 {strides = array<i32>} : memref<8x128xf32, #tpu.memory_space<vmem>>, vector<8x128xf32>,
    return
  }
  func.func @transform_0(%arg0: i32) -> (i32, i32) {
    %c0_i32 = arith.constant 0 : i32
    %c0_i32_0 = arith.constant 0 : i32
    return %arg0, %c0_i32 : i32, i32
  }
  func.func @transform_1(%arg0: i32) -> (i32, i32) {
    %c0_i32 = arith.constant 0 : i32
    %c0_i32_0 = arith.constant 0 : i32
    %c0_i32_1 = arith.constant 0 : i32
    return %c0_i32, %c0_i32_0 : i32, i32
  }
  func.func @transform_2(%arg0: i32) -> (i32, i32) {
    %c0_i32 = arith.constant 0 : i32
    %c0_i32_0 = arith.constant 0 : i32
    %c0_i32_1 = arith.constant 0 : i32
    return %c0_i32, %c0_i32_0 : i32, i32
  }
  func.func @transform_3(%arg0: i32) -> (i32, i32) {
    %c0_i32 = arith.constant 0 : i32
    %c0_i32_0 = arith.constant 0 : i32
    return %arg0, %c0_i32 : i32, i32
  }
  func.func @transform_4(%arg0: i32) -> (i32, i32) {
    %c0_i32 = arith.constant 0 : i32
    %c0_i32_0 = arith.constant 0 : i32
    return %arg0, %c0_i32 : i32, i32
  }
  func.func @transform_5(%arg0: i32) -> (i32, i32) {
    %c0_i32 = arith.constant 0 : i32
    %c0_i32_0 = arith.constant 0 : i32
    return %arg0, %c0_i32 : i32, i32
  }
  func.func @transform_6(%arg0: i32) -> (i32, i32) {
    %c0_i32 = arith.constant 0 : i32
    %c0_i32_0 = arith.constant 0 : i32
    return %arg0, %c0_i32 : i32, i32
  }
}

</mosaic_0001>

<bundles_post_ra>
// kernel: encoder_forward.5
= control target key start
LH: loop header
LB: loop body
LE: loop exit
PB: predicated region body
PF: predicated region fallthrough
CT: control target
= control target key end

     0   :  { %s1163_s12 = smov 0   ;;  %s1165_s13 = smov 0   ;;  %s1348_s0 = inlined_call_operand.vmem [shape: bf16[512,128], index: 0, kind: input, shape index: {}]   ;;  %s1349_s1 = inlined_call_operand.vmem [shape: bf16[128,64], index: 1, kind: input, shape index: {}]   ;;  %s1350_s2 = inlined_call_operand.vmem [shape: f32[1,64], index: 2, kind: input, shape index: {}]   ;;  %s1351_s3 = inlined_call_operand.vmem [shape: bf16[512,64], index: 3, kind: output, shape index: {}]  }
   0x1   :  { %s1167_s14 = smov 0  }
   0x2 LB: > { %s25_s15 = sadd.s32 1, %s1137_s13  ;;  %p887_p0 = scmp.ge.s32.totalorder %s1141_s14, 1  ;;  %s1141_s14 = sphi %s1167_s14, %s13_s14   ;;  %s1137_s13 = sphi %s1165_s13, %s1353_s13   ;;  %s1133_s12 = sphi %s1163_s12, %s1352_s12  }
   0x3   : > { %p27_p1 = scmp.ge.s32.totalorder %s25_s15, 2  ;;  %p169_p2 = scmp.lt.s32.totalorder %s1141_s14, 3 }
   0x5   : > { %s1355_s15 = smov (%p27_p1, %s25_s15), 0  ;;  %p170_p3 = pnand %p887_p0, %p169_p2 }
   0x6   : > { %v1095_v0 = vld [vmem:[%s1349_s1] sm:$0xff] (!%p170_p3)   ;;  %s888_s18 = sshll.u32 (!%p170_p3), %s1133_s12, 5  ;;  %v1096_v1 = vld [vmem:[%s1349_s1 + $0x8] sm:$0xff] (!%p170_p3)   ;;  %v1097_v2 = vld [vmem:[%s1349_s1 + $0x10] sm:$0xff] (!%p170_p3)   ;;  %vm746_vm0 = vcmask (!%p170_p3), 519168  }
   0x7   : > { %173 = sbr.rel (%p170_p3) target bundleno = 285 (0x11d), region = 32  ;;  %p204_p4 = scmp.lt.s32.totalorder (!%p170_p3), %s888_s18, 63  ;;  %1007 = vmatprep.subr.bf16.mxu0 (!%p170_p3), %v1095_v0  ;;  %1055 = vmatprep.subr.bf16.mxu1 (!%p170_p3), %v1095_v0  ;;  %v1098_v3 = vld [vmem:[%s1349_s1 + $0x18] sm:$0xff] (!%p170_p3)   ;;  %v1099_v6 = vld [vmem:[%s1349_s1 + $0x20] sm:$0xff] (!%p170_p3)   ;;  %v1100_v7 = vld [vmem:[%s1349_s1 + $0x28] sm:$0xff] (!%p170_p3)  }
   0x8   : > { %1008 = vmatpush3.bf16.msra.mxu0 (!%p170_p3), %v1095_v0  ;;  %1063 = vmatpush3.bf16.msra.mxu1 (!%p170_p3), %v1095_v0  ;;  %v1101_v8 = vld [vmem:[%s1349_s1 + $0x30] sm:$0xff] (!%p170_p3)   ;;  %v1102_v9 = vld [vmem:[%s1349_s1 + $0x38] sm:$0xff] (!%p170_p3)   ;;  %v1234_v24 = vld [vmem:[%s1350_s2] ss:$0 sm:$0xff] (!%p170_p3) }
   0x9   : > { %1009 = vmatprep.subr.bf16.mxu0 (!%p170_p3), %v1096_v1  ;;  %1056 = vmatprep.subr.bf16.mxu1 (!%p170_p3), %v1096_v1 }
   0xc   : > { %1010 = vmatpush3.bf16.msra.mxu0 (!%p170_p3), %v1096_v1  ;;  %1064 = vmatpush3.bf16.msra.mxu1 (!%p170_p3), %v1096_v1 }
   0xd   : > { %1011 = vmatprep.subr.bf16.mxu0 (!%p170_p3), %v1097_v2  ;;  %1057 = vmatprep.subr.bf16.mxu1 (!%p170_p3), %v1097_v2 }
   0xe   : > { %s1357_s18 = smov (!%p204_p4, %s888_s18), 63 }
   0xf   : > { %s889_s23 = sshll.u32 %s1357_s18, 2 }
  0x10   : > { %s1198_s26 = scalar_lea.vmem %s1348_s0, %s889_s23  ;;  %1012 = vmatpush3.bf16.msra.mxu0 %v1097_v2  ;;  %1065 = vmatpush3.bf16.msra.mxu1 %v1097_v2  ;;  %s1247_s17 = scalar_lea.vmem %s1351_s3, %s889_s23 }
  0x11   : > { %v1103_v4 = vld [vmem:[%s1198_s26] sm:$0xff]   ;;  %1013 = vmatprep.subr.bf16.mxu0 %v1098_v3  ;;  %1058 = vmatprep.subr.bf16.mxu1 %v1098_v3  ;;  %v1105_v10 = vld [vmem:[%s1198_s26 + $0x8] sm:$0xff]   ;;  %v1107_v12 = vld [vmem:[%s1198_s26 + $0x10] sm:$0xff]  }
  0x12   : > { %v1104_v5 = vld [vmem:[%s1198_s26 + $0x40] sm:$0xff]   ;;  %1023 = vmatprep.mubr.bf16.mxu0 %v1103_v4  ;;  %v1106_v11 = vld [vmem:[%s1198_s26 + $0x48] sm:$0xff]   ;;  %v1108_v13 = vld [vmem:[%s1198_s26 + $0x50] sm:$0xff]  }
  0x13   : > { %1039 = vmatprep.mubr.bf16.mxu1 %v1104_v5  ;;  %v1109_v14 = vld [vmem:[%s1198_s26 + $0x18] sm:$0xff]   ;;  %v1111_v16 = vld [vmem:[%s1198_s26 + $0x20] sm:$0xff]   ;;  %v1113_v18 = vld [vmem:[%s1198_s26 + $0x28] sm:$0xff]  }
  0x14   : > { %1014 = vmatpush3.bf16.msra.mxu0 %v1098_v3  ;;  %1066 = vmatpush3.bf16.msra.mxu1 %v1098_v3  ;;  %v1110_v15 = vld [vmem:[%s1198_s26 + $0x58] sm:$0xff]   ;;  %v1112_v17 = vld [vmem:[%s1198_s26 + $0x60] sm:$0xff]   ;;  %v1114_v19 = vld [vmem:[%s1198_s26 + $0x68] sm:$0xff]  }
  0x15   : > { %1015 = vmatprep.subr.bf16.mxu0 %v1099_v6  ;;  %1059 = vmatprep.subr.bf16.mxu1 %v1099_v6  ;;  %v1115_v20 = vld [vmem:[%s1198_s26 + $0x30] sm:$0xff]   ;;  %v1117_v22 = vld [vmem:[%s1198_s26 + $0x38] sm:$0xff]  }
  0x16   : > { %v1116_v21 = vld [vmem:[%s1198_s26 + $0x70] sm:$0xff]   ;;  %v1118_v23 = vld [vmem:[%s1198_s26 + $0x78] sm:$0xff]  }
  0x18   : > { %1016 = vmatpush3.bf16.msra.mxu0 %v1099_v6  ;;  %1067 = vmatpush3.bf16.msra.mxu1 %v1099_v6 }
  0x19   : > { %1017 = vmatprep.subr.bf16.mxu0 %v1100_v7  ;;  %1060 = vmatprep.subr.bf16.mxu1 %v1100_v7 }
  0x1c   : > { %1018 = vmatpush3.bf16.msra.mxu0 %v1100_v7  ;;  %1068 = vmatpush3.bf16.msra.mxu1 %v1100_v7 }
  0x1d   : > { %1019 = vmatprep.subr.bf16.mxu0 %v1101_v8  ;;  %1061 = vmatprep.subr.bf16.mxu1 %v1101_v8 }
  0x20   : > { %1020 = vmatpush3.bf16.msra.mxu0 %v1101_v8  ;;  %1069 = vmatpush3.bf16.msra.mxu1 %v1101_v8 }
  0x21   : > { %1021 = vmatprep.subr.bf16.mxu0 %v1102_v9  ;;  %1062 = vmatprep.subr.bf16.mxu1 %v1102_v9 }
  0x24   : > { %1022 = vmatpush3.bf16.msra.mxu0 %v1102_v9  ;;  %1070 = vmatpush3.bf16.msra.mxu1 %v1102_v9 }
  0x27   : > { %1024 = vmatmul.mubr.bf16.vlgmr.msra.gmra.mrb[0].mxu0 %v1105_v10  ;;  %1040 = vmatmul.mubr.bf16.vlgmr.msra.gmra.mrb[0].mxu1 %v1106_v11 }
  0x28   : > { %1027 = vmatprep.mubr.bf16.mxu0 %v1107_v12  ;;  %1043 = vmatprep.mubr.bf16.mxu1 %v1108_v13 }
  0x2f   : > { %1028 = vmatmul.mubr.bf16.gmra.mrb[4].mxu0 %v1109_v14  ;;  %1044 = vmatmul.mubr.bf16.gmra.mrb[4].mxu1 %v1110_v15 }
  0x30   : > { %1031 = vmatprep.mubr.bf16.mxu0 %v1111_v16  ;;  %1047 = vmatprep.mubr.bf16.mxu1 %v1112_v17 }
  0x37   : > { %1032 = vmatmul.mubr.bf16.gmra.mrb[8].mxu0 %v1113_v18  ;;  %1048 = vmatmul.mubr.bf16.gmra.mrb[8].mxu1 %v1114_v19 }
  0x38   : > { %1035 = vmatprep.mubr.bf16.mxu0 %v1115_v20  ;;  %1051 = vmatprep.mubr.bf16.mxu1 %v1116_v21 }
  0x3f   : > { %1036 = vmatmul.mubr.bf16.gmra.mrb[12].mxu0 %v1117_v22  ;;  %1052 = vmatmul.mubr.bf16.gmra.mrb[12].mxu1 %v1118_v23 }
  0xfa   : > { %v1025_v25 = vpop.f32.mrb[0].mxu0  ;;  %v1041_v26 = vpop.f32.mrb[0].mxu1 }
  0xfb   : > { %v468_v27 = vadd.f32 %v1025_v25, %v1234_v24  ;;  %v532_v28 = vadd.f32 %v1041_v26, %v1234_v24  ;;  %v459_v29 = vpop.f32.mrb[1].mxu0  ;;  %v523_v30 = vpop.f32.mrb[1].mxu1 }
  0xfc   : > { %v460_v31 = vadd.f32 %v1234_v24, %v459_v29  ;;  %v524_v32 = vadd.f32 %v1234_v24, %v523_v30  ;;  %v1026_v33 = vpop.f32.mrb[2].mxu0  ;;  %v1042_v34 = vpop.f32.mrb[2].mxu1 }
  0xfd   : > { %v588_v35 = vmax.f32 %v468_v27, 0.0  ;;  %v604_v36 = vmax.f32 %v532_v28, 0.0  ;;  %v471_v37 = vadd.f32 %v1026_v33, %v1234_v24  ;;  %v535_v38 = vadd.f32 %v1042_v34, %v1234_v24  ;;  %v462_v39 = vpop.f32.mrb[3].mxu0  ;;  %v526_v40 = vpop.f32.mrb[3].mxu1 }
  0xfe   : > { %v586_v41 = vmax.f32 %v460_v31, 0.0  ;;  %v602_v42 = vmax.f32 %v524_v32, 0.0  ;;  %v463_v43 = vadd.f32 %v1234_v24, %v462_v39  ;;  %v527_v44 = vadd.f32 %v1234_v24, %v526_v40 }
  0xff   : > { %v953_v45 = vpack.c.bf16 %v588_v35, %v588_v35  ;;  %v969_v46 = vpack.c.bf16 %v604_v36, %v604_v36  ;;  %v589_v47 = vmax.f32 %v471_v37, 0.0  ;;  %v605_v48 = vmax.f32 %v535_v38, 0.0 }
 0x100   : > { %v951_v49 = vpack.c.bf16 %v586_v41, %v586_v41  ;;  %v967_v50 = vpack.c.bf16 %v602_v42, %v602_v42  ;;  %v587_v51 = vmax.f32 %v463_v43, 0.0  ;;  %v603_v52 = vmax.f32 %v527_v44, 0.0 }
 0x101   : > { %749 = vst.msk [vmem:[%s1247_s17 + $0x8] sm:$0xf] %vm746_vm0, %v953_v45  ;;  %765 = vst.msk [vmem:[%s1247_s17 + $0x48] sm:$0xf] %vm746_vm0, %v969_v46  ;;  %v954_v53 = vpack.c.bf16 %v589_v47, %v589_v47  ;;  %v970_v54 = vpack.c.bf16 %v605_v48, %v605_v48 }
 0x102   : > { %747 = vst.msk [vmem:[%s1247_s17] sm:$0xf] %vm746_vm0, %v951_v49  ;;  %763 = vst.msk [vmem:[%s1247_s17 + $0x40] sm:$0xf] %vm746_vm0, %v967_v50  ;;  %v952_v55 = vpack.c.bf16 %v587_v51, %v587_v51  ;;  %v968_v56 = vpack.c.bf16 %v603_v52, %v603_v52  ;;  %v1029_v57 = vpop.f32.mrb[4].mxu0  ;;  %v1045_v58 = vpop.f32.mrb[4].mxu1 }
 0x103   : > { %750 = vst.msk [vmem:[%s1247_s17 + $0xc] sm:$0xf] %vm746_vm0, %v954_v53  ;;  %766 = vst.msk [vmem:[%s1247_s17 + $0x4c] sm:$0xf] %vm746_vm0, %v970_v54  ;;  %v484_v59 = vadd.f32 %v1029_v57, %v1234_v24  ;;  %v548_v60 = vadd.f32 %v1045_v58, %v1234_v24  ;;  %v475_v61 = vpop.f32.mrb[5].mxu0  ;;  %v539_v62 = vpop.f32.mrb[5].mxu1 }
 0x104   : > { %748 = vst.msk [vmem:[%s1247_s17 + $0x4] sm:$0xf] %vm746_vm0, %v952_v55  ;;  %764 = vst.msk [vmem:[%s1247_s17 + $0x44] sm:$0xf] %vm746_vm0, %v968_v56  ;;  %v476_v63 = vadd.f32 %v1234_v24, %v475_v61  ;;  %v540_v0 = vadd.f32 %v1234_v24, %v539_v62  ;;  %v1030_v1 = vpop.f32.mrb[6].mxu0  ;;  %v1046_v2 = vpop.f32.mrb[6].mxu1 }
 0x105   : > { %v592_v3 = vmax.f32 %v484_v59, 0.0  ;;  %v608_v4 = vmax.f32 %v548_v60, 0.0  ;;  %v487_v5 = vadd.f32 %v1030_v1, %v1234_v24  ;;  %v551_v6 = vadd.f32 %v1046_v2, %v1234_v24  ;;  %v478_v7 = vpop.f32.mrb[7].mxu0  ;;  %v542_v8 = vpop.f32.mrb[7].mxu1 }
 0x106   : > { %v590_v9 = vmax.f32 %v476_v63, 0.0  ;;  %v606_v10 = vmax.f32 %v540_v0, 0.0  ;;  %v479_v11 = vadd.f32 %v1234_v24, %v478_v7  ;;  %v543_v12 = vadd.f32 %v1234_v24, %v542_v8 }
 0x107   : > { %v957_v13 = vpack.c.bf16 %v592_v3, %v592_v3  ;;  %v973_v14 = vpack.c.bf16 %v608_v4, %v608_v4  ;;  %v593_v15 = vmax.f32 %v487_v5, 0.0  ;;  %v609_v16 = vmax.f32 %v551_v6, 0.0 }
 0x108   : > { %v955_v17 = vpack.c.bf16 %v590_v9, %v590_v9  ;;  %v971_v18 = vpack.c.bf16 %v606_v10, %v606_v10  ;;  %v591_v19 = vmax.f32 %v479_v11, 0.0  ;;  %v607_v20 = vmax.f32 %v543_v12, 0.0 }
 0x109   : > { %753 = vst.msk [vmem:[%s1247_s17 + $0x18] sm:$0xf] %vm746_vm0, %v957_v13  ;;  %769 = vst.msk [vmem:[%s1247_s17 + $0x58] sm:$0xf] %vm746_vm0, %v973_v14  ;;  %v958_v21 = vpack.c.bf16 %v593_v15, %v593_v15  ;;  %v974_v22 = vpack.c.bf16 %v609_v16, %v609_v16 }
 0x10a   : > { %751 = vst.msk [vmem:[%s1247_s17 + $0x10] sm:$0xf] %vm746_vm0, %v955_v17  ;;  %767 = vst.msk [vmem:[%s1247_s17 + $0x50] sm:$0xf] %vm746_vm0, %v971_v18  ;;  %v956_v23 = vpack.c.bf16 %v591_v19, %v591_v19  ;;  %v972_v25 = vpack.c.bf16 %v607_v20, %v607_v20  ;;  %v1033_v26 = vpop.f32.mrb[8].mxu0  ;;  %v1049_v27 = vpop.f32.mrb[8].mxu1 }
 0x10b   : > { %754 = vst.msk [vmem:[%s1247_s17 + $0x1c] sm:$0xf] %vm746_vm0, %v958_v21  ;;  %770 = vst.msk [vmem:[%s1247_s17 + $0x5c] sm:$0xf] %vm746_vm0, %v974_v22  ;;  %v500_v28 = vadd.f32 %v1033_v26, %v1234_v24  ;;  %v564_v29 = vadd.f32 %v1049_v27, %v1234_v24  ;;  %v491_v30 = vpop.f32.mrb[9].mxu0  ;;  %v555_v31 = vpop.f32.mrb[9].mxu1 }
 0x10c   : > { %752 = vst.msk [vmem:[%s1247_s17 + $0x14] sm:$0xf] %vm746_vm0, %v956_v23  ;;  %768 = vst.msk [vmem:[%s1247_s17 + $0x54] sm:$0xf] %vm746_vm0, %v972_v25  ;;  %v492_v32 = vadd.f32 %v1234_v24, %v491_v30  ;;  %v556_v33 = vadd.f32 %v1234_v24, %v555_v31  ;;  %v1034_v34 = vpop.f32.mrb[10].mxu0  ;;  %v1050_v35 = vpop.f32.mrb[10].mxu1 }
 0x10d   : > { %v596_v36 = vmax.f32 %v500_v28, 0.0  ;;  %v612_v37 = vmax.f32 %v564_v29, 0.0  ;;  %v503_v38 = vadd.f32 %v1034_v34, %v1234_v24  ;;  %v567_v39 = vadd.f32 %v1050_v35, %v1234_v24  ;;  %v494_v40 = vpop.f32.mrb[11].mxu0  ;;  %v558_v41 = vpop.f32.mrb[11].mxu1 }
 0x10e   : > { %v594_v42 = vmax.f32 %v492_v32, 0.0  ;;  %v610_v43 = vmax.f32 %v556_v33, 0.0  ;;  %v495_v44 = vadd.f32 %v1234_v24, %v494_v40  ;;  %v559_v45 = vadd.f32 %v1234_v24, %v558_v41 }
 0x10f   : > { %v961_v46 = vpack.c.bf16 %v596_v36, %v596_v36  ;;  %v977_v47 = vpack.c.bf16 %v612_v37, %v612_v37  ;;  %v597_v48 = vmax.f32 %v503_v38, 0.0  ;;  %v613_v49 = vmax.f32 %v567_v39, 0.0 }
 0x110   : > { %v959_v50 = vpack.c.bf16 %v594_v42, %v594_v42  ;;  %v975_v51 = vpack.c.bf16 %v610_v43, %v610_v43  ;;  %v595_v52 = vmax.f32 %v495_v44, 0.0  ;;  %v611_v53 = vmax.f32 %v559_v45, 0.0 }
 0x111   : > { %757 = vst.msk [vmem:[%s1247_s17 + $0x28] sm:$0xf] %vm746_vm0, %v961_v46  ;;  %773 = vst.msk [vmem:[%s1247_s17 + $0x68] sm:$0xf] %vm746_vm0, %v977_v47  ;;  %v962_v54 = vpack.c.bf16 %v597_v48, %v597_v48  ;;  %v978_v55 = vpack.c.bf16 %v613_v49, %v613_v49 }
 0x112   : > { %755 = vst.msk [vmem:[%s1247_s17 + $0x20] sm:$0xf] %vm746_vm0, %v959_v50  ;;  %771 = vst.msk [vmem:[%s1247_s17 + $0x60] sm:$0xf] %vm746_vm0, %v975_v51  ;;  %v960_v56 = vpack.c.bf16 %v595_v52, %v595_v52  ;;  %v976_v57 = vpack.c.bf16 %v611_v53, %v611_v53  ;;  %v1037_v58 = vpop.f32.mrb[12].mxu0  ;;  %v1053_v59 = vpop.f32.mrb[12].mxu1 }
 0x113   : > { %758 = vst.msk [vmem:[%s1247_s17 + $0x2c] sm:$0xf] %vm746_vm0, %v962_v54  ;;  %774 = vst.msk [vmem:[%s1247_s17 + $0x6c] sm:$0xf] %vm746_vm0, %v978_v55  ;;  %v516_v60 = vadd.f32 %v1037_v58, %v1234_v24  ;;  %v580_v61 = vadd.f32 %v1053_v59, %v1234_v24  ;;  %v507_v62 = vpop.f32.mrb[13].mxu0  ;;  %v571_v63 = vpop.f32.mrb[13].mxu1 }
 0x114   : > { %756 = vst.msk [vmem:[%s1247_s17 + $0x24] sm:$0xf] %vm746_vm0, %v960_v56  ;;  %772 = vst.msk [vmem:[%s1247_s17 + $0x64] sm:$0xf] %vm746_vm0, %v976_v57  ;;  %v508_v0 = vadd.f32 %v1234_v24, %v507_v62  ;;  %v572_v1 = vadd.f32 %v1234_v24, %v571_v63  ;;  %v1038_v2 = vpop.f32.mrb[14].mxu0  ;;  %v1054_v3 = vpop.f32.mrb[14].mxu1 }
 0x115   : > { %v600_v4 = vmax.f32 %v516_v60, 0.0  ;;  %v616_v5 = vmax.f32 %v580_v61, 0.0  ;;  %v519_v6 = vadd.f32 %v1038_v2, %v1234_v24  ;;  %v583_v7 = vadd.f32 %v1054_v3, %v1234_v24  ;;  %v510_v8 = vpop.f32.mrb[15].mxu0  ;;  %v574_v9 = vpop.f32.mrb[15].mxu1 }
 0x116   : > { %v598_v10 = vmax.f32 %v508_v0, 0.0  ;;  %v614_v11 = vmax.f32 %v572_v1, 0.0  ;;  %v511_v12 = vadd.f32 %v1234_v24, %v510_v8  ;;  %v575_v13 = vadd.f32 %v1234_v24, %v574_v9 }
 0x117   : > { %v965_v14 = vpack.c.bf16 %v600_v4, %v600_v4  ;;  %v981_v15 = vpack.c.bf16 %v616_v5, %v616_v5  ;;  %v601_v16 = vmax.f32 %v519_v6, 0.0  ;;  %v617_v17 = vmax.f32 %v583_v7, 0.0 }
 0x118   : > { %v963_v18 = vpack.c.bf16 %v598_v10, %v598_v10  ;;  %v979_v19 = vpack.c.bf16 %v614_v11, %v614_v11  ;;  %v599_v20 = vmax.f32 %v511_v12, 0.0  ;;  %v615_v21 = vmax.f32 %v575_v13, 0.0 }
 0x119   : > { %761 = vst.msk [vmem:[%s1247_s17 + $0x38] sm:$0xf] %vm746_vm0, %v965_v14  ;;  %777 = vst.msk [vmem:[%s1247_s17 + $0x78] sm:$0xf] %vm746_vm0, %v981_v15  ;;  %v966_v22 = vpack.c.bf16 %v601_v16, %v601_v16  ;;  %v982_v23 = vpack.c.bf16 %v617_v17, %v617_v17 }
 0x11a   : > { %759 = vst.msk [vmem:[%s1247_s17 + $0x30] sm:$0xf] %vm746_vm0, %v963_v18  ;;  %775 = vst.msk [vmem:[%s1247_s17 + $0x70] sm:$0xf] %vm746_vm0, %v979_v19  ;;  %v964_v24 = vpack.c.bf16 %v599_v20, %v599_v20  ;;  %v980_v25 = vpack.c.bf16 %v615_v21, %v615_v21 }
 0x11b   : > { %762 = vst.msk [vmem:[%s1247_s17 + $0x3c] sm:$0xf] %vm746_vm0, %v966_v22  ;;  %778 = vst.msk [vmem:[%s1247_s17 + $0x7c] sm:$0xf] %vm746_vm0, %v982_v23 }
 0x11c   : > { %760 = vst.msk [vmem:[%s1247_s17 + $0x34] sm:$0xf] %vm746_vm0, %v964_v24  ;;  %776 = vst.msk [vmem:[%s1247_s17 + $0x74] sm:$0xf] %vm746_vm0, %v980_v25 }
 0x11d PF: > { %s13_s14 = sadd.s32 1, %s1141_s14   ;;  %s1352_s12 = smov %s1137_s13 }
 0x11e   : > { %p10_p5 = scmp.ge.s32.totalorder %s13_s14, 4   ;;  %s1353_s13 = smov %s1355_s15 }
 0x120   :  { %12 = sbr.rel (!%p10_p5) target bundleno = 2 (0x2), region = 68 }

// kernel: encoder_forward.6
= control target key start
LH: loop header
LB: loop body
LE: loop exit
PB: predicated region body
PF: predicated region fallthrough
CT: control target
= control target key end

     0   :  { %s1793_s12 = smov 0   ;;  %s1795_s13 = smov 0   ;;  %s2089_s0 = inlined_call_operand.vmem [shape: bf16[128,1024], index: 0, kind: input, shape index: {}]   ;;  %s2090_s1 = inlined_call_operand.vmem [shape: bf16[1024,128], index: 1, kind: input, shape index: {}]   ;;  %s2091_s2 = inlined_call_operand.vmem [shape: f32[1,128], index: 2, kind: input, shape index: {}]   ;;  %s2092_s3 = inlined_call_operand.vmem [shape: bf16[128,128], index: 3, kind: output, shape index: {}]  }
   0x1   :  { %s1797_s14 = smov 0  }
   0x2 LB: > { %s25_s15 = sadd.s32 1, %s1767_s13  ;;  %p1356_p0 = scmp.ge.s32.totalorder %s1771_s14, 1  ;;  %s1771_s14 = sphi %s1797_s14, %s13_s14   ;;  %s1767_s13 = sphi %s1795_s13, %s2094_s13   ;;  %s1763_s12 = sphi %s1793_s12, %s2093_s12  }
   0x3   : > { %p27_p1 = scmp.ge.s32.totalorder %s25_s15, 2  ;;  %p170_p2 = scmp.lt.s32.totalorder %s1771_s14, 3 }
   0x5   : > { %s2096_s15 = smov (%p27_p1, %s25_s15), 0  ;;  %p171_p3 = pnand %p1356_p0, %p170_p2 }
   0x6   : > { %v1685_v0 = vld [vmem:[%s2090_s1 + $0x40] sm:$0xff] (!%p171_p3)   ;;  %v1689_v4 = vld [vmem:[%s2090_s1 + $0x48] sm:$0xff] (!%p171_p3)   ;;  %v1693_v8 = vld [vmem:[%s2090_s1 + $0x50] sm:$0xff] (!%p171_p3)   ;;  %s1357_s25 = sshll.u32 (!%p171_p3), %s1763_s12, 3 }
   0x7   : > { %174 = sbr.rel (%p171_p3) target bundleno = 322 (0x142), region = 32  ;;  %v1686_v1 = vld [vmem:[%s2090_s1 + $0xc0] sm:$0xff] (!%p171_p3)   ;;  %1501 = vmatprep.subr.bf16.mxu0 (!%p171_p3), %v1685_v0  ;;  %v1690_v5 = vld [vmem:[%s2090_s1 + $0xc8] sm:$0xff] (!%p171_p3)   ;;  %v1694_v9 = vld [vmem:[%s2090_s1 + $0xd0] sm:$0xff] (!%p171_p3)   ;;  %p206_p4 = scmp.lt.s32.totalorder (!%p171_p3), %s1357_s25, 15 }
   0x8   : > { %v1687_v2 = vld [vmem:[%s2090_s1] sm:$0xff] (!%p171_p3)   ;;  %1541 = vmatprep.subr.bf16.mxu1 (!%p171_p3), %v1686_v1  ;;  %v1691_v6 = vld [vmem:[%s2090_s1 + $0x8] sm:$0xff] (!%p171_p3)   ;;  %v1695_v10 = vld [vmem:[%s2090_s1 + $0x10] sm:$0xff] (!%p171_p3)  }
   0x9   : > { %v1688_v3 = vld [vmem:[%s2090_s1 + $0x80] sm:$0xff] (!%p171_p3)   ;;  %1502 = vmatpush3.bf16.msra.mxu0 (!%p171_p3), %v1687_v2  ;;  %v1692_v7 = vld [vmem:[%s2090_s1 + $0x88] sm:$0xff] (!%p171_p3)   ;;  %v1696_v11 = vld [vmem:[%s2090_s1 + $0x90] sm:$0xff] (!%p171_p3)  }
   0xa   : > { %1542 = vmatpush3.bf16.msra.mxu1 (!%p171_p3), %v1688_v3  ;;  %1503 = vmatprep.subr.bf16.mxu0 (!%p171_p3), %v1689_v4  ;;  %v1697_v12 = vld [vmem:[%s2090_s1 + $0x58] sm:$0xff] (!%p171_p3)   ;;  %v1701_v16 = vld [vmem:[%s2090_s1 + $0x60] sm:$0xff] (!%p171_p3)   ;;  %v1705_v20 = vld [vmem:[%s2090_s1 + $0x68] sm:$0xff] (!%p171_p3)  }
   0xb   : > { %1543 = vmatprep.subr.bf16.mxu1 (!%p171_p3), %v1690_v5  ;;  %v1698_v13 = vld [vmem:[%s2090_s1 + $0xd8] sm:$0xff] (!%p171_p3)   ;;  %v1702_v17 = vld [vmem:[%s2090_s1 + $0xe0] sm:$0xff] (!%p171_p3)   ;;  %v1706_v21 = vld [vmem:[%s2090_s1 + $0xe8] sm:$0xff] (!%p171_p3)  }
   0xc   : > { %v1699_v14 = vld [vmem:[%s2090_s1 + $0x18] sm:$0xff] (!%p171_p3)   ;;  %v1703_v18 = vld [vmem:[%s2090_s1 + $0x20] sm:$0xff] (!%p171_p3)   ;;  %v1707_v22 = vld [vmem:[%s2090_s1 + $0x28] sm:$0xff] (!%p171_p3)  }
   0xd   : > { %1504 = vmatpush3.bf16.msra.mxu0 (!%p171_p3), %v1691_v6  ;;  %v1700_v15 = vld [vmem:[%s2090_s1 + $0x98] sm:$0xff] (!%p171_p3)   ;;  %v1704_v19 = vld [vmem:[%s2090_s1 + $0xa0] sm:$0xff] (!%p171_p3)   ;;  %v1708_v23 = vld [vmem:[%s2090_s1 + $0xa8] sm:$0xff] (!%p171_p3)  }
   0xe   : > { %1544 = vmatpush3.bf16.msra.mxu1 %v1692_v7  ;;  %1505 = vmatprep.subr.bf16.mxu0 %v1693_v8  ;;  %s2098_s25 = smov (!%p206_p4, %s1357_s25), 15  ;;  %v1709_v24 = vld [vmem:[%s2090_s1 + $0x70] sm:$0xff]   ;;  %v1713_v28 = vld [vmem:[%s2090_s1 + $0x78] sm:$0xff]   ;;  %v1717_v40 = vld [vmem:[%s2090_s1 + $0x140] sm:$0xff]  }
   0xf   : > { %1545 = vmatprep.subr.bf16.mxu1 %v1694_v9  ;;  %v1710_v25 = vld [vmem:[%s2090_s1 + $0xf0] sm:$0xff]   ;;  %s1469_s24 = sshll.u32 %s2098_s25, 5  ;;  %v1714_v29 = vld [vmem:[%s2090_s1 + $0xf8] sm:$0xff]   ;;  %v1718_v41 = vld [vmem:[%s2090_s1 + $0x1c0] sm:$0xff]  }
  0x10   : > { %v1711_v26 = vld [vmem:[%s2090_s1 + $0x30] sm:$0xff]   ;;  %s1910_s12 = scalar_lea.vmem %s2089_s0, %s1469_s24  ;;  %v1715_v30 = vld [vmem:[%s2090_s1 + $0x38] sm:$0xff]   ;;  %v1719_v42 = vld [vmem:[%s2090_s1 + $0x100] sm:$0xff]  }
  0x11   : > { %1506 = vmatpush3.bf16.msra.mxu0 %v1695_v10  ;;  %v1712_v27 = vld [vmem:[%s2090_s1 + $0xb0] sm:$0xff]   ;;  %v1716_v31 = vld [vmem:[%s2090_s1 + $0xb8] sm:$0xff]   ;;  %v229_v32 = vld [vmem:[%s1910_s12] sm:$0xff] }
  0x12   : > { %1546 = vmatpush3.bf16.msra.mxu1 %v1696_v11  ;;  %1507 = vmatprep.subr.bf16.mxu0 %v1697_v12  ;;  %v233_v33 = vld [vmem:[%s1910_s12 + $0x20] sm:$0xff]  ;;  %v230_v34 = vld [vmem:[%s1910_s12 + $0x8] sm:$0xff]  ;;  %v1725_v56 = vld [vmem:[%s2090_s1 + $0x150] sm:$0xff]  }
  0x13   : > { %1547 = vmatprep.subr.bf16.mxu1 %v1698_v13  ;;  %v1363_v35 = vcombine.low %v229_v32, %v233_v33  ;;  %v1364_v36 = vcombine.high %v229_v32, %v233_v33  ;;  %v234_v37 = vld [vmem:[%s1910_s12 + $0x28] sm:$0xff]  ;;  %v1720_v43 = vld [vmem:[%s2090_s1 + $0x180] sm:$0xff]   ;;  %v1726_v57 = vld [vmem:[%s2090_s1 + $0x1d0] sm:$0xff]  }
  0x14   : > { %v1365_v38 = vcombine.low %v230_v34, %v234_v37  ;;  %v1366_v39 = vcombine.high %v230_v34, %v234_v37  ;;  %v1721_v44 = vld [vmem:[%s2090_s1 + $0x148] sm:$0xff]   ;;  %v237_v48 = vld [vmem:[%s1910_s12 + $0x40] sm:$0xff]  ;;  %v1727_v58 = vld [vmem:[%s2090_s1 + $0x110] sm:$0xff]  }
  0x15   : > { %1508 = vmatpush3.bf16.msra.mxu0 %v1699_v14  ;;  %972 = vmatprep.mubr.bf16.mxu0 %v1364_v36  ;;  %v1722_v45 = vld [vmem:[%s2090_s1 + $0x1c8] sm:$0xff]   ;;  %v241_v49 = vld [vmem:[%s1910_s12 + $0x60] sm:$0xff]  ;;  %v1728_v59 = vld [vmem:[%s2090_s1 + $0x190] sm:$0xff]  }
  0x16   : > { %1548 = vmatpush3.bf16.msra.mxu1 %v1700_v15  ;;  %1509 = vmatprep.subr.bf16.mxu0 %v1701_v16  ;;  %v1723_v46 = vld [vmem:[%s2090_s1 + $0x108] sm:$0xff]   ;;  %v1372_v50 = vcombine.high %v237_v48, %v241_v49  ;;  %v1371_v53 = vcombine.low %v237_v48, %v241_v49  ;;  %v1729_v60 = vld [vmem:[%s2090_s1 + $0x158] sm:$0xff]   ;;  %v245_v0 = vld [vmem:[%s1910_s12 + $0x80] sm:$0xff] }
  0x17   : > { %1549 = vmatprep.subr.bf16.mxu1 %v1702_v17  ;;  %1037 = vmatprep.mubr.bf16.mxu1 %v1366_v39  ;;  %v1724_v47 = vld [vmem:[%s2090_s1 + $0x188] sm:$0xff]   ;;  %v1730_v61 = vld [vmem:[%s2090_s1 + $0x1d8] sm:$0xff]   ;;  %v249_v1 = vld [vmem:[%s1910_s12 + $0xa0] sm:$0xff] }
  0x18   : > { %v238_v51 = vld [vmem:[%s1910_s12 + $0x48] sm:$0xff]  ;;  %v1731_v62 = vld [vmem:[%s2090_s1 + $0x118] sm:$0xff]   ;;  %v1380_v4 = vcombine.high %v245_v0, %v249_v1  ;;  %v1379_v6 = vcombine.low %v245_v0, %v249_v1  ;;  %v1733_v8 = vld [vmem:[%s2090_s1 + $0x160] sm:$0xff]  }
  0x19   : > { %1510 = vmatpush3.bf16.msra.mxu0 %v1703_v18  ;;  %v242_v52 = vld [vmem:[%s1910_s12 + $0x68] sm:$0xff]  ;;  %v1732_v63 = vld [vmem:[%s2090_s1 + $0x198] sm:$0xff]   ;;  %v1734_v9 = vld [vmem:[%s2090_s1 + $0x1e0] sm:$0xff]  }
  0x1a   : > { %1550 = vmatpush3.bf16.msra.mxu1 %v1704_v19  ;;  %1511 = vmatprep.subr.bf16.mxu0 %v1705_v20  ;;  %v1374_v54 = vcombine.high %v238_v51, %v242_v52  ;;  %v1373_v55 = vcombine.low %v238_v51, %v242_v52  ;;  %v246_v2 = vld [vmem:[%s1910_s12 + $0x88] sm:$0xff]  ;;  %v1735_v10 = vld [vmem:[%s2090_s1 + $0x120] sm:$0xff]   ;;  %v231_v32 = vld [vmem:[%s1910_s12 + $0x10] sm:$0xff] }
  0x1b   : > { %1551 = vmatprep.subr.bf16.mxu1 %v1706_v21  ;;  %v250_v3 = vld [vmem:[%s1910_s12 + $0xa8] sm:$0xff]  ;;  %v1736_v11 = vld [vmem:[%s2090_s1 + $0x1a0] sm:$0xff]   ;;  %v235_v33 = vld [vmem:[%s1910_s12 + $0x30] sm:$0xff] }
  0x1c   : > { %v1382_v5 = vcombine.high %v246_v2, %v250_v3  ;;  %v1381_v7 = vcombine.low %v246_v2, %v250_v3  ;;  %v1737_v12 = vld [vmem:[%s2090_s1 + $0x168] sm:$0xff]   ;;  %v253_v16 = vld [vmem:[%s1910_s12 + $0xc0] sm:$0xff]  ;;  %v1367_v34 = vcombine.low %v231_v32, %v235_v33  ;;  %v232_v36 = vld [vmem:[%s1910_s12 + $0x18] sm:$0xff] }
  0x1d   : > { %1512 = vmatpush3.bf16.msra.mxu0 %v1707_v22  ;;  %v1738_v13 = vld [vmem:[%s2090_s1 + $0x1e8] sm:$0xff]   ;;  %v257_v17 = vld [vmem:[%s1910_s12 + $0xe0] sm:$0xff]  ;;  %v236_v37 = vld [vmem:[%s1910_s12 + $0x38] sm:$0xff] }
  0x1e   : > { %1552 = vmatpush3.bf16.msra.mxu1 %v1708_v23  ;;  %1513 = vmatprep.subr.bf16.mxu0 %v1709_v24  ;;  %v1739_v14 = vld [vmem:[%s2090_s1 + $0x128] sm:$0xff]   ;;  %v1388_v19 = vcombine.high %v253_v16, %v257_v17  ;;  %v1387_v21 = vcombine.low %v253_v16, %v257_v17  ;;  %v1741_v24 = vld [vmem:[%s2090_s1 + $0x170] sm:$0xff]   ;;  %v1369_v39 = vcombine.low %v232_v36, %v236_v37  ;;  %v248_v48 = vld [vmem:[%s1910_s12 + $0x98] sm:$0xff] }
  0x1f   : > { %1553 = vmatprep.subr.bf16.mxu1 %v1710_v25  ;;  %v1740_v15 = vld [vmem:[%s2090_s1 + $0x1a8] sm:$0xff]   ;;  %v1742_v25 = vld [vmem:[%s2090_s1 + $0x1f0] sm:$0xff]   ;;  %v252_v49 = vld [vmem:[%s1910_s12 + $0xb8] sm:$0xff] }
  0x20   : > { %v254_v18 = vld [vmem:[%s1910_s12 + $0xc8] sm:$0xff]  ;;  %v1362_v2 = vld [vmem:[%s2091_s2] ss:$0 sm:$0xff] }
  0x21   : > { %1514 = vmatpush3.bf16.msra.mxu0 %v1711_v26  ;;  %v258_v20 = vld [vmem:[%s1910_s12 + $0xe8] sm:$0xff]  ;;  %v1743_v26 = vld [vmem:[%s2090_s1 + $0x130] sm:$0xff]  }
  0x22   : > { %1554 = vmatpush3.bf16.msra.mxu1 %v1712_v27  ;;  %1515 = vmatprep.subr.bf16.mxu0 %v1713_v28  ;;  %v1390_v22 = vcombine.high %v254_v18, %v258_v20  ;;  %v1389_v23 = vcombine.low %v254_v18, %v258_v20  ;;  %v1744_v27 = vld [vmem:[%s2090_s1 + $0x1b0] sm:$0xff]   ;;  %v1745_v28 = vld [vmem:[%s2090_s1 + $0x178] sm:$0xff]  }
  0x23   : > { %1555 = vmatprep.subr.bf16.mxu1 %v1714_v29  ;;  %v1746_v29 = vld [vmem:[%s2090_s1 + $0x1f8] sm:$0xff]  }
  0x25   : > { %1516 = vmatpush3.bf16.msra.mxu0 %v1715_v30  ;;  %v1747_v30 = vld [vmem:[%s2090_s1 + $0x138] sm:$0xff]  }
  0x26   : > { %1556 = vmatpush3.bf16.msra.mxu1 %v1716_v31  ;;  %1581 = vmatprep.subr.bf16.mxu0 %v1717_v40  ;;  %v1748_v31 = vld [vmem:[%s2090_s1 + $0x1b8] sm:$0xff]   ;;  %v1370_v40 = vcombine.high %v232_v36, %v236_v37 }
  0x27   : > { %1621 = vmatprep.subr.bf16.mxu1 %v1718_v41  ;;  %v243_v41 = vld [vmem:[%s1910_s12 + $0x70] sm:$0xff] }
  0x28   : > { %973 = vmatmul.mubr.bf16.vlgmr.msra.gmra.mrb[0].mxu0 %v1363_v35  ;;  %v1368_v35 = vcombine.high %v231_v32, %v235_v33 }
  0x29   : > { %1038 = vmatmul.mubr.bf16.vlgmr.msra.gmra.mrb[0].mxu1 %v1365_v38  ;;  %1582 = vmatpush3.bf16.msra.mxu0 %v1719_v42  ;;  %v239_v38 = vld [vmem:[%s1910_s12 + $0x50] sm:$0xff]  ;;  %v240_v42 = vld [vmem:[%s1910_s12 + $0x58] sm:$0xff] }
  0x2a   : > { %1622 = vmatpush3.bf16.msra.mxu1 %v1720_v43  ;;  %1583 = vmatprep.subr.bf16.mxu0 %v1721_v44  ;;  %v244_v43 = vld [vmem:[%s1910_s12 + $0x78] sm:$0xff]  ;;  %v1376_v44 = vcombine.high %v239_v38, %v243_v41 }
  0x2b   : > { %1623 = vmatprep.subr.bf16.mxu1 %v1722_v45  ;;  %980 = vmatprep.mubr.bf16.mxu0 %v1372_v50  ;;  %v1378_v45 = vcombine.high %v240_v42, %v244_v43  ;;  %v1375_v50 = vcombine.low %v239_v38, %v243_v41  ;;  %v1377_v51 = vcombine.low %v240_v42, %v244_v43 }
  0x2c   : > { %1045 = vmatprep.mubr.bf16.mxu1 %v1374_v54  ;;  %v255_v54 = vld [vmem:[%s1910_s12 + $0xd0] sm:$0xff] }
  0x2d   : > { %1584 = vmatpush3.bf16.msra.mxu0 %v1723_v46  ;;  %v247_v46 = vld [vmem:[%s1910_s12 + $0x90] sm:$0xff] }
  0x2e   : > { %1624 = vmatpush3.bf16.msra.mxu1 %v1724_v47  ;;  %1585 = vmatprep.subr.bf16.mxu0 %v1725_v56  ;;  %v251_v47 = vld [vmem:[%s1910_s12 + $0xb0] sm:$0xff]  ;;  %v256_v56 = vld [vmem:[%s1910_s12 + $0xd8] sm:$0xff] }
  0x2f   : > { %1625 = vmatprep.subr.bf16.mxu1 %v1726_v57  ;;  %v1384_v52 = vcombine.high %v247_v46, %v251_v47  ;;  %v260_v57 = vld [vmem:[%s1910_s12 + $0xf8] sm:$0xff] }
  0x30   : > { %981 = vmatmul.mubr.bf16.gmra.mrb[4].mxu0 %v1371_v53  ;;  %v1386_v53 = vcombine.high %v248_v48, %v252_v49 }
  0x31   : > { %1046 = vmatmul.mubr.bf16.gmra.mrb[4].mxu1 %v1373_v55  ;;  %1586 = vmatpush3.bf16.msra.mxu0 %v1727_v58  ;;  %v259_v55 = vld [vmem:[%s1910_s12 + $0xf0] sm:$0xff]  ;;  %v1383_v58 = vcombine.low %v247_v46, %v251_v47  ;;  %s1361_s12 = sshll.u32 %s2098_s25, 2 }
  0x32   : > { %1626 = vmatpush3.bf16.msra.mxu1 %v1728_v59  ;;  %1587 = vmatprep.subr.bf16.mxu0 %v1729_v60  ;;  %v1385_v59 = vcombine.low %v248_v48, %v252_v49  ;;  %v1392_v60 = vcombine.high %v255_v54, %v259_v55  ;;  %s2068_s17 = scalar_lea.vmem %s2092_s3, %s1361_s12 }
  0x33   : > { %1627 = vmatprep.subr.bf16.mxu1 %v1730_v61  ;;  %988 = vmatprep.mubr.bf16.mxu0 %v1380_v4  ;;  %v1394_v61 = vcombine.high %v256_v56, %v260_v57 }
  0x34   : > { %1053 = vmatprep.mubr.bf16.mxu1 %v1382_v5 }
  0x35   : > { %1588 = vmatpush3.bf16.msra.mxu0 %v1731_v62  ;;  %v1391_v62 = vcombine.low %v255_v54, %v259_v55 }
  0x36   : > { %1628 = vmatpush3.bf16.msra.mxu1 %v1732_v63  ;;  %1589 = vmatprep.subr.bf16.mxu0 %v1733_v8  ;;  %v1393_v63 = vcombine.low %v256_v56, %v260_v57 }
  0x37   : > { %1629 = vmatprep.subr.bf16.mxu1 %v1734_v9 }
  0x38   : > { %989 = vmatmul.mubr.bf16.gmra.mrb[8].mxu0 %v1379_v6 }
  0x39   : > { %1054 = vmatmul.mubr.bf16.gmra.mrb[8].mxu1 %v1381_v7  ;;  %1590 = vmatpush3.bf16.msra.mxu0 %v1735_v10 }
  0x3a   : > { %1630 = vmatpush3.bf16.msra.mxu1 %v1736_v11  ;;  %1591 = vmatprep.subr.bf16.mxu0 %v1737_v12 }
  0x3b   : > { %1631 = vmatprep.subr.bf16.mxu1 %v1738_v13  ;;  %996 = vmatprep.mubr.bf16.mxu0 %v1388_v19 }
  0x3c   : > { %1061 = vmatprep.mubr.bf16.mxu1 %v1390_v22 }
  0x3d   : > { %1592 = vmatpush3.bf16.msra.mxu0 %v1739_v14 }
  0x3e   : > { %1632 = vmatpush3.bf16.msra.mxu1 %v1740_v15  ;;  %1593 = vmatprep.subr.bf16.mxu0 %v1741_v24 }
  0x3f   : > { %1633 = vmatprep.subr.bf16.mxu1 %v1742_v25 }
  0x40   : > { %997 = vmatmul.mubr.bf16.gmra.mrb[12].mxu0 %v1387_v21 }
  0x41   : > { %1062 = vmatmul.mubr.bf16.gmra.mrb[12].mxu1 %v1389_v23  ;;  %1594 = vmatpush3.bf16.msra.mxu0 %v1743_v26 }
  0x42   : > { %1634 = vmatpush3.bf16.msra.mxu1 %v1744_v27  ;;  %1595 = vmatprep.subr.bf16.mxu0 %v1745_v28 }
  0x43   : > { %1635 = vmatprep.subr.bf16.mxu1 %v1746_v29  ;;  %1102 = vmatprep.mubr.bf16.mxu0 %v1368_v35 }
  0x44   : > { %1167 = vmatprep.mubr.bf16.mxu1 %v1370_v40 }
  0x45   : > { %1596 = vmatpush3.bf16.msra.mxu0 %v1747_v30 }
  0x46   : > { %1636 = vmatpush3.bf16.msra.mxu1 %v1748_v31 }
  0x48   : > { %1103 = vmatmul.mubr.bf16.vlgmr.msra.gmra.mrb[16].mxu0 %v1367_v34 }
  0x49   : > { %1168 = vmatmul.mubr.bf16.vlgmr.msra.gmra.mrb[16].mxu1 %v1369_v39  ;;  %1110 = vmatprep.mubr.bf16.mxu0 %v1376_v44 }
  0x4a   : > { %1175 = vmatprep.mubr.bf16.mxu1 %v1378_v45 }
  0x50   : > { %1111 = vmatmul.mubr.bf16.gmra.mrb[20].mxu0 %v1375_v50 }
  0x51   : > { %1176 = vmatmul.mubr.bf16.gmra.mrb[20].mxu1 %v1377_v51  ;;  %1118 = vmatprep.mubr.bf16.mxu0 %v1384_v52 }
  0x52   : > { %1183 = vmatprep.mubr.bf16.mxu1 %v1386_v53 }
  0x58   : > { %1119 = vmatmul.mubr.bf16.gmra.mrb[24].mxu0 %v1383_v58 }
  0x59   : > { %1184 = vmatmul.mubr.bf16.gmra.mrb[24].mxu1 %v1385_v59  ;;  %1126 = vmatprep.mubr.bf16.mxu0 %v1392_v60 }
  0x5a   : > { %1191 = vmatprep.mubr.bf16.mxu1 %v1394_v61 }
  0x60   : > { %1127 = vmatmul.mubr.bf16.gmra.mrb[28].mxu0 %v1391_v62 }
  0x61   : > { %1192 = vmatmul.mubr.bf16.gmra.mrb[28].mxu1 %v1393_v63 }
  0xfb   : > { %v1517_v0 = vpop.f32.mrb[0].mxu0 }
  0xfc   : > { %v1557_v1 = vpop.f32.mrb[0].mxu1  ;;  %v1518_v3 = vpop.f32.mrb[1].mxu0 }
  0xfd   : > { %v1519_v4 = vadd.f32 %v1518_v3, %v1517_v0  ;;  %v1558_v5 = vpop.f32.mrb[1].mxu1  ;;  %v1520_v6 = vpop.f32.mrb[2].mxu0 }
  0xfe   : > { %v1559_v7 = vadd.f32 %v1558_v5, %v1557_v1  ;;  %v1560_v8 = vpop.f32.mrb[2].mxu1  ;;  %v1521_v9 = vpop.f32.mrb[3].mxu0 }
  0xff   : > { %v975_v10 = vadd.f32 %v1519_v4, %v1362_v2  ;;  %v1522_v11 = vadd.f32 %v1521_v9, %v1520_v6  ;;  %v1561_v12 = vpop.f32.mrb[3].mxu1 }
 0x100   : > { %v1562_v13 = vadd.f32 %v1561_v12, %v1560_v8 }
 0x101   : > { %v1040_v14 = vadd.f32 %v1559_v7, %v975_v10  ;;  %v978_v15 = vadd.f32 %v1522_v11, %v1362_v2 }
 0x103   : > { %v2049_v16 = vadd.f32 %v1562_v13, %v978_v15  ;;  %v1523_v17 = vpop.f32.mrb[4].mxu0 }
 0x104   : > { %v1563_v18 = vpop.f32.mrb[4].mxu1  ;;  %v1524_v19 = vpop.f32.mrb[5].mxu0 }
 0x105   : > { %v1525_v20 = vadd.f32 %v1524_v19, %v1523_v17  ;;  %v1564_v21 = vpop.f32.mrb[5].mxu1  ;;  %v1526_v22 = vpop.f32.mrb[6].mxu0 }
 0x106   : > { %v1565_v23 = vadd.f32 %v1564_v21, %v1563_v18  ;;  %v1566_v24 = vpop.f32.mrb[6].mxu1  ;;  %v1527_v25 = vpop.f32.mrb[7].mxu0 }
 0x107   : > { %v983_v26 = vadd.f32 %v1525_v20, %v1362_v2  ;;  %v1528_v27 = vadd.f32 %v1527_v25, %v1526_v22  ;;  %v1567_v28 = vpop.f32.mrb[7].mxu1 }
 0x108   : > { %v1568_v29 = vadd.f32 %v1567_v28, %v1566_v24 }
 0x109   : > { %v2051_v30 = vadd.f32 %v1565_v23, %v983_v26  ;;  %v986_v31 = vadd.f32 %v1528_v27, %v1362_v2 }
 0x10b   : > { %v2053_v32 = vadd.f32 %v1568_v29, %v986_v31  ;;  %v1529_v33 = vpop.f32.mrb[8].mxu0 }
 0x10c   : > { %v1569_v34 = vpop.f32.mrb[8].mxu1  ;;  %v1530_v35 = vpop.f32.mrb[9].mxu0 }
 0x10d   : > { %v1570_v36 = vpop.f32.mrb[9].mxu1  ;;  %v1531_v37 = vadd.f32 %v1530_v35, %v1529_v33  ;;  %v1532_v39 = vpop.f32.mrb[10].mxu0 }
 0x10e   : > { %v1571_v38 = vadd.f32 %v1570_v36, %v1569_v34  ;;  %v1572_v40 = vpop.f32.mrb[10].mxu1  ;;  %v1533_v41 = vpop.f32.mrb[11].mxu0 }
 0x10f   : > { %v1573_v42 = vpop.f32.mrb[11].mxu1  ;;  %v991_v43 = vadd.f32 %v1531_v37, %v1362_v2  ;;  %v1534_v44 = vadd.f32 %v1533_v41, %v1532_v39 }
 0x110   : > { %v1574_v45 = vadd.f32 %v1573_v42, %v1572_v40 }
 0x111   : > { %v2055_v46 = vadd.f32 %v1571_v38, %v991_v43  ;;  %v994_v47 = vadd.f32 %v1534_v44, %v1362_v2 }
 0x113   : > { %v2057_v48 = vadd.f32 %v1574_v45, %v994_v47  ;;  %v1535_v49 = vpop.f32.mrb[12].mxu0 }
 0x114   : > { %v1575_v50 = vpop.f32.mrb[12].mxu1  ;;  %v1536_v51 = vpop.f32.mrb[13].mxu0 }
 0x115   : > { %v1537_v52 = vadd.f32 %v1536_v51, %v1535_v49  ;;  %v1576_v53 = vpop.f32.mrb[13].mxu1  ;;  %v1538_v54 = vpop.f32.mrb[14].mxu0 }
 0x116   : > { %v1577_v55 = vadd.f32 %v1576_v53, %v1575_v50  ;;  %v1578_v56 = vpop.f32.mrb[14].mxu1  ;;  %v1539_v57 = vpop.f32.mrb[15].mxu0 }
 0x117   : > { %v999_v58 = vadd.f32 %v1537_v52, %v1362_v2  ;;  %v1540_v59 = vadd.f32 %v1539_v57, %v1538_v54  ;;  %v1579_v60 = vpop.f32.mrb[15].mxu1 }
 0x118   : > { %v1580_v61 = vadd.f32 %v1579_v60, %v1578_v56 }
 0x119   : > { %v2059_v62 = vadd.f32 %v1577_v55, %v999_v58  ;;  %v1002_v63 = vadd.f32 %v1540_v59, %v1362_v2 }
 0x11b   : > { %v2061_v0 = vadd.f32 %v1580_v61, %v1002_v63  ;;  %v1597_v1 = vpop.f32.mrb[16].mxu0 }
 0x11c   : > { %v1637_v3 = vpop.f32.mrb[16].mxu1  ;;  %v1598_v4 = vpop.f32.mrb[17].mxu0 }
 0x11d   : > { %v1599_v5 = vadd.f32 %v1598_v4, %v1597_v1  ;;  %v1638_v6 = vpop.f32.mrb[17].mxu1  ;;  %v1600_v7 = vpop.f32.mrb[18].mxu0 }
 0x11e   : > { %v1639_v8 = vadd.f32 %v1638_v6, %v1637_v3  ;;  %v1640_v9 = vpop.f32.mrb[18].mxu1  ;;  %v1601_v10 = vpop.f32.mrb[19].mxu0 }
 0x11f   : > { %v1105_v11 = vadd.f32 %v1599_v5, %v1040_v14  ;;  %v1602_v12 = vadd.f32 %v1601_v10, %v1600_v7  ;;  %v1641_v13 = vpop.f32.mrb[19].mxu1 }
 0x120   : > { %v1642_v15 = vadd.f32 %v1641_v13, %v1640_v9 }
 0x121   : > { %v1170_v17 = vadd.f32 %v1639_v8, %v1105_v11  ;;  %v1108_v18 = vadd.f32 %v1602_v12, %v2049_v16 }
 0x123   : > { %v1173_v2 = vadd.f32 %v1642_v15, %v1108_v18  ;;  %v1603_v19 = vpop.f32.mrb[20].mxu0  ;;  %v1200_v22 = vmax.f32 %v1170_v17, 0.0 }
 0x124   : > { %v1643_v20 = vpop.f32.mrb[20].mxu1  ;;  %v1604_v21 = vpop.f32.mrb[21].mxu0 }
 0x125   : > { %v1201_v23 = vmax.f32 %v1173_v2, 0.0  ;;  %v1605_v24 = vadd.f32 %v1604_v21, %v1603_v19  ;;  %v1644_v25 = vpop.f32.mrb[21].mxu1  ;;  %v1606_v26 = vpop.f32.mrb[22].mxu0 }
 0x126   : > { %v1645_v14 = vadd.f32 %v1644_v25, %v1643_v20  ;;  %v1646_v27 = vpop.f32.mrb[22].mxu1  ;;  %v1607_v28 = vpop.f32.mrb[23].mxu0 }
 0x127   : > { %v1481_v16 = vpack.c.bf16 %v1201_v23, %v1200_v22  ;;  %v1113_v29 = vadd.f32 %v1605_v24, %v2051_v30  ;;  %v1608_v31 = vadd.f32 %v1607_v28, %v1606_v26  ;;  %v1647_v33 = vpop.f32.mrb[23].mxu1 }
 0x128   : > { %v1648_v34 = vadd.f32 %v1647_v33, %v1646_v27 }
 0x129   : > { %1482 = vst [vmem:[%s2068_s17] sm:$0xff] %v1481_v16   ;;  %v1178_v35 = vadd.f32 %v1645_v14, %v1113_v29  ;;  %v1116_v36 = vadd.f32 %v1608_v31, %v2053_v32 }
 0x12b   : > { %v1181_v37 = vadd.f32 %v1648_v34, %v1116_v36  ;;  %v1609_v38 = vpop.f32.mrb[24].mxu0  ;;  %v1202_v41 = vmax.f32 %v1178_v35, 0.0 }
 0x12c   : > { %v1649_v39 = vpop.f32.mrb[24].mxu1  ;;  %v1610_v40 = vpop.f32.mrb[25].mxu0 }
 0x12d   : > { %v1203_v42 = vmax.f32 %v1181_v37, 0.0  ;;  %v1611_v43 = vadd.f32 %v1610_v40, %v1609_v38  ;;  %v1650_v44 = vpop.f32.mrb[25].mxu1  ;;  %v1612_v45 = vpop.f32.mrb[26].mxu0 }
 0x12e   : > { %v1651_v47 = vadd.f32 %v1650_v44, %v1649_v39  ;;  %v1652_v49 = vpop.f32.mrb[26].mxu1  ;;  %v1613_v30 = vpop.f32.mrb[27].mxu0 }
 0x12f   : > { %v1486_v50 = vpack.c.bf16 %v1203_v42, %v1202_v41  ;;  %v1121_v51 = vadd.f32 %v1611_v43, %v2055_v46  ;;  %v1614_v52 = vadd.f32 %v1613_v30, %v1612_v45  ;;  %v1653_v53 = vpop.f32.mrb[27].mxu1 }
 0x130   : > { %v1654_v54 = vadd.f32 %v1653_v53, %v1652_v49 }
 0x131   : > { %1498 = vst [vmem:[%s2068_s17 + $0x8] sm:$0xff] %v1486_v50   ;;  %v1186_v32 = vadd.f32 %v1651_v47, %v1121_v51  ;;  %v1124_v55 = vadd.f32 %v1614_v52, %v2057_v48 }
 0x133   : > { %v1189_v56 = vadd.f32 %v1654_v54, %v1124_v55  ;;  %v1615_v57 = vpop.f32.mrb[28].mxu0  ;;  %v1204_v60 = vmax.f32 %v1186_v32, 0.0 }
 0x134   : > { %v1655_v58 = vpop.f32.mrb[28].mxu1  ;;  %v1616_v59 = vpop.f32.mrb[29].mxu0 }
 0x135   : > { %v1205_v61 = vmax.f32 %v1189_v56, 0.0  ;;  %v1617_v63 = vadd.f32 %v1616_v59, %v1615_v57  ;;  %v1656_v1 = vpop.f32.mrb[29].mxu1  ;;  %v1618_v3 = vpop.f32.mrb[30].mxu0 }
 0x136   : > { %v1657_v4 = vadd.f32 %v1656_v1, %v1655_v58  ;;  %v1658_v46 = vpop.f32.mrb[30].mxu1  ;;  %v1619_v5 = vpop.f32.mrb[31].mxu0 }
 0x137   : > { %v1491_v6 = vpack.c.bf16 %v1205_v61, %v1204_v60  ;;  %v1129_v7 = vadd.f32 %v1617_v63, %v2059_v62  ;;  %v1620_v8 = vadd.f32 %v1619_v5, %v1618_v3  ;;  %v1659_v9 = vpop.f32.mrb[31].mxu1 }
 0x138   : > { %v1660_v48 = vadd.f32 %v1659_v9, %v1658_v46 }
 0x139   : > { %1499 = vst [vmem:[%s2068_s17 + $0x10] sm:$0xff] %v1491_v6   ;;  %v1194_v10 = vadd.f32 %v1657_v4, %v1129_v7  ;;  %v1132_v11 = vadd.f32 %v1620_v8, %v2061_v0 }
 0x13b   : > { %v1197_v12 = vadd.f32 %v1660_v48, %v1132_v11  ;;  %v1206_v13 = vmax.f32 %v1194_v10, 0.0 }
 0x13d   : > { %v1207_v15 = vmax.f32 %v1197_v12, 0.0 }
 0x13f   : > { %v1496_v17 = vpack.c.bf16 %v1207_v15, %v1206_v13 }
 0x141   : > { %1500 = vst [vmem:[%s2068_s17 + $0x18] sm:$0xff] %v1496_v17  }
 0x142 PF: > { %s13_s14 = sadd.s32 1, %s1771_s14   ;;  %s2093_s12 = smov %s1767_s13 }
 0x143   : > { %p10_p5 = scmp.ge.s32.totalorder %s13_s14, 4   ;;  %s2094_s13 = smov %s2096_s15 }
 0x145   :  { %12 = sbr.rel (!%p10_p5) target bundleno = 2 (0x2), region = 68 }

// kernel: encoder_forward.7
= control target key start
LH: loop header
LB: loop body
LE: loop exit
PB: predicated region body
PF: predicated region fallthrough
CT: control target
= control target key end

     0   :  { %s3720_s12 = smov 0   ;;  %s3722_s13 = smov 0   ;;  %s4559_s0 = inlined_call_operand.vmem [shape: bf16[32,2048], index: 0, kind: input, shape index: {}]   ;;  %s4560_s1 = inlined_call_operand.vmem [shape: bf16[2048,256], index: 1, kind: input, shape index: {}]   ;;  %s4561_s2 = inlined_call_operand.vmem [shape: f32[1,256], index: 2, kind: input, shape index: {}]   ;;  %s4562_s3 = inlined_call_operand.vmem [shape: bf16[32,256], index: 3, kind: output, shape index: {}]  }
   0x1   :  { %s3724_s14 = smov 0   ;;  %s3726_s15 = smov 0  }
   0x2   :  { %s3728_s16 = smov 0  }
   0x3 LB: > { %s22_s17 = sadd.s32 1, %s3694_s15  ;;  %s3074_s18 = sadd.s32 4294967295, %s3698_s16   ;;  %s3698_s16 = sphi %s3728_s16, %s13_s16   ;;  %s3694_s15 = sphi %s3726_s15, %s4567_s15   ;;  %s3690_s14 = sphi %s3724_s14, %s4566_s14   ;;  %s3686_s13 = sphi %s3722_s13, %s4565_s13   ;;  %s3682_s12 = sphi %s3720_s12, %s4564_s12  }
   0x4   : > { %p23_p0 = scmp.ge.s32.totalorder %s22_s17, 2  ;;  %p65_p1 = scmp.ne.s32.totalorder %s3686_s13, %s3682_s12 }
   0x5   : > { %p66_p2 = scmp.eq.s32.totalorder %s3698_s16, 0  ;;  %p123_p4 = scmp.eq.s32.totalorder %s3074_s18, 1 }
   0x6   : > { %s4569_s17 = smov (%p23_p0, %s22_s17), 0  ;;  %s58_s20 = sadd.s32 1, %s3686_s13 }
   0x7   : > { %p67_p3 = por %p66_p2, %p65_p1  ;;  %s55_s19 = ssub.s32 %s3694_s15, %s4569_s17 }
   0x8   : > { %p56_p5 = scmp.eq.s32.totalorder %s55_s19, 0  ;;  %p3755_p6 = por %p123_p4, %p65_p1 }
   0x9   : > { %p3078_p7 = scmp.ge.s32.totalorder %s3698_s16, 2 }
   0xa   : > { %s3760_s22 = scalar_select %p56_p5, %s3686_s13, %s58_s20  }
   0xb   : > { %155 = sbr.rel (%p3078_p7) target bundleno = 192 (0xc0), region = 20 }
  0x12   : > { %158 = sbr.rel (!%p67_p3) target bundleno = 192 (0xc0), region = 24  ;;  %s160_s23 = sand.u32 (%p67_p3), 1, %s3686_s13  }
  0x13   : > { %s3080_s24 = sshll.u32 (%p67_p3), %s3694_s15, 2  ;;  %s3079_s25 = sshll.u32 (%p67_p3), %s160_s23, 10 }
  0x14   : > { %s3768_s28 = scalar_lea.vmem (%p67_p3), %s4560_s1, %s3080_s24  ;;  %s3772_s29 = scalar_lea.vmem (%p67_p3), [#allocation2], %s3079_s25 }
  0x15   : > { %v180_v0 = vld [vmem:[%s3768_s28] sm:$0xf] (%p67_p3)  ;;  %v182_v1 = vld [vmem:[%s3768_s28 + $0x8] sm:$0xf] (%p67_p3)  ;;  %v184_v2 = vld [vmem:[%s3768_s28 + $0x10] sm:$0xf] (%p67_p3) }
  0x16   : > { %181 = vst [vmem:[%s3772_s29] sm:$0xf] (%p67_p3), %v180_v0  ;;  %183 = vst [vmem:[%s3772_s29 + $0x4] sm:$0xf] (%p67_p3), %v182_v1  ;;  %v186_v3 = vld [vmem:[%s3768_s28 + $0x18] sm:$0xf] (%p67_p3) }
  0x17   : > { %v188_v4 = vld [vmem:[%s3768_s28 + $0x20] sm:$0xf] (%p67_p3)  ;;  %185 = vst [vmem:[%s3772_s29 + $0x8] sm:$0xf] (%p67_p3), %v184_v2  ;;  %187 = vst [vmem:[%s3772_s29 + $0xc] sm:$0xf] (%p67_p3), %v186_v3 }
  0x18   : > { %189 = vst [vmem:[%s3772_s29 + $0x10] sm:$0xf] (%p67_p3), %v188_v4  ;;  %v190_v5 = vld [vmem:[%s3768_s28 + $0x28] sm:$0xf] (%p67_p3)  ;;  %v192_v6 = vld [vmem:[%s3768_s28 + $0x30] sm:$0xf] (%p67_p3) }
  0x19   : > { %v194_v7 = vld [vmem:[%s3768_s28 + $0x38] sm:$0xf]  ;;  %191 = vst [vmem:[%s3772_s29 + $0x14] sm:$0xf] %v190_v5  ;;  %193 = vst [vmem:[%s3772_s29 + $0x18] sm:$0xf] %v192_v6 }
  0x1a   : > { %195 = vst [vmem:[%s3772_s29 + $0x1c] sm:$0xf] %v194_v7  ;;  %v196_v8 = vld [vmem:[%s3768_s28 + $0x40] sm:$0xf]  ;;  %v198_v9 = vld [vmem:[%s3768_s28 + $0x48] sm:$0xf] }
  0x1b   : > { %v200_v10 = vld [vmem:[%s3768_s28 + $0x50] sm:$0xf]  ;;  %197 = vst [vmem:[%s3772_s29 + $0x20] sm:$0xf] %v196_v8  ;;  %199 = vst [vmem:[%s3772_s29 + $0x24] sm:$0xf] %v198_v9 }
  0x1c   : > { %201 = vst [vmem:[%s3772_s29 + $0x28] sm:$0xf] %v200_v10  ;;  %v202_v11 = vld [vmem:[%s3768_s28 + $0x58] sm:$0xf]  ;;  %v204_v12 = vld [vmem:[%s3768_s28 + $0x60] sm:$0xf] }
  0x1d   : > { %v206_v13 = vld [vmem:[%s3768_s28 + $0x68] sm:$0xf]  ;;  %203 = vst [vmem:[%s3772_s29 + $0x2c] sm:$0xf] %v202_v11  ;;  %205 = vst [vmem:[%s3772_s29 + $0x30] sm:$0xf] %v204_v12 }
  0x1e   : > { %207 = vst [vmem:[%s3772_s29 + $0x34] sm:$0xf] %v206_v13  ;;  %v208_v14 = vld [vmem:[%s3768_s28 + $0x70] sm:$0xf]  ;;  %v210_v15 = vld [vmem:[%s3768_s28 + $0x78] sm:$0xf] }
  0x1f   : > { %v212_v16 = vld [vmem:[%s3768_s28 + $0x80] sm:$0xf]  ;;  %209 = vst [vmem:[%s3772_s29 + $0x38] sm:$0xf] %v208_v14  ;;  %211 = vst [vmem:[%s3772_s29 + $0x3c] sm:$0xf] %v210_v15 }
  0x20   : > { %213 = vst [vmem:[%s3772_s29 + $0x40] sm:$0xf] %v212_v16  ;;  %v214_v17 = vld [vmem:[%s3768_s28 + $0x88] sm:$0xf]  ;;  %v216_v18 = vld [vmem:[%s3768_s28 + $0x90] sm:$0xf] }
  0x21   : > { %v218_v19 = vld [vmem:[%s3768_s28 + $0x98] sm:$0xf]  ;;  %215 = vst [vmem:[%s3772_s29 + $0x44] sm:$0xf] %v214_v17  ;;  %217 = vst [vmem:[%s3772_s29 + $0x48] sm:$0xf] %v216_v18 }
  0x22   : > { %219 = vst [vmem:[%s3772_s29 + $0x4c] sm:$0xf] %v218_v19  ;;  %v220_v20 = vld [vmem:[%s3768_s28 + $0xa0] sm:$0xf]  ;;  %v222_v21 = vld [vmem:[%s3768_s28 + $0xa8] sm:$0xf] }
  0x23   : > { %v224_v22 = vld [vmem:[%s3768_s28 + $0xb0] sm:$0xf]  ;;  %221 = vst [vmem:[%s3772_s29 + $0x50] sm:$0xf] %v220_v20  ;;  %223 = vst [vmem:[%s3772_s29 + $0x54] sm:$0xf] %v222_v21 }
  0x24   : > { %225 = vst [vmem:[%s3772_s29 + $0x58] sm:$0xf] %v224_v22  ;;  %v226_v23 = vld [vmem:[%s3768_s28 + $0xb8] sm:$0xf]  ;;  %v228_v24 = vld [vmem:[%s3768_s28 + $0xc0] sm:$0xf] }
  0x25   : > { %v230_v25 = vld [vmem:[%s3768_s28 + $0xc8] sm:$0xf]  ;;  %227 = vst [vmem:[%s3772_s29 + $0x5c] sm:$0xf] %v226_v23  ;;  %229 = vst [vmem:[%s3772_s29 + $0x60] sm:$0xf] %v228_v24 }
  0x26   : > { %231 = vst [vmem:[%s3772_s29 + $0x64] sm:$0xf] %v230_v25  ;;  %v232_v26 = vld [vmem:[%s3768_s28 + $0xd0] sm:$0xf]  ;;  %v234_v27 = vld [vmem:[%s3768_s28 + $0xd8] sm:$0xf] }
  0x27   : > { %v236_v28 = vld [vmem:[%s3768_s28 + $0xe0] sm:$0xf]  ;;  %233 = vst [vmem:[%s3772_s29 + $0x68] sm:$0xf] %v232_v26  ;;  %235 = vst [vmem:[%s3772_s29 + $0x6c] sm:$0xf] %v234_v27 }
  0x28   : > { %237 = vst [vmem:[%s3772_s29 + $0x70] sm:$0xf] %v236_v28  ;;  %v238_v29 = vld [vmem:[%s3768_s28 + $0xe8] sm:$0xf]  ;;  %v240_v30 = vld [vmem:[%s3768_s28 + $0xf0] sm:$0xf] }
  0x29   : > { %v242_v31 = vld [vmem:[%s3768_s28 + $0xf8] sm:$0xf]  ;;  %239 = vst [vmem:[%s3772_s29 + $0x74] sm:$0xf] %v238_v29  ;;  %241 = vst [vmem:[%s3772_s29 + $0x78] sm:$0xf] %v240_v30 }
  0x2a   : > { %243 = vst [vmem:[%s3772_s29 + $0x7c] sm:$0xf] %v242_v31  ;;  %v244_v32 = vld [vmem:[%s3768_s28 + $0x100] sm:$0xf]  ;;  %v246_v33 = vld [vmem:[%s3768_s28 + $0x108] sm:$0xf] }
  0x2b   : > { %v248_v34 = vld [vmem:[%s3768_s28 + $0x110] sm:$0xf]  ;;  %245 = vst [vmem:[%s3772_s29 + $0x80] sm:$0xf] %v244_v32  ;;  %247 = vst [vmem:[%s3772_s29 + $0x84] sm:$0xf] %v246_v33 }
  0x2c   : > { %249 = vst [vmem:[%s3772_s29 + $0x88] sm:$0xf] %v248_v34  ;;  %v250_v35 = vld [vmem:[%s3768_s28 + $0x118] sm:$0xf]  ;;  %v252_v36 = vld [vmem:[%s3768_s28 + $0x120] sm:$0xf] }
  0x2d   : > { %v254_v37 = vld [vmem:[%s3768_s28 + $0x128] sm:$0xf]  ;;  %251 = vst [vmem:[%s3772_s29 + $0x8c] sm:$0xf] %v250_v35  ;;  %253 = vst [vmem:[%s3772_s29 + $0x90] sm:$0xf] %v252_v36 }
  0x2e   : > { %255 = vst [vmem:[%s3772_s29 + $0x94] sm:$0xf] %v254_v37  ;;  %v256_v38 = vld [vmem:[%s3768_s28 + $0x130] sm:$0xf]  ;;  %v258_v39 = vld [vmem:[%s3768_s28 + $0x138] sm:$0xf] }
  0x2f   : > { %v260_v40 = vld [vmem:[%s3768_s28 + $0x140] sm:$0xf]  ;;  %257 = vst [vmem:[%s3772_s29 + $0x98] sm:$0xf] %v256_v38  ;;  %259 = vst [vmem:[%s3772_s29 + $0x9c] sm:$0xf] %v258_v39 }
  0x30   : > { %261 = vst [vmem:[%s3772_s29 + $0xa0] sm:$0xf] %v260_v40  ;;  %v262_v41 = vld [vmem:[%s3768_s28 + $0x148] sm:$0xf]  ;;  %v264_v42 = vld [vmem:[%s3768_s28 + $0x150] sm:$0xf] }
  0x31   : > { %v266_v43 = vld [vmem:[%s3768_s28 + $0x158] sm:$0xf]  ;;  %263 = vst [vmem:[%s3772_s29 + $0xa4] sm:$0xf] %v262_v41  ;;  %265 = vst [vmem:[%s3772_s29 + $0xa8] sm:$0xf] %v264_v42 }
  0x32   : > { %267 = vst [vmem:[%s3772_s29 + $0xac] sm:$0xf] %v266_v43  ;;  %v268_v44 = vld [vmem:[%s3768_s28 + $0x160] sm:$0xf]  ;;  %v270_v45 = vld [vmem:[%s3768_s28 + $0x168] sm:$0xf] }
  0x33   : > { %v272_v46 = vld [vmem:[%s3768_s28 + $0x170] sm:$0xf]  ;;  %269 = vst [vmem:[%s3772_s29 + $0xb0] sm:$0xf] %v268_v44  ;;  %271 = vst [vmem:[%s3772_s29 + $0xb4] sm:$0xf] %v270_v45 }
  0x34   : > { %273 = vst [vmem:[%s3772_s29 + $0xb8] sm:$0xf] %v272_v46  ;;  %v274_v47 = vld [vmem:[%s3768_s28 + $0x178] sm:$0xf]  ;;  %v276_v48 = vld [vmem:[%s3768_s28 + $0x180] sm:$0xf] }
  0x35   : > { %v278_v49 = vld [vmem:[%s3768_s28 + $0x188] sm:$0xf]  ;;  %275 = vst [vmem:[%s3772_s29 + $0xbc] sm:$0xf] %v274_v47  ;;  %277 = vst [vmem:[%s3772_s29 + $0xc0] sm:$0xf] %v276_v48 }
  0x36   : > { %279 = vst [vmem:[%s3772_s29 + $0xc4] sm:$0xf] %v278_v49  ;;  %v280_v50 = vld [vmem:[%s3768_s28 + $0x190] sm:$0xf]  ;;  %v282_v51 = vld [vmem:[%s3768_s28 + $0x198] sm:$0xf] }
  0x37   : > { %v284_v52 = vld [vmem:[%s3768_s28 + $0x1a0] sm:$0xf]  ;;  %281 = vst [vmem:[%s3772_s29 + $0xc8] sm:$0xf] %v280_v50  ;;  %283 = vst [vmem:[%s3772_s29 + $0xcc] sm:$0xf] %v282_v51 }
  0x38   : > { %285 = vst [vmem:[%s3772_s29 + $0xd0] sm:$0xf] %v284_v52  ;;  %v286_v53 = vld [vmem:[%s3768_s28 + $0x1a8] sm:$0xf]  ;;  %v288_v54 = vld [vmem:[%s3768_s28 + $0x1b0] sm:$0xf] }
  0x39   : > { %v290_v55 = vld [vmem:[%s3768_s28 + $0x1b8] sm:$0xf]  ;;  %287 = vst [vmem:[%s3772_s29 + $0xd4] sm:$0xf] %v286_v53  ;;  %289 = vst [vmem:[%s3772_s29 + $0xd8] sm:$0xf] %v288_v54 }
  0x3a   : > { %291 = vst [vmem:[%s3772_s29 + $0xdc] sm:$0xf] %v290_v55  ;;  %v292_v56 = vld [vmem:[%s3768_s28 + $0x1c0] sm:$0xf]  ;;  %v294_v57 = vld [vmem:[%s3768_s28 + $0x1c8] sm:$0xf] }
  0x3b   : > { %v296_v58 = vld [vmem:[%s3768_s28 + $0x1d0] sm:$0xf]  ;;  %293 = vst [vmem:[%s3772_s29 + $0xe0] sm:$0xf] %v292_v56  ;;  %295 = vst [vmem:[%s3772_s29 + $0xe4] sm:$0xf] %v294_v57 }
  0x3c   : > { %297 = vst [vmem:[%s3772_s29 + $0xe8] sm:$0xf] %v296_v58  ;;  %v298_v59 = vld [vmem:[%s3768_s28 + $0x1d8] sm:$0xf]  ;;  %v300_v60 = vld [vmem:[%s3768_s28 + $0x1e0] sm:$0xf] }
  0x3d   : > { %v302_v61 = vld [vmem:[%s3768_s28 + $0x1e8] sm:$0xf]  ;;  %299 = vst [vmem:[%s3772_s29 + $0xec] sm:$0xf] %v298_v59  ;;  %301 = vst [vmem:[%s3772_s29 + $0xf0] sm:$0xf] %v300_v60 }
  0x3e   : > { %303 = vst [vmem:[%s3772_s29 + $0xf4] sm:$0xf] %v302_v61  ;;  %v304_v62 = vld [vmem:[%s3768_s28 + $0x1f0] sm:$0xf]  ;;  %v306_v63 = vld [vmem:[%s3768_s28 + $0x1f8] sm:$0xf] }
  0x3f   : > { %v308_v0 = vld [vmem:[%s3768_s28 + $0x200] sm:$0xf]  ;;  %305 = vst [vmem:[%s3772_s29 + $0xf8] sm:$0xf] %v304_v62  ;;  %307 = vst [vmem:[%s3772_s29 + $0xfc] sm:$0xf] %v306_v63 }
  0x40   : > { %309 = vst [vmem:[%s3772_s29 + $0x100] sm:$0xf] %v308_v0  ;;  %v310_v1 = vld [vmem:[%s3768_s28 + $0x208] sm:$0xf]  ;;  %v312_v2 = vld [vmem:[%s3768_s28 + $0x210] sm:$0xf] }
  0x41   : > { %v314_v3 = vld [vmem:[%s3768_s28 + $0x218] sm:$0xf]  ;;  %311 = vst [vmem:[%s3772_s29 + $0x104] sm:$0xf] %v310_v1  ;;  %313 = vst [vmem:[%s3772_s29 + $0x108] sm:$0xf] %v312_v2 }
  0x42   : > { %315 = vst [vmem:[%s3772_s29 + $0x10c] sm:$0xf] %v314_v3  ;;  %v316_v4 = vld [vmem:[%s3768_s28 + $0x220] sm:$0xf]  ;;  %v318_v5 = vld [vmem:[%s3768_s28 + $0x228] sm:$0xf] }
  0x43   : > { %v320_v6 = vld [vmem:[%s3768_s28 + $0x230] sm:$0xf]  ;;  %317 = vst [vmem:[%s3772_s29 + $0x110] sm:$0xf] %v316_v4  ;;  %319 = vst [vmem:[%s3772_s29 + $0x114] sm:$0xf] %v318_v5 }
  0x44   : > { %321 = vst [vmem:[%s3772_s29 + $0x118] sm:$0xf] %v320_v6  ;;  %v322_v7 = vld [vmem:[%s3768_s28 + $0x238] sm:$0xf]  ;;  %v324_v8 = vld [vmem:[%s3768_s28 + $0x240] sm:$0xf] }
  0x45   : > { %v326_v9 = vld [vmem:[%s3768_s28 + $0x248] sm:$0xf]  ;;  %323 = vst [vmem:[%s3772_s29 + $0x11c] sm:$0xf] %v322_v7  ;;  %325 = vst [vmem:[%s3772_s29 + $0x120] sm:$0xf] %v324_v8 }
  0x46   : > { %327 = vst [vmem:[%s3772_s29 + $0x124] sm:$0xf] %v326_v9  ;;  %v328_v10 = vld [vmem:[%s3768_s28 + $0x250] sm:$0xf]  ;;  %v330_v11 = vld [vmem:[%s3768_s28 + $0x258] sm:$0xf] }
  0x47   : > { %v332_v12 = vld [vmem:[%s3768_s28 + $0x260] sm:$0xf]  ;;  %329 = vst [vmem:[%s3772_s29 + $0x128] sm:$0xf] %v328_v10  ;;  %331 = vst [vmem:[%s3772_s29 + $0x12c] sm:$0xf] %v330_v11 }
  0x48   : > { %333 = vst [vmem:[%s3772_s29 + $0x130] sm:$0xf] %v332_v12  ;;  %v334_v13 = vld [vmem:[%s3768_s28 + $0x268] sm:$0xf]  ;;  %v336_v14 = vld [vmem:[%s3768_s28 + $0x270] sm:$0xf] }
  0x49   : > { %v338_v15 = vld [vmem:[%s3768_s28 + $0x278] sm:$0xf]  ;;  %335 = vst [vmem:[%s3772_s29 + $0x134] sm:$0xf] %v334_v13  ;;  %337 = vst [vmem:[%s3772_s29 + $0x138] sm:$0xf] %v336_v14 }
  0x4a   : > { %339 = vst [vmem:[%s3772_s29 + $0x13c] sm:$0xf] %v338_v15  ;;  %v340_v16 = vld [vmem:[%s3768_s28 + $0x280] sm:$0xf]  ;;  %v342_v17 = vld [vmem:[%s3768_s28 + $0x288] sm:$0xf] }
  0x4b   : > { %v344_v18 = vld [vmem:[%s3768_s28 + $0x290] sm:$0xf]  ;;  %341 = vst [vmem:[%s3772_s29 + $0x140] sm:$0xf] %v340_v16  ;;  %343 = vst [vmem:[%s3772_s29 + $0x144] sm:$0xf] %v342_v17 }
  0x4c   : > { %345 = vst [vmem:[%s3772_s29 + $0x148] sm:$0xf] %v344_v18  ;;  %v346_v19 = vld [vmem:[%s3768_s28 + $0x298] sm:$0xf]  ;;  %v348_v20 = vld [vmem:[%s3768_s28 + $0x2a0] sm:$0xf] }
  0x4d   : > { %v350_v21 = vld [vmem:[%s3768_s28 + $0x2a8] sm:$0xf]  ;;  %347 = vst [vmem:[%s3772_s29 + $0x14c] sm:$0xf] %v346_v19  ;;  %349 = vst [vmem:[%s3772_s29 + $0x150] sm:$0xf] %v348_v20 }
  0x4e   : > { %351 = vst [vmem:[%s3772_s29 + $0x154] sm:$0xf] %v350_v21  ;;  %v352_v22 = vld [vmem:[%s3768_s28 + $0x2b0] sm:$0xf]  ;;  %v354_v23 = vld [vmem:[%s3768_s28 + $0x2b8] sm:$0xf] }
  0x4f   : > { %v356_v24 = vld [vmem:[%s3768_s28 + $0x2c0] sm:$0xf]  ;;  %353 = vst [vmem:[%s3772_s29 + $0x158] sm:$0xf] %v352_v22  ;;  %355 = vst [vmem:[%s3772_s29 + $0x15c] sm:$0xf] %v354_v23 }
  0x50   : > { %357 = vst [vmem:[%s3772_s29 + $0x160] sm:$0xf] %v356_v24  ;;  %v358_v25 = vld [vmem:[%s3768_s28 + $0x2c8] sm:$0xf]  ;;  %v360_v26 = vld [vmem:[%s3768_s28 + $0x2d0] sm:$0xf] }
  0x51   : > { %v362_v27 = vld [vmem:[%s3768_s28 + $0x2d8] sm:$0xf]  ;;  %359 = vst [vmem:[%s3772_s29 + $0x164] sm:$0xf] %v358_v25  ;;  %361 = vst [vmem:[%s3772_s29 + $0x168] sm:$0xf] %v360_v26 }
  0x52   : > { %363 = vst [vmem:[%s3772_s29 + $0x16c] sm:$0xf] %v362_v27  ;;  %v364_v28 = vld [vmem:[%s3768_s28 + $0x2e0] sm:$0xf]  ;;  %v366_v29 = vld [vmem:[%s3768_s28 + $0x2e8] sm:$0xf] }
  0x53   : > { %v368_v30 = vld [vmem:[%s3768_s28 + $0x2f0] sm:$0xf]  ;;  %365 = vst [vmem:[%s3772_s29 + $0x170] sm:$0xf] %v364_v28  ;;  %367 = vst [vmem:[%s3772_s29 + $0x174] sm:$0xf] %v366_v29 }
  0x54   : > { %369 = vst [vmem:[%s3772_s29 + $0x178] sm:$0xf] %v368_v30  ;;  %v370_v31 = vld [vmem:[%s3768_s28 + $0x2f8] sm:$0xf]  ;;  %v372_v32 = vld [vmem:[%s3768_s28 + $0x300] sm:$0xf] }
  0x55   : > { %v374_v33 = vld [vmem:[%s3768_s28 + $0x308] sm:$0xf]  ;;  %371 = vst [vmem:[%s3772_s29 + $0x17c] sm:$0xf] %v370_v31  ;;  %373 = vst [vmem:[%s3772_s29 + $0x180] sm:$0xf] %v372_v32 }
  0x56   : > { %375 = vst [vmem:[%s3772_s29 + $0x184] sm:$0xf] %v374_v33  ;;  %v376_v34 = vld [vmem:[%s3768_s28 + $0x310] sm:$0xf]  ;;  %v378_v35 = vld [vmem:[%s3768_s28 + $0x318] sm:$0xf] }
  0x57   : > { %v380_v36 = vld [vmem:[%s3768_s28 + $0x320] sm:$0xf]  ;;  %377 = vst [vmem:[%s3772_s29 + $0x188] sm:$0xf] %v376_v34  ;;  %379 = vst [vmem:[%s3772_s29 + $0x18c] sm:$0xf] %v378_v35 }
  0x58   : > { %381 = vst [vmem:[%s3772_s29 + $0x190] sm:$0xf] %v380_v36  ;;  %v382_v37 = vld [vmem:[%s3768_s28 + $0x328] sm:$0xf]  ;;  %v384_v38 = vld [vmem:[%s3768_s28 + $0x330] sm:$0xf] }
  0x59   : > { %v386_v39 = vld [vmem:[%s3768_s28 + $0x338] sm:$0xf]  ;;  %383 = vst [vmem:[%s3772_s29 + $0x194] sm:$0xf] %v382_v37  ;;  %385 = vst [vmem:[%s3772_s29 + $0x198] sm:$0xf] %v384_v38 }
  0x5a   : > { %387 = vst [vmem:[%s3772_s29 + $0x19c] sm:$0xf] %v386_v39  ;;  %v388_v40 = vld [vmem:[%s3768_s28 + $0x340] sm:$0xf]  ;;  %v390_v41 = vld [vmem:[%s3768_s28 + $0x348] sm:$0xf] }
  0x5b   : > { %v392_v42 = vld [vmem:[%s3768_s28 + $0x350] sm:$0xf]  ;;  %389 = vst [vmem:[%s3772_s29 + $0x1a0] sm:$0xf] %v388_v40  ;;  %391 = vst [vmem:[%s3772_s29 + $0x1a4] sm:$0xf] %v390_v41 }
  0x5c   : > { %393 = vst [vmem:[%s3772_s29 + $0x1a8] sm:$0xf] %v392_v42  ;;  %v394_v43 = vld [vmem:[%s3768_s28 + $0x358] sm:$0xf]  ;;  %v396_v44 = vld [vmem:[%s3768_s28 + $0x360] sm:$0xf] }
  0x5d   : > { %v398_v45 = vld [vmem:[%s3768_s28 + $0x368] sm:$0xf]  ;;  %395 = vst [vmem:[%s3772_s29 + $0x1ac] sm:$0xf] %v394_v43  ;;  %397 = vst [vmem:[%s3772_s29 + $0x1b0] sm:$0xf] %v396_v44 }
  0x5e   : > { %399 = vst [vmem:[%s3772_s29 + $0x1b4] sm:$0xf] %v398_v45  ;;  %v400_v46 = vld [vmem:[%s3768_s28 + $0x370] sm:$0xf]  ;;  %v402_v47 = vld [vmem:[%s3768_s28 + $0x378] sm:$0xf] }
  0x5f   : > { %v404_v48 = vld [vmem:[%s3768_s28 + $0x380] sm:$0xf]  ;;  %401 = vst [vmem:[%s3772_s29 + $0x1b8] sm:$0xf] %v400_v46  ;;  %403 = vst [vmem:[%s3772_s29 + $0x1bc] sm:$0xf] %v402_v47 }
  0x60   : > { %405 = vst [vmem:[%s3772_s29 + $0x1c0] sm:$0xf] %v404_v48  ;;  %v406_v49 = vld [vmem:[%s3768_s28 + $0x388] sm:$0xf]  ;;  %v408_v50 = vld [vmem:[%s3768_s28 + $0x390] sm:$0xf] }
  0x61   : > { %v410_v51 = vld [vmem:[%s3768_s28 + $0x398] sm:$0xf]  ;;  %407 = vst [vmem:[%s3772_s29 + $0x1c4] sm:$0xf] %v406_v49  ;;  %409 = vst [vmem:[%s3772_s29 + $0x1c8] sm:$0xf] %v408_v50 }
  0x62   : > { %411 = vst [vmem:[%s3772_s29 + $0x1cc] sm:$0xf] %v410_v51  ;;  %v412_v52 = vld [vmem:[%s3768_s28 + $0x3a0] sm:$0xf]  ;;  %v414_v53 = vld [vmem:[%s3768_s28 + $0x3a8] sm:$0xf] }
  0x63   : > { %v416_v54 = vld [vmem:[%s3768_s28 + $0x3b0] sm:$0xf]  ;;  %413 = vst [vmem:[%s3772_s29 + $0x1d0] sm:$0xf] %v412_v52  ;;  %415 = vst [vmem:[%s3772_s29 + $0x1d4] sm:$0xf] %v414_v53 }
  0x64   : > { %417 = vst [vmem:[%s3772_s29 + $0x1d8] sm:$0xf] %v416_v54  ;;  %v418_v55 = vld [vmem:[%s3768_s28 + $0x3b8] sm:$0xf]  ;;  %v420_v56 = vld [vmem:[%s3768_s28 + $0x3c0] sm:$0xf] }
  0x65   : > { %v422_v57 = vld [vmem:[%s3768_s28 + $0x3c8] sm:$0xf]  ;;  %419 = vst [vmem:[%s3772_s29 + $0x1dc] sm:$0xf] %v418_v55  ;;  %421 = vst [vmem:[%s3772_s29 + $0x1e0] sm:$0xf] %v420_v56 }
  0x66   : > { %423 = vst [vmem:[%s3772_s29 + $0x1e4] sm:$0xf] %v422_v57  ;;  %v424_v58 = vld [vmem:[%s3768_s28 + $0x3d0] sm:$0xf]  ;;  %v426_v59 = vld [vmem:[%s3768_s28 + $0x3d8] sm:$0xf] }
  0x67   : > { %v428_v60 = vld [vmem:[%s3768_s28 + $0x3e0] sm:$0xf]  ;;  %425 = vst [vmem:[%s3772_s29 + $0x1e8] sm:$0xf] %v424_v58  ;;  %427 = vst [vmem:[%s3772_s29 + $0x1ec] sm:$0xf] %v426_v59 }
  0x68   : > { %429 = vst [vmem:[%s3772_s29 + $0x1f0] sm:$0xf] %v428_v60  ;;  %v430_v61 = vld [vmem:[%s3768_s28 + $0x3e8] sm:$0xf]  ;;  %v432_v62 = vld [vmem:[%s3768_s28 + $0x3f0] sm:$0xf] }
  0x69   : > { %v434_v63 = vld [vmem:[%s3768_s28 + $0x3f8] sm:$0xf]  ;;  %431 = vst [vmem:[%s3772_s29 + $0x1f4] sm:$0xf] %v430_v61  ;;  %433 = vst [vmem:[%s3772_s29 + $0x1f8] sm:$0xf] %v432_v62 }
  0x6a   : > { %435 = vst [vmem:[%s3772_s29 + $0x1fc] sm:$0xf] %v434_v63  ;;  %v436_v0 = vld [vmem:[%s3768_s28 + $0x400] sm:$0xf]  ;;  %v438_v1 = vld [vmem:[%s3768_s28 + $0x408] sm:$0xf] }
  0x6b   : > { %v440_v2 = vld [vmem:[%s3768_s28 + $0x410] sm:$0xf]  ;;  %437 = vst [vmem:[%s3772_s29 + $0x200] sm:$0xf] %v436_v0  ;;  %439 = vst [vmem:[%s3772_s29 + $0x204] sm:$0xf] %v438_v1 }
  0x6c   : > { %441 = vst [vmem:[%s3772_s29 + $0x208] sm:$0xf] %v440_v2  ;;  %v442_v3 = vld [vmem:[%s3768_s28 + $0x418] sm:$0xf]  ;;  %v444_v4 = vld [vmem:[%s3768_s28 + $0x420] sm:$0xf] }
  0x6d   : > { %v446_v5 = vld [vmem:[%s3768_s28 + $0x428] sm:$0xf]  ;;  %443 = vst [vmem:[%s3772_s29 + $0x20c] sm:$0xf] %v442_v3  ;;  %445 = vst [vmem:[%s3772_s29 + $0x210] sm:$0xf] %v444_v4 }
  0x6e   : > { %447 = vst [vmem:[%s3772_s29 + $0x214] sm:$0xf] %v446_v5  ;;  %v448_v6 = vld [vmem:[%s3768_s28 + $0x430] sm:$0xf]  ;;  %v450_v7 = vld [vmem:[%s3768_s28 + $0x438] sm:$0xf] }
  0x6f   : > { %v452_v8 = vld [vmem:[%s3768_s28 + $0x440] sm:$0xf]  ;;  %449 = vst [vmem:[%s3772_s29 + $0x218] sm:$0xf] %v448_v6  ;;  %451 = vst [vmem:[%s3772_s29 + $0x21c] sm:$0xf] %v450_v7 }
  0x70   : > { %453 = vst [vmem:[%s3772_s29 + $0x220] sm:$0xf] %v452_v8  ;;  %v454_v9 = vld [vmem:[%s3768_s28 + $0x448] sm:$0xf]  ;;  %v456_v10 = vld [vmem:[%s3768_s28 + $0x450] sm:$0xf] }
  0x71   : > { %v458_v11 = vld [vmem:[%s3768_s28 + $0x458] sm:$0xf]  ;;  %455 = vst [vmem:[%s3772_s29 + $0x224] sm:$0xf] %v454_v9  ;;  %457 = vst [vmem:[%s3772_s29 + $0x228] sm:$0xf] %v456_v10 }
  0x72   : > { %459 = vst [vmem:[%s3772_s29 + $0x22c] sm:$0xf] %v458_v11  ;;  %v460_v12 = vld [vmem:[%s3768_s28 + $0x460] sm:$0xf]  ;;  %v462_v13 = vld [vmem:[%s3768_s28 + $0x468] sm:$0xf] }
  0x73   : > { %v464_v14 = vld [vmem:[%s3768_s28 + $0x470] sm:$0xf]  ;;  %461 = vst [vmem:[%s3772_s29 + $0x230] sm:$0xf] %v460_v12  ;;  %463 = vst [vmem:[%s3772_s29 + $0x234] sm:$0xf] %v462_v13 }
  0x74   : > { %465 = vst [vmem:[%s3772_s29 + $0x238] sm:$0xf] %v464_v14  ;;  %v466_v15 = vld [vmem:[%s3768_s28 + $0x478] sm:$0xf]  ;;  %v468_v16 = vld [vmem:[%s3768_s28 + $0x480] sm:$0xf] }
  0x75   : > { %v470_v17 = vld [vmem:[%s3768_s28 + $0x488] sm:$0xf]  ;;  %467 = vst [vmem:[%s3772_s29 + $0x23c] sm:$0xf] %v466_v15  ;;  %469 = vst [vmem:[%s3772_s29 + $0x240] sm:$0xf] %v468_v16 }
  0x76   : > { %471 = vst [vmem:[%s3772_s29 + $0x244] sm:$0xf] %v470_v17  ;;  %v472_v18 = vld [vmem:[%s3768_s28 + $0x490] sm:$0xf]  ;;  %v474_v19 = vld [vmem:[%s3768_s28 + $0x498] sm:$0xf] }
  0x77   : > { %v476_v20 = vld [vmem:[%s3768_s28 + $0x4a0] sm:$0xf]  ;;  %473 = vst [vmem:[%s3772_s29 + $0x248] sm:$0xf] %v472_v18  ;;  %475 = vst [vmem:[%s3772_s29 + $0x24c] sm:$0xf] %v474_v19 }
  0x78   : > { %477 = vst [vmem:[%s3772_s29 + $0x250] sm:$0xf] %v476_v20  ;;  %v478_v21 = vld [vmem:[%s3768_s28 + $0x4a8] sm:$0xf]  ;;  %v480_v22 = vld [vmem:[%s3768_s28 + $0x4b0] sm:$0xf] }
  0x79   : > { %v482_v23 = vld [vmem:[%s3768_s28 + $0x4b8] sm:$0xf]  ;;  %479 = vst [vmem:[%s3772_s29 + $0x254] sm:$0xf] %v478_v21  ;;  %481 = vst [vmem:[%s3772_s29 + $0x258] sm:$0xf] %v480_v22 }
  0x7a   : > { %483 = vst [vmem:[%s3772_s29 + $0x25c] sm:$0xf] %v482_v23  ;;  %v484_v24 = vld [vmem:[%s3768_s28 + $0x4c0] sm:$0xf]  ;;  %v486_v25 = vld [vmem:[%s3768_s28 + $0x4c8] sm:$0xf] }
  0x7b   : > { %v488_v26 = vld [vmem:[%s3768_s28 + $0x4d0] sm:$0xf]  ;;  %485 = vst [vmem:[%s3772_s29 + $0x260] sm:$0xf] %v484_v24  ;;  %487 = vst [vmem:[%s3772_s29 + $0x264] sm:$0xf] %v486_v25 }
  0x7c   : > { %489 = vst [vmem:[%s3772_s29 + $0x268] sm:$0xf] %v488_v26  ;;  %v490_v27 = vld [vmem:[%s3768_s28 + $0x4d8] sm:$0xf]  ;;  %v492_v28 = vld [vmem:[%s3768_s28 + $0x4e0] sm:$0xf] }
  0x7d   : > { %v494_v29 = vld [vmem:[%s3768_s28 + $0x4e8] sm:$0xf]  ;;  %491 = vst [vmem:[%s3772_s29 + $0x26c] sm:$0xf] %v490_v27  ;;  %493 = vst [vmem:[%s3772_s29 + $0x270] sm:$0xf] %v492_v28 }
  0x7e   : > { %495 = vst [vmem:[%s3772_s29 + $0x274] sm:$0xf] %v494_v29  ;;  %v496_v30 = vld [vmem:[%s3768_s28 + $0x4f0] sm:$0xf]  ;;  %v498_v31 = vld [vmem:[%s3768_s28 + $0x4f8] sm:$0xf] }
  0x7f   : > { %v500_v32 = vld [vmem:[%s3768_s28 + $0x500] sm:$0xf]  ;;  %497 = vst [vmem:[%s3772_s29 + $0x278] sm:$0xf] %v496_v30  ;;  %499 = vst [vmem:[%s3772_s29 + $0x27c] sm:$0xf] %v498_v31 }
  0x80   : > { %501 = vst [vmem:[%s3772_s29 + $0x280] sm:$0xf] %v500_v32  ;;  %v502_v33 = vld [vmem:[%s3768_s28 + $0x508] sm:$0xf]  ;;  %v504_v34 = vld [vmem:[%s3768_s28 + $0x510] sm:$0xf] }
  0x81   : > { %v506_v35 = vld [vmem:[%s3768_s28 + $0x518] sm:$0xf]  ;;  %503 = vst [vmem:[%s3772_s29 + $0x284] sm:$0xf] %v502_v33  ;;  %505 = vst [vmem:[%s3772_s29 + $0x288] sm:$0xf] %v504_v34 }
  0x82   : > { %507 = vst [vmem:[%s3772_s29 + $0x28c] sm:$0xf] %v506_v35  ;;  %v508_v36 = vld [vmem:[%s3768_s28 + $0x520] sm:$0xf]  ;;  %v510_v37 = vld [vmem:[%s3768_s28 + $0x528] sm:$0xf] }
  0x83   : > { %v512_v38 = vld [vmem:[%s3768_s28 + $0x530] sm:$0xf]  ;;  %509 = vst [vmem:[%s3772_s29 + $0x290] sm:$0xf] %v508_v36  ;;  %511 = vst [vmem:[%s3772_s29 + $0x294] sm:$0xf] %v510_v37 }
  0x84   : > { %513 = vst [vmem:[%s3772_s29 + $0x298] sm:$0xf] %v512_v38  ;;  %v514_v39 = vld [vmem:[%s3768_s28 + $0x538] sm:$0xf]  ;;  %v516_v40 = vld [vmem:[%s3768_s28 + $0x540] sm:$0xf] }
  0x85   : > { %v518_v41 = vld [vmem:[%s3768_s28 + $0x548] sm:$0xf]  ;;  %515 = vst [vmem:[%s3772_s29 + $0x29c] sm:$0xf] %v514_v39  ;;  %517 = vst [vmem:[%s3772_s29 + $0x2a0] sm:$0xf] %v516_v40 }
  0x86   : > { %519 = vst [vmem:[%s3772_s29 + $0x2a4] sm:$0xf] %v518_v41  ;;  %v520_v42 = vld [vmem:[%s3768_s28 + $0x550] sm:$0xf]  ;;  %v522_v43 = vld [vmem:[%s3768_s28 + $0x558] sm:$0xf] }
  0x87   : > { %v524_v44 = vld [vmem:[%s3768_s28 + $0x560] sm:$0xf]  ;;  %521 = vst [vmem:[%s3772_s29 + $0x2a8] sm:$0xf] %v520_v42  ;;  %523 = vst [vmem:[%s3772_s29 + $0x2ac] sm:$0xf] %v522_v43 }
  0x88   : > { %525 = vst [vmem:[%s3772_s29 + $0x2b0] sm:$0xf] %v524_v44  ;;  %v526_v45 = vld [vmem:[%s3768_s28 + $0x568] sm:$0xf]  ;;  %v528_v46 = vld [vmem:[%s3768_s28 + $0x570] sm:$0xf] }
  0x89   : > { %v530_v47 = vld [vmem:[%s3768_s28 + $0x578] sm:$0xf]  ;;  %527 = vst [vmem:[%s3772_s29 + $0x2b4] sm:$0xf] %v526_v45  ;;  %529 = vst [vmem:[%s3772_s29 + $0x2b8] sm:$0xf] %v528_v46 }
  0x8a   : > { %531 = vst [vmem:[%s3772_s29 + $0x2bc] sm:$0xf] %v530_v47  ;;  %v532_v48 = vld [vmem:[%s3768_s28 + $0x580] sm:$0xf]  ;;  %v534_v49 = vld [vmem:[%s3768_s28 + $0x588] sm:$0xf] }
  0x8b   : > { %v536_v50 = vld [vmem:[%s3768_s28 + $0x590] sm:$0xf]  ;;  %533 = vst [vmem:[%s3772_s29 + $0x2c0] sm:$0xf] %v532_v48  ;;  %535 = vst [vmem:[%s3772_s29 + $0x2c4] sm:$0xf] %v534_v49 }
  0x8c   : > { %537 = vst [vmem:[%s3772_s29 + $0x2c8] sm:$0xf] %v536_v50  ;;  %v538_v51 = vld [vmem:[%s3768_s28 + $0x598] sm:$0xf]  ;;  %v540_v52 = vld [vmem:[%s3768_s28 + $0x5a0] sm:$0xf] }
  0x8d   : > { %v542_v53 = vld [vmem:[%s3768_s28 + $0x5a8] sm:$0xf]  ;;  %539 = vst [vmem:[%s3772_s29 + $0x2cc] sm:$0xf] %v538_v51  ;;  %541 = vst [vmem:[%s3772_s29 + $0x2d0] sm:$0xf] %v540_v52 }
  0x8e   : > { %543 = vst [vmem:[%s3772_s29 + $0x2d4] sm:$0xf] %v542_v53  ;;  %v544_v54 = vld [vmem:[%s3768_s28 + $0x5b0] sm:$0xf]  ;;  %v546_v55 = vld [vmem:[%s3768_s28 + $0x5b8] sm:$0xf] }
  0x8f   : > { %v548_v56 = vld [vmem:[%s3768_s28 + $0x5c0] sm:$0xf]  ;;  %545 = vst [vmem:[%s3772_s29 + $0x2d8] sm:$0xf] %v544_v54  ;;  %547 = vst [vmem:[%s3772_s29 + $0x2dc] sm:$0xf] %v546_v55 }
  0x90   : > { %549 = vst [vmem:[%s3772_s29 + $0x2e0] sm:$0xf] %v548_v56  ;;  %v550_v57 = vld [vmem:[%s3768_s28 + $0x5c8] sm:$0xf]  ;;  %v552_v58 = vld [vmem:[%s3768_s28 + $0x5d0] sm:$0xf] }
  0x91   : > { %v554_v59 = vld [vmem:[%s3768_s28 + $0x5d8] sm:$0xf]  ;;  %551 = vst [vmem:[%s3772_s29 + $0x2e4] sm:$0xf] %v550_v57  ;;  %553 = vst [vmem:[%s3772_s29 + $0x2e8] sm:$0xf] %v552_v58 }
  0x92   : > { %555 = vst [vmem:[%s3772_s29 + $0x2ec] sm:$0xf] %v554_v59  ;;  %v556_v60 = vld [vmem:[%s3768_s28 + $0x5e0] sm:$0xf]  ;;  %v558_v61 = vld [vmem:[%s3768_s28 + $0x5e8] sm:$0xf] }
  0x93   : > { %v560_v62 = vld [vmem:[%s3768_s28 + $0x5f0] sm:$0xf]  ;;  %557 = vst [vmem:[%s3772_s29 + $0x2f0] sm:$0xf] %v556_v60  ;;  %559 = vst [vmem:[%s3772_s29 + $0x2f4] sm:$0xf] %v558_v61 }
  0x94   : > { %561 = vst [vmem:[%s3772_s29 + $0x2f8] sm:$0xf] %v560_v62  ;;  %v562_v63 = vld [vmem:[%s3768_s28 + $0x5f8] sm:$0xf]  ;;  %v564_v0 = vld [vmem:[%s3768_s28 + $0x600] sm:$0xf] }
  0x95   : > { %v566_v1 = vld [vmem:[%s3768_s28 + $0x608] sm:$0xf]  ;;  %563 = vst [vmem:[%s3772_s29 + $0x2fc] sm:$0xf] %v562_v63  ;;  %565 = vst [vmem:[%s3772_s29 + $0x300] sm:$0xf] %v564_v0 }
  0x96   : > { %567 = vst [vmem:[%s3772_s29 + $0x304] sm:$0xf] %v566_v1  ;;  %v568_v2 = vld [vmem:[%s3768_s28 + $0x610] sm:$0xf]  ;;  %v570_v3 = vld [vmem:[%s3768_s28 + $0x618] sm:$0xf] }
  0x97   : > { %v572_v4 = vld [vmem:[%s3768_s28 + $0x620] sm:$0xf]  ;;  %569 = vst [vmem:[%s3772_s29 + $0x308] sm:$0xf] %v568_v2  ;;  %571 = vst [vmem:[%s3772_s29 + $0x30c] sm:$0xf] %v570_v3 }
  0x98   : > { %573 = vst [vmem:[%s3772_s29 + $0x310] sm:$0xf] %v572_v4  ;;  %v574_v5 = vld [vmem:[%s3768_s28 + $0x628] sm:$0xf]  ;;  %v576_v6 = vld [vmem:[%s3768_s28 + $0x630] sm:$0xf] }
  0x99   : > { %v578_v7 = vld [vmem:[%s3768_s28 + $0x638] sm:$0xf]  ;;  %575 = vst [vmem:[%s3772_s29 + $0x314] sm:$0xf] %v574_v5  ;;  %577 = vst [vmem:[%s3772_s29 + $0x318] sm:$0xf] %v576_v6 }
  0x9a   : > { %579 = vst [vmem:[%s3772_s29 + $0x31c] sm:$0xf] %v578_v7  ;;  %v580_v8 = vld [vmem:[%s3768_s28 + $0x640] sm:$0xf]  ;;  %v582_v9 = vld [vmem:[%s3768_s28 + $0x648] sm:$0xf] }
  0x9b   : > { %v584_v10 = vld [vmem:[%s3768_s28 + $0x650] sm:$0xf]  ;;  %581 = vst [vmem:[%s3772_s29 + $0x320] sm:$0xf] %v580_v8  ;;  %583 = vst [vmem:[%s3772_s29 + $0x324] sm:$0xf] %v582_v9 }
  0x9c   : > { %585 = vst [vmem:[%s3772_s29 + $0x328] sm:$0xf] %v584_v10  ;;  %v586_v11 = vld [vmem:[%s3768_s28 + $0x658] sm:$0xf]  ;;  %v588_v12 = vld [vmem:[%s3768_s28 + $0x660] sm:$0xf] }
  0x9d   : > { %v590_v13 = vld [vmem:[%s3768_s28 + $0x668] sm:$0xf]  ;;  %587 = vst [vmem:[%s3772_s29 + $0x32c] sm:$0xf] %v586_v11  ;;  %589 = vst [vmem:[%s3772_s29 + $0x330] sm:$0xf] %v588_v12 }
  0x9e   : > { %591 = vst [vmem:[%s3772_s29 + $0x334] sm:$0xf] %v590_v13  ;;  %v592_v14 = vld [vmem:[%s3768_s28 + $0x670] sm:$0xf]  ;;  %v594_v15 = vld [vmem:[%s3768_s28 + $0x678] sm:$0xf] }
  0x9f   : > { %v596_v16 = vld [vmem:[%s3768_s28 + $0x680] sm:$0xf]  ;;  %593 = vst [vmem:[%s3772_s29 + $0x338] sm:$0xf] %v592_v14  ;;  %595 = vst [vmem:[%s3772_s29 + $0x33c] sm:$0xf] %v594_v15 }
  0xa0   : > { %597 = vst [vmem:[%s3772_s29 + $0x340] sm:$0xf] %v596_v16  ;;  %v598_v17 = vld [vmem:[%s3768_s28 + $0x688] sm:$0xf]  ;;  %v600_v18 = vld [vmem:[%s3768_s28 + $0x690] sm:$0xf] }
  0xa1   : > { %v602_v19 = vld [vmem:[%s3768_s28 + $0x698] sm:$0xf]  ;;  %599 = vst [vmem:[%s3772_s29 + $0x344] sm:$0xf] %v598_v17  ;;  %601 = vst [vmem:[%s3772_s29 + $0x348] sm:$0xf] %v600_v18 }
  0xa2   : > { %603 = vst [vmem:[%s3772_s29 + $0x34c] sm:$0xf] %v602_v19  ;;  %v604_v20 = vld [vmem:[%s3768_s28 + $0x6a0] sm:$0xf]  ;;  %v606_v21 = vld [vmem:[%s3768_s28 + $0x6a8] sm:$0xf] }
  0xa3   : > { %v608_v22 = vld [vmem:[%s3768_s28 + $0x6b0] sm:$0xf]  ;;  %605 = vst [vmem:[%s3772_s29 + $0x350] sm:$0xf] %v604_v20  ;;  %607 = vst [vmem:[%s3772_s29 + $0x354] sm:$0xf] %v606_v21 }
  0xa4   : > { %609 = vst [vmem:[%s3772_s29 + $0x358] sm:$0xf] %v608_v22  ;;  %v610_v23 = vld [vmem:[%s3768_s28 + $0x6b8] sm:$0xf]  ;;  %v612_v24 = vld [vmem:[%s3768_s28 + $0x6c0] sm:$0xf] }
  0xa5   : > { %v614_v25 = vld [vmem:[%s3768_s28 + $0x6c8] sm:$0xf]  ;;  %611 = vst [vmem:[%s3772_s29 + $0x35c] sm:$0xf] %v610_v23  ;;  %613 = vst [vmem:[%s3772_s29 + $0x360] sm:$0xf] %v612_v24 }
  0xa6   : > { %615 = vst [vmem:[%s3772_s29 + $0x364] sm:$0xf] %v614_v25  ;;  %v616_v26 = vld [vmem:[%s3768_s28 + $0x6d0] sm:$0xf]  ;;  %v618_v27 = vld [vmem:[%s3768_s28 + $0x6d8] sm:$0xf] }
  0xa7   : > { %v620_v28 = vld [vmem:[%s3768_s28 + $0x6e0] sm:$0xf]  ;;  %617 = vst [vmem:[%s3772_s29 + $0x368] sm:$0xf] %v616_v26  ;;  %619 = vst [vmem:[%s3772_s29 + $0x36c] sm:$0xf] %v618_v27 }
  0xa8   : > { %621 = vst [vmem:[%s3772_s29 + $0x370] sm:$0xf] %v620_v28  ;;  %v622_v29 = vld [vmem:[%s3768_s28 + $0x6e8] sm:$0xf]  ;;  %v624_v30 = vld [vmem:[%s3768_s28 + $0x6f0] sm:$0xf] }
  0xa9   : > { %v626_v31 = vld [vmem:[%s3768_s28 + $0x6f8] sm:$0xf]  ;;  %623 = vst [vmem:[%s3772_s29 + $0x374] sm:$0xf] %v622_v29  ;;  %625 = vst [vmem:[%s3772_s29 + $0x378] sm:$0xf] %v624_v30 }
  0xaa   : > { %627 = vst [vmem:[%s3772_s29 + $0x37c] sm:$0xf] %v626_v31  ;;  %v628_v32 = vld [vmem:[%s3768_s28 + $0x700] sm:$0xf]  ;;  %v630_v33 = vld [vmem:[%s3768_s28 + $0x708] sm:$0xf] }
  0xab   : > { %v632_v34 = vld [vmem:[%s3768_s28 + $0x710] sm:$0xf]  ;;  %629 = vst [vmem:[%s3772_s29 + $0x380] sm:$0xf] %v628_v32  ;;  %631 = vst [vmem:[%s3772_s29 + $0x384] sm:$0xf] %v630_v33 }
  0xac   : > { %633 = vst [vmem:[%s3772_s29 + $0x388] sm:$0xf] %v632_v34  ;;  %v634_v35 = vld [vmem:[%s3768_s28 + $0x718] sm:$0xf]  ;;  %v636_v36 = vld [vmem:[%s3768_s28 + $0x720] sm:$0xf] }
  0xad   : > { %v638_v37 = vld [vmem:[%s3768_s28 + $0x728] sm:$0xf]  ;;  %635 = vst [vmem:[%s3772_s29 + $0x38c] sm:$0xf] %v634_v35  ;;  %637 = vst [vmem:[%s3772_s29 + $0x390] sm:$0xf] %v636_v36 }
  0xae   : > { %639 = vst [vmem:[%s3772_s29 + $0x394] sm:$0xf] %v638_v37  ;;  %v640_v38 = vld [vmem:[%s3768_s28 + $0x730] sm:$0xf]  ;;  %v642_v39 = vld [vmem:[%s3768_s28 + $0x738] sm:$0xf] }
  0xaf   : > { %v644_v40 = vld [vmem:[%s3768_s28 + $0x740] sm:$0xf]  ;;  %641 = vst [vmem:[%s3772_s29 + $0x398] sm:$0xf] %v640_v38  ;;  %643 = vst [vmem:[%s3772_s29 + $0x39c] sm:$0xf] %v642_v39 }
  0xb0   : > { %645 = vst [vmem:[%s3772_s29 + $0x3a0] sm:$0xf] %v644_v40  ;;  %v646_v41 = vld [vmem:[%s3768_s28 + $0x748] sm:$0xf]  ;;  %v648_v42 = vld [vmem:[%s3768_s28 + $0x750] sm:$0xf] }
  0xb1   : > { %v650_v43 = vld [vmem:[%s3768_s28 + $0x758] sm:$0xf]  ;;  %647 = vst [vmem:[%s3772_s29 + $0x3a4] sm:$0xf] %v646_v41  ;;  %649 = vst [vmem:[%s3772_s29 + $0x3a8] sm:$0xf] %v648_v42 }
  0xb2   : > { %651 = vst [vmem:[%s3772_s29 + $0x3ac] sm:$0xf] %v650_v43  ;;  %v652_v44 = vld [vmem:[%s3768_s28 + $0x760] sm:$0xf]  ;;  %v654_v45 = vld [vmem:[%s3768_s28 + $0x768] sm:$0xf] }
  0xb3   : > { %v656_v46 = vld [vmem:[%s3768_s28 + $0x770] sm:$0xf]  ;;  %653 = vst [vmem:[%s3772_s29 + $0x3b0] sm:$0xf] %v652_v44  ;;  %655 = vst [vmem:[%s3772_s29 + $0x3b4] sm:$0xf] %v654_v45 }
  0xb4   : > { %657 = vst [vmem:[%s3772_s29 + $0x3b8] sm:$0xf] %v656_v46  ;;  %v658_v47 = vld [vmem:[%s3768_s28 + $0x778] sm:$0xf]  ;;  %v660_v48 = vld [vmem:[%s3768_s28 + $0x780] sm:$0xf] }
  0xb5   : > { %v662_v49 = vld [vmem:[%s3768_s28 + $0x788] sm:$0xf]  ;;  %659 = vst [vmem:[%s3772_s29 + $0x3bc] sm:$0xf] %v658_v47  ;;  %661 = vst [vmem:[%s3772_s29 + $0x3c0] sm:$0xf] %v660_v48 }
  0xb6   : > { %663 = vst [vmem:[%s3772_s29 + $0x3c4] sm:$0xf] %v662_v49  ;;  %v664_v50 = vld [vmem:[%s3768_s28 + $0x790] sm:$0xf]  ;;  %v666_v51 = vld [vmem:[%s3768_s28 + $0x798] sm:$0xf] }
  0xb7   : > { %v668_v52 = vld [vmem:[%s3768_s28 + $0x7a0] sm:$0xf]  ;;  %665 = vst [vmem:[%s3772_s29 + $0x3c8] sm:$0xf] %v664_v50  ;;  %667 = vst [vmem:[%s3772_s29 + $0x3cc] sm:$0xf] %v666_v51 }
  0xb8   : > { %669 = vst [vmem:[%s3772_s29 + $0x3d0] sm:$0xf] %v668_v52  ;;  %v670_v53 = vld [vmem:[%s3768_s28 + $0x7a8] sm:$0xf]  ;;  %v672_v54 = vld [vmem:[%s3768_s28 + $0x7b0] sm:$0xf] }
  0xb9   : > { %v674_v55 = vld [vmem:[%s3768_s28 + $0x7b8] sm:$0xf]  ;;  %671 = vst [vmem:[%s3772_s29 + $0x3d4] sm:$0xf] %v670_v53  ;;  %673 = vst [vmem:[%s3772_s29 + $0x3d8] sm:$0xf] %v672_v54 }
  0xba   : > { %675 = vst [vmem:[%s3772_s29 + $0x3dc] sm:$0xf] %v674_v55  ;;  %v676_v56 = vld [vmem:[%s3768_s28 + $0x7c0] sm:$0xf]  ;;  %v678_v57 = vld [vmem:[%s3768_s28 + $0x7c8] sm:$0xf] }
  0xbb   : > { %v680_v58 = vld [vmem:[%s3768_s28 + $0x7d0] sm:$0xf]  ;;  %677 = vst [vmem:[%s3772_s29 + $0x3e0] sm:$0xf] %v676_v56  ;;  %679 = vst [vmem:[%s3772_s29 + $0x3e4] sm:$0xf] %v678_v57 }
  0xbc   : > { %681 = vst [vmem:[%s3772_s29 + $0x3e8] sm:$0xf] %v680_v58  ;;  %v682_v59 = vld [vmem:[%s3768_s28 + $0x7d8] sm:$0xf]  ;;  %v684_v60 = vld [vmem:[%s3768_s28 + $0x7e0] sm:$0xf] }
  0xbd   : > { %v686_v61 = vld [vmem:[%s3768_s28 + $0x7e8] sm:$0xf]  ;;  %683 = vst [vmem:[%s3772_s29 + $0x3ec] sm:$0xf] %v682_v59  ;;  %685 = vst [vmem:[%s3772_s29 + $0x3f0] sm:$0xf] %v684_v60 }
  0xbe   : > { %687 = vst [vmem:[%s3772_s29 + $0x3f4] sm:$0xf] %v686_v61  ;;  %v688_v62 = vld [vmem:[%s3768_s28 + $0x7f0] sm:$0xf]  ;;  %v690_v63 = vld [vmem:[%s3768_s28 + $0x7f8] sm:$0xf] }
  0xbf   : > { %689 = vst [vmem:[%s3772_s29 + $0x3f8] sm:$0xf] %v688_v62  ;;  %691 = vst [vmem:[%s3772_s29 + $0x3fc] sm:$0xf] %v690_v63 }
  0xc0 PF: > { %p3081_p8 = scmp.ge.s32.totalorder %s3698_s16, 1  ;;  %p1231_p9 = scmp.lt.s32.totalorder %s3698_s16, 3 }
  0xc2   : > { %p1232_p10 = pnand %p3081_p8, %p1231_p9 }
  0xc3   : > { %s1238_s30 = sand.u32 (!%p1232_p10), 1, %s3682_s12   ;;  %v4290_v0 = vld [vmem:[%s4559_s0] sm:$0xff] (!%p1232_p10)  ;;  %v4300_v2 = vld [vmem:[%s4559_s0 + $0x8] sm:$0xff] (!%p1232_p10)  ;;  %p1276_p11 = scmp.lt.s32.totalorder (!%p1232_p10), %s3690_s14, 1 }
  0xc4   : > { %1235 = sbr.rel (%p1232_p10) target bundleno = 570 (0x23a), region = 69  ;;  %v4295_v1 = vld [vmem:[%s4559_s0 + $0x40] sm:$0xff] (!%p1232_p10)  ;;  %s3082_s10 = sshll.u32 (!%p1232_p10), %s1238_s30, 10  ;;  %v4309_v4 = vld [vmem:[%s4559_s0 + $0x48] sm:$0xff] (!%p1232_p10) }
  0xc5   : > { %v3086_v3 = vcombine.high (!%p1232_p10), %v4290_v0, %v4295_v1  ;;  %v3088_v5 = vcombine.high (!%p1232_p10), %v4300_v2, %v4309_v4  ;;  %s4313_s19 = scalar_lea.vmem (!%p1232_p10), [#allocation2], %s3082_s10  ;;  %v1297_v35 = vld [vmem:[%s4559_s0 + $0x80] sm:$0xff] (!%p1232_p10)  ;;  %v1298_v38 = vld [vmem:[%s4559_s0 + $0x88] sm:$0xff] (!%p1232_p10)  ;;  %v3085_v42 = vcombine.low (!%p1232_p10), %v4290_v0, %v4295_v1  ;;  %v3087_v43 = vcombine.low (!%p1232_p10), %v4300_v2, %v4309_v4  ;;  %s3083_s4 = sshll.u32 (!%p1232_p10), %s1238_s30, 4 }
  0xc6   : > { %v3532_v6 = vld [vmem:[%s4313_s19 + $0x40] sm:$0xff] (!%p1232_p10)   ;;  %v3536_v10 = vld [vmem:[%s4313_s19 + $0x48] sm:$0xff] (!%p1232_p10)   ;;  %v3540_v14 = vld [vmem:[%s4313_s19 + $0x50] sm:$0xff] (!%p1232_p10)   ;;  %s1268_s5 = scalar_lea.vmem (!%p1232_p10), [#allocation3], %s3083_s4 }
  0xc7   : > { %2536 = vmatprep.mubr.bf16.mxu0 (!%p1232_p10), %v3086_v3  ;;  %v3533_v7 = vld [vmem:[%s4313_s19 + $0xc0] sm:$0xff] (!%p1232_p10)   ;;  %2585 = vmatprep.mubr.bf16.mxu1 (!%p1232_p10), %v3088_v5  ;;  %v3537_v11 = vld [vmem:[%s4313_s19 + $0xc8] sm:$0xff] (!%p1232_p10)   ;;  %v3541_v15 = vld [vmem:[%s4313_s19 + $0xd0] sm:$0xff] (!%p1232_p10)  }
  0xc8   : > { %3268 = vmatprep.subr.bf16.mxu0 (!%p1232_p10), %v3532_v6  ;;  %v3534_v8 = vld [vmem:[%s4313_s19] sm:$0xff] (!%p1232_p10)   ;;  %3296 = vmatprep.subr.bf16.mxu1 (!%p1232_p10), %v3533_v7  ;;  %v3538_v12 = vld [vmem:[%s4313_s19 + $0x8] sm:$0xff] (!%p1232_p10)   ;;  %v3542_v16 = vld [vmem:[%s4313_s19 + $0x10] sm:$0xff] (!%p1232_p10)  }
  0xc9   : > { %v3535_v9 = vld [vmem:[%s4313_s19 + $0x80] sm:$0xff] (!%p1232_p10)   ;;  %3269 = vmatpush3.bf16.msra.mxu0 (!%p1232_p10), %v3534_v8  ;;  %v3539_v13 = vld [vmem:[%s4313_s19 + $0x88] sm:$0xff] (!%p1232_p10)   ;;  %v3543_v17 = vld [vmem:[%s4313_s19 + $0x90] sm:$0xff] (!%p1232_p10)  }
  0xca   : > { %3297 = vmatpush3.bf16.msra.mxu1 (!%p1232_p10), %v3535_v9  ;;  %3270 = vmatprep.subr.bf16.mxu0 (!%p1232_p10), %v3536_v10  ;;  %v3544_v18 = vld [vmem:[%s4313_s19 + $0x58] sm:$0xff] (!%p1232_p10)   ;;  %v3548_v22 = vld [vmem:[%s4313_s19 + $0x60] sm:$0xff] (!%p1232_p10)   ;;  %v3552_v26 = vld [vmem:[%s4313_s19 + $0x68] sm:$0xff] (!%p1232_p10)  }
  0xcb   : > { %3298 = vmatprep.subr.bf16.mxu1 %v3537_v11  ;;  %v3545_v19 = vld [vmem:[%s4313_s19 + $0xd8] sm:$0xff]   ;;  %v3549_v23 = vld [vmem:[%s4313_s19 + $0xe0] sm:$0xff]   ;;  %v3553_v27 = vld [vmem:[%s4313_s19 + $0xe8] sm:$0xff]   ;;  %s1277_s26 = scalar_select %p1276_p11, %s3690_s14, 1 }
  0xcc   : > { %v3546_v20 = vld [vmem:[%s4313_s19 + $0x18] sm:$0xff]   ;;  %v3550_v24 = vld [vmem:[%s4313_s19 + $0x20] sm:$0xff]   ;;  %v3554_v28 = vld [vmem:[%s4313_s19 + $0x28] sm:$0xff]   ;;  %s3250_s12 = sshll.u32 (%p3755_p6), %s3690_s14, 2 }
  0xcd   : > { %3271 = vmatpush3.bf16.msra.mxu0 %v3538_v12  ;;  %v3547_v21 = vld [vmem:[%s4313_s19 + $0x98] sm:$0xff]   ;;  %v3551_v25 = vld [vmem:[%s4313_s19 + $0xa0] sm:$0xff]   ;;  %v3555_v29 = vld [vmem:[%s4313_s19 + $0xa8] sm:$0xff]   ;;  %s1278_s29 = scalar_lea.vmem %s4561_s2, %s1277_s26  ;;  %s2931_s7 = scalar_lea.vmem (%p3755_p6), %s4562_s3, %s3250_s12 }
  0xce   : > { %3299 = vmatpush3.bf16.msra.mxu1 %v3539_v13  ;;  %3272 = vmatprep.subr.bf16.mxu0 %v3540_v14  ;;  %v3556_v30 = vld [vmem:[%s4313_s19 + $0x70] sm:$0xff]   ;;  %v3560_v34 = vld [vmem:[%s4313_s19 + $0x78] sm:$0xff]   ;;  %v1305_v36 = vld [vmem:[%s4559_s0 + $0xc0] sm:$0xff] }
  0xcf   : > { %3300 = vmatprep.subr.bf16.mxu1 %v3541_v15  ;;  %v3557_v31 = vld [vmem:[%s4313_s19 + $0xf0] sm:$0xff]   ;;  %v3561_v37 = vld [vmem:[%s4313_s19 + $0xf8] sm:$0xff]   ;;  %v1306_v39 = vld [vmem:[%s4559_s0 + $0xc8] sm:$0xff]  ;;  %v3102_v46 = vcombine.high %v1297_v35, %v1305_v36  ;;  %v3101_v54 = vcombine.low %v1297_v35, %v1305_v36 }
  0xd0   : > { %v3558_v32 = vld [vmem:[%s4313_s19 + $0x30] sm:$0xff]   ;;  %v3562_v40 = vld [vmem:[%s4313_s19 + $0x38] sm:$0xff]   ;;  %v3564_v44 = vld [vmem:[%s4313_s19 + $0x140] sm:$0xff]   ;;  %v3104_v48 = vcombine.high %v1298_v38, %v1306_v39  ;;  %v3103_v56 = vcombine.low %v1298_v38, %v1306_v39 }
  0xd1   : > { %3273 = vmatpush3.bf16.msra.mxu0 %v3542_v16  ;;  %v3559_v33 = vld [vmem:[%s4313_s19 + $0xb0] sm:$0xff]   ;;  %v3563_v41 = vld [vmem:[%s4313_s19 + $0xb8] sm:$0xff]   ;;  %v3565_v45 = vld [vmem:[%s4313_s19 + $0x1c0] sm:$0xff]  }
  0xd2   : > { %3301 = vmatpush3.bf16.msra.mxu1 %v3543_v17  ;;  %3274 = vmatprep.subr.bf16.mxu0 %v3544_v18  ;;  %v3566_v47 = vld [vmem:[%s4313_s19 + $0x100] sm:$0xff]   ;;  %v3568_v50 = vld [vmem:[%s4313_s19 + $0x148] sm:$0xff]   ;;  %v3572_v55 = vld [vmem:[%s4313_s19 + $0x150] sm:$0xff]  }
  0xd3   : > { %3302 = vmatprep.subr.bf16.mxu1 %v3545_v19  ;;  %v3567_v49 = vld [vmem:[%s4313_s19 + $0x180] sm:$0xff]   ;;  %v3569_v51 = vld [vmem:[%s4313_s19 + $0x1c8] sm:$0xff]   ;;  %v3573_v57 = vld [vmem:[%s4313_s19 + $0x1d0] sm:$0xff]  }
  0xd4   : > { %v3570_v52 = vld [vmem:[%s4313_s19 + $0x108] sm:$0xff]   ;;  %v3574_v58 = vld [vmem:[%s4313_s19 + $0x110] sm:$0xff]   ;;  %v3576_v60 = vld [vmem:[%s4313_s19 + $0x158] sm:$0xff]  }
  0xd5   : > { %3275 = vmatpush3.bf16.msra.mxu0 %v3546_v20  ;;  %v3571_v53 = vld [vmem:[%s4313_s19 + $0x188] sm:$0xff]   ;;  %v3575_v59 = vld [vmem:[%s4313_s19 + $0x190] sm:$0xff]   ;;  %v3577_v61 = vld [vmem:[%s4313_s19 + $0x1d8] sm:$0xff]  }
  0xd6   : > { %3303 = vmatpush3.bf16.msra.mxu1 %v3547_v21  ;;  %3276 = vmatprep.subr.bf16.mxu0 %v3548_v22  ;;  %v3578_v62 = vld [vmem:[%s4313_s19 + $0x118] sm:$0xff]   ;;  %v3580_v0 = vld [vmem:[%s4313_s19 + $0x160] sm:$0xff]   ;;  %v3584_v4 = vld [vmem:[%s4313_s19 + $0x168] sm:$0xff]  }
  0xd7   : > { %3304 = vmatprep.subr.bf16.mxu1 %v3549_v23  ;;  %v3579_v63 = vld [vmem:[%s4313_s19 + $0x198] sm:$0xff]   ;;  %v3581_v1 = vld [vmem:[%s4313_s19 + $0x1e0] sm:$0xff]   ;;  %v3585_v5 = vld [vmem:[%s4313_s19 + $0x1e8] sm:$0xff]  }
  0xd8   : > { %v3582_v2 = vld [vmem:[%s4313_s19 + $0x120] sm:$0xff]   ;;  %v3586_v6 = vld [vmem:[%s4313_s19 + $0x128] sm:$0xff]   ;;  %v3588_v8 = vld [vmem:[%s4313_s19 + $0x170] sm:$0xff]  }
  0xd9   : > { %3277 = vmatpush3.bf16.msra.mxu0 %v3550_v24  ;;  %v3583_v3 = vld [vmem:[%s4313_s19 + $0x1a0] sm:$0xff]   ;;  %v3587_v7 = vld [vmem:[%s4313_s19 + $0x1a8] sm:$0xff]   ;;  %v3589_v9 = vld [vmem:[%s4313_s19 + $0x1f0] sm:$0xff]  }
  0xda   : > { %3305 = vmatpush3.bf16.msra.mxu1 %v3551_v25  ;;  %3278 = vmatprep.subr.bf16.mxu0 %v3552_v26  ;;  %v3590_v10 = vld [vmem:[%s4313_s19 + $0x130] sm:$0xff]   ;;  %v3592_v12 = vld [vmem:[%s4313_s19 + $0x178] sm:$0xff]   ;;  %v3596_v24 = vld [vmem:[%s4313_s19 + $0x240] sm:$0xff]  }
  0xdb   : > { %3306 = vmatprep.subr.bf16.mxu1 %v3553_v27  ;;  %v3591_v11 = vld [vmem:[%s4313_s19 + $0x1b0] sm:$0xff]   ;;  %v3593_v14 = vld [vmem:[%s4313_s19 + $0x1f8] sm:$0xff]   ;;  %v3597_v25 = vld [vmem:[%s4313_s19 + $0x2c0] sm:$0xff]  }
  0xdc   : > { %v1283_v13 = vld [vmem:[%s4559_s0 + $0x10] sm:$0xff]  ;;  %v3594_v15 = vld [vmem:[%s4313_s19 + $0x138] sm:$0xff]   ;;  %v3598_v26 = vld [vmem:[%s4313_s19 + $0x200] sm:$0xff]  }
  0xdd   : > { %3279 = vmatpush3.bf16.msra.mxu0 %v3554_v28  ;;  %v3595_v16 = vld [vmem:[%s4313_s19 + $0x1b8] sm:$0xff]   ;;  %v1291_v17 = vld [vmem:[%s4559_s0 + $0x50] sm:$0xff]  ;;  %v3599_v27 = vld [vmem:[%s4313_s19 + $0x280] sm:$0xff]  }
  0xde   : > { %3307 = vmatpush3.bf16.msra.mxu1 %v3555_v29  ;;  %3280 = vmatprep.subr.bf16.mxu0 %v3556_v30  ;;  %v1284_v18 = vld [vmem:[%s4559_s0 + $0x18] sm:$0xff]  ;;  %v3089_v20 = vcombine.low %v1283_v13, %v1291_v17  ;;  %v3090_v21 = vcombine.high %v1283_v13, %v1291_v17  ;;  %v3600_v28 = vld [vmem:[%s4313_s19 + $0x248] sm:$0xff]   ;;  %v3604_v36 = vld [vmem:[%s4313_s19 + $0x250] sm:$0xff]  }
  0xdf   : > { %3308 = vmatprep.subr.bf16.mxu1 %v3557_v31  ;;  %v1292_v19 = vld [vmem:[%s4559_s0 + $0x58] sm:$0xff]  ;;  %v3601_v29 = vld [vmem:[%s4313_s19 + $0x2c8] sm:$0xff]   ;;  %v1309_v17 = vld [vmem:[%s4559_s0 + $0xe0] sm:$0xff] }
  0xe0   : > { %v3091_v22 = vcombine.low %v1284_v18, %v1292_v19  ;;  %v3092_v23 = vcombine.high %v1284_v18, %v1292_v19  ;;  %v3602_v30 = vld [vmem:[%s4313_s19 + $0x208] sm:$0xff]   ;;  %v1300_v38 = vld [vmem:[%s4559_s0 + $0x98] sm:$0xff] }
  0xe1   : > { %3281 = vmatpush3.bf16.msra.mxu0 %v3558_v32  ;;  %v3603_v31 = vld [vmem:[%s4313_s19 + $0x288] sm:$0xff]   ;;  %v1299_v32 = vld [vmem:[%s4559_s0 + $0x90] sm:$0xff]  ;;  %v1308_v39 = vld [vmem:[%s4559_s0 + $0xd8] sm:$0xff] }
  0xe2   : > { %3309 = vmatpush3.bf16.msra.mxu1 %v3559_v33  ;;  %3282 = vmatprep.subr.bf16.mxu0 %v3560_v34  ;;  %v1307_v33 = vld [vmem:[%s4559_s0 + $0xd0] sm:$0xff]  ;;  %v3633_v13 = vld [vmem:[%s4313_s19 + $0x3c8] sm:$0xff]  }
  0xe3   : > { %3310 = vmatprep.subr.bf16.mxu1 %v3561_v37  ;;  %v3106_v34 = vcombine.high %v1299_v32, %v1307_v33  ;;  %v3105_v35 = vcombine.low %v1299_v32, %v1307_v33  ;;  %v3605_v37 = vld [vmem:[%s4313_s19 + $0x2d0] sm:$0xff]   ;;  %v3644_v32 = vld [vmem:[%s4313_s19 + $0x360] sm:$0xff]  }
  0xe4   : > { %v3645_v33 = vld [vmem:[%s4313_s19 + $0x3e0] sm:$0xff]  }
  0xe5   : > { %3283 = vmatpush3.bf16.msra.mxu0 %v3562_v40  ;;  %v3108_v40 = vcombine.high %v1300_v38, %v1308_v39 }
  0xe6   : > { %3311 = vmatpush3.bf16.msra.mxu1 %v3563_v41  ;;  %3324 = vmatprep.subr.bf16.mxu0 %v3564_v44  ;;  %v3606_v41 = vld [vmem:[%s4313_s19 + $0x210] sm:$0xff]   ;;  %v3608_v44 = vld [vmem:[%s4313_s19 + $0x258] sm:$0xff]  }
  0xe7   : > { %3352 = vmatprep.subr.bf16.mxu1 %v3565_v45  ;;  %v3609_v45 = vld [vmem:[%s4313_s19 + $0x2d8] sm:$0xff]  }
  0xe8   : > { %2537 = vmatmul.mubr.bf16.vlgmr.msra.gmra.mrb[0].mxu0 %v3085_v42  ;;  %v3107_v42 = vcombine.low %v1300_v38, %v1308_v39  ;;  %v3650_v38 = vld [vmem:[%s4313_s19 + $0x328] sm:$0xff]  }
  0xe9   : > { %2586 = vmatmul.mubr.bf16.vlgmr.msra.gmra.mrb[0].mxu1 %v3087_v43  ;;  %3325 = vmatpush3.bf16.msra.mxu0 %v3566_v47  ;;  %v3607_v43 = vld [vmem:[%s4313_s19 + $0x290] sm:$0xff]   ;;  %v3611_v47 = vld [vmem:[%s4313_s19 + $0x298] sm:$0xff]   ;;  %v3651_v39 = vld [vmem:[%s4313_s19 + $0x3a8] sm:$0xff]  }
  0xea   : > { %3353 = vmatpush3.bf16.msra.mxu1 %v3567_v49  ;;  %2544 = vmatprep.mubr.bf16.mxu0 %v3102_v46  ;;  %v3610_v46 = vld [vmem:[%s4313_s19 + $0x218] sm:$0xff]   ;;  %v3613_v49 = vld [vmem:[%s4313_s19 + $0x2e0] sm:$0xff]  }
  0xeb   : > { %3326 = vmatprep.subr.bf16.mxu0 %v3568_v50  ;;  %2593 = vmatprep.mubr.bf16.mxu1 %v3104_v48  ;;  %v3612_v48 = vld [vmem:[%s4313_s19 + $0x260] sm:$0xff]  }
  0xec   : > { %3354 = vmatprep.subr.bf16.mxu1 %v3569_v51  ;;  %v3614_v50 = vld [vmem:[%s4313_s19 + $0x220] sm:$0xff]  }
  0xed   : > { %3327 = vmatpush3.bf16.msra.mxu0 %v3570_v52  ;;  %v3615_v51 = vld [vmem:[%s4313_s19 + $0x2a0] sm:$0xff]   ;;  %v3616_v52 = vld [vmem:[%s4313_s19 + $0x268] sm:$0xff]  }
  0xee   : > { %3355 = vmatpush3.bf16.msra.mxu1 %v3571_v53  ;;  %3328 = vmatprep.subr.bf16.mxu0 %v3572_v55  ;;  %v3617_v53 = vld [vmem:[%s4313_s19 + $0x2e8] sm:$0xff]  }
  0xef   : > { %3356 = vmatprep.subr.bf16.mxu1 %v3573_v57  ;;  %v3619_v55 = vld [vmem:[%s4313_s19 + $0x2a8] sm:$0xff]   ;;  %v3621_v57 = vld [vmem:[%s4313_s19 + $0x2f0] sm:$0xff]  }
  0xf0   : > { %2545 = vmatmul.mubr.bf16.gmra.mrb[4].mxu0 %v3101_v54  ;;  %v3618_v54 = vld [vmem:[%s4313_s19 + $0x228] sm:$0xff]  }
  0xf1   : > { %3329 = vmatpush3.bf16.msra.mxu0 %v3574_v58  ;;  %2594 = vmatmul.mubr.bf16.gmra.mrb[4].mxu1 %v3103_v56  ;;  %v3620_v56 = vld [vmem:[%s4313_s19 + $0x270] sm:$0xff]  }
  0xf2   : > { %3357 = vmatpush3.bf16.msra.mxu1 %v3575_v59  ;;  %3330 = vmatprep.subr.bf16.mxu0 %v3576_v60  ;;  %v3622_v58 = vld [vmem:[%s4313_s19 + $0x230] sm:$0xff]   ;;  %v3624_v60 = vld [vmem:[%s4313_s19 + $0x278] sm:$0xff]  }
  0xf3   : > { %3358 = vmatprep.subr.bf16.mxu1 %v3577_v61  ;;  %2634 = vmatprep.mubr.bf16.mxu0 %v3090_v21  ;;  %v3623_v59 = vld [vmem:[%s4313_s19 + $0x2b0] sm:$0xff]   ;;  %v3625_v61 = vld [vmem:[%s4313_s19 + $0x2f8] sm:$0xff]  }
  0xf4   : > { %2683 = vmatprep.mubr.bf16.mxu1 %v3092_v23  ;;  %v3637_v21 = vld [vmem:[%s4313_s19 + $0x3d0] sm:$0xff]   ;;  %v1310_v23 = vld [vmem:[%s4559_s0 + $0xe8] sm:$0xff] }
  0xf5   : > { %3331 = vmatpush3.bf16.msra.mxu0 %v3578_v62  ;;  %v3626_v62 = vld [vmem:[%s4313_s19 + $0x238] sm:$0xff]  }
  0xf6   : > { %3359 = vmatpush3.bf16.msra.mxu1 %v3579_v63  ;;  %3332 = vmatprep.subr.bf16.mxu0 %v3580_v0  ;;  %v3627_v63 = vld [vmem:[%s4313_s19 + $0x2b8] sm:$0xff]   ;;  %v1285_v0 = vld [vmem:[%s4559_s0 + $0x20] sm:$0xff] }
  0xf7   : > { %3360 = vmatprep.subr.bf16.mxu1 %v3581_v1  ;;  %v1293_v1 = vld [vmem:[%s4559_s0 + $0x60] sm:$0xff] }
  0xf9   : > { %3333 = vmatpush3.bf16.msra.mxu0 %v3582_v2  ;;  %v3093_v2 = vcombine.low %v1285_v0, %v1293_v1 }
  0xfa   : > { %3361 = vmatpush3.bf16.msra.mxu1 %v3583_v3  ;;  %3334 = vmatprep.subr.bf16.mxu0 %v3584_v4  ;;  %v3094_v3 = vcombine.high %v1285_v0, %v1293_v1  ;;  %v1286_v4 = vld [vmem:[%s4559_s0 + $0x28] sm:$0xff] }
  0xfb   : > { %3362 = vmatprep.subr.bf16.mxu1 %v3585_v5  ;;  %v1294_v5 = vld [vmem:[%s4559_s0 + $0x68] sm:$0xff] }
  0xfd   : > { %3335 = vmatpush3.bf16.msra.mxu0 %v3586_v6  ;;  %v3095_v6 = vcombine.low %v1286_v4, %v1294_v5 }
  0xfe   : > { %3363 = vmatpush3.bf16.msra.mxu1 %v3587_v7  ;;  %3336 = vmatprep.subr.bf16.mxu0 %v3588_v8  ;;  %v3096_v7 = vcombine.high %v1286_v4, %v1294_v5  ;;  %v3628_v8 = vld [vmem:[%s4313_s19 + $0x340] sm:$0xff]  }
  0xff   : > { %3364 = vmatprep.subr.bf16.mxu1 %v3589_v9  ;;  %v3629_v9 = vld [vmem:[%s4313_s19 + $0x3c0] sm:$0xff]  }
 0x101   : > { %3337 = vmatpush3.bf16.msra.mxu0 %v3590_v10  ;;  %v3630_v10 = vld [vmem:[%s4313_s19 + $0x300] sm:$0xff]  }
 0x102   : > { %3365 = vmatpush3.bf16.msra.mxu1 %v3591_v11  ;;  %3338 = vmatprep.subr.bf16.mxu0 %v3592_v12  ;;  %v3631_v11 = vld [vmem:[%s4313_s19 + $0x380] sm:$0xff]   ;;  %v3632_v12 = vld [vmem:[%s4313_s19 + $0x348] sm:$0xff]  }
 0x103   : > { %3366 = vmatprep.subr.bf16.mxu1 %v3593_v14  ;;  %v3634_v14 = vld [vmem:[%s4313_s19 + $0x308] sm:$0xff]  }
 0x105   : > { %3339 = vmatpush3.bf16.msra.mxu0 %v3594_v15  ;;  %v3635_v15 = vld [vmem:[%s4313_s19 + $0x388] sm:$0xff]  }
 0x106   : > { %3367 = vmatpush3.bf16.msra.mxu1 %v3595_v16  ;;  %3380 = vmatprep.subr.bf16.mxu0 %v3596_v24  ;;  %v1301_v16 = vld [vmem:[%s4559_s0 + $0xa0] sm:$0xff] }
 0x107   : > { %3408 = vmatprep.subr.bf16.mxu1 %v3597_v25  ;;  %v3110_v18 = vcombine.high %v1301_v16, %v1309_v17  ;;  %v3109_v19 = vcombine.low %v1301_v16, %v1309_v17  ;;  %v3638_v25 = vld [vmem:[%s4313_s19 + $0x310] sm:$0xff]  }
 0x108   : > { %2635 = vmatmul.mubr.bf16.vlgmr.msra.gmra.mrb[8].mxu0 %v3089_v20  ;;  %v3636_v20 = vld [vmem:[%s4313_s19 + $0x350] sm:$0xff]  }
 0x109   : > { %2684 = vmatmul.mubr.bf16.vlgmr.msra.gmra.mrb[8].mxu1 %v3091_v22  ;;  %3381 = vmatpush3.bf16.msra.mxu0 %v3598_v26  ;;  %v1302_v22 = vld [vmem:[%s4559_s0 + $0xa8] sm:$0xff] }
 0x10a   : > { %3409 = vmatpush3.bf16.msra.mxu1 %v3599_v27  ;;  %3382 = vmatprep.subr.bf16.mxu0 %v3600_v28  ;;  %v3112_v24 = vcombine.high %v1302_v22, %v1310_v23  ;;  %v3111_v26 = vcombine.low %v1302_v22, %v1310_v23  ;;  %v3639_v27 = vld [vmem:[%s4313_s19 + $0x390] sm:$0xff]   ;;  %v3640_v28 = vld [vmem:[%s4313_s19 + $0x358] sm:$0xff]  }
 0x10b   : > { %3410 = vmatprep.subr.bf16.mxu1 %v3601_v29  ;;  %2642 = vmatprep.mubr.bf16.mxu0 %v3106_v34  ;;  %v3641_v29 = vld [vmem:[%s4313_s19 + $0x3d8] sm:$0xff]   ;;  %v3646_v34 = vld [vmem:[%s4313_s19 + $0x320] sm:$0xff]  }
 0x10c   : > { %2691 = vmatprep.mubr.bf16.mxu1 %v3108_v40  ;;  %v3652_v40 = vld [vmem:[%s4313_s19 + $0x370] sm:$0xff]  }
 0x10d   : > { %3383 = vmatpush3.bf16.msra.mxu0 %v3602_v30  ;;  %v3642_v30 = vld [vmem:[%s4313_s19 + $0x318] sm:$0xff]  }
 0x10e   : > { %3411 = vmatpush3.bf16.msra.mxu1 %v3603_v31  ;;  %3384 = vmatprep.subr.bf16.mxu0 %v3604_v36  ;;  %v3643_v31 = vld [vmem:[%s4313_s19 + $0x398] sm:$0xff]   ;;  %v3648_v36 = vld [vmem:[%s4313_s19 + $0x368] sm:$0xff]  }
 0x10f   : > { %3412 = vmatprep.subr.bf16.mxu1 %v3605_v37  ;;  %v3649_v37 = vld [vmem:[%s4313_s19 + $0x3e8] sm:$0xff]  }
 0x110   : > { %2643 = vmatmul.mubr.bf16.gmra.mrb[12].mxu0 %v3105_v35  ;;  %v3647_v35 = vld [vmem:[%s4313_s19 + $0x3a0] sm:$0xff]  }
 0x111   : > { %3385 = vmatpush3.bf16.msra.mxu0 %v3606_v41  ;;  %2692 = vmatmul.mubr.bf16.gmra.mrb[12].mxu1 %v3107_v42  ;;  %v3653_v41 = vld [vmem:[%s4313_s19 + $0x3f0] sm:$0xff]  }
 0x112   : > { %3413 = vmatpush3.bf16.msra.mxu1 %v3607_v43  ;;  %3386 = vmatprep.subr.bf16.mxu0 %v3608_v44  ;;  %v3654_v42 = vld [vmem:[%s4313_s19 + $0x330] sm:$0xff]   ;;  %v3656_v44 = vld [vmem:[%s4313_s19 + $0x378] sm:$0xff]  }
 0x113   : > { %3414 = vmatprep.subr.bf16.mxu1 %v3609_v45  ;;  %2732 = vmatprep.mubr.bf16.mxu0 %v3094_v3  ;;  %v3655_v43 = vld [vmem:[%s4313_s19 + $0x3b0] sm:$0xff]   ;;  %v3657_v45 = vld [vmem:[%s4313_s19 + $0x3f8] sm:$0xff]  }
 0x114   : > { %2781 = vmatprep.mubr.bf16.mxu1 %v3096_v7 }
 0x115   : > { %3387 = vmatpush3.bf16.msra.mxu0 %v3610_v46  ;;  %v3658_v46 = vld [vmem:[%s4313_s19 + $0x338] sm:$0xff]  }
 0x116   : > { %3415 = vmatpush3.bf16.msra.mxu1 %v3611_v47  ;;  %3388 = vmatprep.subr.bf16.mxu0 %v3612_v48  ;;  %v3659_v47 = vld [vmem:[%s4313_s19 + $0x3b8] sm:$0xff]   ;;  %v1287_v48 = vld [vmem:[%s4559_s0 + $0x30] sm:$0xff] }
 0x117   : > { %3416 = vmatprep.subr.bf16.mxu1 %v3613_v49  ;;  %v1295_v49 = vld [vmem:[%s4559_s0 + $0x70] sm:$0xff] }
 0x119   : > { %3389 = vmatpush3.bf16.msra.mxu0 %v3614_v50  ;;  %v1288_v50 = vld [vmem:[%s4559_s0 + $0x38] sm:$0xff] }
 0x11a   : > { %3417 = vmatpush3.bf16.msra.mxu1 %v3615_v51  ;;  %3390 = vmatprep.subr.bf16.mxu0 %v3616_v52  ;;  %v3097_v51 = vcombine.low %v1287_v48, %v1295_v49  ;;  %v3098_v52 = vcombine.high %v1287_v48, %v1295_v49 }
 0x11b   : > { %3418 = vmatprep.subr.bf16.mxu1 %v3617_v53  ;;  %v1296_v53 = vld [vmem:[%s4559_s0 + $0x78] sm:$0xff] }
 0x11d   : > { %3391 = vmatpush3.bf16.msra.mxu0 %v3618_v54  ;;  %v1303_v54 = vld [vmem:[%s4559_s0 + $0xb0] sm:$0xff] }
 0x11e   : > { %3419 = vmatpush3.bf16.msra.mxu1 %v3619_v55  ;;  %3392 = vmatprep.subr.bf16.mxu0 %v3620_v56  ;;  %v1311_v55 = vld [vmem:[%s4559_s0 + $0xf0] sm:$0xff]  ;;  %v3099_v56 = vcombine.low %v1288_v50, %v1296_v53 }
 0x11f   : > { %3420 = vmatprep.subr.bf16.mxu1 %v3621_v57  ;;  %v3100_v57 = vcombine.high %v1288_v50, %v1296_v53 }
 0x121   : > { %3393 = vmatpush3.bf16.msra.mxu0 %v3622_v58  ;;  %v3114_v58 = vcombine.high %v1303_v54, %v1311_v55 }
 0x122   : > { %3421 = vmatpush3.bf16.msra.mxu1 %v3623_v59  ;;  %3394 = vmatprep.subr.bf16.mxu0 %v3624_v60  ;;  %v1304_v59 = vld [vmem:[%s4559_s0 + $0xb8] sm:$0xff] }
 0x123   : > { %3422 = vmatprep.subr.bf16.mxu1 %v3625_v61  ;;  %v1312_v60 = vld [vmem:[%s4559_s0 + $0xf8] sm:$0xff] }
 0x124   : > { %v3116_v61 = vcombine.high %v1304_v59, %v1312_v60 }
 0x125   : > { %3395 = vmatpush3.bf16.msra.mxu0 %v3626_v62  ;;  %v3113_v62 = vcombine.low %v1303_v54, %v1311_v55 }
 0x126   : > { %3423 = vmatpush3.bf16.msra.mxu1 %v3627_v63  ;;  %3436 = vmatprep.subr.bf16.mxu0 %v3628_v8  ;;  %v3115_v63 = vcombine.low %v1304_v59, %v1312_v60 }
 0x127   : > { %3464 = vmatprep.subr.bf16.mxu1 %v3629_v9 }
 0x128   : > { %2733 = vmatmul.mubr.bf16.vlgmr.msra.gmra.mrb[16].mxu0 %v3093_v2  ;;  %v3084_v2 = vld [vmem:[%s1278_s29] ss:$0 sm:$0xff] }
 0x129   : > { %2782 = vmatmul.mubr.bf16.vlgmr.msra.gmra.mrb[16].mxu1 %v3095_v6  ;;  %3437 = vmatpush3.bf16.msra.mxu0 %v3630_v10 }
 0x12a   : > { %3465 = vmatpush3.bf16.msra.mxu1 %v3631_v11  ;;  %3438 = vmatprep.subr.bf16.mxu0 %v3632_v12 }
 0x12b   : > { %3466 = vmatprep.subr.bf16.mxu1 %v3633_v13  ;;  %2740 = vmatprep.mubr.bf16.mxu0 %v3110_v18 }
 0x12c   : > { %2789 = vmatprep.mubr.bf16.mxu1 %v3112_v24 }
 0x12d   : > { %3439 = vmatpush3.bf16.msra.mxu0 %v3634_v14 }
 0x12e   : > { %3467 = vmatpush3.bf16.msra.mxu1 %v3635_v15  ;;  %3440 = vmatprep.subr.bf16.mxu0 %v3636_v20 }
 0x12f   : > { %3468 = vmatprep.subr.bf16.mxu1 %v3637_v21 }
 0x130   : > { %2741 = vmatmul.mubr.bf16.gmra.mrb[20].mxu0 %v3109_v19 }
 0x131   : > { %3441 = vmatpush3.bf16.msra.mxu0 %v3638_v25  ;;  %2790 = vmatmul.mubr.bf16.gmra.mrb[20].mxu1 %v3111_v26 }
 0x132   : > { %3469 = vmatpush3.bf16.msra.mxu1 %v3639_v27  ;;  %3442 = vmatprep.subr.bf16.mxu0 %v3640_v28 }
 0x133   : > { %3470 = vmatprep.subr.bf16.mxu1 %v3641_v29  ;;  %2830 = vmatprep.mubr.bf16.mxu0 %v3098_v52 }
 0x134   : > { %2879 = vmatprep.mubr.bf16.mxu1 %v3100_v57 }
 0x135   : > { %3443 = vmatpush3.bf16.msra.mxu0 %v3642_v30 }
 0x136   : > { %3471 = vmatpush3.bf16.msra.mxu1 %v3643_v31  ;;  %3444 = vmatprep.subr.bf16.mxu0 %v3644_v32 }
 0x137   : > { %3472 = vmatprep.subr.bf16.mxu1 %v3645_v33 }
 0x139   : > { %3445 = vmatpush3.bf16.msra.mxu0 %v3646_v34 }
 0x13a   : > { %3473 = vmatpush3.bf16.msra.mxu1 %v3647_v35  ;;  %3446 = vmatprep.subr.bf16.mxu0 %v3648_v36 }
 0x13b   : > { %3474 = vmatprep.subr.bf16.mxu1 %v3649_v37 }
 0x13d   : > { %3447 = vmatpush3.bf16.msra.mxu0 %v3650_v38 }
 0x13e   : > { %3475 = vmatpush3.bf16.msra.mxu1 %v3651_v39  ;;  %3448 = vmatprep.subr.bf16.mxu0 %v3652_v40 }
 0x13f   : > { %3476 = vmatprep.subr.bf16.mxu1 %v3653_v41 }
 0x141   : > { %3449 = vmatpush3.bf16.msra.mxu0 %v3654_v42 }
 0x142   : > { %3477 = vmatpush3.bf16.msra.mxu1 %v3655_v43  ;;  %3450 = vmatprep.subr.bf16.mxu0 %v3656_v44 }
 0x143   : > { %3478 = vmatprep.subr.bf16.mxu1 %v3657_v45 }
 0x145   : > { %3451 = vmatpush3.bf16.msra.mxu0 %v3658_v46 }
 0x146   : > { %3479 = vmatpush3.bf16.msra.mxu1 %v3659_v47 }
 0x148   : > { %2831 = vmatmul.mubr.bf16.vlgmr.msra.gmra.mrb[24].mxu0 %v3097_v51 }
 0x149   : > { %2880 = vmatmul.mubr.bf16.vlgmr.msra.gmra.mrb[24].mxu1 %v3099_v56  ;;  %2838 = vmatprep.mubr.bf16.mxu0 %v3114_v58 }
 0x14a   : > { %2887 = vmatprep.mubr.bf16.mxu1 %v3116_v61 }
 0x150   : > { %2839 = vmatmul.mubr.bf16.gmra.mrb[28].mxu0 %v3113_v62 }
 0x151   : > { %2888 = vmatmul.mubr.bf16.gmra.mrb[28].mxu1 %v3115_v63 }
 0x1bb   : > { %v3284_v0 = vpop.f32.mrb[0].mxu0 }
 0x1bc   : > { %v3312_v1 = vpop.f32.mrb[0].mxu1  ;;  %v3285_v3 = vpop.f32.mrb[1].mxu0 }
 0x1bd   : > { %v3286_v4 = vadd.f32 %v3285_v3, %v3284_v0  ;;  %v3313_v5 = vpop.f32.mrb[1].mxu1  ;;  %v3287_v6 = vpop.f32.mrb[2].mxu0 }
 0x1be   : > { %v3314_v7 = vadd.f32 %v3313_v5, %v3312_v1  ;;  %v3315_v8 = vpop.f32.mrb[2].mxu1  ;;  %v3288_v9 = vpop.f32.mrb[3].mxu0 }
 0x1bf   : > { %v2539_v10 = vadd.f32 %v3286_v4, %v3084_v2  ;;  %v3289_v11 = vadd.f32 %v3288_v9, %v3287_v6  ;;  %v3316_v12 = vpop.f32.mrb[3].mxu1 }
 0x1c0   : > { %v3317_v13 = vadd.f32 %v3316_v12, %v3315_v8 }
 0x1c1   : > { %v2588_v14 = vadd.f32 %v3314_v7, %v2539_v10  ;;  %v2542_v15 = vadd.f32 %v3289_v11, %v3084_v2 }
 0x1c3   : > { %v2591_v16 = vadd.f32 %v3317_v13, %v2542_v15  ;;  %v3290_v17 = vpop.f32.mrb[4].mxu0 }
 0x1c4   : > { %v3291_v18 = vpop.f32.mrb[5].mxu0  ;;  %v3318_v19 = vpop.f32.mrb[4].mxu1 }
 0x1c5   : > { %v3292_v20 = vadd.f32 %v3291_v18, %v3290_v17  ;;  %v3293_v21 = vpop.f32.mrb[6].mxu0  ;;  %v3319_v22 = vpop.f32.mrb[5].mxu1 }
 0x1c6   : > { %v3294_v23 = vpop.f32.mrb[7].mxu0  ;;  %v3320_v24 = vadd.f32 %v3319_v22, %v3318_v19  ;;  %v3321_v25 = vpop.f32.mrb[6].mxu1 }
 0x1c7   : > { %v2547_v26 = vadd.f32 %v3292_v20, %v3084_v2  ;;  %v3295_v27 = vadd.f32 %v3294_v23, %v3293_v21  ;;  %v3322_v28 = vpop.f32.mrb[7].mxu1 }
 0x1c8   : > { %v3323_v29 = vadd.f32 %v3322_v28, %v3321_v25 }
 0x1c9   : > { %v2550_v30 = vadd.f32 %v3295_v27, %v3084_v2  ;;  %v2596_v31 = vadd.f32 %v3320_v24, %v2547_v26 }
 0x1cb   : > { %v2599_v32 = vadd.f32 %v3323_v29, %v2550_v30 }
 0x1db   : > { %v3340_v33 = vpop.f32.mrb[8].mxu0 }
 0x1dc   : > { %v3368_v34 = vpop.f32.mrb[8].mxu1  ;;  %v3341_v35 = vpop.f32.mrb[9].mxu0 }
 0x1dd   : > { %v3369_v36 = vpop.f32.mrb[9].mxu1  ;;  %v3342_v37 = vadd.f32 %v3341_v35, %v3340_v33  ;;  %v3343_v39 = vpop.f32.mrb[10].mxu0 }
 0x1de   : > { %v3370_v38 = vadd.f32 %v3369_v36, %v3368_v34  ;;  %v3371_v40 = vpop.f32.mrb[10].mxu1  ;;  %v3344_v41 = vpop.f32.mrb[11].mxu0 }
 0x1df   : > { %v3372_v42 = vpop.f32.mrb[11].mxu1  ;;  %v2637_v43 = vadd.f32 %v3342_v37, %v2588_v14  ;;  %v3345_v44 = vadd.f32 %v3344_v41, %v3343_v39 }
 0x1e0   : > { %v3373_v45 = vadd.f32 %v3372_v42, %v3371_v40 }
 0x1e1   : > { %v2686_v46 = vadd.f32 %v3370_v38, %v2637_v43  ;;  %v2640_v47 = vadd.f32 %v3345_v44, %v2591_v16 }
 0x1e3   : > { %v2689_v48 = vadd.f32 %v3373_v45, %v2640_v47  ;;  %v3346_v49 = vpop.f32.mrb[12].mxu0 }
 0x1e4   : > { %v3347_v50 = vpop.f32.mrb[13].mxu0  ;;  %v3374_v55 = vpop.f32.mrb[12].mxu1 }
 0x1e5   : > { %v3348_v51 = vadd.f32 %v3347_v50, %v3346_v49  ;;  %v3349_v52 = vpop.f32.mrb[14].mxu0  ;;  %v3375_v57 = vpop.f32.mrb[13].mxu1 }
 0x1e6   : > { %v3350_v53 = vpop.f32.mrb[15].mxu0  ;;  %v3376_v59 = vadd.f32 %v3375_v57, %v3374_v55  ;;  %v3377_v60 = vpop.f32.mrb[14].mxu1 }
 0x1e7   : > { %v2645_v54 = vadd.f32 %v3348_v51, %v2596_v31  ;;  %v3351_v56 = vadd.f32 %v3350_v53, %v3349_v52  ;;  %v3378_v61 = vpop.f32.mrb[15].mxu1 }
 0x1e8   : > { %v3379_v63 = vadd.f32 %v3378_v61, %v3377_v60 }
 0x1e9   : > { %v2648_v58 = vadd.f32 %v3351_v56, %v2599_v32  ;;  %v2694_v62 = vadd.f32 %v3376_v59, %v2645_v54 }
 0x1eb   : > { %v2697_v0 = vadd.f32 %v3379_v63, %v2648_v58 }
 0x1fb   : > { %v3396_v1 = vpop.f32.mrb[16].mxu0 }
 0x1fc   : > { %v3424_v2 = vpop.f32.mrb[16].mxu1  ;;  %v3397_v3 = vpop.f32.mrb[17].mxu0 }
 0x1fd   : > { %v3398_v4 = vadd.f32 %v3397_v3, %v3396_v1  ;;  %v3425_v5 = vpop.f32.mrb[17].mxu1  ;;  %v3399_v6 = vpop.f32.mrb[18].mxu0 }
 0x1fe   : > { %v3426_v7 = vadd.f32 %v3425_v5, %v3424_v2  ;;  %v3427_v8 = vpop.f32.mrb[18].mxu1  ;;  %v3400_v9 = vpop.f32.mrb[19].mxu0 }
 0x1ff   : > { %v2735_v10 = vadd.f32 %v3398_v4, %v2686_v46  ;;  %v3401_v11 = vadd.f32 %v3400_v9, %v3399_v6  ;;  %v3428_v12 = vpop.f32.mrb[19].mxu1 }
 0x200   : > { %v3429_v13 = vadd.f32 %v3428_v12, %v3427_v8 }
 0x201   : > { %v2784_v14 = vadd.f32 %v3426_v7, %v2735_v10  ;;  %v2738_v15 = vadd.f32 %v3401_v11, %v2689_v48 }
 0x203   : > { %v2787_v16 = vadd.f32 %v3429_v13, %v2738_v15  ;;  %v3402_v17 = vpop.f32.mrb[20].mxu0 }
 0x204   : > { %v3403_v18 = vpop.f32.mrb[21].mxu0  ;;  %v3430_v21 = vpop.f32.mrb[20].mxu1 }
 0x205   : > { %v3404_v19 = vadd.f32 %v3403_v18, %v3402_v17  ;;  %v3405_v20 = vpop.f32.mrb[22].mxu0  ;;  %v3431_v25 = vpop.f32.mrb[21].mxu1 }
 0x206   : > { %v3406_v22 = vpop.f32.mrb[23].mxu0  ;;  %v3432_v26 = vadd.f32 %v3431_v25, %v3430_v21  ;;  %v3433_v27 = vpop.f32.mrb[22].mxu1 }
 0x207   : > { %v2743_v23 = vadd.f32 %v3404_v19, %v2694_v62  ;;  %v3407_v24 = vadd.f32 %v3406_v22, %v3405_v20  ;;  %v3434_v29 = vpop.f32.mrb[23].mxu1 }
 0x208   : > { %v3435_v31 = vadd.f32 %v3434_v29, %v3433_v27 }
 0x209   : > { %v2746_v28 = vadd.f32 %v3407_v24, %v2697_v0  ;;  %v2792_v30 = vadd.f32 %v3432_v26, %v2743_v23 }
 0x20b   : > { %v2795_v32 = vadd.f32 %v3435_v31, %v2746_v28 }
 0x21b   : > { %v3452_v33 = vpop.f32.mrb[24].mxu0 }
 0x21c   : > { %v3480_v34 = vpop.f32.mrb[24].mxu1  ;;  %v3453_v35 = vpop.f32.mrb[25].mxu0 }
 0x21d   : > { %v3454_v36 = vadd.f32 %v3453_v35, %v3452_v33  ;;  %v3481_v37 = vpop.f32.mrb[25].mxu1  ;;  %v3455_v38 = vpop.f32.mrb[26].mxu0 }
 0x21e   : > { %v3482_v39 = vadd.f32 %v3481_v37, %v3480_v34  ;;  %v3483_v40 = vpop.f32.mrb[26].mxu1  ;;  %v3456_v41 = vpop.f32.mrb[27].mxu0 }
 0x21f   : > { %v2833_v42 = vadd.f32 %v3454_v36, %v2784_v14  ;;  %v3457_v43 = vadd.f32 %v3456_v41, %v3455_v38  ;;  %v3484_v44 = vpop.f32.mrb[27].mxu1 }
 0x220   : > { %v3485_v45 = vadd.f32 %v3484_v44, %v3483_v40 }
 0x221   : > { %v2882_v46 = vadd.f32 %v3482_v39, %v2833_v42  ;;  %v2836_v47 = vadd.f32 %v3457_v43, %v2787_v16 }
 0x223   : > { %v2885_v48 = vadd.f32 %v3485_v45, %v2836_v47  ;;  %v3458_v49 = vpop.f32.mrb[28].mxu0  ;;  %v2896_v52 = vmax.f32 %v2882_v46, 0.0 }
 0x224   : > { %v3486_v50 = vpop.f32.mrb[28].mxu1  ;;  %v3459_v51 = vpop.f32.mrb[29].mxu0 }
 0x225   : > { %v2897_v53 = vmax.f32 %v2885_v48, 0.0  ;;  %v3460_v54 = vadd.f32 %v3459_v51, %v3458_v49  ;;  %v3487_v55 = vpop.f32.mrb[29].mxu1  ;;  %v3461_v56 = vpop.f32.mrb[30].mxu0 }
 0x226   : > { %v3488_v57 = vadd.f32 %v3487_v55, %v3486_v50  ;;  %v3489_v58 = vpop.f32.mrb[30].mxu1  ;;  %v3462_v59 = vpop.f32.mrb[31].mxu0 }
 0x227   : > { %v3260_v60 = vpack.c.bf16 %v2897_v53, %v2896_v52  ;;  %v2841_v61 = vadd.f32 %v3460_v54, %v2792_v30  ;;  %v3463_v62 = vadd.f32 %v3462_v59, %v3461_v56  ;;  %v3490_v63 = vpop.f32.mrb[31].mxu1 }
 0x228   : > { %v3491_v0 = vadd.f32 %v3490_v63, %v3489_v58 }
 0x229   : > { %3261 = vst [vmem:[%s1268_s5] sm:$0xff] %v3260_v60   ;;  %v2890_v1 = vadd.f32 %v3488_v57, %v2841_v61  ;;  %v2844_v2 = vadd.f32 %v3463_v62, %v2795_v32 }
 0x22b   : > { %v2893_v3 = vadd.f32 %v3491_v0, %v2844_v2  ;;  %v2898_v4 = vmax.f32 %v2890_v1, 0.0  ;;  %2926 = sbr.rel (!%p3755_p6) target bundleno = 570 (0x23a), region = 77 }
 0x22d   : > { %v2899_v5 = vmax.f32 %v2893_v3, 0.0 }
 0x22f   : > { %v3265_v6 = vpack.c.bf16 %v2899_v5, %v2898_v4 }
 0x230   : > { %v2947_v7 = vld [vmem:[%s1268_s5] sm:$0xf] (%p3755_p6)  ;;  %v2949_v8 = vld [vmem:[%s1268_s5 + $0x4] sm:$0xf] (%p3755_p6) }
 0x231   : > { %3267 = vst [vmem:[%s1268_s5 + $0x8] sm:$0xff] %v3265_v6   ;;  %2948 = vst [vmem:[%s2931_s7] sm:$0xf] (%p3755_p6), %v2947_v7 }
 0x232   : > { %2950 = vst [vmem:[%s2931_s7 + $0x8] sm:$0xf] %v2949_v8 }
 0x238   : > { %v2951_v9 = vld [vmem:[%s1268_s5 + $0x8] sm:$0xf]  ;;  %v2953_v10 = vld [vmem:[%s1268_s5 + $0xc] sm:$0xf] }
 0x239   : > { %2952 = vst [vmem:[%s2931_s7 + $0x10] sm:$0xf] %v2951_v9  ;;  %2954 = vst [vmem:[%s2931_s7 + $0x18] sm:$0xf] %v2953_v10 }
 0x23a PF: > { %s13_s16 = sadd.s32 1, %s3698_s16   ;;  %s4564_s12 = smov %s3686_s13 }
 0x23b   : > { %p10_p12 = scmp.ge.s32.totalorder %s13_s16, 4   ;;  %s4565_s13 = smov %s3760_s22 }
 0x23c   : > { %s4566_s14 = smov %s3694_s15  ;;  %s4567_s15 = smov %s4569_s17 }
 0x23d   :  { %12 = sbr.rel (!%p10_p12) target bundleno = 3 (0x3), region = 155 }

// kernel: encoder_forward.8
= control target key start
LH: loop header
LB: loop body
LE: loop exit
PB: predicated region body
PF: predicated region fallthrough
CT: control target
= control target key end

     0   :  { %s8472_s12 = smov 0   ;;  %s8474_s13 = smov 0   ;;  %s9967_s0 = inlined_call_operand.vmem [shape: bf16[16,4096], index: 0, kind: input, shape index: {}]   ;;  %s9968_s1 = inlined_call_operand.vmem [shape: bf16[4096,512], index: 1, kind: input, shape index: {}]   ;;  %s9969_s2 = inlined_call_operand.vmem [shape: f32[1,512], index: 2, kind: input, shape index: {}]   ;;  %s9970_s3 = inlined_call_operand.vmem [shape: bf16[16,512], index: 3, kind: output, shape index: {}]  }
   0x1   :  { %s8476_s14 = smov 0   ;;  %s8478_s15 = smov 0  }
   0x2   :  { %s8480_s16 = smov 0  }
   0x3 LB: > { %s22_s17 = sadd.s32 1, %s8446_s15  ;;  %s7452_s18 = sadd.s32 4294967295, %s8450_s16   ;;  %s8450_s16 = sphi %s8480_s16, %s13_s16   ;;  %s8446_s15 = sphi %s8478_s15, %s9975_s15   ;;  %s8442_s14 = sphi %s8476_s14, %s9974_s14   ;;  %s8438_s13 = sphi %s8474_s13, %s9973_s13   ;;  %s8434_s12 = sphi %s8472_s12, %s9972_s12  }
   0x4   : > { %p23_p0 = scmp.ge.s32.totalorder %s22_s17, 4  ;;  %p65_p1 = scmp.ne.s32.totalorder %s8438_s13, %s8434_s12 }
   0x5   : > { %p66_p2 = scmp.eq.s32.totalorder %s8450_s16, 0  ;;  %p123_p4 = scmp.eq.s32.totalorder %s7452_s18, 3 }
   0x6   : > { %s9977_s17 = smov (%p23_p0, %s22_s17), 0  ;;  %s58_s20 = sadd.s32 1, %s8438_s13 }
   0x7   : > { %p67_p3 = por %p66_p2, %p65_p1  ;;  %s55_s19 = ssub.s32 %s8446_s15, %s9977_s17 }
   0x8   : > { %p56_p5 = scmp.eq.s32.totalorder %s55_s19, 0  ;;  %p8507_p6 = por %p123_p4, %p65_p1 }
   0x9   : > { %p7456_p7 = scmp.ge.s32.totalorder %s8450_s16, 4 }
   0xa   : > { %s8512_s22 = scalar_select %p56_p5, %s8438_s13, %s58_s20  }
   0xb   : > { %155 = sbr.rel (%p7456_p7) target bundleno = 363 (0x16b), region = 20 }
  0x12   : > { %158 = sbr.rel (!%p67_p3) target bundleno = 363 (0x16b), region = 24  ;;  %s160_s23 = sand.u32 (%p67_p3), 1, %s8438_s13  }
  0x13   : > { %s7458_s24 = sshll.u32 (%p67_p3), %s8446_s15, 2  ;;  %s7457_s25 = sshll.u32 (%p67_p3), %s160_s23, 11 }
  0x14   : > { %s8520_s28 = scalar_lea.vmem (%p67_p3), %s9968_s1, %s7458_s24  ;;  %s8524_s29 = scalar_lea.vmem (%p67_p3), [#allocation2], %s7457_s25 }
  0x15   : > { %v180_v0 = vld [vmem:[%s8520_s28] sm:$0xf] (%p67_p3)  ;;  %v182_v1 = vld [vmem:[%s8520_s28 + $0x10] sm:$0xf] (%p67_p3) }
  0x16   : > { %181 = vst [vmem:[%s8524_s29] sm:$0xf] (%p67_p3), %v180_v0  ;;  %183 = vst [vmem:[%s8524_s29 + $0x4] sm:$0xf] (%p67_p3), %v182_v1  ;;  %v184_v2 = vld [vmem:[%s8520_s28 + $0x20] sm:$0xf] (%p67_p3) }
  0x17   : > { %v186_v3 = vld [vmem:[%s8520_s28 + $0x30] sm:$0xf] (%p67_p3)  ;;  %v188_v4 = vld [vmem:[%s8520_s28 + $0x40] sm:$0xf] (%p67_p3)  ;;  %185 = vst [vmem:[%s8524_s29 + $0x8] sm:$0xf] (%p67_p3), %v184_v2 }
  0x18   : > { %187 = vst [vmem:[%s8524_s29 + $0xc] sm:$0xf] (%p67_p3), %v186_v3  ;;  %189 = vst [vmem:[%s8524_s29 + $0x10] sm:$0xf] (%p67_p3), %v188_v4  ;;  %v190_v5 = vld [vmem:[%s8520_s28 + $0x50] sm:$0xf] (%p67_p3) }
  0x19   : > { %v192_v6 = vld [vmem:[%s8520_s28 + $0x60] sm:$0xf]  ;;  %v194_v7 = vld [vmem:[%s8520_s28 + $0x70] sm:$0xf]  ;;  %191 = vst [vmem:[%s8524_s29 + $0x14] sm:$0xf] %v190_v5 }
  0x1a   : > { %193 = vst [vmem:[%s8524_s29 + $0x18] sm:$0xf] %v192_v6  ;;  %195 = vst [vmem:[%s8524_s29 + $0x1c] sm:$0xf] %v194_v7  ;;  %v196_v8 = vld [vmem:[%s8520_s28 + $0x80] sm:$0xf] }
  0x1b   : > { %v198_v9 = vld [vmem:[%s8520_s28 + $0x90] sm:$0xf]  ;;  %v200_v10 = vld [vmem:[%s8520_s28 + $0xa0] sm:$0xf]  ;;  %197 = vst [vmem:[%s8524_s29 + $0x20] sm:$0xf] %v196_v8 }
  0x1c   : > { %199 = vst [vmem:[%s8524_s29 + $0x24] sm:$0xf] %v198_v9  ;;  %201 = vst [vmem:[%s8524_s29 + $0x28] sm:$0xf] %v200_v10  ;;  %v202_v11 = vld [vmem:[%s8520_s28 + $0xb0] sm:$0xf] }
  0x1d   : > { %v204_v12 = vld [vmem:[%s8520_s28 + $0xc0] sm:$0xf]  ;;  %v206_v13 = vld [vmem:[%s8520_s28 + $0xd0] sm:$0xf]  ;;  %203 = vst [vmem:[%s8524_s29 + $0x2c] sm:$0xf] %v202_v11 }
  0x1e   : > { %205 = vst [vmem:[%s8524_s29 + $0x30] sm:$0xf] %v204_v12  ;;  %207 = vst [vmem:[%s8524_s29 + $0x34] sm:$0xf] %v206_v13  ;;  %v208_v14 = vld [vmem:[%s8520_s28 + $0xe0] sm:$0xf] }
  0x1f   : > { %v210_v15 = vld [vmem:[%s8520_s28 + $0xf0] sm:$0xf]  ;;  %v212_v16 = vld [vmem:[%s8520_s28 + $0x100] sm:$0xf]  ;;  %209 = vst [vmem:[%s8524_s29 + $0x38] sm:$0xf] %v208_v14 }
  0x20   : > { %211 = vst [vmem:[%s8524_s29 + $0x3c] sm:$0xf] %v210_v15  ;;  %213 = vst [vmem:[%s8524_s29 + $0x40] sm:$0xf] %v212_v16  ;;  %v214_v17 = vld [vmem:[%s8520_s28 + $0x110] sm:$0xf] }
  0x21   : > { %v216_v18 = vld [vmem:[%s8520_s28 + $0x120] sm:$0xf]  ;;  %v218_v19 = vld [vmem:[%s8520_s28 + $0x130] sm:$0xf]  ;;  %215 = vst [vmem:[%s8524_s29 + $0x44] sm:$0xf] %v214_v17 }
  0x22   : > { %217 = vst [vmem:[%s8524_s29 + $0x48] sm:$0xf] %v216_v18  ;;  %219 = vst [vmem:[%s8524_s29 + $0x4c] sm:$0xf] %v218_v19  ;;  %v220_v20 = vld [vmem:[%s8520_s28 + $0x140] sm:$0xf] }
  0x23   : > { %v222_v21 = vld [vmem:[%s8520_s28 + $0x150] sm:$0xf]  ;;  %v224_v22 = vld [vmem:[%s8520_s28 + $0x160] sm:$0xf]  ;;  %221 = vst [vmem:[%s8524_s29 + $0x50] sm:$0xf] %v220_v20 }
  0x24   : > { %223 = vst [vmem:[%s8524_s29 + $0x54] sm:$0xf] %v222_v21  ;;  %225 = vst [vmem:[%s8524_s29 + $0x58] sm:$0xf] %v224_v22  ;;  %v226_v23 = vld [vmem:[%s8520_s28 + $0x170] sm:$0xf] }
  0x25   : > { %v228_v24 = vld [vmem:[%s8520_s28 + $0x180] sm:$0xf]  ;;  %v230_v25 = vld [vmem:[%s8520_s28 + $0x190] sm:$0xf]  ;;  %227 = vst [vmem:[%s8524_s29 + $0x5c] sm:$0xf] %v226_v23 }
  0x26   : > { %229 = vst [vmem:[%s8524_s29 + $0x60] sm:$0xf] %v228_v24  ;;  %231 = vst [vmem:[%s8524_s29 + $0x64] sm:$0xf] %v230_v25  ;;  %v232_v26 = vld [vmem:[%s8520_s28 + $0x1a0] sm:$0xf] }
  0x27   : > { %v234_v27 = vld [vmem:[%s8520_s28 + $0x1b0] sm:$0xf]  ;;  %v236_v28 = vld [vmem:[%s8520_s28 + $0x1c0] sm:$0xf]  ;;  %233 = vst [vmem:[%s8524_s29 + $0x68] sm:$0xf] %v232_v26 }
  0x28   : > { %235 = vst [vmem:[%s8524_s29 + $0x6c] sm:$0xf] %v234_v27  ;;  %237 = vst [vmem:[%s8524_s29 + $0x70] sm:$0xf] %v236_v28  ;;  %v238_v29 = vld [vmem:[%s8520_s28 + $0x1d0] sm:$0xf] }
  0x29   : > { %v240_v30 = vld [vmem:[%s8520_s28 + $0x1e0] sm:$0xf]  ;;  %v242_v31 = vld [vmem:[%s8520_s28 + $0x1f0] sm:$0xf]  ;;  %239 = vst [vmem:[%s8524_s29 + $0x74] sm:$0xf] %v238_v29 }
  0x2a   : > { %241 = vst [vmem:[%s8524_s29 + $0x78] sm:$0xf] %v240_v30  ;;  %243 = vst [vmem:[%s8524_s29 + $0x7c] sm:$0xf] %v242_v31  ;;  %v244_v32 = vld [vmem:[%s8520_s28 + $0x200] sm:$0xf] }
  0x2b   : > { %v246_v33 = vld [vmem:[%s8520_s28 + $0x210] sm:$0xf]  ;;  %v248_v34 = vld [vmem:[%s8520_s28 + $0x220] sm:$0xf]  ;;  %245 = vst [vmem:[%s8524_s29 + $0x80] sm:$0xf] %v244_v32 }
  0x2c   : > { %247 = vst [vmem:[%s8524_s29 + $0x84] sm:$0xf] %v246_v33  ;;  %249 = vst [vmem:[%s8524_s29 + $0x88] sm:$0xf] %v248_v34  ;;  %v250_v35 = vld [vmem:[%s8520_s28 + $0x230] sm:$0xf] }
  0x2d   : > { %v252_v36 = vld [vmem:[%s8520_s28 + $0x240] sm:$0xf]  ;;  %v254_v37 = vld [vmem:[%s8520_s28 + $0x250] sm:$0xf]  ;;  %251 = vst [vmem:[%s8524_s29 + $0x8c] sm:$0xf] %v250_v35 }
  0x2e   : > { %253 = vst [vmem:[%s8524_s29 + $0x90] sm:$0xf] %v252_v36  ;;  %255 = vst [vmem:[%s8524_s29 + $0x94] sm:$0xf] %v254_v37  ;;  %v256_v38 = vld [vmem:[%s8520_s28 + $0x260] sm:$0xf] }
  0x2f   : > { %v258_v39 = vld [vmem:[%s8520_s28 + $0x270] sm:$0xf]  ;;  %v260_v40 = vld [vmem:[%s8520_s28 + $0x280] sm:$0xf]  ;;  %257 = vst [vmem:[%s8524_s29 + $0x98] sm:$0xf] %v256_v38 }
  0x30   : > { %259 = vst [vmem:[%s8524_s29 + $0x9c] sm:$0xf] %v258_v39  ;;  %261 = vst [vmem:[%s8524_s29 + $0xa0] sm:$0xf] %v260_v40  ;;  %v262_v41 = vld [vmem:[%s8520_s28 + $0x290] sm:$0xf] }
  0x31   : > { %v264_v42 = vld [vmem:[%s8520_s28 + $0x2a0] sm:$0xf]  ;;  %v266_v43 = vld [vmem:[%s8520_s28 + $0x2b0] sm:$0xf]  ;;  %263 = vst [vmem:[%s8524_s29 + $0xa4] sm:$0xf] %v262_v41 }
  0x32   : > { %265 = vst [vmem:[%s8524_s29 + $0xa8] sm:$0xf] %v264_v42  ;;  %267 = vst [vmem:[%s8524_s29 + $0xac] sm:$0xf] %v266_v43  ;;  %v268_v44 = vld [vmem:[%s8520_s28 + $0x2c0] sm:$0xf] }
  0x33   : > { %v270_v45 = vld [vmem:[%s8520_s28 + $0x2d0] sm:$0xf]  ;;  %v272_v46 = vld [vmem:[%s8520_s28 + $0x2e0] sm:$0xf]  ;;  %269 = vst [vmem:[%s8524_s29 + $0xb0] sm:$0xf] %v268_v44 }
  0x34   : > { %271 = vst [vmem:[%s8524_s29 + $0xb4] sm:$0xf] %v270_v45  ;;  %273 = vst [vmem:[%s8524_s29 + $0xb8] sm:$0xf] %v272_v46  ;;  %v274_v47 = vld [vmem:[%s8520_s28 + $0x2f0] sm:$0xf] }
  0x35   : > { %v276_v48 = vld [vmem:[%s8520_s28 + $0x300] sm:$0xf]  ;;  %v278_v49 = vld [vmem:[%s8520_s28 + $0x310] sm:$0xf]  ;;  %275 = vst [vmem:[%s8524_s29 + $0xbc] sm:$0xf] %v274_v47 }
  0x36   : > { %277 = vst [vmem:[%s8524_s29 + $0xc0] sm:$0xf] %v276_v48  ;;  %279 = vst [vmem:[%s8524_s29 + $0xc4] sm:$0xf] %v278_v49  ;;  %v280_v50 = vld [vmem:[%s8520_s28 + $0x320] sm:$0xf] }
  0x37   : > { %v282_v51 = vld [vmem:[%s8520_s28 + $0x330] sm:$0xf]  ;;  %v284_v52 = vld [vmem:[%s8520_s28 + $0x340] sm:$0xf]  ;;  %281 = vst [vmem:[%s8524_s29 + $0xc8] sm:$0xf] %v280_v50 }
  0x38   : > { %283 = vst [vmem:[%s8524_s29 + $0xcc] sm:$0xf] %v282_v51  ;;  %285 = vst [vmem:[%s8524_s29 + $0xd0] sm:$0xf] %v284_v52  ;;  %v286_v53 = vld [vmem:[%s8520_s28 + $0x350] sm:$0xf] }
  0x39   : > { %v288_v54 = vld [vmem:[%s8520_s28 + $0x360] sm:$0xf]  ;;  %v290_v55 = vld [vmem:[%s8520_s28 + $0x370] sm:$0xf]  ;;  %287 = vst [vmem:[%s8524_s29 + $0xd4] sm:$0xf] %v286_v53 }
  0x3a   : > { %289 = vst [vmem:[%s8524_s29 + $0xd8] sm:$0xf] %v288_v54  ;;  %291 = vst [vmem:[%s8524_s29 + $0xdc] sm:$0xf] %v290_v55  ;;  %v292_v56 = vld [vmem:[%s8520_s28 + $0x380] sm:$0xf] }
  0x3b   : > { %v294_v57 = vld [vmem:[%s8520_s28 + $0x390] sm:$0xf]  ;;  %v296_v58 = vld [vmem:[%s8520_s28 + $0x3a0] sm:$0xf]  ;;  %293 = vst [vmem:[%s8524_s29 + $0xe0] sm:$0xf] %v292_v56 }
  0x3c   : > { %295 = vst [vmem:[%s8524_s29 + $0xe4] sm:$0xf] %v294_v57  ;;  %297 = vst [vmem:[%s8524_s29 + $0xe8] sm:$0xf] %v296_v58  ;;  %v298_v59 = vld [vmem:[%s8520_s28 + $0x3b0] sm:$0xf] }
  0x3d   : > { %v300_v60 = vld [vmem:[%s8520_s28 + $0x3c0] sm:$0xf]  ;;  %v302_v61 = vld [vmem:[%s8520_s28 + $0x3d0] sm:$0xf]  ;;  %299 = vst [vmem:[%s8524_s29 + $0xec] sm:$0xf] %v298_v59 }
  0x3e   : > { %301 = vst [vmem:[%s8524_s29 + $0xf0] sm:$0xf] %v300_v60  ;;  %303 = vst [vmem:[%s8524_s29 + $0xf4] sm:$0xf] %v302_v61  ;;  %v304_v62 = vld [vmem:[%s8520_s28 + $0x3e0] sm:$0xf] }
  0x3f   : > { %v306_v63 = vld [vmem:[%s8520_s28 + $0x3f0] sm:$0xf]  ;;  %v308_v0 = vld [vmem:[%s8520_s28 + $0x400] sm:$0xf]  ;;  %305 = vst [vmem:[%s8524_s29 + $0xf8] sm:$0xf] %v304_v62 }
  0x40   : > { %307 = vst [vmem:[%s8524_s29 + $0xfc] sm:$0xf] %v306_v63  ;;  %309 = vst [vmem:[%s8524_s29 + $0x100] sm:$0xf] %v308_v0  ;;  %v310_v1 = vld [vmem:[%s8520_s28 + $0x410] sm:$0xf] }
  0x41   : > { %v312_v2 = vld [vmem:[%s8520_s28 + $0x420] sm:$0xf]  ;;  %v314_v3 = vld [vmem:[%s8520_s28 + $0x430] sm:$0xf]  ;;  %311 = vst [vmem:[%s8524_s29 + $0x104] sm:$0xf] %v310_v1 }
  0x42   : > { %313 = vst [vmem:[%s8524_s29 + $0x108] sm:$0xf] %v312_v2  ;;  %315 = vst [vmem:[%s8524_s29 + $0x10c] sm:$0xf] %v314_v3  ;;  %v316_v4 = vld [vmem:[%s8520_s28 + $0x440] sm:$0xf] }
  0x43   : > { %v318_v5 = vld [vmem:[%s8520_s28 + $0x450] sm:$0xf]  ;;  %v320_v6 = vld [vmem:[%s8520_s28 + $0x460] sm:$0xf]  ;;  %317 = vst [vmem:[%s8524_s29 + $0x110] sm:$0xf] %v316_v4 }
  0x44   : > { %319 = vst [vmem:[%s8524_s29 + $0x114] sm:$0xf] %v318_v5  ;;  %321 = vst [vmem:[%s8524_s29 + $0x118] sm:$0xf] %v320_v6  ;;  %v322_v7 = vld [vmem:[%s8520_s28 + $0x470] sm:$0xf] }
  0x45   : > { %v324_v8 = vld [vmem:[%s8520_s28 + $0x480] sm:$0xf]  ;;  %v326_v9 = vld [vmem:[%s8520_s28 + $0x490] sm:$0xf]  ;;  %323 = vst [vmem:[%s8524_s29 + $0x11c] sm:$0xf] %v322_v7 }
  0x46   : > { %325 = vst [vmem:[%s8524_s29 + $0x120] sm:$0xf] %v324_v8  ;;  %327 = vst [vmem:[%s8524_s29 + $0x124] sm:$0xf] %v326_v9  ;;  %v328_v10 = vld [vmem:[%s8520_s28 + $0x4a0] sm:$0xf] }
  0x47   : > { %v330_v11 = vld [vmem:[%s8520_s28 + $0x4b0] sm:$0xf]  ;;  %v332_v12 = vld [vmem:[%s8520_s28 + $0x4c0] sm:$0xf]  ;;  %329 = vst [vmem:[%s8524_s29 + $0x128] sm:$0xf] %v328_v10 }
  0x48   : > { %331 = vst [vmem:[%s8524_s29 + $0x12c] sm:$0xf] %v330_v11  ;;  %333 = vst [vmem:[%s8524_s29 + $0x130] sm:$0xf] %v332_v12  ;;  %v334_v13 = vld [vmem:[%s8520_s28 + $0x4d0] sm:$0xf] }
  0x49   : > { %v336_v14 = vld [vmem:[%s8520_s28 + $0x4e0] sm:$0xf]  ;;  %v338_v15 = vld [vmem:[%s8520_s28 + $0x4f0] sm:$0xf]  ;;  %335 = vst [vmem:[%s8524_s29 + $0x134] sm:$0xf] %v334_v13 }
  0x4a   : > { %337 = vst [vmem:[%s8524_s29 + $0x138] sm:$0xf] %v336_v14  ;;  %339 = vst [vmem:[%s8524_s29 + $0x13c] sm:$0xf] %v338_v15  ;;  %v340_v16 = vld [vmem:[%s8520_s28 + $0x500] sm:$0xf] }
  0x4b   : > { %v342_v17 = vld [vmem:[%s8520_s28 + $0x510] sm:$0xf]  ;;  %v344_v18 = vld [vmem:[%s8520_s28 + $0x520] sm:$0xf]  ;;  %341 = vst [vmem:[%s8524_s29 + $0x140] sm:$0xf] %v340_v16 }
  0x4c   : > { %343 = vst [vmem:[%s8524_s29 + $0x144] sm:$0xf] %v342_v17  ;;  %345 = vst [vmem:[%s8524_s29 + $0x148] sm:$0xf] %v344_v18  ;;  %v346_v19 = vld [vmem:[%s8520_s28 + $0x530] sm:$0xf] }
  0x4d   : > { %v348_v20 = vld [vmem:[%s8520_s28 + $0x540] sm:$0xf]  ;;  %v350_v21 = vld [vmem:[%s8520_s28 + $0x550] sm:$0xf]  ;;  %347 = vst [vmem:[%s8524_s29 + $0x14c] sm:$0xf] %v346_v19 }
  0x4e   : > { %349 = vst [vmem:[%s8524_s29 + $0x150] sm:$0xf] %v348_v20  ;;  %351 = vst [vmem:[%s8524_s29 + $0x154] sm:$0xf] %v350_v21  ;;  %v352_v22 = vld [vmem:[%s8520_s28 + $0x560] sm:$0xf] }
  0x4f   : > { %v354_v23 = vld [vmem:[%s8520_s28 + $0x570] sm:$0xf]  ;;  %v356_v24 = vld [vmem:[%s8520_s28 + $0x580] sm:$0xf]  ;;  %353 = vst [vmem:[%s8524_s29 + $0x158] sm:$0xf] %v352_v22 }
  0x50   : > { %355 = vst [vmem:[%s8524_s29 + $0x15c] sm:$0xf] %v354_v23  ;;  %357 = vst [vmem:[%s8524_s29 + $0x160] sm:$0xf] %v356_v24  ;;  %v358_v25 = vld [vmem:[%s8520_s28 + $0x590] sm:$0xf] }
  0x51   : > { %v360_v26 = vld [vmem:[%s8520_s28 + $0x5a0] sm:$0xf]  ;;  %v362_v27 = vld [vmem:[%s8520_s28 + $0x5b0] sm:$0xf]  ;;  %359 = vst [vmem:[%s8524_s29 + $0x164] sm:$0xf] %v358_v25 }
  0x52   : > { %361 = vst [vmem:[%s8524_s29 + $0x168] sm:$0xf] %v360_v26  ;;  %363 = vst [vmem:[%s8524_s29 + $0x16c] sm:$0xf] %v362_v27  ;;  %v364_v28 = vld [vmem:[%s8520_s28 + $0x5c0] sm:$0xf] }
  0x53   : > { %v366_v29 = vld [vmem:[%s8520_s28 + $0x5d0] sm:$0xf]  ;;  %v368_v30 = vld [vmem:[%s8520_s28 + $0x5e0] sm:$0xf]  ;;  %365 = vst [vmem:[%s8524_s29 + $0x170] sm:$0xf] %v364_v28 }
  0x54   : > { %367 = vst [vmem:[%s8524_s29 + $0x174] sm:$0xf] %v366_v29  ;;  %369 = vst [vmem:[%s8524_s29 + $0x178] sm:$0xf] %v368_v30  ;;  %v370_v31 = vld [vmem:[%s8520_s28 + $0x5f0] sm:$0xf] }
  0x55   : > { %v372_v32 = vld [vmem:[%s8520_s28 + $0x600] sm:$0xf]  ;;  %v374_v33 = vld [vmem:[%s8520_s28 + $0x610] sm:$0xf]  ;;  %371 = vst [vmem:[%s8524_s29 + $0x17c] sm:$0xf] %v370_v31 }
  0x56   : > { %373 = vst [vmem:[%s8524_s29 + $0x180] sm:$0xf] %v372_v32  ;;  %375 = vst [vmem:[%s8524_s29 + $0x184] sm:$0xf] %v374_v33  ;;  %v376_v34 = vld [vmem:[%s8520_s28 + $0x620] sm:$0xf] }
  0x57   : > { %v378_v35 = vld [vmem:[%s8520_s28 + $0x630] sm:$0xf]  ;;  %v380_v36 = vld [vmem:[%s8520_s28 + $0x640] sm:$0xf]  ;;  %377 = vst [vmem:[%s8524_s29 + $0x188] sm:$0xf] %v376_v34 }
  0x58   : > { %379 = vst [vmem:[%s8524_s29 + $0x18c] sm:$0xf] %v378_v35  ;;  %381 = vst [vmem:[%s8524_s29 + $0x190] sm:$0xf] %v380_v36  ;;  %v382_v37 = vld [vmem:[%s8520_s28 + $0x650] sm:$0xf] }
  0x59   : > { %v384_v38 = vld [vmem:[%s8520_s28 + $0x660] sm:$0xf]  ;;  %v386_v39 = vld [vmem:[%s8520_s28 + $0x670] sm:$0xf]  ;;  %383 = vst [vmem:[%s8524_s29 + $0x194] sm:$0xf] %v382_v37 }
  0x5a   : > { %385 = vst [vmem:[%s8524_s29 + $0x198] sm:$0xf] %v384_v38  ;;  %387 = vst [vmem:[%s8524_s29 + $0x19c] sm:$0xf] %v386_v39  ;;  %v388_v40 = vld [vmem:[%s8520_s28 + $0x680] sm:$0xf] }
  0x5b   : > { %v390_v41 = vld [vmem:[%s8520_s28 + $0x690] sm:$0xf]  ;;  %v392_v42 = vld [vmem:[%s8520_s28 + $0x6a0] sm:$0xf]  ;;  %389 = vst [vmem:[%s8524_s29 + $0x1a0] sm:$0xf] %v388_v40 }
  0x5c   : > { %391 = vst [vmem:[%s8524_s29 + $0x1a4] sm:$0xf] %v390_v41  ;;  %393 = vst [vmem:[%s8524_s29 + $0x1a8] sm:$0xf] %v392_v42  ;;  %v394_v43 = vld [vmem:[%s8520_s28 + $0x6b0] sm:$0xf] }
  0x5d   : > { %v396_v44 = vld [vmem:[%s8520_s28 + $0x6c0] sm:$0xf]  ;;  %v398_v45 = vld [vmem:[%s8520_s28 + $0x6d0] sm:$0xf]  ;;  %395 = vst [vmem:[%s8524_s29 + $0x1ac] sm:$0xf] %v394_v43 }
  0x5e   : > { %397 = vst [vmem:[%s8524_s29 + $0x1b0] sm:$0xf] %v396_v44  ;;  %399 = vst [vmem:[%s8524_s29 + $0x1b4] sm:$0xf] %v398_v45  ;;  %v400_v46 = vld [vmem:[%s8520_s28 + $0x6e0] sm:$0xf] }
  0x5f   : > { %v402_v47 = vld [vmem:[%s8520_s28 + $0x6f0] sm:$0xf]  ;;  %v404_v48 = vld [vmem:[%s8520_s28 + $0x700] sm:$0xf]  ;;  %401 = vst [vmem:[%s8524_s29 + $0x1b8] sm:$0xf] %v400_v46 }
  0x60   : > { %403 = vst [vmem:[%s8524_s29 + $0x1bc] sm:$0xf] %v402_v47  ;;  %405 = vst [vmem:[%s8524_s29 + $0x1c0] sm:$0xf] %v404_v48  ;;  %v406_v49 = vld [vmem:[%s8520_s28 + $0x710] sm:$0xf] }
  0x61   : > { %v408_v50 = vld [vmem:[%s8520_s28 + $0x720] sm:$0xf]  ;;  %v410_v51 = vld [vmem:[%s8520_s28 + $0x730] sm:$0xf]  ;;  %407 = vst [vmem:[%s8524_s29 + $0x1c4] sm:$0xf] %v406_v49 }
  0x62   : > { %409 = vst [vmem:[%s8524_s29 + $0x1c8] sm:$0xf] %v408_v50  ;;  %411 = vst [vmem:[%s8524_s29 + $0x1cc] sm:$0xf] %v410_v51  ;;  %v412_v52 = vld [vmem:[%s8520_s28 + $0x740] sm:$0xf] }
  0x63   : > { %v414_v53 = vld [vmem:[%s8520_s28 + $0x750] sm:$0xf]  ;;  %v416_v54 = vld [vmem:[%s8520_s28 + $0x760] sm:$0xf]  ;;  %413 = vst [vmem:[%s8524_s29 + $0x1d0] sm:$0xf] %v412_v52 }
  0x64   : > { %415 = vst [vmem:[%s8524_s29 + $0x1d4] sm:$0xf] %v414_v53  ;;  %417 = vst [vmem:[%s8524_s29 + $0x1d8] sm:$0xf] %v416_v54  ;;  %v418_v55 = vld [vmem:[%s8520_s28 + $0x770] sm:$0xf] }
  0x65   : > { %v420_v56 = vld [vmem:[%s8520_s28 + $0x780] sm:$0xf]  ;;  %v422_v57 = vld [vmem:[%s8520_s28 + $0x790] sm:$0xf]  ;;  %419 = vst [vmem:[%s8524_s29 + $0x1dc] sm:$0xf] %v418_v55 }
  0x66   : > { %421 = vst [vmem:[%s8524_s29 + $0x1e0] sm:$0xf] %v420_v56  ;;  %423 = vst [vmem:[%s8524_s29 + $0x1e4] sm:$0xf] %v422_v57  ;;  %v424_v58 = vld [vmem:[%s8520_s28 + $0x7a0] sm:$0xf] }
  0x67   : > { %v426_v59 = vld [vmem:[%s8520_s28 + $0x7b0] sm:$0xf]  ;;  %v428_v60 = vld [vmem:[%s8520_s28 + $0x7c0] sm:$0xf]  ;;  %425 = vst [vmem:[%s8524_s29 + $0x1e8] sm:$0xf] %v424_v58 }
  0x68   : > { %427 = vst [vmem:[%s8524_s29 + $0x1ec] sm:$0xf] %v426_v59  ;;  %429 = vst [vmem:[%s8524_s29 + $0x1f0] sm:$0xf] %v428_v60  ;;  %v430_v61 = vld [vmem:[%s8520_s28 + $0x7d0] sm:$0xf] }
  0x69   : > { %v432_v62 = vld [vmem:[%s8520_s28 + $0x7e0] sm:$0xf]  ;;  %v434_v63 = vld [vmem:[%s8520_s28 + $0x7f0] sm:$0xf]  ;;  %431 = vst [vmem:[%s8524_s29 + $0x1f4] sm:$0xf] %v430_v61 }
  0x6a   : > { %433 = vst [vmem:[%s8524_s29 + $0x1f8] sm:$0xf] %v432_v62  ;;  %435 = vst [vmem:[%s8524_s29 + $0x1fc] sm:$0xf] %v434_v63  ;;  %v436_v0 = vld [vmem:[%s8520_s28 + $0x800] sm:$0xf] }
  0x6b   : > { %v438_v1 = vld [vmem:[%s8520_s28 + $0x810] sm:$0xf]  ;;  %v440_v2 = vld [vmem:[%s8520_s28 + $0x820] sm:$0xf]  ;;  %437 = vst [vmem:[%s8524_s29 + $0x200] sm:$0xf] %v436_v0 }
  0x6c   : > { %439 = vst [vmem:[%s8524_s29 + $0x204] sm:$0xf] %v438_v1  ;;  %441 = vst [vmem:[%s8524_s29 + $0x208] sm:$0xf] %v440_v2  ;;  %v442_v3 = vld [vmem:[%s8520_s28 + $0x830] sm:$0xf] }
  0x6d   : > { %v444_v4 = vld [vmem:[%s8520_s28 + $0x840] sm:$0xf]  ;;  %v446_v5 = vld [vmem:[%s8520_s28 + $0x850] sm:$0xf]  ;;  %443 = vst [vmem:[%s8524_s29 + $0x20c] sm:$0xf] %v442_v3 }
  0x6e   : > { %445 = vst [vmem:[%s8524_s29 + $0x210] sm:$0xf] %v444_v4  ;;  %447 = vst [vmem:[%s8524_s29 + $0x214] sm:$0xf] %v446_v5  ;;  %v448_v6 = vld [vmem:[%s8520_s28 + $0x860] sm:$0xf] }
  0x6f   : > { %v450_v7 = vld [vmem:[%s8520_s28 + $0x870] sm:$0xf]  ;;  %v452_v8 = vld [vmem:[%s8520_s28 + $0x880] sm:$0xf]  ;;  %449 = vst [vmem:[%s8524_s29 + $0x218] sm:$0xf] %v448_v6 }
  0x70   : > { %451 = vst [vmem:[%s8524_s29 + $0x21c] sm:$0xf] %v450_v7  ;;  %453 = vst [vmem:[%s8524_s29 + $0x220] sm:$0xf] %v452_v8  ;;  %v454_v9 = vld [vmem:[%s8520_s28 + $0x890] sm:$0xf] }
  0x71   : > { %v456_v10 = vld [vmem:[%s8520_s28 + $0x8a0] sm:$0xf]  ;;  %v458_v11 = vld [vmem:[%s8520_s28 + $0x8b0] sm:$0xf]  ;;  %455 = vst [vmem:[%s8524_s29 + $0x224] sm:$0xf] %v454_v9 }
  0x72   : > { %457 = vst [vmem:[%s8524_s29 + $0x228] sm:$0xf] %v456_v10  ;;  %459 = vst [vmem:[%s8524_s29 + $0x22c] sm:$0xf] %v458_v11  ;;  %v460_v12 = vld [vmem:[%s8520_s28 + $0x8c0] sm:$0xf] }
  0x73   : > { %v462_v13 = vld [vmem:[%s8520_s28 + $0x8d0] sm:$0xf]  ;;  %v464_v14 = vld [vmem:[%s8520_s28 + $0x8e0] sm:$0xf]  ;;  %461 = vst [vmem:[%s8524_s29 + $0x230] sm:$0xf] %v460_v12 }
  0x74   : > { %463 = vst [vmem:[%s8524_s29 + $0x234] sm:$0xf] %v462_v13  ;;  %465 = vst [vmem:[%s8524_s29 + $0x238] sm:$0xf] %v464_v14  ;;  %v466_v15 = vld [vmem:[%s8520_s28 + $0x8f0] sm:$0xf] }
  0x75   : > { %v468_v16 = vld [vmem:[%s8520_s28 + $0x900] sm:$0xf]  ;;  %v470_v17 = vld [vmem:[%s8520_s28 + $0x910] sm:$0xf]  ;;  %467 = vst [vmem:[%s8524_s29 + $0x23c] sm:$0xf] %v466_v15 }
  0x76   : > { %469 = vst [vmem:[%s8524_s29 + $0x240] sm:$0xf] %v468_v16  ;;  %471 = vst [vmem:[%s8524_s29 + $0x244] sm:$0xf] %v470_v17  ;;  %v472_v18 = vld [vmem:[%s8520_s28 + $0x920] sm:$0xf] }
  0x77   : > { %v474_v19 = vld [vmem:[%s8520_s28 + $0x930] sm:$0xf]  ;;  %v476_v20 = vld [vmem:[%s8520_s28 + $0x940] sm:$0xf]  ;;  %473 = vst [vmem:[%s8524_s29 + $0x248] sm:$0xf] %v472_v18 }
  0x78   : > { %475 = vst [vmem:[%s8524_s29 + $0x24c] sm:$0xf] %v474_v19  ;;  %477 = vst [vmem:[%s8524_s29 + $0x250] sm:$0xf] %v476_v20  ;;  %v478_v21 = vld [vmem:[%s8520_s28 + $0x950] sm:$0xf] }
  0x79   : > { %v480_v22 = vld [vmem:[%s8520_s28 + $0x960] sm:$0xf]  ;;  %v482_v23 = vld [vmem:[%s8520_s28 + $0x970] sm:$0xf]  ;;  %479 = vst [vmem:[%s8524_s29 + $0x254] sm:$0xf] %v478_v21 }
  0x7a   : > { %481 = vst [vmem:[%s8524_s29 + $0x258] sm:$0xf] %v480_v22  ;;  %483 = vst [vmem:[%s8524_s29 + $0x25c] sm:$0xf] %v482_v23  ;;  %v484_v24 = vld [vmem:[%s8520_s28 + $0x980] sm:$0xf] }
  0x7b   : > { %v486_v25 = vld [vmem:[%s8520_s28 + $0x990] sm:$0xf]  ;;  %v488_v26 = vld [vmem:[%s8520_s28 + $0x9a0] sm:$0xf]  ;;  %485 = vst [vmem:[%s8524_s29 + $0x260] sm:$0xf] %v484_v24 }
  0x7c   : > { %487 = vst [vmem:[%s8524_s29 + $0x264] sm:$0xf] %v486_v25  ;;  %489 = vst [vmem:[%s8524_s29 + $0x268] sm:$0xf] %v488_v26  ;;  %v490_v27 = vld [vmem:[%s8520_s28 + $0x9b0] sm:$0xf] }
  0x7d   : > { %v492_v28 = vld [vmem:[%s8520_s28 + $0x9c0] sm:$0xf]  ;;  %v494_v29 = vld [vmem:[%s8520_s28 + $0x9d0] sm:$0xf]  ;;  %491 = vst [vmem:[%s8524_s29 + $0x26c] sm:$0xf] %v490_v27 }
  0x7e   : > { %493 = vst [vmem:[%s8524_s29 + $0x270] sm:$0xf] %v492_v28  ;;  %495 = vst [vmem:[%s8524_s29 + $0x274] sm:$0xf] %v494_v29  ;;  %v496_v30 = vld [vmem:[%s8520_s28 + $0x9e0] sm:$0xf] }
  0x7f   : > { %v498_v31 = vld [vmem:[%s8520_s28 + $0x9f0] sm:$0xf]  ;;  %v500_v32 = vld [vmem:[%s8520_s28 + $0xa00] sm:$0xf]  ;;  %497 = vst [vmem:[%s8524_s29 + $0x278] sm:$0xf] %v496_v30 }
  0x80   : > { %499 = vst [vmem:[%s8524_s29 + $0x27c] sm:$0xf] %v498_v31  ;;  %501 = vst [vmem:[%s8524_s29 + $0x280] sm:$0xf] %v500_v32  ;;  %v502_v33 = vld [vmem:[%s8520_s28 + $0xa10] sm:$0xf] }
  0x81   : > { %v504_v34 = vld [vmem:[%s8520_s28 + $0xa20] sm:$0xf]  ;;  %v506_v35 = vld [vmem:[%s8520_s28 + $0xa30] sm:$0xf]  ;;  %503 = vst [vmem:[%s8524_s29 + $0x284] sm:$0xf] %v502_v33 }
  0x82   : > { %505 = vst [vmem:[%s8524_s29 + $0x288] sm:$0xf] %v504_v34  ;;  %507 = vst [vmem:[%s8524_s29 + $0x28c] sm:$0xf] %v506_v35  ;;  %v508_v36 = vld [vmem:[%s8520_s28 + $0xa40] sm:$0xf] }
  0x83   : > { %v510_v37 = vld [vmem:[%s8520_s28 + $0xa50] sm:$0xf]  ;;  %v512_v38 = vld [vmem:[%s8520_s28 + $0xa60] sm:$0xf]  ;;  %509 = vst [vmem:[%s8524_s29 + $0x290] sm:$0xf] %v508_v36 }
  0x84   : > { %511 = vst [vmem:[%s8524_s29 + $0x294] sm:$0xf] %v510_v37  ;;  %513 = vst [vmem:[%s8524_s29 + $0x298] sm:$0xf] %v512_v38  ;;  %v514_v39 = vld [vmem:[%s8520_s28 + $0xa70] sm:$0xf] }
  0x85   : > { %v516_v40 = vld [vmem:[%s8520_s28 + $0xa80] sm:$0xf]  ;;  %v518_v41 = vld [vmem:[%s8520_s28 + $0xa90] sm:$0xf]  ;;  %515 = vst [vmem:[%s8524_s29 + $0x29c] sm:$0xf] %v514_v39 }
  0x86   : > { %517 = vst [vmem:[%s8524_s29 + $0x2a0] sm:$0xf] %v516_v40  ;;  %519 = vst [vmem:[%s8524_s29 + $0x2a4] sm:$0xf] %v518_v41  ;;  %v520_v42 = vld [vmem:[%s8520_s28 + $0xaa0] sm:$0xf] }
  0x87   : > { %v522_v43 = vld [vmem:[%s8520_s28 + $0xab0] sm:$0xf]  ;;  %v524_v44 = vld [vmem:[%s8520_s28 + $0xac0] sm:$0xf]  ;;  %521 = vst [vmem:[%s8524_s29 + $0x2a8] sm:$0xf] %v520_v42 }
  0x88   : > { %523 = vst [vmem:[%s8524_s29 + $0x2ac] sm:$0xf] %v522_v43  ;;  %525 = vst [vmem:[%s8524_s29 + $0x2b0] sm:$0xf] %v524_v44  ;;  %v526_v45 = vld [vmem:[%s8520_s28 + $0xad0] sm:$0xf] }
  0x89   : > { %v528_v46 = vld [vmem:[%s8520_s28 + $0xae0] sm:$0xf]  ;;  %v530_v47 = vld [vmem:[%s8520_s28 + $0xaf0] sm:$0xf]  ;;  %527 = vst [vmem:[%s8524_s29 + $0x2b4] sm:$0xf] %v526_v45 }
  0x8a   : > { %529 = vst [vmem:[%s8524_s29 + $0x2b8] sm:$0xf] %v528_v46  ;;  %531 = vst [vmem:[%s8524_s29 + $0x2bc] sm:$0xf] %v530_v47  ;;  %v532_v48 = vld [vmem:[%s8520_s28 + $0xb00] sm:$0xf] }
  0x8b   : > { %v534_v49 = vld [vmem:[%s8520_s28 + $0xb10] sm:$0xf]  ;;  %v536_v50 = vld [vmem:[%s8520_s28 + $0xb20] sm:$0xf]  ;;  %533 = vst [vmem:[%s8524_s29 + $0x2c0] sm:$0xf] %v532_v48 }
  0x8c   : > { %535 = vst [vmem:[%s8524_s29 + $0x2c4] sm:$0xf] %v534_v49  ;;  %537 = vst [vmem:[%s8524_s29 + $0x2c8] sm:$0xf] %v536_v50  ;;  %v538_v51 = vld [vmem:[%s8520_s28 + $0xb30] sm:$0xf] }
  0x8d   : > { %v540_v52 = vld [vmem:[%s8520_s28 + $0xb40] sm:$0xf]  ;;  %v542_v53 = vld [vmem:[%s8520_s28 + $0xb50] sm:$0xf]  ;;  %539 = vst [vmem:[%s8524_s29 + $0x2cc] sm:$0xf] %v538_v51 }
  0x8e   : > { %541 = vst [vmem:[%s8524_s29 + $0x2d0] sm:$0xf] %v540_v52  ;;  %543 = vst [vmem:[%s8524_s29 + $0x2d4] sm:$0xf] %v542_v53  ;;  %v544_v54 = vld [vmem:[%s8520_s28 + $0xb60] sm:$0xf] }
  0x8f   : > { %v546_v55 = vld [vmem:[%s8520_s28 + $0xb70] sm:$0xf]  ;;  %v548_v56 = vld [vmem:[%s8520_s28 + $0xb80] sm:$0xf]  ;;  %545 = vst [vmem:[%s8524_s29 + $0x2d8] sm:$0xf] %v544_v54 }
  0x90   : > { %547 = vst [vmem:[%s8524_s29 + $0x2dc] sm:$0xf] %v546_v55  ;;  %549 = vst [vmem:[%s8524_s29 + $0x2e0] sm:$0xf] %v548_v56  ;;  %v550_v57 = vld [vmem:[%s8520_s28 + $0xb90] sm:$0xf] }
  0x91   : > { %v552_v58 = vld [vmem:[%s8520_s28 + $0xba0] sm:$0xf]  ;;  %v554_v59 = vld [vmem:[%s8520_s28 + $0xbb0] sm:$0xf]  ;;  %551 = vst [vmem:[%s8524_s29 + $0x2e4] sm:$0xf] %v550_v57 }
  0x92   : > { %553 = vst [vmem:[%s8524_s29 + $0x2e8] sm:$0xf] %v552_v58  ;;  %555 = vst [vmem:[%s8524_s29 + $0x2ec] sm:$0xf] %v554_v59  ;;  %v556_v60 = vld [vmem:[%s8520_s28 + $0xbc0] sm:$0xf] }
  0x93   : > { %v558_v61 = vld [vmem:[%s8520_s28 + $0xbd0] sm:$0xf]  ;;  %v560_v62 = vld [vmem:[%s8520_s28 + $0xbe0] sm:$0xf]  ;;  %557 = vst [vmem:[%s8524_s29 + $0x2f0] sm:$0xf] %v556_v60 }
  0x94   : > { %559 = vst [vmem:[%s8524_s29 + $0x2f4] sm:$0xf] %v558_v61  ;;  %561 = vst [vmem:[%s8524_s29 + $0x2f8] sm:$0xf] %v560_v62  ;;  %v562_v63 = vld [vmem:[%s8520_s28 + $0xbf0] sm:$0xf] }
  0x95   : > { %v564_v0 = vld [vmem:[%s8520_s28 + $0xc00] sm:$0xf]  ;;  %v566_v1 = vld [vmem:[%s8520_s28 + $0xc10] sm:$0xf]  ;;  %563 = vst [vmem:[%s8524_s29 + $0x2fc] sm:$0xf] %v562_v63 }
  0x96   : > { %565 = vst [vmem:[%s8524_s29 + $0x300] sm:$0xf] %v564_v0  ;;  %567 = vst [vmem:[%s8524_s29 + $0x304] sm:$0xf] %v566_v1  ;;  %v568_v2 = vld [vmem:[%s8520_s28 + $0xc20] sm:$0xf] }
  0x97   : > { %v570_v3 = vld [vmem:[%s8520_s28 + $0xc30] sm:$0xf]  ;;  %v572_v4 = vld [vmem:[%s8520_s28 + $0xc40] sm:$0xf]  ;;  %569 = vst [vmem:[%s8524_s29 + $0x308] sm:$0xf] %v568_v2 }
  0x98   : > { %571 = vst [vmem:[%s8524_s29 + $0x30c] sm:$0xf] %v570_v3  ;;  %573 = vst [vmem:[%s8524_s29 + $0x310] sm:$0xf] %v572_v4  ;;  %v574_v5 = vld [vmem:[%s8520_s28 + $0xc50] sm:$0xf] }
  0x99   : > { %v576_v6 = vld [vmem:[%s8520_s28 + $0xc60] sm:$0xf]  ;;  %v578_v7 = vld [vmem:[%s8520_s28 + $0xc70] sm:$0xf]  ;;  %575 = vst [vmem:[%s8524_s29 + $0x314] sm:$0xf] %v574_v5 }
  0x9a   : > { %577 = vst [vmem:[%s8524_s29 + $0x318] sm:$0xf] %v576_v6  ;;  %579 = vst [vmem:[%s8524_s29 + $0x31c] sm:$0xf] %v578_v7  ;;  %v580_v8 = vld [vmem:[%s8520_s28 + $0xc80] sm:$0xf] }
  0x9b   : > { %v582_v9 = vld [vmem:[%s8520_s28 + $0xc90] sm:$0xf]  ;;  %v584_v10 = vld [vmem:[%s8520_s28 + $0xca0] sm:$0xf]  ;;  %581 = vst [vmem:[%s8524_s29 + $0x320] sm:$0xf] %v580_v8 }
  0x9c   : > { %583 = vst [vmem:[%s8524_s29 + $0x324] sm:$0xf] %v582_v9  ;;  %585 = vst [vmem:[%s8524_s29 + $0x328] sm:$0xf] %v584_v10  ;;  %v586_v11 = vld [vmem:[%s8520_s28 + $0xcb0] sm:$0xf] }
  0x9d   : > { %v588_v12 = vld [vmem:[%s8520_s28 + $0xcc0] sm:$0xf]  ;;  %v590_v13 = vld [vmem:[%s8520_s28 + $0xcd0] sm:$0xf]  ;;  %587 = vst [vmem:[%s8524_s29 + $0x32c] sm:$0xf] %v586_v11 }
  0x9e   : > { %589 = vst [vmem:[%s8524_s29 + $0x330] sm:$0xf] %v588_v12  ;;  %591 = vst [vmem:[%s8524_s29 + $0x334] sm:$0xf] %v590_v13  ;;  %v592_v14 = vld [vmem:[%s8520_s28 + $0xce0] sm:$0xf] }
  0x9f   : > { %v594_v15 = vld [vmem:[%s8520_s28 + $0xcf0] sm:$0xf]  ;;  %v596_v16 = vld [vmem:[%s8520_s28 + $0xd00] sm:$0xf]  ;;  %593 = vst [vmem:[%s8524_s29 + $0x338] sm:$0xf] %v592_v14 }
  0xa0   : > { %595 = vst [vmem:[%s8524_s29 + $0x33c] sm:$0xf] %v594_v15  ;;  %597 = vst [vmem:[%s8524_s29 + $0x340] sm:$0xf] %v596_v16  ;;  %v598_v17 = vld [vmem:[%s8520_s28 + $0xd10] sm:$0xf] }
  0xa1   : > { %v600_v18 = vld [vmem:[%s8520_s28 + $0xd20] sm:$0xf]  ;;  %v602_v19 = vld [vmem:[%s8520_s28 + $0xd30] sm:$0xf]  ;;  %599 = vst [vmem:[%s8524_s29 + $0x344] sm:$0xf] %v598_v17 }
  0xa2   : > { %601 = vst [vmem:[%s8524_s29 + $0x348] sm:$0xf] %v600_v18  ;;  %603 = vst [vmem:[%s8524_s29 + $0x34c] sm:$0xf] %v602_v19  ;;  %v604_v20 = vld [vmem:[%s8520_s28 + $0xd40] sm:$0xf] }
  0xa3   : > { %v606_v21 = vld [vmem:[%s8520_s28 + $0xd50] sm:$0xf]  ;;  %v608_v22 = vld [vmem:[%s8520_s28 + $0xd60] sm:$0xf]  ;;  %605 = vst [vmem:[%s8524_s29 + $0x350] sm:$0xf] %v604_v20 }
  0xa4   : > { %607 = vst [vmem:[%s8524_s29 + $0x354] sm:$0xf] %v606_v21  ;;  %609 = vst [vmem:[%s8524_s29 + $0x358] sm:$0xf] %v608_v22  ;;  %v610_v23 = vld [vmem:[%s8520_s28 + $0xd70] sm:$0xf] }
  0xa5   : > { %v612_v24 = vld [vmem:[%s8520_s28 + $0xd80] sm:$0xf]  ;;  %v614_v25 = vld [vmem:[%s8520_s28 + $0xd90] sm:$0xf]  ;;  %611 = vst [vmem:[%s8524_s29 + $0x35c] sm:$0xf] %v610_v23 }
  0xa6   : > { %613 = vst [vmem:[%s8524_s29 + $0x360] sm:$0xf] %v612_v24  ;;  %615 = vst [vmem:[%s8524_s29 + $0x364] sm:$0xf] %v614_v25  ;;  %v616_v26 = vld [vmem:[%s8520_s28 + $0xda0] sm:$0xf] }
  0xa7   : > { %v618_v27 = vld [vmem:[%s8520_s28 + $0xdb0] sm:$0xf]  ;;  %v620_v28 = vld [vmem:[%s8520_s28 + $0xdc0] sm:$0xf]  ;;  %617 = vst [vmem:[%s8524_s29 + $0x368] sm:$0xf] %v616_v26 }
  0xa8   : > { %619 = vst [vmem:[%s8524_s29 + $0x36c] sm:$0xf] %v618_v27  ;;  %621 = vst [vmem:[%s8524_s29 + $0x370] sm:$0xf] %v620_v28  ;;  %v622_v29 = vld [vmem:[%s8520_s28 + $0xdd0] sm:$0xf] }
  0xa9   : > { %v624_v30 = vld [vmem:[%s8520_s28 + $0xde0] sm:$0xf]  ;;  %v626_v31 = vld [vmem:[%s8520_s28 + $0xdf0] sm:$0xf]  ;;  %623 = vst [vmem:[%s8524_s29 + $0x374] sm:$0xf] %v622_v29 }
  0xaa   : > { %625 = vst [vmem:[%s8524_s29 + $0x378] sm:$0xf] %v624_v30  ;;  %627 = vst [vmem:[%s8524_s29 + $0x37c] sm:$0xf] %v626_v31  ;;  %v628_v32 = vld [vmem:[%s8520_s28 + $0xe00] sm:$0xf] }
  0xab   : > { %v630_v33 = vld [vmem:[%s8520_s28 + $0xe10] sm:$0xf]  ;;  %v632_v34 = vld [vmem:[%s8520_s28 + $0xe20] sm:$0xf]  ;;  %629 = vst [vmem:[%s8524_s29 + $0x380] sm:$0xf] %v628_v32 }
  0xac   : > { %631 = vst [vmem:[%s8524_s29 + $0x384] sm:$0xf] %v630_v33  ;;  %633 = vst [vmem:[%s8524_s29 + $0x388] sm:$0xf] %v632_v34  ;;  %v634_v35 = vld [vmem:[%s8520_s28 + $0xe30] sm:$0xf] }
  0xad   : > { %v636_v36 = vld [vmem:[%s8520_s28 + $0xe40] sm:$0xf]  ;;  %v638_v37 = vld [vmem:[%s8520_s28 + $0xe50] sm:$0xf]  ;;  %635 = vst [vmem:[%s8524_s29 + $0x38c] sm:$0xf] %v634_v35 }
  0xae   : > { %637 = vst [vmem:[%s8524_s29 + $0x390] sm:$0xf] %v636_v36  ;;  %639 = vst [vmem:[%s8524_s29 + $0x394] sm:$0xf] %v638_v37  ;;  %v640_v38 = vld [vmem:[%s8520_s28 + $0xe60] sm:$0xf] }
  0xaf   : > { %v642_v39 = vld [vmem:[%s8520_s28 + $0xe70] sm:$0xf]  ;;  %v644_v40 = vld [vmem:[%s8520_s28 + $0xe80] sm:$0xf]  ;;  %641 = vst [vmem:[%s8524_s29 + $0x398] sm:$0xf] %v640_v38 }
  0xb0   : > { %643 = vst [vmem:[%s8524_s29 + $0x39c] sm:$0xf] %v642_v39  ;;  %645 = vst [vmem:[%s8524_s29 + $0x3a0] sm:$0xf] %v644_v40  ;;  %v646_v41 = vld [vmem:[%s8520_s28 + $0xe90] sm:$0xf] }
  0xb1   : > { %v648_v42 = vld [vmem:[%s8520_s28 + $0xea0] sm:$0xf]  ;;  %v650_v43 = vld [vmem:[%s8520_s28 + $0xeb0] sm:$0xf]  ;;  %647 = vst [vmem:[%s8524_s29 + $0x3a4] sm:$0xf] %v646_v41 }
  0xb2   : > { %649 = vst [vmem:[%s8524_s29 + $0x3a8] sm:$0xf] %v648_v42  ;;  %651 = vst [vmem:[%s8524_s29 + $0x3ac] sm:$0xf] %v650_v43  ;;  %v652_v44 = vld [vmem:[%s8520_s28 + $0xec0] sm:$0xf] }
  0xb3   : > { %v654_v45 = vld [vmem:[%s8520_s28 + $0xed0] sm:$0xf]  ;;  %v656_v46 = vld [vmem:[%s8520_s28 + $0xee0] sm:$0xf]  ;;  %653 = vst [vmem:[%s8524_s29 + $0x3b0] sm:$0xf] %v652_v44 }
  0xb4   : > { %655 = vst [vmem:[%s8524_s29 + $0x3b4] sm:$0xf] %v654_v45  ;;  %657 = vst [vmem:[%s8524_s29 + $0x3b8] sm:$0xf] %v656_v46  ;;  %v658_v47 = vld [vmem:[%s8520_s28 + $0xef0] sm:$0xf] }
  0xb5   : > { %v660_v48 = vld [vmem:[%s8520_s28 + $0xf00] sm:$0xf]  ;;  %v662_v49 = vld [vmem:[%s8520_s28 + $0xf10] sm:$0xf]  ;;  %659 = vst [vmem:[%s8524_s29 + $0x3bc] sm:$0xf] %v658_v47 }
  0xb6   : > { %661 = vst [vmem:[%s8524_s29 + $0x3c0] sm:$0xf] %v660_v48  ;;  %663 = vst [vmem:[%s8524_s29 + $0x3c4] sm:$0xf] %v662_v49  ;;  %v664_v50 = vld [vmem:[%s8520_s28 + $0xf20] sm:$0xf] }
  0xb7   : > { %v666_v51 = vld [vmem:[%s8520_s28 + $0xf30] sm:$0xf]  ;;  %v668_v52 = vld [vmem:[%s8520_s28 + $0xf40] sm:$0xf]  ;;  %665 = vst [vmem:[%s8524_s29 + $0x3c8] sm:$0xf] %v664_v50 }
  0xb8   : > { %667 = vst [vmem:[%s8524_s29 + $0x3cc] sm:$0xf] %v666_v51  ;;  %669 = vst [vmem:[%s8524_s29 + $0x3d0] sm:$0xf] %v668_v52  ;;  %v670_v53 = vld [vmem:[%s8520_s28 + $0xf50] sm:$0xf] }
  0xb9   : > { %v672_v54 = vld [vmem:[%s8520_s28 + $0xf60] sm:$0xf]  ;;  %v674_v55 = vld [vmem:[%s8520_s28 + $0xf70] sm:$0xf]  ;;  %671 = vst [vmem:[%s8524_s29 + $0x3d4] sm:$0xf] %v670_v53 }
  0xba   : > { %673 = vst [vmem:[%s8524_s29 + $0x3d8] sm:$0xf] %v672_v54  ;;  %675 = vst [vmem:[%s8524_s29 + $0x3dc] sm:$0xf] %v674_v55  ;;  %v676_v56 = vld [vmem:[%s8520_s28 + $0xf80] sm:$0xf] }
  0xbb   : > { %v678_v57 = vld [vmem:[%s8520_s28 + $0xf90] sm:$0xf]  ;;  %v680_v58 = vld [vmem:[%s8520_s28 + $0xfa0] sm:$0xf]  ;;  %677 = vst [vmem:[%s8524_s29 + $0x3e0] sm:$0xf] %v676_v56 }
  0xbc   : > { %679 = vst [vmem:[%s8524_s29 + $0x3e4] sm:$0xf] %v678_v57  ;;  %681 = vst [vmem:[%s8524_s29 + $0x3e8] sm:$0xf] %v680_v58  ;;  %v682_v59 = vld [vmem:[%s8520_s28 + $0xfb0] sm:$0xf] }
  0xbd   : > { %v684_v60 = vld [vmem:[%s8520_s28 + $0xfc0] sm:$0xf]  ;;  %v686_v61 = vld [vmem:[%s8520_s28 + $0xfd0] sm:$0xf]  ;;  %683 = vst [vmem:[%s8524_s29 + $0x3ec] sm:$0xf] %v682_v59 }
  0xbe   : > { %685 = vst [vmem:[%s8524_s29 + $0x3f0] sm:$0xf] %v684_v60  ;;  %687 = vst [vmem:[%s8524_s29 + $0x3f4] sm:$0xf] %v686_v61  ;;  %v688_v62 = vld [vmem:[%s8520_s28 + $0xfe0] sm:$0xf] }
  0xbf   : > { %v690_v63 = vld [vmem:[%s8520_s28 + $0xff0] sm:$0xf]  ;;  %v692_v0 = vld [vmem:[%s8520_s28 + $0x1000] sm:$0xf]  ;;  %689 = vst [vmem:[%s8524_s29 + $0x3f8] sm:$0xf] %v688_v62 }
  0xc0   : > { %691 = vst [vmem:[%s8524_s29 + $0x3fc] sm:$0xf] %v690_v63  ;;  %693 = vst [vmem:[%s8524_s29 + $0x400] sm:$0xf] %v692_v0  ;;  %v694_v1 = vld [vmem:[%s8520_s28 + $0x1010] sm:$0xf] }
  0xc1   : > { %v696_v2 = vld [vmem:[%s8520_s28 + $0x1020] sm:$0xf]  ;;  %v698_v3 = vld [vmem:[%s8520_s28 + $0x1030] sm:$0xf]  ;;  %695 = vst [vmem:[%s8524_s29 + $0x404] sm:$0xf] %v694_v1 }
  0xc2   : > { %697 = vst [vmem:[%s8524_s29 + $0x408] sm:$0xf] %v696_v2  ;;  %699 = vst [vmem:[%s8524_s29 + $0x40c] sm:$0xf] %v698_v3  ;;  %v700_v4 = vld [vmem:[%s8520_s28 + $0x1040] sm:$0xf] }
  0xc3   : > { %v702_v5 = vld [vmem:[%s8520_s28 + $0x1050] sm:$0xf]  ;;  %v704_v6 = vld [vmem:[%s8520_s28 + $0x1060] sm:$0xf]  ;;  %701 = vst [vmem:[%s8524_s29 + $0x410] sm:$0xf] %v700_v4 }
  0xc4   : > { %703 = vst [vmem:[%s8524_s29 + $0x414] sm:$0xf] %v702_v5  ;;  %705 = vst [vmem:[%s8524_s29 + $0x418] sm:$0xf] %v704_v6  ;;  %v706_v7 = vld [vmem:[%s8520_s28 + $0x1070] sm:$0xf] }
  0xc5   : > { %v708_v8 = vld [vmem:[%s8520_s28 + $0x1080] sm:$0xf]  ;;  %v710_v9 = vld [vmem:[%s8520_s28 + $0x1090] sm:$0xf]  ;;  %707 = vst [vmem:[%s8524_s29 + $0x41c] sm:$0xf] %v706_v7 }
  0xc6   : > { %709 = vst [vmem:[%s8524_s29 + $0x420] sm:$0xf] %v708_v8  ;;  %711 = vst [vmem:[%s8524_s29 + $0x424] sm:$0xf] %v710_v9  ;;  %v712_v10 = vld [vmem:[%s8520_s28 + $0x10a0] sm:$0xf] }
  0xc7   : > { %v714_v11 = vld [vmem:[%s8520_s28 + $0x10b0] sm:$0xf]  ;;  %v716_v12 = vld [vmem:[%s8520_s28 + $0x10c0] sm:$0xf]  ;;  %713 = vst [vmem:[%s8524_s29 + $0x428] sm:$0xf] %v712_v10 }
  0xc8   : > { %715 = vst [vmem:[%s8524_s29 + $0x42c] sm:$0xf] %v714_v11  ;;  %717 = vst [vmem:[%s8524_s29 + $0x430] sm:$0xf] %v716_v12  ;;  %v718_v13 = vld [vmem:[%s8520_s28 + $0x10d0] sm:$0xf] }
  0xc9   : > { %v720_v14 = vld [vmem:[%s8520_s28 + $0x10e0] sm:$0xf]  ;;  %v722_v15 = vld [vmem:[%s8520_s28 + $0x10f0] sm:$0xf]  ;;  %719 = vst [vmem:[%s8524_s29 + $0x434] sm:$0xf] %v718_v13 }
  0xca   : > { %721 = vst [vmem:[%s8524_s29 + $0x438] sm:$0xf] %v720_v14  ;;  %723 = vst [vmem:[%s8524_s29 + $0x43c] sm:$0xf] %v722_v15  ;;  %v724_v16 = vld [vmem:[%s8520_s28 + $0x1100] sm:$0xf] }
  0xcb   : > { %v726_v17 = vld [vmem:[%s8520_s28 + $0x1110] sm:$0xf]  ;;  %v728_v18 = vld [vmem:[%s8520_s28 + $0x1120] sm:$0xf]  ;;  %725 = vst [vmem:[%s8524_s29 + $0x440] sm:$0xf] %v724_v16 }
  0xcc   : > { %727 = vst [vmem:[%s8524_s29 + $0x444] sm:$0xf] %v726_v17  ;;  %729 = vst [vmem:[%s8524_s29 + $0x448] sm:$0xf] %v728_v18  ;;  %v730_v19 = vld [vmem:[%s8520_s28 + $0x1130] sm:$0xf] }
  0xcd   : > { %v732_v20 = vld [vmem:[%s8520_s28 + $0x1140] sm:$0xf]  ;;  %v734_v21 = vld [vmem:[%s8520_s28 + $0x1150] sm:$0xf]  ;;  %731 = vst [vmem:[%s8524_s29 + $0x44c] sm:$0xf] %v730_v19 }
  0xce   : > { %733 = vst [vmem:[%s8524_s29 + $0x450] sm:$0xf] %v732_v20  ;;  %735 = vst [vmem:[%s8524_s29 + $0x454] sm:$0xf] %v734_v21  ;;  %v736_v22 = vld [vmem:[%s8520_s28 + $0x1160] sm:$0xf] }
  0xcf   : > { %v738_v23 = vld [vmem:[%s8520_s28 + $0x1170] sm:$0xf]  ;;  %v740_v24 = vld [vmem:[%s8520_s28 + $0x1180] sm:$0xf]  ;;  %737 = vst [vmem:[%s8524_s29 + $0x458] sm:$0xf] %v736_v22 }
  0xd0   : > { %739 = vst [vmem:[%s8524_s29 + $0x45c] sm:$0xf] %v738_v23  ;;  %741 = vst [vmem:[%s8524_s29 + $0x460] sm:$0xf] %v740_v24  ;;  %v742_v25 = vld [vmem:[%s8520_s28 + $0x1190] sm:$0xf] }
  0xd1   : > { %v744_v26 = vld [vmem:[%s8520_s28 + $0x11a0] sm:$0xf]  ;;  %v746_v27 = vld [vmem:[%s8520_s28 + $0x11b0] sm:$0xf]  ;;  %743 = vst [vmem:[%s8524_s29 + $0x464] sm:$0xf] %v742_v25 }
  0xd2   : > { %745 = vst [vmem:[%s8524_s29 + $0x468] sm:$0xf] %v744_v26  ;;  %747 = vst [vmem:[%s8524_s29 + $0x46c] sm:$0xf] %v746_v27  ;;  %v748_v28 = vld [vmem:[%s8520_s28 + $0x11c0] sm:$0xf] }
  0xd3   : > { %v750_v29 = vld [vmem:[%s8520_s28 + $0x11d0] sm:$0xf]  ;;  %v752_v30 = vld [vmem:[%s8520_s28 + $0x11e0] sm:$0xf]  ;;  %749 = vst [vmem:[%s8524_s29 + $0x470] sm:$0xf] %v748_v28 }
  0xd4   : > { %751 = vst [vmem:[%s8524_s29 + $0x474] sm:$0xf] %v750_v29  ;;  %753 = vst [vmem:[%s8524_s29 + $0x478] sm:$0xf] %v752_v30  ;;  %v754_v31 = vld [vmem:[%s8520_s28 + $0x11f0] sm:$0xf] }
  0xd5   : > { %v756_v32 = vld [vmem:[%s8520_s28 + $0x1200] sm:$0xf]  ;;  %v758_v33 = vld [vmem:[%s8520_s28 + $0x1210] sm:$0xf]  ;;  %755 = vst [vmem:[%s8524_s29 + $0x47c] sm:$0xf] %v754_v31 }
  0xd6   : > { %757 = vst [vmem:[%s8524_s29 + $0x480] sm:$0xf] %v756_v32  ;;  %759 = vst [vmem:[%s8524_s29 + $0x484] sm:$0xf] %v758_v33  ;;  %v760_v34 = vld [vmem:[%s8520_s28 + $0x1220] sm:$0xf] }
  0xd7   : > { %v762_v35 = vld [vmem:[%s8520_s28 + $0x1230] sm:$0xf]  ;;  %v764_v36 = vld [vmem:[%s8520_s28 + $0x1240] sm:$0xf]  ;;  %761 = vst [vmem:[%s8524_s29 + $0x488] sm:$0xf] %v760_v34 }
  0xd8   : > { %763 = vst [vmem:[%s8524_s29 + $0x48c] sm:$0xf] %v762_v35  ;;  %765 = vst [vmem:[%s8524_s29 + $0x490] sm:$0xf] %v764_v36  ;;  %v766_v37 = vld [vmem:[%s8520_s28 + $0x1250] sm:$0xf] }
  0xd9   : > { %v768_v38 = vld [vmem:[%s8520_s28 + $0x1260] sm:$0xf]  ;;  %v770_v39 = vld [vmem:[%s8520_s28 + $0x1270] sm:$0xf]  ;;  %767 = vst [vmem:[%s8524_s29 + $0x494] sm:$0xf] %v766_v37 }
  0xda   : > { %769 = vst [vmem:[%s8524_s29 + $0x498] sm:$0xf] %v768_v38  ;;  %771 = vst [vmem:[%s8524_s29 + $0x49c] sm:$0xf] %v770_v39  ;;  %v772_v40 = vld [vmem:[%s8520_s28 + $0x1280] sm:$0xf] }
  0xdb   : > { %v774_v41 = vld [vmem:[%s8520_s28 + $0x1290] sm:$0xf]  ;;  %v776_v42 = vld [vmem:[%s8520_s28 + $0x12a0] sm:$0xf]  ;;  %773 = vst [vmem:[%s8524_s29 + $0x4a0] sm:$0xf] %v772_v40 }
  0xdc   : > { %775 = vst [vmem:[%s8524_s29 + $0x4a4] sm:$0xf] %v774_v41  ;;  %777 = vst [vmem:[%s8524_s29 + $0x4a8] sm:$0xf] %v776_v42  ;;  %v778_v43 = vld [vmem:[%s8520_s28 + $0x12b0] sm:$0xf] }
  0xdd   : > { %v780_v44 = vld [vmem:[%s8520_s28 + $0x12c0] sm:$0xf]  ;;  %v782_v45 = vld [vmem:[%s8520_s28 + $0x12d0] sm:$0xf]  ;;  %779 = vst [vmem:[%s8524_s29 + $0x4ac] sm:$0xf] %v778_v43 }
  0xde   : > { %781 = vst [vmem:[%s8524_s29 + $0x4b0] sm:$0xf] %v780_v44  ;;  %783 = vst [vmem:[%s8524_s29 + $0x4b4] sm:$0xf] %v782_v45  ;;  %v784_v46 = vld [vmem:[%s8520_s28 + $0x12e0] sm:$0xf] }
  0xdf   : > { %v786_v47 = vld [vmem:[%s8520_s28 + $0x12f0] sm:$0xf]  ;;  %v788_v48 = vld [vmem:[%s8520_s28 + $0x1300] sm:$0xf]  ;;  %785 = vst [vmem:[%s8524_s29 + $0x4b8] sm:$0xf] %v784_v46 }
  0xe0   : > { %787 = vst [vmem:[%s8524_s29 + $0x4bc] sm:$0xf] %v786_v47  ;;  %789 = vst [vmem:[%s8524_s29 + $0x4c0] sm:$0xf] %v788_v48  ;;  %v790_v49 = vld [vmem:[%s8520_s28 + $0x1310] sm:$0xf] }
  0xe1   : > { %v792_v50 = vld [vmem:[%s8520_s28 + $0x1320] sm:$0xf]  ;;  %v794_v51 = vld [vmem:[%s8520_s28 + $0x1330] sm:$0xf]  ;;  %791 = vst [vmem:[%s8524_s29 + $0x4c4] sm:$0xf] %v790_v49 }
  0xe2   : > { %793 = vst [vmem:[%s8524_s29 + $0x4c8] sm:$0xf] %v792_v50  ;;  %795 = vst [vmem:[%s8524_s29 + $0x4cc] sm:$0xf] %v794_v51  ;;  %v796_v52 = vld [vmem:[%s8520_s28 + $0x1340] sm:$0xf] }
  0xe3   : > { %v798_v53 = vld [vmem:[%s8520_s28 + $0x1350] sm:$0xf]  ;;  %v800_v54 = vld [vmem:[%s8520_s28 + $0x1360] sm:$0xf]  ;;  %797 = vst [vmem:[%s8524_s29 + $0x4d0] sm:$0xf] %v796_v52 }
  0xe4   : > { %799 = vst [vmem:[%s8524_s29 + $0x4d4] sm:$0xf] %v798_v53  ;;  %801 = vst [vmem:[%s8524_s29 + $0x4d8] sm:$0xf] %v800_v54  ;;  %v802_v55 = vld [vmem:[%s8520_s28 + $0x1370] sm:$0xf] }
  0xe5   : > { %v804_v56 = vld [vmem:[%s8520_s28 + $0x1380] sm:$0xf]  ;;  %v806_v57 = vld [vmem:[%s8520_s28 + $0x1390] sm:$0xf]  ;;  %803 = vst [vmem:[%s8524_s29 + $0x4dc] sm:$0xf] %v802_v55 }
  0xe6   : > { %805 = vst [vmem:[%s8524_s29 + $0x4e0] sm:$0xf] %v804_v56  ;;  %807 = vst [vmem:[%s8524_s29 + $0x4e4] sm:$0xf] %v806_v57  ;;  %v808_v58 = vld [vmem:[%s8520_s28 + $0x13a0] sm:$0xf] }
  0xe7   : > { %v810_v59 = vld [vmem:[%s8520_s28 + $0x13b0] sm:$0xf]  ;;  %v812_v60 = vld [vmem:[%s8520_s28 + $0x13c0] sm:$0xf]  ;;  %809 = vst [vmem:[%s8524_s29 + $0x4e8] sm:$0xf] %v808_v58 }
  0xe8   : > { %811 = vst [vmem:[%s8524_s29 + $0x4ec] sm:$0xf] %v810_v59  ;;  %813 = vst [vmem:[%s8524_s29 + $0x4f0] sm:$0xf] %v812_v60  ;;  %v814_v61 = vld [vmem:[%s8520_s28 + $0x13d0] sm:$0xf] }
  0xe9   : > { %v816_v62 = vld [vmem:[%s8520_s28 + $0x13e0] sm:$0xf]  ;;  %v818_v63 = vld [vmem:[%s8520_s28 + $0x13f0] sm:$0xf]  ;;  %815 = vst [vmem:[%s8524_s29 + $0x4f4] sm:$0xf] %v814_v61 }
  0xea   : > { %817 = vst [vmem:[%s8524_s29 + $0x4f8] sm:$0xf] %v816_v62  ;;  %819 = vst [vmem:[%s8524_s29 + $0x4fc] sm:$0xf] %v818_v63  ;;  %v820_v0 = vld [vmem:[%s8520_s28 + $0x1400] sm:$0xf] }
  0xeb   : > { %v822_v1 = vld [vmem:[%s8520_s28 + $0x1410] sm:$0xf]  ;;  %v824_v2 = vld [vmem:[%s8520_s28 + $0x1420] sm:$0xf]  ;;  %821 = vst [vmem:[%s8524_s29 + $0x500] sm:$0xf] %v820_v0 }
  0xec   : > { %823 = vst [vmem:[%s8524_s29 + $0x504] sm:$0xf] %v822_v1  ;;  %825 = vst [vmem:[%s8524_s29 + $0x508] sm:$0xf] %v824_v2  ;;  %v826_v3 = vld [vmem:[%s8520_s28 + $0x1430] sm:$0xf] }
  0xed   : > { %v828_v4 = vld [vmem:[%s8520_s28 + $0x1440] sm:$0xf]  ;;  %v830_v5 = vld [vmem:[%s8520_s28 + $0x1450] sm:$0xf]  ;;  %827 = vst [vmem:[%s8524_s29 + $0x50c] sm:$0xf] %v826_v3 }
  0xee   : > { %829 = vst [vmem:[%s8524_s29 + $0x510] sm:$0xf] %v828_v4  ;;  %831 = vst [vmem:[%s8524_s29 + $0x514] sm:$0xf] %v830_v5  ;;  %v832_v6 = vld [vmem:[%s8520_s28 + $0x1460] sm:$0xf] }
  0xef   : > { %v834_v7 = vld [vmem:[%s8520_s28 + $0x1470] sm:$0xf]  ;;  %v836_v8 = vld [vmem:[%s8520_s28 + $0x1480] sm:$0xf]  ;;  %833 = vst [vmem:[%s8524_s29 + $0x518] sm:$0xf] %v832_v6 }
  0xf0   : > { %835 = vst [vmem:[%s8524_s29 + $0x51c] sm:$0xf] %v834_v7  ;;  %837 = vst [vmem:[%s8524_s29 + $0x520] sm:$0xf] %v836_v8  ;;  %v838_v9 = vld [vmem:[%s8520_s28 + $0x1490] sm:$0xf] }
  0xf1   : > { %v840_v10 = vld [vmem:[%s8520_s28 + $0x14a0] sm:$0xf]  ;;  %v842_v11 = vld [vmem:[%s8520_s28 + $0x14b0] sm:$0xf]  ;;  %839 = vst [vmem:[%s8524_s29 + $0x524] sm:$0xf] %v838_v9 }
  0xf2   : > { %841 = vst [vmem:[%s8524_s29 + $0x528] sm:$0xf] %v840_v10  ;;  %843 = vst [vmem:[%s8524_s29 + $0x52c] sm:$0xf] %v842_v11  ;;  %v844_v12 = vld [vmem:[%s8520_s28 + $0x14c0] sm:$0xf] }
  0xf3   : > { %v846_v13 = vld [vmem:[%s8520_s28 + $0x14d0] sm:$0xf]  ;;  %v848_v14 = vld [vmem:[%s8520_s28 + $0x14e0] sm:$0xf]  ;;  %845 = vst [vmem:[%s8524_s29 + $0x530] sm:$0xf] %v844_v12 }
  0xf4   : > { %847 = vst [vmem:[%s8524_s29 + $0x534] sm:$0xf] %v846_v13  ;;  %849 = vst [vmem:[%s8524_s29 + $0x538] sm:$0xf] %v848_v14  ;;  %v850_v15 = vld [vmem:[%s8520_s28 + $0x14f0] sm:$0xf] }
  0xf5   : > { %v852_v16 = vld [vmem:[%s8520_s28 + $0x1500] sm:$0xf]  ;;  %v854_v17 = vld [vmem:[%s8520_s28 + $0x1510] sm:$0xf]  ;;  %851 = vst [vmem:[%s8524_s29 + $0x53c] sm:$0xf] %v850_v15 }
  0xf6   : > { %853 = vst [vmem:[%s8524_s29 + $0x540] sm:$0xf] %v852_v16  ;;  %855 = vst [vmem:[%s8524_s29 + $0x544] sm:$0xf] %v854_v17  ;;  %v856_v18 = vld [vmem:[%s8520_s28 + $0x1520] sm:$0xf] }
  0xf7   : > { %v858_v19 = vld [vmem:[%s8520_s28 + $0x1530] sm:$0xf]  ;;  %v860_v20 = vld [vmem:[%s8520_s28 + $0x1540] sm:$0xf]  ;;  %857 = vst [vmem:[%s8524_s29 + $0x548] sm:$0xf] %v856_v18 }
  0xf8   : > { %859 = vst [vmem:[%s8524_s29 + $0x54c] sm:$0xf] %v858_v19  ;;  %861 = vst [vmem:[%s8524_s29 + $0x550] sm:$0xf] %v860_v20  ;;  %v862_v21 = vld [vmem:[%s8520_s28 + $0x1550] sm:$0xf] }
  0xf9   : > { %v864_v22 = vld [vmem:[%s8520_s28 + $0x1560] sm:$0xf]  ;;  %v866_v23 = vld [vmem:[%s8520_s28 + $0x1570] sm:$0xf]  ;;  %863 = vst [vmem:[%s8524_s29 + $0x554] sm:$0xf] %v862_v21 }
  0xfa   : > { %865 = vst [vmem:[%s8524_s29 + $0x558] sm:$0xf] %v864_v22  ;;  %867 = vst [vmem:[%s8524_s29 + $0x55c] sm:$0xf] %v866_v23  ;;  %v868_v24 = vld [vmem:[%s8520_s28 + $0x1580] sm:$0xf] }
  0xfb   : > { %v870_v25 = vld [vmem:[%s8520_s28 + $0x1590] sm:$0xf]  ;;  %v872_v26 = vld [vmem:[%s8520_s28 + $0x15a0] sm:$0xf]  ;;  %869 = vst [vmem:[%s8524_s29 + $0x560] sm:$0xf] %v868_v24 }
  0xfc   : > { %871 = vst [vmem:[%s8524_s29 + $0x564] sm:$0xf] %v870_v25  ;;  %873 = vst [vmem:[%s8524_s29 + $0x568] sm:$0xf] %v872_v26  ;;  %v874_v27 = vld [vmem:[%s8520_s28 + $0x15b0] sm:$0xf] }
  0xfd   : > { %v876_v28 = vld [vmem:[%s8520_s28 + $0x15c0] sm:$0xf]  ;;  %v878_v29 = vld [vmem:[%s8520_s28 + $0x15d0] sm:$0xf]  ;;  %875 = vst [vmem:[%s8524_s29 + $0x56c] sm:$0xf] %v874_v27 }
  0xfe   : > { %877 = vst [vmem:[%s8524_s29 + $0x570] sm:$0xf] %v876_v28  ;;  %879 = vst [vmem:[%s8524_s29 + $0x574] sm:$0xf] %v878_v29  ;;  %v880_v30 = vld [vmem:[%s8520_s28 + $0x15e0] sm:$0xf] }
  0xff   : > { %v882_v31 = vld [vmem:[%s8520_s28 + $0x15f0] sm:$0xf]  ;;  %v884_v32 = vld [vmem:[%s8520_s28 + $0x1600] sm:$0xf]  ;;  %881 = vst [vmem:[%s8524_s29 + $0x578] sm:$0xf] %v880_v30 }
 0x100   : > { %883 = vst [vmem:[%s8524_s29 + $0x57c] sm:$0xf] %v882_v31  ;;  %885 = vst [vmem:[%s8524_s29 + $0x580] sm:$0xf] %v884_v32  ;;  %v886_v33 = vld [vmem:[%s8520_s28 + $0x1610] sm:$0xf] }
 0x101   : > { %v888_v34 = vld [vmem:[%s8520_s28 + $0x1620] sm:$0xf]  ;;  %v890_v35 = vld [vmem:[%s8520_s28 + $0x1630] sm:$0xf]  ;;  %887 = vst [vmem:[%s8524_s29 + $0x584] sm:$0xf] %v886_v33 }
 0x102   : > { %889 = vst [vmem:[%s8524_s29 + $0x588] sm:$0xf] %v888_v34  ;;  %891 = vst [vmem:[%s8524_s29 + $0x58c] sm:$0xf] %v890_v35  ;;  %v892_v36 = vld [vmem:[%s8520_s28 + $0x1640] sm:$0xf] }
 0x103   : > { %v894_v37 = vld [vmem:[%s8520_s28 + $0x1650] sm:$0xf]  ;;  %v896_v38 = vld [vmem:[%s8520_s28 + $0x1660] sm:$0xf]  ;;  %893 = vst [vmem:[%s8524_s29 + $0x590] sm:$0xf] %v892_v36 }
 0x104   : > { %895 = vst [vmem:[%s8524_s29 + $0x594] sm:$0xf] %v894_v37  ;;  %897 = vst [vmem:[%s8524_s29 + $0x598] sm:$0xf] %v896_v38  ;;  %v898_v39 = vld [vmem:[%s8520_s28 + $0x1670] sm:$0xf] }
 0x105   : > { %v900_v40 = vld [vmem:[%s8520_s28 + $0x1680] sm:$0xf]  ;;  %v902_v41 = vld [vmem:[%s8520_s28 + $0x1690] sm:$0xf]  ;;  %899 = vst [vmem:[%s8524_s29 + $0x59c] sm:$0xf] %v898_v39 }
 0x106   : > { %901 = vst [vmem:[%s8524_s29 + $0x5a0] sm:$0xf] %v900_v40  ;;  %903 = vst [vmem:[%s8524_s29 + $0x5a4] sm:$0xf] %v902_v41  ;;  %v904_v42 = vld [vmem:[%s8520_s28 + $0x16a0] sm:$0xf] }
 0x107   : > { %v906_v43 = vld [vmem:[%s8520_s28 + $0x16b0] sm:$0xf]  ;;  %v908_v44 = vld [vmem:[%s8520_s28 + $0x16c0] sm:$0xf]  ;;  %905 = vst [vmem:[%s8524_s29 + $0x5a8] sm:$0xf] %v904_v42 }
 0x108   : > { %907 = vst [vmem:[%s8524_s29 + $0x5ac] sm:$0xf] %v906_v43  ;;  %909 = vst [vmem:[%s8524_s29 + $0x5b0] sm:$0xf] %v908_v44  ;;  %v910_v45 = vld [vmem:[%s8520_s28 + $0x16d0] sm:$0xf] }
 0x109   : > { %v912_v46 = vld [vmem:[%s8520_s28 + $0x16e0] sm:$0xf]  ;;  %v914_v47 = vld [vmem:[%s8520_s28 + $0x16f0] sm:$0xf]  ;;  %911 = vst [vmem:[%s8524_s29 + $0x5b4] sm:$0xf] %v910_v45 }
 0x10a   : > { %913 = vst [vmem:[%s8524_s29 + $0x5b8] sm:$0xf] %v912_v46  ;;  %915 = vst [vmem:[%s8524_s29 + $0x5bc] sm:$0xf] %v914_v47  ;;  %v916_v48 = vld [vmem:[%s8520_s28 + $0x1700] sm:$0xf] }
 0x10b   : > { %v918_v49 = vld [vmem:[%s8520_s28 + $0x1710] sm:$0xf]  ;;  %v920_v50 = vld [vmem:[%s8520_s28 + $0x1720] sm:$0xf]  ;;  %917 = vst [vmem:[%s8524_s29 + $0x5c0] sm:$0xf] %v916_v48 }
 0x10c   : > { %919 = vst [vmem:[%s8524_s29 + $0x5c4] sm:$0xf] %v918_v49  ;;  %921 = vst [vmem:[%s8524_s29 + $0x5c8] sm:$0xf] %v920_v50  ;;  %v922_v51 = vld [vmem:[%s8520_s28 + $0x1730] sm:$0xf] }
 0x10d   : > { %v924_v52 = vld [vmem:[%s8520_s28 + $0x1740] sm:$0xf]  ;;  %v926_v53 = vld [vmem:[%s8520_s28 + $0x1750] sm:$0xf]  ;;  %923 = vst [vmem:[%s8524_s29 + $0x5cc] sm:$0xf] %v922_v51 }
 0x10e   : > { %925 = vst [vmem:[%s8524_s29 + $0x5d0] sm:$0xf] %v924_v52  ;;  %927 = vst [vmem:[%s8524_s29 + $0x5d4] sm:$0xf] %v926_v53  ;;  %v928_v54 = vld [vmem:[%s8520_s28 + $0x1760] sm:$0xf] }
 0x10f   : > { %v930_v55 = vld [vmem:[%s8520_s28 + $0x1770] sm:$0xf]  ;;  %v932_v56 = vld [vmem:[%s8520_s28 + $0x1780] sm:$0xf]  ;;  %929 = vst [vmem:[%s8524_s29 + $0x5d8] sm:$0xf] %v928_v54 }
 0x110   : > { %931 = vst [vmem:[%s8524_s29 + $0x5dc] sm:$0xf] %v930_v55  ;;  %933 = vst [vmem:[%s8524_s29 + $0x5e0] sm:$0xf] %v932_v56  ;;  %v934_v57 = vld [vmem:[%s8520_s28 + $0x1790] sm:$0xf] }
 0x111   : > { %v936_v58 = vld [vmem:[%s8520_s28 + $0x17a0] sm:$0xf]  ;;  %v938_v59 = vld [vmem:[%s8520_s28 + $0x17b0] sm:$0xf]  ;;  %935 = vst [vmem:[%s8524_s29 + $0x5e4] sm:$0xf] %v934_v57 }
 0x112   : > { %937 = vst [vmem:[%s8524_s29 + $0x5e8] sm:$0xf] %v936_v58  ;;  %939 = vst [vmem:[%s8524_s29 + $0x5ec] sm:$0xf] %v938_v59  ;;  %v940_v60 = vld [vmem:[%s8520_s28 + $0x17c0] sm:$0xf] }
 0x113   : > { %v942_v61 = vld [vmem:[%s8520_s28 + $0x17d0] sm:$0xf]  ;;  %v944_v62 = vld [vmem:[%s8520_s28 + $0x17e0] sm:$0xf]  ;;  %941 = vst [vmem:[%s8524_s29 + $0x5f0] sm:$0xf] %v940_v60 }
 0x114   : > { %943 = vst [vmem:[%s8524_s29 + $0x5f4] sm:$0xf] %v942_v61  ;;  %945 = vst [vmem:[%s8524_s29 + $0x5f8] sm:$0xf] %v944_v62  ;;  %v946_v63 = vld [vmem:[%s8520_s28 + $0x17f0] sm:$0xf] }
 0x115   : > { %v948_v0 = vld [vmem:[%s8520_s28 + $0x1800] sm:$0xf]  ;;  %v950_v1 = vld [vmem:[%s8520_s28 + $0x1810] sm:$0xf]  ;;  %947 = vst [vmem:[%s8524_s29 + $0x5fc] sm:$0xf] %v946_v63 }
 0x116   : > { %949 = vst [vmem:[%s8524_s29 + $0x600] sm:$0xf] %v948_v0  ;;  %951 = vst [vmem:[%s8524_s29 + $0x604] sm:$0xf] %v950_v1  ;;  %v952_v2 = vld [vmem:[%s8520_s28 + $0x1820] sm:$0xf] }
 0x117   : > { %v954_v3 = vld [vmem:[%s8520_s28 + $0x1830] sm:$0xf]  ;;  %v956_v4 = vld [vmem:[%s8520_s28 + $0x1840] sm:$0xf]  ;;  %953 = vst [vmem:[%s8524_s29 + $0x608] sm:$0xf] %v952_v2 }
 0x118   : > { %955 = vst [vmem:[%s8524_s29 + $0x60c] sm:$0xf] %v954_v3  ;;  %957 = vst [vmem:[%s8524_s29 + $0x610] sm:$0xf] %v956_v4  ;;  %v958_v5 = vld [vmem:[%s8520_s28 + $0x1850] sm:$0xf] }
 0x119   : > { %v960_v6 = vld [vmem:[%s8520_s28 + $0x1860] sm:$0xf]  ;;  %v962_v7 = vld [vmem:[%s8520_s28 + $0x1870] sm:$0xf]  ;;  %959 = vst [vmem:[%s8524_s29 + $0x614] sm:$0xf] %v958_v5 }
 0x11a   : > { %961 = vst [vmem:[%s8524_s29 + $0x618] sm:$0xf] %v960_v6  ;;  %963 = vst [vmem:[%s8524_s29 + $0x61c] sm:$0xf] %v962_v7  ;;  %v964_v8 = vld [vmem:[%s8520_s28 + $0x1880] sm:$0xf] }
 0x11b   : > { %v966_v9 = vld [vmem:[%s8520_s28 + $0x1890] sm:$0xf]  ;;  %v968_v10 = vld [vmem:[%s8520_s28 + $0x18a0] sm:$0xf]  ;;  %965 = vst [vmem:[%s8524_s29 + $0x620] sm:$0xf] %v964_v8 }
 0x11c   : > { %967 = vst [vmem:[%s8524_s29 + $0x624] sm:$0xf] %v966_v9  ;;  %969 = vst [vmem:[%s8524_s29 + $0x628] sm:$0xf] %v968_v10  ;;  %v970_v11 = vld [vmem:[%s8520_s28 + $0x18b0] sm:$0xf] }
 0x11d   : > { %v972_v12 = vld [vmem:[%s8520_s28 + $0x18c0] sm:$0xf]  ;;  %v974_v13 = vld [vmem:[%s8520_s28 + $0x18d0] sm:$0xf]  ;;  %971 = vst [vmem:[%s8524_s29 + $0x62c] sm:$0xf] %v970_v11 }
 0x11e   : > { %973 = vst [vmem:[%s8524_s29 + $0x630] sm:$0xf] %v972_v12  ;;  %975 = vst [vmem:[%s8524_s29 + $0x634] sm:$0xf] %v974_v13  ;;  %v976_v14 = vld [vmem:[%s8520_s28 + $0x18e0] sm:$0xf] }
 0x11f   : > { %v978_v15 = vld [vmem:[%s8520_s28 + $0x18f0] sm:$0xf]  ;;  %v980_v16 = vld [vmem:[%s8520_s28 + $0x1900] sm:$0xf]  ;;  %977 = vst [vmem:[%s8524_s29 + $0x638] sm:$0xf] %v976_v14 }
 0x120   : > { %979 = vst [vmem:[%s8524_s29 + $0x63c] sm:$0xf] %v978_v15  ;;  %981 = vst [vmem:[%s8524_s29 + $0x640] sm:$0xf] %v980_v16  ;;  %v982_v17 = vld [vmem:[%s8520_s28 + $0x1910] sm:$0xf] }
 0x121   : > { %v984_v18 = vld [vmem:[%s8520_s28 + $0x1920] sm:$0xf]  ;;  %v986_v19 = vld [vmem:[%s8520_s28 + $0x1930] sm:$0xf]  ;;  %983 = vst [vmem:[%s8524_s29 + $0x644] sm:$0xf] %v982_v17 }
 0x122   : > { %985 = vst [vmem:[%s8524_s29 + $0x648] sm:$0xf] %v984_v18  ;;  %987 = vst [vmem:[%s8524_s29 + $0x64c] sm:$0xf] %v986_v19  ;;  %v988_v20 = vld [vmem:[%s8520_s28 + $0x1940] sm:$0xf] }
 0x123   : > { %v990_v21 = vld [vmem:[%s8520_s28 + $0x1950] sm:$0xf]  ;;  %v992_v22 = vld [vmem:[%s8520_s28 + $0x1960] sm:$0xf]  ;;  %989 = vst [vmem:[%s8524_s29 + $0x650] sm:$0xf] %v988_v20 }
 0x124   : > { %991 = vst [vmem:[%s8524_s29 + $0x654] sm:$0xf] %v990_v21  ;;  %993 = vst [vmem:[%s8524_s29 + $0x658] sm:$0xf] %v992_v22  ;;  %v994_v23 = vld [vmem:[%s8520_s28 + $0x1970] sm:$0xf] }
 0x125   : > { %v996_v24 = vld [vmem:[%s8520_s28 + $0x1980] sm:$0xf]  ;;  %v998_v25 = vld [vmem:[%s8520_s28 + $0x1990] sm:$0xf]  ;;  %995 = vst [vmem:[%s8524_s29 + $0x65c] sm:$0xf] %v994_v23 }
 0x126   : > { %997 = vst [vmem:[%s8524_s29 + $0x660] sm:$0xf] %v996_v24  ;;  %999 = vst [vmem:[%s8524_s29 + $0x664] sm:$0xf] %v998_v25  ;;  %v1000_v26 = vld [vmem:[%s8520_s28 + $0x19a0] sm:$0xf] }
 0x127   : > { %v1002_v27 = vld [vmem:[%s8520_s28 + $0x19b0] sm:$0xf]  ;;  %v1004_v28 = vld [vmem:[%s8520_s28 + $0x19c0] sm:$0xf]  ;;  %1001 = vst [vmem:[%s8524_s29 + $0x668] sm:$0xf] %v1000_v26 }
 0x128   : > { %1003 = vst [vmem:[%s8524_s29 + $0x66c] sm:$0xf] %v1002_v27  ;;  %1005 = vst [vmem:[%s8524_s29 + $0x670] sm:$0xf] %v1004_v28  ;;  %v1006_v29 = vld [vmem:[%s8520_s28 + $0x19d0] sm:$0xf] }
 0x129   : > { %v1008_v30 = vld [vmem:[%s8520_s28 + $0x19e0] sm:$0xf]  ;;  %v1010_v31 = vld [vmem:[%s8520_s28 + $0x19f0] sm:$0xf]  ;;  %1007 = vst [vmem:[%s8524_s29 + $0x674] sm:$0xf] %v1006_v29 }
 0x12a   : > { %1009 = vst [vmem:[%s8524_s29 + $0x678] sm:$0xf] %v1008_v30  ;;  %1011 = vst [vmem:[%s8524_s29 + $0x67c] sm:$0xf] %v1010_v31  ;;  %v1012_v32 = vld [vmem:[%s8520_s28 + $0x1a00] sm:$0xf] }
 0x12b   : > { %v1014_v33 = vld [vmem:[%s8520_s28 + $0x1a10] sm:$0xf]  ;;  %v1016_v34 = vld [vmem:[%s8520_s28 + $0x1a20] sm:$0xf]  ;;  %1013 = vst [vmem:[%s8524_s29 + $0x680] sm:$0xf] %v1012_v32 }
 0x12c   : > { %1015 = vst [vmem:[%s8524_s29 + $0x684] sm:$0xf] %v1014_v33  ;;  %1017 = vst [vmem:[%s8524_s29 + $0x688] sm:$0xf] %v1016_v34  ;;  %v1018_v35 = vld [vmem:[%s8520_s28 + $0x1a30] sm:$0xf] }
 0x12d   : > { %v1020_v36 = vld [vmem:[%s8520_s28 + $0x1a40] sm:$0xf]  ;;  %v1022_v37 = vld [vmem:[%s8520_s28 + $0x1a50] sm:$0xf]  ;;  %1019 = vst [vmem:[%s8524_s29 + $0x68c] sm:$0xf] %v1018_v35 }
 0x12e   : > { %1021 = vst [vmem:[%s8524_s29 + $0x690] sm:$0xf] %v1020_v36  ;;  %1023 = vst [vmem:[%s8524_s29 + $0x694] sm:$0xf] %v1022_v37  ;;  %v1024_v38 = vld [vmem:[%s8520_s28 + $0x1a60] sm:$0xf] }
 0x12f   : > { %v1026_v39 = vld [vmem:[%s8520_s28 + $0x1a70] sm:$0xf]  ;;  %v1028_v40 = vld [vmem:[%s8520_s28 + $0x1a80] sm:$0xf]  ;;  %1025 = vst [vmem:[%s8524_s29 + $0x698] sm:$0xf] %v1024_v38 }
 0x130   : > { %1027 = vst [vmem:[%s8524_s29 + $0x69c] sm:$0xf] %v1026_v39  ;;  %1029 = vst [vmem:[%s8524_s29 + $0x6a0] sm:$0xf] %v1028_v40  ;;  %v1030_v41 = vld [vmem:[%s8520_s28 + $0x1a90] sm:$0xf] }
 0x131   : > { %v1032_v42 = vld [vmem:[%s8520_s28 + $0x1aa0] sm:$0xf]  ;;  %v1034_v43 = vld [vmem:[%s8520_s28 + $0x1ab0] sm:$0xf]  ;;  %1031 = vst [vmem:[%s8524_s29 + $0x6a4] sm:$0xf] %v1030_v41 }
 0x132   : > { %1033 = vst [vmem:[%s8524_s29 + $0x6a8] sm:$0xf] %v1032_v42  ;;  %1035 = vst [vmem:[%s8524_s29 + $0x6ac] sm:$0xf] %v1034_v43  ;;  %v1036_v44 = vld [vmem:[%s8520_s28 + $0x1ac0] sm:$0xf] }
 0x133   : > { %v1038_v45 = vld [vmem:[%s8520_s28 + $0x1ad0] sm:$0xf]  ;;  %v1040_v46 = vld [vmem:[%s8520_s28 + $0x1ae0] sm:$0xf]  ;;  %1037 = vst [vmem:[%s8524_s29 + $0x6b0] sm:$0xf] %v1036_v44 }
 0x134   : > { %1039 = vst [vmem:[%s8524_s29 + $0x6b4] sm:$0xf] %v1038_v45  ;;  %1041 = vst [vmem:[%s8524_s29 + $0x6b8] sm:$0xf] %v1040_v46  ;;  %v1042_v47 = vld [vmem:[%s8520_s28 + $0x1af0] sm:$0xf] }
 0x135   : > { %v1044_v48 = vld [vmem:[%s8520_s28 + $0x1b00] sm:$0xf]  ;;  %v1046_v49 = vld [vmem:[%s8520_s28 + $0x1b10] sm:$0xf]  ;;  %1043 = vst [vmem:[%s8524_s29 + $0x6bc] sm:$0xf] %v1042_v47 }
 0x136   : > { %1045 = vst [vmem:[%s8524_s29 + $0x6c0] sm:$0xf] %v1044_v48  ;;  %1047 = vst [vmem:[%s8524_s29 + $0x6c4] sm:$0xf] %v1046_v49  ;;  %v1048_v50 = vld [vmem:[%s8520_s28 + $0x1b20] sm:$0xf] }
 0x137   : > { %v1050_v51 = vld [vmem:[%s8520_s28 + $0x1b30] sm:$0xf]  ;;  %v1052_v52 = vld [vmem:[%s8520_s28 + $0x1b40] sm:$0xf]  ;;  %1049 = vst [vmem:[%s8524_s29 + $0x6c8] sm:$0xf] %v1048_v50 }
 0x138   : > { %1051 = vst [vmem:[%s8524_s29 + $0x6cc] sm:$0xf] %v1050_v51  ;;  %1053 = vst [vmem:[%s8524_s29 + $0x6d0] sm:$0xf] %v1052_v52  ;;  %v1054_v53 = vld [vmem:[%s8520_s28 + $0x1b50] sm:$0xf] }
 0x139   : > { %v1056_v54 = vld [vmem:[%s8520_s28 + $0x1b60] sm:$0xf]  ;;  %v1058_v55 = vld [vmem:[%s8520_s28 + $0x1b70] sm:$0xf]  ;;  %1055 = vst [vmem:[%s8524_s29 + $0x6d4] sm:$0xf] %v1054_v53 }
 0x13a   : > { %1057 = vst [vmem:[%s8524_s29 + $0x6d8] sm:$0xf] %v1056_v54  ;;  %1059 = vst [vmem:[%s8524_s29 + $0x6dc] sm:$0xf] %v1058_v55  ;;  %v1060_v56 = vld [vmem:[%s8520_s28 + $0x1b80] sm:$0xf] }
 0x13b   : > { %v1062_v57 = vld [vmem:[%s8520_s28 + $0x1b90] sm:$0xf]  ;;  %v1064_v58 = vld [vmem:[%s8520_s28 + $0x1ba0] sm:$0xf]  ;;  %1061 = vst [vmem:[%s8524_s29 + $0x6e0] sm:$0xf] %v1060_v56 }
 0x13c   : > { %1063 = vst [vmem:[%s8524_s29 + $0x6e4] sm:$0xf] %v1062_v57  ;;  %1065 = vst [vmem:[%s8524_s29 + $0x6e8] sm:$0xf] %v1064_v58  ;;  %v1066_v59 = vld [vmem:[%s8520_s28 + $0x1bb0] sm:$0xf] }
 0x13d   : > { %v1068_v60 = vld [vmem:[%s8520_s28 + $0x1bc0] sm:$0xf]  ;;  %v1070_v61 = vld [vmem:[%s8520_s28 + $0x1bd0] sm:$0xf]  ;;  %1067 = vst [vmem:[%s8524_s29 + $0x6ec] sm:$0xf] %v1066_v59 }
 0x13e   : > { %1069 = vst [vmem:[%s8524_s29 + $0x6f0] sm:$0xf] %v1068_v60  ;;  %1071 = vst [vmem:[%s8524_s29 + $0x6f4] sm:$0xf] %v1070_v61  ;;  %v1072_v62 = vld [vmem:[%s8520_s28 + $0x1be0] sm:$0xf] }
 0x13f   : > { %v1074_v63 = vld [vmem:[%s8520_s28 + $0x1bf0] sm:$0xf]  ;;  %v1076_v0 = vld [vmem:[%s8520_s28 + $0x1c00] sm:$0xf]  ;;  %1073 = vst [vmem:[%s8524_s29 + $0x6f8] sm:$0xf] %v1072_v62 }
 0x140   : > { %1075 = vst [vmem:[%s8524_s29 + $0x6fc] sm:$0xf] %v1074_v63  ;;  %1077 = vst [vmem:[%s8524_s29 + $0x700] sm:$0xf] %v1076_v0  ;;  %v1078_v1 = vld [vmem:[%s8520_s28 + $0x1c10] sm:$0xf] }
 0x141   : > { %v1080_v2 = vld [vmem:[%s8520_s28 + $0x1c20] sm:$0xf]  ;;  %v1082_v3 = vld [vmem:[%s8520_s28 + $0x1c30] sm:$0xf]  ;;  %1079 = vst [vmem:[%s8524_s29 + $0x704] sm:$0xf] %v1078_v1 }
 0x142   : > { %1081 = vst [vmem:[%s8524_s29 + $0x708] sm:$0xf] %v1080_v2  ;;  %1083 = vst [vmem:[%s8524_s29 + $0x70c] sm:$0xf] %v1082_v3  ;;  %v1084_v4 = vld [vmem:[%s8520_s28 + $0x1c40] sm:$0xf] }
 0x143   : > { %v1086_v5 = vld [vmem:[%s8520_s28 + $0x1c50] sm:$0xf]  ;;  %v1088_v6 = vld [vmem:[%s8520_s28 + $0x1c60] sm:$0xf]  ;;  %1085 = vst [vmem:[%s8524_s29 + $0x710] sm:$0xf] %v1084_v4 }
 0x144   : > { %1087 = vst [vmem:[%s8524_s29 + $0x714] sm:$0xf] %v1086_v5  ;;  %1089 = vst [vmem:[%s8524_s29 + $0x718] sm:$0xf] %v1088_v6  ;;  %v1090_v7 = vld [vmem:[%s8520_s28 + $0x1c70] sm:$0xf] }
 0x145   : > { %v1092_v8 = vld [vmem:[%s8520_s28 + $0x1c80] sm:$0xf]  ;;  %v1094_v9 = vld [vmem:[%s8520_s28 + $0x1c90] sm:$0xf]  ;;  %1091 = vst [vmem:[%s8524_s29 + $0x71c] sm:$0xf] %v1090_v7 }
 0x146   : > { %1093 = vst [vmem:[%s8524_s29 + $0x720] sm:$0xf] %v1092_v8  ;;  %1095 = vst [vmem:[%s8524_s29 + $0x724] sm:$0xf] %v1094_v9  ;;  %v1096_v10 = vld [vmem:[%s8520_s28 + $0x1ca0] sm:$0xf] }
 0x147   : > { %v1098_v11 = vld [vmem:[%s8520_s28 + $0x1cb0] sm:$0xf]  ;;  %v1100_v12 = vld [vmem:[%s8520_s28 + $0x1cc0] sm:$0xf]  ;;  %1097 = vst [vmem:[%s8524_s29 + $0x728] sm:$0xf] %v1096_v10 }
 0x148   : > { %1099 = vst [vmem:[%s8524_s29 + $0x72c] sm:$0xf] %v1098_v11  ;;  %1101 = vst [vmem:[%s8524_s29 + $0x730] sm:$0xf] %v1100_v12  ;;  %v1102_v13 = vld [vmem:[%s8520_s28 + $0x1cd0] sm:$0xf] }
 0x149   : > { %v1104_v14 = vld [vmem:[%s8520_s28 + $0x1ce0] sm:$0xf]  ;;  %v1106_v15 = vld [vmem:[%s8520_s28 + $0x1cf0] sm:$0xf]  ;;  %1103 = vst [vmem:[%s8524_s29 + $0x734] sm:$0xf] %v1102_v13 }
 0x14a   : > { %1105 = vst [vmem:[%s8524_s29 + $0x738] sm:$0xf] %v1104_v14  ;;  %1107 = vst [vmem:[%s8524_s29 + $0x73c] sm:$0xf] %v1106_v15  ;;  %v1108_v16 = vld [vmem:[%s8520_s28 + $0x1d00] sm:$0xf] }
 0x14b   : > { %v1110_v17 = vld [vmem:[%s8520_s28 + $0x1d10] sm:$0xf]  ;;  %v1112_v18 = vld [vmem:[%s8520_s28 + $0x1d20] sm:$0xf]  ;;  %1109 = vst [vmem:[%s8524_s29 + $0x740] sm:$0xf] %v1108_v16 }
 0x14c   : > { %1111 = vst [vmem:[%s8524_s29 + $0x744] sm:$0xf] %v1110_v17  ;;  %1113 = vst [vmem:[%s8524_s29 + $0x748] sm:$0xf] %v1112_v18  ;;  %v1114_v19 = vld [vmem:[%s8520_s28 + $0x1d30] sm:$0xf] }
 0x14d   : > { %v1116_v20 = vld [vmem:[%s8520_s28 + $0x1d40] sm:$0xf]  ;;  %v1118_v21 = vld [vmem:[%s8520_s28 + $0x1d50] sm:$0xf]  ;;  %1115 = vst [vmem:[%s8524_s29 + $0x74c] sm:$0xf] %v1114_v19 }
 0x14e   : > { %1117 = vst [vmem:[%s8524_s29 + $0x750] sm:$0xf] %v1116_v20  ;;  %1119 = vst [vmem:[%s8524_s29 + $0x754] sm:$0xf] %v1118_v21  ;;  %v1120_v22 = vld [vmem:[%s8520_s28 + $0x1d60] sm:$0xf] }
 0x14f   : > { %v1122_v23 = vld [vmem:[%s8520_s28 + $0x1d70] sm:$0xf]  ;;  %v1124_v24 = vld [vmem:[%s8520_s28 + $0x1d80] sm:$0xf]  ;;  %1121 = vst [vmem:[%s8524_s29 + $0x758] sm:$0xf] %v1120_v22 }
 0x150   : > { %1123 = vst [vmem:[%s8524_s29 + $0x75c] sm:$0xf] %v1122_v23  ;;  %1125 = vst [vmem:[%s8524_s29 + $0x760] sm:$0xf] %v1124_v24  ;;  %v1126_v25 = vld [vmem:[%s8520_s28 + $0x1d90] sm:$0xf] }
 0x151   : > { %v1128_v26 = vld [vmem:[%s8520_s28 + $0x1da0] sm:$0xf]  ;;  %v1130_v27 = vld [vmem:[%s8520_s28 + $0x1db0] sm:$0xf]  ;;  %1127 = vst [vmem:[%s8524_s29 + $0x764] sm:$0xf] %v1126_v25 }
 0x152   : > { %1129 = vst [vmem:[%s8524_s29 + $0x768] sm:$0xf] %v1128_v26  ;;  %1131 = vst [vmem:[%s8524_s29 + $0x76c] sm:$0xf] %v1130_v27  ;;  %v1132_v28 = vld [vmem:[%s8520_s28 + $0x1dc0] sm:$0xf] }
 0x153   : > { %v1134_v29 = vld [vmem:[%s8520_s28 + $0x1dd0] sm:$0xf]  ;;  %v1136_v30 = vld [vmem:[%s8520_s28 + $0x1de0] sm:$0xf]  ;;  %1133 = vst [vmem:[%s8524_s29 + $0x770] sm:$0xf] %v1132_v28 }
 0x154   : > { %1135 = vst [vmem:[%s8524_s29 + $0x774] sm:$0xf] %v1134_v29  ;;  %1137 = vst [vmem:[%s8524_s29 + $0x778] sm:$0xf] %v1136_v30  ;;  %v1138_v31 = vld [vmem:[%s8520_s28 + $0x1df0] sm:$0xf] }
 0x155   : > { %v1140_v32 = vld [vmem:[%s8520_s28 + $0x1e00] sm:$0xf]  ;;  %v1142_v33 = vld [vmem:[%s8520_s28 + $0x1e10] sm:$0xf]  ;;  %1139 = vst [vmem:[%s8524_s29 + $0x77c] sm:$0xf] %v1138_v31 }
 0x156   : > { %1141 = vst [vmem:[%s8524_s29 + $0x780] sm:$0xf] %v1140_v32  ;;  %1143 = vst [vmem:[%s8524_s29 + $0x784] sm:$0xf] %v1142_v33  ;;  %v1144_v34 = vld [vmem:[%s8520_s28 + $0x1e20] sm:$0xf] }
 0x157   : > { %v1146_v35 = vld [vmem:[%s8520_s28 + $0x1e30] sm:$0xf]  ;;  %v1148_v36 = vld [vmem:[%s8520_s28 + $0x1e40] sm:$0xf]  ;;  %1145 = vst [vmem:[%s8524_s29 + $0x788] sm:$0xf] %v1144_v34 }
 0x158   : > { %1147 = vst [vmem:[%s8524_s29 + $0x78c] sm:$0xf] %v1146_v35  ;;  %1149 = vst [vmem:[%s8524_s29 + $0x790] sm:$0xf] %v1148_v36  ;;  %v1150_v37 = vld [vmem:[%s8520_s28 + $0x1e50] sm:$0xf] }
 0x159   : > { %v1152_v38 = vld [vmem:[%s8520_s28 + $0x1e60] sm:$0xf]  ;;  %v1154_v39 = vld [vmem:[%s8520_s28 + $0x1e70] sm:$0xf]  ;;  %1151 = vst [vmem:[%s8524_s29 + $0x794] sm:$0xf] %v1150_v37 }
 0x15a   : > { %1153 = vst [vmem:[%s8524_s29 + $0x798] sm:$0xf] %v1152_v38  ;;  %1155 = vst [vmem:[%s8524_s29 + $0x79c] sm:$0xf] %v1154_v39  ;;  %v1156_v40 = vld [vmem:[%s8520_s28 + $0x1e80] sm:$0xf] }
 0x15b   : > { %v1158_v41 = vld [vmem:[%s8520_s28 + $0x1e90] sm:$0xf]  ;;  %v1160_v42 = vld [vmem:[%s8520_s28 + $0x1ea0] sm:$0xf]  ;;  %1157 = vst [vmem:[%s8524_s29 + $0x7a0] sm:$0xf] %v1156_v40 }
 0x15c   : > { %1159 = vst [vmem:[%s8524_s29 + $0x7a4] sm:$0xf] %v1158_v41  ;;  %1161 = vst [vmem:[%s8524_s29 + $0x7a8] sm:$0xf] %v1160_v42  ;;  %v1162_v43 = vld [vmem:[%s8520_s28 + $0x1eb0] sm:$0xf] }
 0x15d   : > { %v1164_v44 = vld [vmem:[%s8520_s28 + $0x1ec0] sm:$0xf]  ;;  %v1166_v45 = vld [vmem:[%s8520_s28 + $0x1ed0] sm:$0xf]  ;;  %1163 = vst [vmem:[%s8524_s29 + $0x7ac] sm:$0xf] %v1162_v43 }
 0x15e   : > { %1165 = vst [vmem:[%s8524_s29 + $0x7b0] sm:$0xf] %v1164_v44  ;;  %1167 = vst [vmem:[%s8524_s29 + $0x7b4] sm:$0xf] %v1166_v45  ;;  %v1168_v46 = vld [vmem:[%s8520_s28 + $0x1ee0] sm:$0xf] }
 0x15f   : > { %v1170_v47 = vld [vmem:[%s8520_s28 + $0x1ef0] sm:$0xf]  ;;  %v1172_v48 = vld [vmem:[%s8520_s28 + $0x1f00] sm:$0xf]  ;;  %1169 = vst [vmem:[%s8524_s29 + $0x7b8] sm:$0xf] %v1168_v46 }
 0x160   : > { %1171 = vst [vmem:[%s8524_s29 + $0x7bc] sm:$0xf] %v1170_v47  ;;  %1173 = vst [vmem:[%s8524_s29 + $0x7c0] sm:$0xf] %v1172_v48  ;;  %v1174_v49 = vld [vmem:[%s8520_s28 + $0x1f10] sm:$0xf] }
 0x161   : > { %v1176_v50 = vld [vmem:[%s8520_s28 + $0x1f20] sm:$0xf]  ;;  %v1178_v51 = vld [vmem:[%s8520_s28 + $0x1f30] sm:$0xf]  ;;  %1175 = vst [vmem:[%s8524_s29 + $0x7c4] sm:$0xf] %v1174_v49 }
 0x162   : > { %1177 = vst [vmem:[%s8524_s29 + $0x7c8] sm:$0xf] %v1176_v50  ;;  %1179 = vst [vmem:[%s8524_s29 + $0x7cc] sm:$0xf] %v1178_v51  ;;  %v1180_v52 = vld [vmem:[%s8520_s28 + $0x1f40] sm:$0xf] }
 0x163   : > { %v1182_v53 = vld [vmem:[%s8520_s28 + $0x1f50] sm:$0xf]  ;;  %v1184_v54 = vld [vmem:[%s8520_s28 + $0x1f60] sm:$0xf]  ;;  %1181 = vst [vmem:[%s8524_s29 + $0x7d0] sm:$0xf] %v1180_v52 }
 0x164   : > { %1183 = vst [vmem:[%s8524_s29 + $0x7d4] sm:$0xf] %v1182_v53  ;;  %1185 = vst [vmem:[%s8524_s29 + $0x7d8] sm:$0xf] %v1184_v54  ;;  %v1186_v55 = vld [vmem:[%s8520_s28 + $0x1f70] sm:$0xf] }
 0x165   : > { %v1188_v56 = vld [vmem:[%s8520_s28 + $0x1f80] sm:$0xf]  ;;  %v1190_v57 = vld [vmem:[%s8520_s28 + $0x1f90] sm:$0xf]  ;;  %1187 = vst [vmem:[%s8524_s29 + $0x7dc] sm:$0xf] %v1186_v55 }
 0x166   : > { %1189 = vst [vmem:[%s8524_s29 + $0x7e0] sm:$0xf] %v1188_v56  ;;  %1191 = vst [vmem:[%s8524_s29 + $0x7e4] sm:$0xf] %v1190_v57  ;;  %v1192_v58 = vld [vmem:[%s8520_s28 + $0x1fa0] sm:$0xf] }
 0x167   : > { %v1194_v59 = vld [vmem:[%s8520_s28 + $0x1fb0] sm:$0xf]  ;;  %v1196_v60 = vld [vmem:[%s8520_s28 + $0x1fc0] sm:$0xf]  ;;  %1193 = vst [vmem:[%s8524_s29 + $0x7e8] sm:$0xf] %v1192_v58 }
 0x168   : > { %1195 = vst [vmem:[%s8524_s29 + $0x7ec] sm:$0xf] %v1194_v59  ;;  %1197 = vst [vmem:[%s8524_s29 + $0x7f0] sm:$0xf] %v1196_v60  ;;  %v1198_v61 = vld [vmem:[%s8520_s28 + $0x1fd0] sm:$0xf] }
 0x169   : > { %v1200_v62 = vld [vmem:[%s8520_s28 + $0x1fe0] sm:$0xf]  ;;  %v1202_v63 = vld [vmem:[%s8520_s28 + $0x1ff0] sm:$0xf]  ;;  %1199 = vst [vmem:[%s8524_s29 + $0x7f4] sm:$0xf] %v1198_v61 }
 0x16a   : > { %1201 = vst [vmem:[%s8524_s29 + $0x7f8] sm:$0xf] %v1200_v62  ;;  %1203 = vst [vmem:[%s8524_s29 + $0x7fc] sm:$0xf] %v1202_v63 }
 0x16b PF: > { %p7459_p8 = scmp.ge.s32.totalorder %s8450_s16, 1  ;;  %p4333_p9 = scmp.lt.s32.totalorder %s8450_s16, 5 }
 0x16d   : > { %p4334_p10 = pnand %p7459_p8, %p4333_p9 }
 0x16e   : > { %s4340_s30 = sand.u32 (!%p4334_p10), 1, %s8434_s12   ;;  %v9554_v0 = vld [vmem:[%s9967_s0] sm:$0xff] (!%p4334_p10)  ;;  %v9564_v2 = vld [vmem:[%s9967_s0 + $0x8] sm:$0xff] (!%p4334_p10)  ;;  %v9611_v35 = vld [vmem:[%s9967_s0 + $0x10] sm:$0xff] (!%p4334_p10)  ;;  %p4378_p11 = scmp.lt.s32.totalorder (!%p4334_p10), %s8442_s14, 3 }
 0x16f   : > { %4337 = sbr.rel (%p4334_p10) target bundleno = 861 (0x35d), region = 80  ;;  %v9559_v1 = vld [vmem:[%s9967_s0 + $0x80] sm:$0xff] (!%p4334_p10)  ;;  %s7460_s10 = sshll.u32 (!%p4334_p10), %s4340_s30, 11  ;;  %v9573_v4 = vld [vmem:[%s9967_s0 + $0x88] sm:$0xff] (!%p4334_p10)  ;;  %v9616_v36 = vld [vmem:[%s9967_s0 + $0x90] sm:$0xff] (!%p4334_p10) }
 0x170   : > { %v7464_v3 = vcombine.high (!%p4334_p10), %v9554_v0, %v9559_v1  ;;  %v7466_v5 = vcombine.high (!%p4334_p10), %v9564_v2, %v9573_v4  ;;  %s9577_s19 = scalar_lea.vmem (!%p4334_p10), [#allocation2], %s7460_s10  ;;  %v9622_v38 = vld [vmem:[%s9967_s0 + $0x18] sm:$0xff] (!%p4334_p10)  ;;  %v7463_v42 = vcombine.low (!%p4334_p10), %v9554_v0, %v9559_v1  ;;  %v7465_v43 = vcombine.low (!%p4334_p10), %v9564_v2, %v9573_v4 }
 0x171   : > { %v8156_v6 = vld [vmem:[%s9577_s19 + $0x40] sm:$0xff] (!%p4334_p10)   ;;  %v8160_v10 = vld [vmem:[%s9577_s19 + $0x48] sm:$0xff] (!%p4334_p10)   ;;  %v8164_v14 = vld [vmem:[%s9577_s19 + $0x50] sm:$0xff] (!%p4334_p10)   ;;  %v7468_v46 = vcombine.high (!%p4334_p10), %v9611_v35, %v9616_v36 }
 0x172   : > { %6662 = vmatprep.mubr.bf16.mxu0 (!%p4334_p10), %v7464_v3  ;;  %v8157_v7 = vld [vmem:[%s9577_s19 + $0xc0] sm:$0xff] (!%p4334_p10)   ;;  %6703 = vmatprep.mubr.bf16.mxu1 (!%p4334_p10), %v7466_v5  ;;  %v8161_v11 = vld [vmem:[%s9577_s19 + $0xc8] sm:$0xff] (!%p4334_p10)   ;;  %v8165_v15 = vld [vmem:[%s9577_s19 + $0xd0] sm:$0xff] (!%p4334_p10)  }
 0x173   : > { %7764 = vmatprep.subr.bf16.mxu0 (!%p4334_p10), %v8156_v6  ;;  %v8158_v8 = vld [vmem:[%s9577_s19] sm:$0xff] (!%p4334_p10)   ;;  %7786 = vmatprep.subr.bf16.mxu1 (!%p4334_p10), %v8157_v7  ;;  %v8162_v12 = vld [vmem:[%s9577_s19 + $0x8] sm:$0xff] (!%p4334_p10)   ;;  %v8166_v16 = vld [vmem:[%s9577_s19 + $0x10] sm:$0xff] (!%p4334_p10)  }
 0x174   : > { %v8159_v9 = vld [vmem:[%s9577_s19 + $0x80] sm:$0xff] (!%p4334_p10)   ;;  %7765 = vmatpush3.bf16.msra.mxu0 (!%p4334_p10), %v8158_v8  ;;  %v8163_v13 = vld [vmem:[%s9577_s19 + $0x88] sm:$0xff] (!%p4334_p10)   ;;  %v8167_v17 = vld [vmem:[%s9577_s19 + $0x90] sm:$0xff] (!%p4334_p10)  }
 0x175   : > { %7787 = vmatpush3.bf16.msra.mxu1 (!%p4334_p10), %v8159_v9  ;;  %7766 = vmatprep.subr.bf16.mxu0 (!%p4334_p10), %v8160_v10  ;;  %v8168_v18 = vld [vmem:[%s9577_s19 + $0x58] sm:$0xff] (!%p4334_p10)   ;;  %v8172_v22 = vld [vmem:[%s9577_s19 + $0x60] sm:$0xff] (!%p4334_p10)   ;;  %v8176_v26 = vld [vmem:[%s9577_s19 + $0x68] sm:$0xff] (!%p4334_p10)  }
 0x176   : > { %7788 = vmatprep.subr.bf16.mxu1 %v8161_v11  ;;  %v8169_v19 = vld [vmem:[%s9577_s19 + $0xd8] sm:$0xff]   ;;  %v8173_v23 = vld [vmem:[%s9577_s19 + $0xe0] sm:$0xff]   ;;  %v8177_v27 = vld [vmem:[%s9577_s19 + $0xe8] sm:$0xff]   ;;  %s4379_s10 = scalar_select %p4378_p11, %s8442_s14, 3 }
 0x177   : > { %v8170_v20 = vld [vmem:[%s9577_s19 + $0x18] sm:$0xff]   ;;  %v8174_v24 = vld [vmem:[%s9577_s19 + $0x20] sm:$0xff]   ;;  %v8178_v28 = vld [vmem:[%s9577_s19 + $0x28] sm:$0xff]   ;;  %s7754_s6 = sshll.u32 (%p8507_p6), %s8442_s14, 2 }
 0x178   : > { %7767 = vmatpush3.bf16.msra.mxu0 %v8162_v12  ;;  %v8171_v21 = vld [vmem:[%s9577_s19 + $0x98] sm:$0xff]   ;;  %v8175_v25 = vld [vmem:[%s9577_s19 + $0xa0] sm:$0xff]   ;;  %v8179_v29 = vld [vmem:[%s9577_s19 + $0xa8] sm:$0xff]   ;;  %s4380_s20 = scalar_lea.vmem %s9969_s2, %s4379_s10  ;;  %s7309_s9 = scalar_lea.vmem (%p8507_p6), %s9970_s3, %s7754_s6 }
 0x179   : > { %7789 = vmatpush3.bf16.msra.mxu1 %v8163_v13  ;;  %7768 = vmatprep.subr.bf16.mxu0 %v8164_v14  ;;  %v8180_v30 = vld [vmem:[%s9577_s19 + $0x70] sm:$0xff]   ;;  %v8184_v34 = vld [vmem:[%s9577_s19 + $0x78] sm:$0xff]   ;;  %v8188_v44 = vld [vmem:[%s9577_s19 + $0x140] sm:$0xff]   ;;  %v7467_v14 = vcombine.low %v9611_v35, %v9616_v36 }
 0x17a   : > { %7790 = vmatprep.subr.bf16.mxu1 %v8165_v15  ;;  %v8181_v31 = vld [vmem:[%s9577_s19 + $0xf0] sm:$0xff]   ;;  %v8185_v37 = vld [vmem:[%s9577_s19 + $0xf8] sm:$0xff]   ;;  %v8189_v45 = vld [vmem:[%s9577_s19 + $0x1c0] sm:$0xff]  }
 0x17b   : > { %v8182_v32 = vld [vmem:[%s9577_s19 + $0x30] sm:$0xff]   ;;  %v9627_v39 = vld [vmem:[%s9967_s0 + $0x98] sm:$0xff]  ;;  %v8190_v47 = vld [vmem:[%s9577_s19 + $0x100] sm:$0xff]  }
 0x17c   : > { %7769 = vmatpush3.bf16.msra.mxu0 %v8166_v16  ;;  %v8183_v33 = vld [vmem:[%s9577_s19 + $0xb0] sm:$0xff]   ;;  %v8186_v40 = vld [vmem:[%s9577_s19 + $0x38] sm:$0xff]   ;;  %v7470_v48 = vcombine.high %v9622_v38, %v9627_v39  ;;  %v8191_v49 = vld [vmem:[%s9577_s19 + $0x180] sm:$0xff]   ;;  %v7469_v15 = vcombine.low %v9622_v38, %v9627_v39 }
 0x17d   : > { %7791 = vmatpush3.bf16.msra.mxu1 %v8167_v17  ;;  %7770 = vmatprep.subr.bf16.mxu0 %v8168_v18  ;;  %v8187_v41 = vld [vmem:[%s9577_s19 + $0xb8] sm:$0xff]   ;;  %v8192_v50 = vld [vmem:[%s9577_s19 + $0x148] sm:$0xff]   ;;  %v8196_v54 = vld [vmem:[%s9577_s19 + $0x150] sm:$0xff]  }
 0x17e   : > { %7792 = vmatprep.subr.bf16.mxu1 %v8169_v19  ;;  %v8193_v51 = vld [vmem:[%s9577_s19 + $0x1c8] sm:$0xff]   ;;  %v8197_v55 = vld [vmem:[%s9577_s19 + $0x1d0] sm:$0xff]   ;;  %v8200_v58 = vld [vmem:[%s9577_s19 + $0x158] sm:$0xff]  }
 0x17f   : > { %v8194_v52 = vld [vmem:[%s9577_s19 + $0x108] sm:$0xff]   ;;  %v8198_v56 = vld [vmem:[%s9577_s19 + $0x110] sm:$0xff]   ;;  %v8201_v59 = vld [vmem:[%s9577_s19 + $0x1d8] sm:$0xff]  }
 0x180   : > { %7771 = vmatpush3.bf16.msra.mxu0 %v8170_v20  ;;  %v8195_v53 = vld [vmem:[%s9577_s19 + $0x188] sm:$0xff]   ;;  %v8199_v57 = vld [vmem:[%s9577_s19 + $0x190] sm:$0xff]   ;;  %v8202_v60 = vld [vmem:[%s9577_s19 + $0x118] sm:$0xff]  }
 0x181   : > { %7793 = vmatpush3.bf16.msra.mxu1 %v8171_v21  ;;  %7772 = vmatprep.subr.bf16.mxu0 %v8172_v22  ;;  %v8203_v61 = vld [vmem:[%s9577_s19 + $0x198] sm:$0xff]   ;;  %v8204_v62 = vld [vmem:[%s9577_s19 + $0x160] sm:$0xff]   ;;  %v8208_v2 = vld [vmem:[%s9577_s19 + $0x168] sm:$0xff]  }
 0x182   : > { %7794 = vmatprep.subr.bf16.mxu1 %v8173_v23  ;;  %v8205_v63 = vld [vmem:[%s9577_s19 + $0x1e0] sm:$0xff]   ;;  %v8209_v3 = vld [vmem:[%s9577_s19 + $0x1e8] sm:$0xff]   ;;  %v8212_v6 = vld [vmem:[%s9577_s19 + $0x170] sm:$0xff]  }
 0x183   : > { %v8206_v0 = vld [vmem:[%s9577_s19 + $0x120] sm:$0xff]   ;;  %v8210_v4 = vld [vmem:[%s9577_s19 + $0x128] sm:$0xff]   ;;  %v8213_v7 = vld [vmem:[%s9577_s19 + $0x1f0] sm:$0xff]  }
 0x184   : > { %7773 = vmatpush3.bf16.msra.mxu0 %v8174_v24  ;;  %v8207_v1 = vld [vmem:[%s9577_s19 + $0x1a0] sm:$0xff]   ;;  %v8211_v5 = vld [vmem:[%s9577_s19 + $0x1a8] sm:$0xff]   ;;  %v8214_v8 = vld [vmem:[%s9577_s19 + $0x130] sm:$0xff]  }
 0x185   : > { %7795 = vmatpush3.bf16.msra.mxu1 %v8175_v25  ;;  %7774 = vmatprep.subr.bf16.mxu0 %v8176_v26  ;;  %v8215_v9 = vld [vmem:[%s9577_s19 + $0x1b0] sm:$0xff]   ;;  %v8216_v10 = vld [vmem:[%s9577_s19 + $0x178] sm:$0xff]   ;;  %v8220_v16 = vld [vmem:[%s9577_s19 + $0x240] sm:$0xff]  }
 0x186   : > { %7796 = vmatprep.subr.bf16.mxu1 %v8177_v27  ;;  %v8217_v11 = vld [vmem:[%s9577_s19 + $0x1f8] sm:$0xff]   ;;  %v8221_v17 = vld [vmem:[%s9577_s19 + $0x2c0] sm:$0xff]   ;;  %v8224_v20 = vld [vmem:[%s9577_s19 + $0x248] sm:$0xff]  }
 0x187   : > { %v8218_v12 = vld [vmem:[%s9577_s19 + $0x138] sm:$0xff]   ;;  %v8222_v18 = vld [vmem:[%s9577_s19 + $0x200] sm:$0xff]   ;;  %v8225_v21 = vld [vmem:[%s9577_s19 + $0x2c8] sm:$0xff]  }
 0x188   : > { %7775 = vmatpush3.bf16.msra.mxu0 %v8178_v28  ;;  %v8219_v13 = vld [vmem:[%s9577_s19 + $0x1b8] sm:$0xff]   ;;  %v8223_v19 = vld [vmem:[%s9577_s19 + $0x280] sm:$0xff]   ;;  %v8226_v22 = vld [vmem:[%s9577_s19 + $0x208] sm:$0xff]  }
 0x189   : > { %7797 = vmatpush3.bf16.msra.mxu1 %v8179_v29  ;;  %7776 = vmatprep.subr.bf16.mxu0 %v8180_v30  ;;  %v8227_v23 = vld [vmem:[%s9577_s19 + $0x288] sm:$0xff]   ;;  %v8228_v24 = vld [vmem:[%s9577_s19 + $0x250] sm:$0xff]   ;;  %v8232_v28 = vld [vmem:[%s9577_s19 + $0x258] sm:$0xff]  }
 0x18a   : > { %7798 = vmatprep.subr.bf16.mxu1 %v8181_v31  ;;  %v8229_v25 = vld [vmem:[%s9577_s19 + $0x2d0] sm:$0xff]   ;;  %v8233_v29 = vld [vmem:[%s9577_s19 + $0x2d8] sm:$0xff]   ;;  %v8239_v35 = vld [vmem:[%s9577_s19 + $0x2a0] sm:$0xff]  }
 0x18b   : > { %v8230_v26 = vld [vmem:[%s9577_s19 + $0x210] sm:$0xff]   ;;  %v8234_v30 = vld [vmem:[%s9577_s19 + $0x218] sm:$0xff]   ;;  %v8240_v36 = vld [vmem:[%s9577_s19 + $0x268] sm:$0xff]  }
 0x18c   : > { %7777 = vmatpush3.bf16.msra.mxu0 %v8182_v32  ;;  %v8231_v27 = vld [vmem:[%s9577_s19 + $0x290] sm:$0xff]   ;;  %v8235_v31 = vld [vmem:[%s9577_s19 + $0x298] sm:$0xff]   ;;  %v8236_v32 = vld [vmem:[%s9577_s19 + $0x260] sm:$0xff]  }
 0x18d   : > { %7799 = vmatpush3.bf16.msra.mxu1 %v8183_v33  ;;  %7778 = vmatprep.subr.bf16.mxu0 %v8184_v34  ;;  %v8237_v33 = vld [vmem:[%s9577_s19 + $0x2e0] sm:$0xff]   ;;  %v8242_v38 = vld [vmem:[%s9577_s19 + $0x228] sm:$0xff]  }
 0x18e   : > { %7800 = vmatprep.subr.bf16.mxu1 %v8185_v37  ;;  %v8238_v34 = vld [vmem:[%s9577_s19 + $0x220] sm:$0xff]   ;;  %v8241_v37 = vld [vmem:[%s9577_s19 + $0x2e8] sm:$0xff]  }
 0x18f   : > { %v8243_v39 = vld [vmem:[%s9577_s19 + $0x2a8] sm:$0xff]  }
 0x190   : > { %7779 = vmatpush3.bf16.msra.mxu0 %v8186_v40  ;;  %v8244_v40 = vld [vmem:[%s9577_s19 + $0x270] sm:$0xff]  }
 0x191   : > { %7801 = vmatpush3.bf16.msra.mxu1 %v8187_v41  ;;  %7808 = vmatprep.subr.bf16.mxu0 %v8188_v44  ;;  %v8245_v41 = vld [vmem:[%s9577_s19 + $0x2f0] sm:$0xff]   ;;  %v8248_v44 = vld [vmem:[%s9577_s19 + $0x278] sm:$0xff]  }
 0x192   : > { %7830 = vmatprep.subr.bf16.mxu1 %v8189_v45  ;;  %v4387_v45 = vld [vmem:[%s9967_s0 + $0x20] sm:$0xff] }
 0x193   : > { %6663 = vmatmul.mubr.bf16.vlgmr.msra.gmra.mrb[0].mxu0 %v7463_v42  ;;  %v8246_v42 = vld [vmem:[%s9577_s19 + $0x230] sm:$0xff]  }
 0x194   : > { %6704 = vmatmul.mubr.bf16.vlgmr.msra.gmra.mrb[0].mxu1 %v7465_v43  ;;  %7809 = vmatpush3.bf16.msra.mxu0 %v8190_v47  ;;  %v8247_v43 = vld [vmem:[%s9577_s19 + $0x2b0] sm:$0xff]   ;;  %v8250_v47 = vld [vmem:[%s9577_s19 + $0x238] sm:$0xff]  }
 0x195   : > { %7831 = vmatpush3.bf16.msra.mxu1 %v8191_v49  ;;  %6744 = vmatprep.mubr.bf16.mxu0 %v7468_v46  ;;  %v8249_v46 = vld [vmem:[%s9577_s19 + $0x2f8] sm:$0xff]   ;;  %v4403_v49 = vld [vmem:[%s9967_s0 + $0xa0] sm:$0xff] }
 0x196   : > { %7810 = vmatprep.subr.bf16.mxu0 %v8192_v50  ;;  %6785 = vmatprep.mubr.bf16.mxu1 %v7470_v48  ;;  %v8251_v48 = vld [vmem:[%s9577_s19 + $0x2b8] sm:$0xff]   ;;  %v4388_v50 = vld [vmem:[%s9967_s0 + $0x28] sm:$0xff] }
 0x197   : > { %7832 = vmatprep.subr.bf16.mxu1 %v8193_v51  ;;  %v4404_v51 = vld [vmem:[%s9967_s0 + $0xa8] sm:$0xff] }
 0x198   : > { %7811 = vmatpush3.bf16.msra.mxu0 %v8194_v52  ;;  %v7471_v52 = vcombine.low %v4387_v45, %v4403_v49 }
 0x199   : > { %7833 = vmatpush3.bf16.msra.mxu1 %v8195_v53  ;;  %7812 = vmatprep.subr.bf16.mxu0 %v8196_v54  ;;  %v7472_v53 = vcombine.high %v4387_v45, %v4403_v49  ;;  %v7473_v54 = vcombine.low %v4388_v50, %v4404_v51  ;;  %v8297_v45 = vld [vmem:[%s9577_s19 + $0x4d8] sm:$0xff]   ;;  %v8301_v49 = vld [vmem:[%s9577_s19 + $0x4e0] sm:$0xff]  }
 0x19a   : > { %7834 = vmatprep.subr.bf16.mxu1 %v8197_v55  ;;  %v7474_v55 = vcombine.high %v4388_v50, %v4404_v51  ;;  %v8302_v50 = vld [vmem:[%s9577_s19 + $0x420] sm:$0xff]  }
 0x19b   : > { %v8303_v51 = vld [vmem:[%s9577_s19 + $0x4a0] sm:$0xff]  }
 0x19c   : > { %7813 = vmatpush3.bf16.msra.mxu0 %v8198_v56  ;;  %v8252_v56 = vld [vmem:[%s9577_s19 + $0x340] sm:$0xff]  }
 0x19d   : > { %7835 = vmatpush3.bf16.msra.mxu1 %v8199_v57  ;;  %7814 = vmatprep.subr.bf16.mxu0 %v8200_v58  ;;  %v8253_v57 = vld [vmem:[%s9577_s19 + $0x3c0] sm:$0xff]  }
 0x19e   : > { %7836 = vmatprep.subr.bf16.mxu1 %v8201_v59  ;;  %v8254_v58 = vld [vmem:[%s9577_s19 + $0x300] sm:$0xff]  }
 0x19f   : > { %v8255_v59 = vld [vmem:[%s9577_s19 + $0x380] sm:$0xff]  }
 0x1a0   : > { %7815 = vmatpush3.bf16.msra.mxu0 %v8202_v60  ;;  %v8256_v60 = vld [vmem:[%s9577_s19 + $0x348] sm:$0xff]  }
 0x1a1   : > { %7837 = vmatpush3.bf16.msra.mxu1 %v8203_v61  ;;  %7816 = vmatprep.subr.bf16.mxu0 %v8204_v62  ;;  %v8257_v61 = vld [vmem:[%s9577_s19 + $0x3c8] sm:$0xff]  }
 0x1a2   : > { %7838 = vmatprep.subr.bf16.mxu1 %v8205_v63  ;;  %v8258_v62 = vld [vmem:[%s9577_s19 + $0x308] sm:$0xff]  }
 0x1a3   : > { %v8259_v63 = vld [vmem:[%s9577_s19 + $0x388] sm:$0xff]  }
 0x1a4   : > { %7817 = vmatpush3.bf16.msra.mxu0 %v8206_v0  ;;  %v8260_v0 = vld [vmem:[%s9577_s19 + $0x350] sm:$0xff]  }
 0x1a5   : > { %7839 = vmatpush3.bf16.msra.mxu1 %v8207_v1  ;;  %7818 = vmatprep.subr.bf16.mxu0 %v8208_v2  ;;  %v8261_v1 = vld [vmem:[%s9577_s19 + $0x3d0] sm:$0xff]  }
 0x1a6   : > { %7840 = vmatprep.subr.bf16.mxu1 %v8209_v3  ;;  %v8262_v2 = vld [vmem:[%s9577_s19 + $0x310] sm:$0xff]  }
 0x1a7   : > { %v8263_v3 = vld [vmem:[%s9577_s19 + $0x390] sm:$0xff]  }
 0x1a8   : > { %7819 = vmatpush3.bf16.msra.mxu0 %v8210_v4  ;;  %v8264_v4 = vld [vmem:[%s9577_s19 + $0x358] sm:$0xff]  }
 0x1a9   : > { %7841 = vmatpush3.bf16.msra.mxu1 %v8211_v5  ;;  %7820 = vmatprep.subr.bf16.mxu0 %v8212_v6  ;;  %v8265_v5 = vld [vmem:[%s9577_s19 + $0x3d8] sm:$0xff]  }
 0x1aa   : > { %7842 = vmatprep.subr.bf16.mxu1 %v8213_v7  ;;  %v8266_v6 = vld [vmem:[%s9577_s19 + $0x318] sm:$0xff]  }
 0x1ab   : > { %v8267_v7 = vld [vmem:[%s9577_s19 + $0x398] sm:$0xff]  }
 0x1ac   : > { %7821 = vmatpush3.bf16.msra.mxu0 %v8214_v8  ;;  %v8268_v8 = vld [vmem:[%s9577_s19 + $0x360] sm:$0xff]  }
 0x1ad   : > { %7843 = vmatpush3.bf16.msra.mxu1 %v8215_v9  ;;  %7822 = vmatprep.subr.bf16.mxu0 %v8216_v10  ;;  %v8269_v9 = vld [vmem:[%s9577_s19 + $0x3e0] sm:$0xff]  }
 0x1ae   : > { %7844 = vmatprep.subr.bf16.mxu1 %v8217_v11  ;;  %v8270_v10 = vld [vmem:[%s9577_s19 + $0x320] sm:$0xff]  }
 0x1af   : > { %v8271_v11 = vld [vmem:[%s9577_s19 + $0x3a0] sm:$0xff]  }
 0x1b0   : > { %7823 = vmatpush3.bf16.msra.mxu0 %v8218_v12  ;;  %v8272_v12 = vld [vmem:[%s9577_s19 + $0x368] sm:$0xff]  }
 0x1b1   : > { %7845 = vmatpush3.bf16.msra.mxu1 %v8219_v13  ;;  %7852 = vmatprep.subr.bf16.mxu0 %v8220_v16  ;;  %v8273_v13 = vld [vmem:[%s9577_s19 + $0x3e8] sm:$0xff]   ;;  %v8276_v16 = vld [vmem:[%s9577_s19 + $0x370] sm:$0xff]  }
 0x1b2   : > { %7874 = vmatprep.subr.bf16.mxu1 %v8221_v17  ;;  %v8277_v17 = vld [vmem:[%s9577_s19 + $0x3f0] sm:$0xff]  }
 0x1b3   : > { %6745 = vmatmul.mubr.bf16.vlgmr.msra.gmra.mrb[4].mxu0 %v7467_v14  ;;  %v8274_v14 = vld [vmem:[%s9577_s19 + $0x328] sm:$0xff]  }
 0x1b4   : > { %6786 = vmatmul.mubr.bf16.vlgmr.msra.gmra.mrb[4].mxu1 %v7469_v15  ;;  %7853 = vmatpush3.bf16.msra.mxu0 %v8222_v18  ;;  %v8275_v15 = vld [vmem:[%s9577_s19 + $0x3a8] sm:$0xff]   ;;  %v8278_v18 = vld [vmem:[%s9577_s19 + $0x330] sm:$0xff]  }
 0x1b5   : > { %7875 = vmatpush3.bf16.msra.mxu1 %v8223_v19  ;;  %7854 = vmatprep.subr.bf16.mxu0 %v8224_v20  ;;  %v8279_v19 = vld [vmem:[%s9577_s19 + $0x3b0] sm:$0xff]   ;;  %v8280_v20 = vld [vmem:[%s9577_s19 + $0x378] sm:$0xff]  }
 0x1b6   : > { %7876 = vmatprep.subr.bf16.mxu1 %v8225_v21  ;;  %6826 = vmatprep.mubr.bf16.mxu0 %v7472_v53  ;;  %v8281_v21 = vld [vmem:[%s9577_s19 + $0x3f8] sm:$0xff]   ;;  %v8305_v53 = vld [vmem:[%s9577_s19 + $0x4e8] sm:$0xff]  }
 0x1b7   : > { %6867 = vmatprep.mubr.bf16.mxu1 %v7474_v55  ;;  %v8307_v55 = vld [vmem:[%s9577_s19 + $0x4a8] sm:$0xff]  }
 0x1b8   : > { %7855 = vmatpush3.bf16.msra.mxu0 %v8226_v22  ;;  %v8282_v22 = vld [vmem:[%s9577_s19 + $0x338] sm:$0xff]  }
 0x1b9   : > { %7877 = vmatpush3.bf16.msra.mxu1 %v8227_v23  ;;  %7856 = vmatprep.subr.bf16.mxu0 %v8228_v24  ;;  %v8283_v23 = vld [vmem:[%s9577_s19 + $0x3b8] sm:$0xff]   ;;  %v4389_v24 = vld [vmem:[%s9967_s0 + $0x30] sm:$0xff] }
 0x1ba   : > { %7878 = vmatprep.subr.bf16.mxu1 %v8229_v25  ;;  %v4405_v25 = vld [vmem:[%s9967_s0 + $0xb0] sm:$0xff] }
 0x1bc   : > { %7857 = vmatpush3.bf16.msra.mxu0 %v8230_v26  ;;  %v4390_v26 = vld [vmem:[%s9967_s0 + $0x38] sm:$0xff] }
 0x1bd   : > { %7879 = vmatpush3.bf16.msra.mxu1 %v8231_v27  ;;  %7858 = vmatprep.subr.bf16.mxu0 %v8232_v28  ;;  %v7475_v27 = vcombine.low %v4389_v24, %v4405_v25  ;;  %v7476_v28 = vcombine.high %v4389_v24, %v4405_v25  ;;  %v8332_v24 = vld [vmem:[%s9577_s19 + $0x560] sm:$0xff]  }
 0x1be   : > { %7880 = vmatprep.subr.bf16.mxu1 %v8233_v29  ;;  %v4406_v29 = vld [vmem:[%s9967_s0 + $0xb8] sm:$0xff]  ;;  %v8333_v25 = vld [vmem:[%s9577_s19 + $0x5e0] sm:$0xff]  }
 0x1c0   : > { %7859 = vmatpush3.bf16.msra.mxu0 %v8234_v30  ;;  %v7477_v30 = vcombine.low %v4390_v26, %v4406_v29 }
 0x1c1   : > { %7881 = vmatpush3.bf16.msra.mxu1 %v8235_v31  ;;  %7860 = vmatprep.subr.bf16.mxu0 %v8236_v32  ;;  %v7478_v31 = vcombine.high %v4390_v26, %v4406_v29  ;;  %v8284_v32 = vld [vmem:[%s9577_s19 + $0x440] sm:$0xff]   ;;  %v8337_v29 = vld [vmem:[%s9577_s19 + $0x5e8] sm:$0xff]  }
 0x1c2   : > { %7882 = vmatprep.subr.bf16.mxu1 %v8237_v33  ;;  %v8285_v33 = vld [vmem:[%s9577_s19 + $0x4c0] sm:$0xff]  }
 0x1c3   : > { %v8334_v26 = vld [vmem:[%s9577_s19 + $0x520] sm:$0xff]  }
 0x1c4   : > { %7861 = vmatpush3.bf16.msra.mxu0 %v8238_v34  ;;  %v8286_v34 = vld [vmem:[%s9577_s19 + $0x400] sm:$0xff]  }
 0x1c5   : > { %7883 = vmatpush3.bf16.msra.mxu1 %v8239_v35  ;;  %7862 = vmatprep.subr.bf16.mxu0 %v8240_v36  ;;  %v8287_v35 = vld [vmem:[%s9577_s19 + $0x480] sm:$0xff]   ;;  %v8288_v36 = vld [vmem:[%s9577_s19 + $0x448] sm:$0xff]  }
 0x1c6   : > { %7884 = vmatprep.subr.bf16.mxu1 %v8241_v37  ;;  %v8289_v37 = vld [vmem:[%s9577_s19 + $0x4c8] sm:$0xff]  }
 0x1c8   : > { %7863 = vmatpush3.bf16.msra.mxu0 %v8242_v38  ;;  %v8290_v38 = vld [vmem:[%s9577_s19 + $0x408] sm:$0xff]  }
 0x1c9   : > { %7885 = vmatpush3.bf16.msra.mxu1 %v8243_v39  ;;  %7864 = vmatprep.subr.bf16.mxu0 %v8244_v40  ;;  %v8291_v39 = vld [vmem:[%s9577_s19 + $0x488] sm:$0xff]   ;;  %v8292_v40 = vld [vmem:[%s9577_s19 + $0x450] sm:$0xff]  }
 0x1ca   : > { %7886 = vmatprep.subr.bf16.mxu1 %v8245_v41  ;;  %v8293_v41 = vld [vmem:[%s9577_s19 + $0x4d0] sm:$0xff]  }
 0x1cc   : > { %7865 = vmatpush3.bf16.msra.mxu0 %v8246_v42  ;;  %v8294_v42 = vld [vmem:[%s9577_s19 + $0x410] sm:$0xff]  }
 0x1cd   : > { %7887 = vmatpush3.bf16.msra.mxu1 %v8247_v43  ;;  %7866 = vmatprep.subr.bf16.mxu0 %v8248_v44  ;;  %v8295_v43 = vld [vmem:[%s9577_s19 + $0x490] sm:$0xff]   ;;  %v8296_v44 = vld [vmem:[%s9577_s19 + $0x458] sm:$0xff]  }
 0x1ce   : > { %7888 = vmatprep.subr.bf16.mxu1 %v8249_v46  ;;  %v8298_v46 = vld [vmem:[%s9577_s19 + $0x418] sm:$0xff]  }
 0x1d0   : > { %7867 = vmatpush3.bf16.msra.mxu0 %v8250_v47  ;;  %v8299_v47 = vld [vmem:[%s9577_s19 + $0x498] sm:$0xff]  }
 0x1d1   : > { %7889 = vmatpush3.bf16.msra.mxu1 %v8251_v48  ;;  %7896 = vmatprep.subr.bf16.mxu0 %v8252_v56  ;;  %v8300_v48 = vld [vmem:[%s9577_s19 + $0x460] sm:$0xff]   ;;  %v8308_v56 = vld [vmem:[%s9577_s19 + $0x470] sm:$0xff]  }
 0x1d2   : > { %7918 = vmatprep.subr.bf16.mxu1 %v8253_v57  ;;  %v8309_v57 = vld [vmem:[%s9577_s19 + $0x4f0] sm:$0xff]  }
 0x1d3   : > { %6827 = vmatmul.mubr.bf16.vlgmr.msra.gmra.mrb[8].mxu0 %v7471_v52  ;;  %v8304_v52 = vld [vmem:[%s9577_s19 + $0x468] sm:$0xff]  }
 0x1d4   : > { %6868 = vmatmul.mubr.bf16.vlgmr.msra.gmra.mrb[8].mxu1 %v7473_v54  ;;  %7897 = vmatpush3.bf16.msra.mxu0 %v8254_v58  ;;  %v8306_v54 = vld [vmem:[%s9577_s19 + $0x428] sm:$0xff]   ;;  %v8310_v58 = vld [vmem:[%s9577_s19 + $0x430] sm:$0xff]  }
 0x1d5   : > { %7919 = vmatpush3.bf16.msra.mxu1 %v8255_v59  ;;  %7898 = vmatprep.subr.bf16.mxu0 %v8256_v60  ;;  %v8311_v59 = vld [vmem:[%s9577_s19 + $0x4b0] sm:$0xff]   ;;  %v8312_v60 = vld [vmem:[%s9577_s19 + $0x478] sm:$0xff]  }
 0x1d6   : > { %7920 = vmatprep.subr.bf16.mxu1 %v8257_v61  ;;  %6908 = vmatprep.mubr.bf16.mxu0 %v7476_v28  ;;  %v8313_v61 = vld [vmem:[%s9577_s19 + $0x4f8] sm:$0xff]   ;;  %v8336_v28 = vld [vmem:[%s9577_s19 + $0x568] sm:$0xff]  }
 0x1d7   : > { %6949 = vmatprep.mubr.bf16.mxu1 %v7478_v31  ;;  %v8339_v31 = vld [vmem:[%s9577_s19 + $0x5a8] sm:$0xff]  }
 0x1d8   : > { %7899 = vmatpush3.bf16.msra.mxu0 %v8258_v62  ;;  %v8314_v62 = vld [vmem:[%s9577_s19 + $0x438] sm:$0xff]  }
 0x1d9   : > { %7921 = vmatpush3.bf16.msra.mxu1 %v8259_v63  ;;  %7900 = vmatprep.subr.bf16.mxu0 %v8260_v0  ;;  %v8315_v63 = vld [vmem:[%s9577_s19 + $0x4b8] sm:$0xff]   ;;  %v4391_v0 = vld [vmem:[%s9967_s0 + $0x40] sm:$0xff] }
 0x1da   : > { %7922 = vmatprep.subr.bf16.mxu1 %v8261_v1  ;;  %v4407_v1 = vld [vmem:[%s9967_s0 + $0xc0] sm:$0xff] }
 0x1dc   : > { %7901 = vmatpush3.bf16.msra.mxu0 %v8262_v2  ;;  %v7479_v2 = vcombine.low %v4391_v0, %v4407_v1 }
 0x1dd   : > { %7923 = vmatpush3.bf16.msra.mxu1 %v8263_v3  ;;  %7902 = vmatprep.subr.bf16.mxu0 %v8264_v4  ;;  %v7480_v3 = vcombine.high %v4391_v0, %v4407_v1  ;;  %v4392_v4 = vld [vmem:[%s9967_s0 + $0x48] sm:$0xff]  ;;  %v8364_v0 = vld [vmem:[%s9577_s19 + $0x660] sm:$0xff]  }
 0x1de   : > { %7924 = vmatprep.subr.bf16.mxu1 %v8265_v5  ;;  %v4408_v5 = vld [vmem:[%s9967_s0 + $0xc8] sm:$0xff]  ;;  %v8365_v1 = vld [vmem:[%s9577_s19 + $0x6e0] sm:$0xff]  }
 0x1e0   : > { %7903 = vmatpush3.bf16.msra.mxu0 %v8266_v6  ;;  %v7481_v6 = vcombine.low %v4392_v4, %v4408_v5 }
 0x1e1   : > { %7925 = vmatpush3.bf16.msra.mxu1 %v8267_v7  ;;  %7904 = vmatprep.subr.bf16.mxu0 %v8268_v8  ;;  %v7482_v7 = vcombine.high %v4392_v4, %v4408_v5  ;;  %v8316_v8 = vld [vmem:[%s9577_s19 + $0x540] sm:$0xff]   ;;  %v8368_v4 = vld [vmem:[%s9577_s19 + $0x668] sm:$0xff]  }
 0x1e2   : > { %7926 = vmatprep.subr.bf16.mxu1 %v8269_v9  ;;  %v8317_v9 = vld [vmem:[%s9577_s19 + $0x5c0] sm:$0xff]   ;;  %v8369_v5 = vld [vmem:[%s9577_s19 + $0x6e8] sm:$0xff]  }
 0x1e4   : > { %7905 = vmatpush3.bf16.msra.mxu0 %v8270_v10  ;;  %v8318_v10 = vld [vmem:[%s9577_s19 + $0x500] sm:$0xff]  }
 0x1e5   : > { %7927 = vmatpush3.bf16.msra.mxu1 %v8271_v11  ;;  %7906 = vmatprep.subr.bf16.mxu0 %v8272_v12  ;;  %v8319_v11 = vld [vmem:[%s9577_s19 + $0x580] sm:$0xff]   ;;  %v8320_v12 = vld [vmem:[%s9577_s19 + $0x548] sm:$0xff]  }
 0x1e6   : > { %7928 = vmatprep.subr.bf16.mxu1 %v8273_v13  ;;  %v8321_v13 = vld [vmem:[%s9577_s19 + $0x5c8] sm:$0xff]  }
 0x1e8   : > { %7907 = vmatpush3.bf16.msra.mxu0 %v8274_v14  ;;  %v8322_v14 = vld [vmem:[%s9577_s19 + $0x508] sm:$0xff]  }
 0x1e9   : > { %7929 = vmatpush3.bf16.msra.mxu1 %v8275_v15  ;;  %7908 = vmatprep.subr.bf16.mxu0 %v8276_v16  ;;  %v8323_v15 = vld [vmem:[%s9577_s19 + $0x588] sm:$0xff]   ;;  %v8324_v16 = vld [vmem:[%s9577_s19 + $0x550] sm:$0xff]  }
 0x1ea   : > { %7930 = vmatprep.subr.bf16.mxu1 %v8277_v17  ;;  %v8325_v17 = vld [vmem:[%s9577_s19 + $0x5d0] sm:$0xff]  }
 0x1ec   : > { %7909 = vmatpush3.bf16.msra.mxu0 %v8278_v18  ;;  %v8326_v18 = vld [vmem:[%s9577_s19 + $0x510] sm:$0xff]  }
 0x1ed   : > { %7931 = vmatpush3.bf16.msra.mxu1 %v8279_v19  ;;  %7910 = vmatprep.subr.bf16.mxu0 %v8280_v20  ;;  %v8327_v19 = vld [vmem:[%s9577_s19 + $0x590] sm:$0xff]   ;;  %v8328_v20 = vld [vmem:[%s9577_s19 + $0x558] sm:$0xff]  }
 0x1ee   : > { %7932 = vmatprep.subr.bf16.mxu1 %v8281_v21  ;;  %v8329_v21 = vld [vmem:[%s9577_s19 + $0x5d8] sm:$0xff]  }
 0x1f0   : > { %7911 = vmatpush3.bf16.msra.mxu0 %v8282_v22  ;;  %v8330_v22 = vld [vmem:[%s9577_s19 + $0x518] sm:$0xff]  }
 0x1f1   : > { %7933 = vmatpush3.bf16.msra.mxu1 %v8283_v23  ;;  %7940 = vmatprep.subr.bf16.mxu0 %v8284_v32  ;;  %v8331_v23 = vld [vmem:[%s9577_s19 + $0x598] sm:$0xff]   ;;  %v8340_v32 = vld [vmem:[%s9577_s19 + $0x570] sm:$0xff]  }
 0x1f2   : > { %7962 = vmatprep.subr.bf16.mxu1 %v8285_v33  ;;  %v8341_v33 = vld [vmem:[%s9577_s19 + $0x5f0] sm:$0xff]  }
 0x1f3   : > { %6909 = vmatmul.mubr.bf16.vlgmr.msra.gmra.mrb[12].mxu0 %v7475_v27  ;;  %v8335_v27 = vld [vmem:[%s9577_s19 + $0x5a0] sm:$0xff]  }
 0x1f4   : > { %6950 = vmatmul.mubr.bf16.vlgmr.msra.gmra.mrb[12].mxu1 %v7477_v30  ;;  %7941 = vmatpush3.bf16.msra.mxu0 %v8286_v34  ;;  %v8338_v30 = vld [vmem:[%s9577_s19 + $0x528] sm:$0xff]   ;;  %v8342_v34 = vld [vmem:[%s9577_s19 + $0x530] sm:$0xff]  }
 0x1f5   : > { %7963 = vmatpush3.bf16.msra.mxu1 %v8287_v35  ;;  %7942 = vmatprep.subr.bf16.mxu0 %v8288_v36  ;;  %v8343_v35 = vld [vmem:[%s9577_s19 + $0x5b0] sm:$0xff]   ;;  %v8344_v36 = vld [vmem:[%s9577_s19 + $0x578] sm:$0xff]  }
 0x1f6   : > { %7964 = vmatprep.subr.bf16.mxu1 %v8289_v37  ;;  %6990 = vmatprep.mubr.bf16.mxu0 %v7480_v3  ;;  %v8345_v37 = vld [vmem:[%s9577_s19 + $0x5f8] sm:$0xff]   ;;  %v8367_v3 = vld [vmem:[%s9577_s19 + $0x6a0] sm:$0xff]  }
 0x1f7   : > { %7031 = vmatprep.mubr.bf16.mxu1 %v7482_v7  ;;  %v8371_v7 = vld [vmem:[%s9577_s19 + $0x6a8] sm:$0xff]  }
 0x1f8   : > { %7943 = vmatpush3.bf16.msra.mxu0 %v8290_v38  ;;  %v8346_v38 = vld [vmem:[%s9577_s19 + $0x538] sm:$0xff]  }
 0x1f9   : > { %7965 = vmatpush3.bf16.msra.mxu1 %v8291_v39  ;;  %7944 = vmatprep.subr.bf16.mxu0 %v8292_v40  ;;  %v8347_v39 = vld [vmem:[%s9577_s19 + $0x5b8] sm:$0xff]   ;;  %v4393_v40 = vld [vmem:[%s9967_s0 + $0x50] sm:$0xff] }
 0x1fa   : > { %7966 = vmatprep.subr.bf16.mxu1 %v8293_v41  ;;  %v4409_v41 = vld [vmem:[%s9967_s0 + $0xd0] sm:$0xff] }
 0x1fc   : > { %7945 = vmatpush3.bf16.msra.mxu0 %v8294_v42  ;;  %v4394_v42 = vld [vmem:[%s9967_s0 + $0x58] sm:$0xff] }
 0x1fd   : > { %7967 = vmatpush3.bf16.msra.mxu1 %v8295_v43  ;;  %7946 = vmatprep.subr.bf16.mxu0 %v8296_v44  ;;  %v4410_v43 = vld [vmem:[%s9967_s0 + $0xd8] sm:$0xff]  ;;  %v7483_v44 = vcombine.low %v4393_v40, %v4409_v41 }
 0x1fe   : > { %7968 = vmatprep.subr.bf16.mxu1 %v8297_v45  ;;  %v7484_v45 = vcombine.high %v4393_v40, %v4409_v41  ;;  %v8396_v41 = vld [vmem:[%s9577_s19 + $0x760] sm:$0xff]  }
 0x200   : > { %7947 = vmatpush3.bf16.msra.mxu0 %v8298_v46  ;;  %v7485_v46 = vcombine.low %v4394_v42, %v4410_v43 }
 0x201   : > { %7969 = vmatpush3.bf16.msra.mxu1 %v8299_v47  ;;  %7948 = vmatprep.subr.bf16.mxu0 %v8300_v48  ;;  %v7486_v47 = vcombine.high %v4394_v42, %v4410_v43  ;;  %v8348_v48 = vld [vmem:[%s9577_s19 + $0x640] sm:$0xff]  }
 0x202   : > { %7970 = vmatprep.subr.bf16.mxu1 %v8301_v49  ;;  %v8349_v49 = vld [vmem:[%s9577_s19 + $0x6c0] sm:$0xff]  }
 0x203   : > { %v8397_v43 = vld [vmem:[%s9577_s19 + $0x7e0] sm:$0xff]  }
 0x204   : > { %7949 = vmatpush3.bf16.msra.mxu0 %v8302_v50  ;;  %v8350_v50 = vld [vmem:[%s9577_s19 + $0x600] sm:$0xff]  }
 0x205   : > { %7971 = vmatpush3.bf16.msra.mxu1 %v8303_v51  ;;  %7950 = vmatprep.subr.bf16.mxu0 %v8304_v52  ;;  %v8351_v51 = vld [vmem:[%s9577_s19 + $0x680] sm:$0xff]   ;;  %v8352_v52 = vld [vmem:[%s9577_s19 + $0x648] sm:$0xff]  }
 0x206   : > { %7972 = vmatprep.subr.bf16.mxu1 %v8305_v53  ;;  %v8353_v53 = vld [vmem:[%s9577_s19 + $0x6c8] sm:$0xff]  }
 0x208   : > { %7951 = vmatpush3.bf16.msra.mxu0 %v8306_v54  ;;  %v8354_v54 = vld [vmem:[%s9577_s19 + $0x608] sm:$0xff]  }
 0x209   : > { %7973 = vmatpush3.bf16.msra.mxu1 %v8307_v55  ;;  %7952 = vmatprep.subr.bf16.mxu0 %v8308_v56  ;;  %v8355_v55 = vld [vmem:[%s9577_s19 + $0x688] sm:$0xff]   ;;  %v8356_v56 = vld [vmem:[%s9577_s19 + $0x650] sm:$0xff]  }
 0x20a   : > { %7974 = vmatprep.subr.bf16.mxu1 %v8309_v57  ;;  %v8357_v57 = vld [vmem:[%s9577_s19 + $0x6d0] sm:$0xff]  }
 0x20c   : > { %7953 = vmatpush3.bf16.msra.mxu0 %v8310_v58  ;;  %v8358_v58 = vld [vmem:[%s9577_s19 + $0x610] sm:$0xff]  }
 0x20d   : > { %7975 = vmatpush3.bf16.msra.mxu1 %v8311_v59  ;;  %7954 = vmatprep.subr.bf16.mxu0 %v8312_v60  ;;  %v8359_v59 = vld [vmem:[%s9577_s19 + $0x690] sm:$0xff]   ;;  %v8360_v60 = vld [vmem:[%s9577_s19 + $0x658] sm:$0xff]  }
 0x20e   : > { %7976 = vmatprep.subr.bf16.mxu1 %v8313_v61  ;;  %v8361_v61 = vld [vmem:[%s9577_s19 + $0x6d8] sm:$0xff]  }
 0x210   : > { %7955 = vmatpush3.bf16.msra.mxu0 %v8314_v62  ;;  %v8362_v62 = vld [vmem:[%s9577_s19 + $0x618] sm:$0xff]  }
 0x211   : > { %7977 = vmatpush3.bf16.msra.mxu1 %v8315_v63  ;;  %7984 = vmatprep.subr.bf16.mxu0 %v8316_v8  ;;  %v8363_v63 = vld [vmem:[%s9577_s19 + $0x698] sm:$0xff]   ;;  %v8372_v8 = vld [vmem:[%s9577_s19 + $0x670] sm:$0xff]  }
 0x212   : > { %8006 = vmatprep.subr.bf16.mxu1 %v8317_v9  ;;  %v8373_v9 = vld [vmem:[%s9577_s19 + $0x6f0] sm:$0xff]  }
 0x213   : > { %6991 = vmatmul.mubr.bf16.vlgmr.msra.gmra.mrb[16].mxu0 %v7479_v2  ;;  %v8366_v2 = vld [vmem:[%s9577_s19 + $0x620] sm:$0xff]  }
 0x214   : > { %7032 = vmatmul.mubr.bf16.vlgmr.msra.gmra.mrb[16].mxu1 %v7481_v6  ;;  %7985 = vmatpush3.bf16.msra.mxu0 %v8318_v10  ;;  %v8370_v6 = vld [vmem:[%s9577_s19 + $0x628] sm:$0xff]   ;;  %v8374_v10 = vld [vmem:[%s9577_s19 + $0x630] sm:$0xff]  }
 0x215   : > { %8007 = vmatpush3.bf16.msra.mxu1 %v8319_v11  ;;  %7986 = vmatprep.subr.bf16.mxu0 %v8320_v12  ;;  %v8375_v11 = vld [vmem:[%s9577_s19 + $0x6b0] sm:$0xff]   ;;  %v8376_v12 = vld [vmem:[%s9577_s19 + $0x678] sm:$0xff]  }
 0x216   : > { %8008 = vmatprep.subr.bf16.mxu1 %v8321_v13  ;;  %7072 = vmatprep.mubr.bf16.mxu0 %v7484_v45  ;;  %v8377_v13 = vld [vmem:[%s9577_s19 + $0x6f8] sm:$0xff]   ;;  %v8398_v45 = vld [vmem:[%s9577_s19 + $0x720] sm:$0xff]  }
 0x217   : > { %7113 = vmatprep.mubr.bf16.mxu1 %v7486_v47 }
 0x218   : > { %7987 = vmatpush3.bf16.msra.mxu0 %v8322_v14  ;;  %v8378_v14 = vld [vmem:[%s9577_s19 + $0x638] sm:$0xff]  }
 0x219   : > { %8009 = vmatpush3.bf16.msra.mxu1 %v8323_v15  ;;  %7988 = vmatprep.subr.bf16.mxu0 %v8324_v16  ;;  %v8379_v15 = vld [vmem:[%s9577_s19 + $0x6b8] sm:$0xff]   ;;  %v4395_v16 = vld [vmem:[%s9967_s0 + $0x60] sm:$0xff] }
 0x21a   : > { %8010 = vmatprep.subr.bf16.mxu1 %v8325_v17  ;;  %v4411_v17 = vld [vmem:[%s9967_s0 + $0xe0] sm:$0xff] }
 0x21c   : > { %7989 = vmatpush3.bf16.msra.mxu0 %v8326_v18  ;;  %v4396_v18 = vld [vmem:[%s9967_s0 + $0x68] sm:$0xff] }
 0x21d   : > { %8011 = vmatpush3.bf16.msra.mxu1 %v8327_v19  ;;  %7990 = vmatprep.subr.bf16.mxu0 %v8328_v20  ;;  %v7487_v19 = vcombine.low %v4395_v16, %v4411_v17  ;;  %v7488_v20 = vcombine.high %v4395_v16, %v4411_v17 }
 0x21e   : > { %8012 = vmatprep.subr.bf16.mxu1 %v8329_v21  ;;  %v4412_v21 = vld [vmem:[%s9967_s0 + $0xe8] sm:$0xff] }
 0x220   : > { %7991 = vmatpush3.bf16.msra.mxu0 %v8330_v22  ;;  %v7489_v22 = vcombine.low %v4396_v18, %v4412_v21 }
 0x221   : > { %8013 = vmatpush3.bf16.msra.mxu1 %v8331_v23  ;;  %7992 = vmatprep.subr.bf16.mxu0 %v8332_v24  ;;  %v7490_v23 = vcombine.high %v4396_v18, %v4412_v21  ;;  %v8380_v24 = vld [vmem:[%s9577_s19 + $0x740] sm:$0xff]  }
 0x222   : > { %8014 = vmatprep.subr.bf16.mxu1 %v8333_v25  ;;  %v8381_v25 = vld [vmem:[%s9577_s19 + $0x7c0] sm:$0xff]  }
 0x224   : > { %7993 = vmatpush3.bf16.msra.mxu0 %v8334_v26  ;;  %v8382_v26 = vld [vmem:[%s9577_s19 + $0x700] sm:$0xff]  }
 0x225   : > { %8015 = vmatpush3.bf16.msra.mxu1 %v8335_v27  ;;  %7994 = vmatprep.subr.bf16.mxu0 %v8336_v28  ;;  %v8383_v27 = vld [vmem:[%s9577_s19 + $0x780] sm:$0xff]   ;;  %v8384_v28 = vld [vmem:[%s9577_s19 + $0x748] sm:$0xff]  }
 0x226   : > { %8016 = vmatprep.subr.bf16.mxu1 %v8337_v29  ;;  %v8385_v29 = vld [vmem:[%s9577_s19 + $0x7c8] sm:$0xff]  }
 0x228   : > { %7995 = vmatpush3.bf16.msra.mxu0 %v8338_v30  ;;  %v8386_v30 = vld [vmem:[%s9577_s19 + $0x708] sm:$0xff]  }
 0x229   : > { %8017 = vmatpush3.bf16.msra.mxu1 %v8339_v31  ;;  %7996 = vmatprep.subr.bf16.mxu0 %v8340_v32  ;;  %v8387_v31 = vld [vmem:[%s9577_s19 + $0x788] sm:$0xff]   ;;  %v8388_v32 = vld [vmem:[%s9577_s19 + $0x750] sm:$0xff]  }
 0x22a   : > { %8018 = vmatprep.subr.bf16.mxu1 %v8341_v33  ;;  %v8389_v33 = vld [vmem:[%s9577_s19 + $0x7d0] sm:$0xff]  }
 0x22c   : > { %7997 = vmatpush3.bf16.msra.mxu0 %v8342_v34  ;;  %v8390_v34 = vld [vmem:[%s9577_s19 + $0x710] sm:$0xff]  }
 0x22d   : > { %8019 = vmatpush3.bf16.msra.mxu1 %v8343_v35  ;;  %7998 = vmatprep.subr.bf16.mxu0 %v8344_v36  ;;  %v8391_v35 = vld [vmem:[%s9577_s19 + $0x790] sm:$0xff]   ;;  %v8392_v36 = vld [vmem:[%s9577_s19 + $0x758] sm:$0xff]  }
 0x22e   : > { %8020 = vmatprep.subr.bf16.mxu1 %v8345_v37  ;;  %v8393_v37 = vld [vmem:[%s9577_s19 + $0x7d8] sm:$0xff]  }
 0x230   : > { %7999 = vmatpush3.bf16.msra.mxu0 %v8346_v38  ;;  %v8394_v38 = vld [vmem:[%s9577_s19 + $0x718] sm:$0xff]  }
 0x231   : > { %8021 = vmatpush3.bf16.msra.mxu1 %v8347_v39  ;;  %8028 = vmatprep.subr.bf16.mxu0 %v8348_v48  ;;  %v8395_v39 = vld [vmem:[%s9577_s19 + $0x798] sm:$0xff]   ;;  %v8399_v48 = vld [vmem:[%s9577_s19 + $0x7a0] sm:$0xff]  }
 0x232   : > { %8050 = vmatprep.subr.bf16.mxu1 %v8349_v49  ;;  %v7462_v49 = vld [vmem:[%s4380_s20] ss:$0 sm:$0xff] }
 0x233   : > { %7073 = vmatmul.mubr.bf16.vlgmr.msra.gmra.mrb[20].mxu0 %v7483_v44 }
 0x234   : > { %7114 = vmatmul.mubr.bf16.vlgmr.msra.gmra.mrb[20].mxu1 %v7485_v46  ;;  %8029 = vmatpush3.bf16.msra.mxu0 %v8350_v50 }
 0x235   : > { %8051 = vmatpush3.bf16.msra.mxu1 %v8351_v51  ;;  %8030 = vmatprep.subr.bf16.mxu0 %v8352_v52 }
 0x236   : > { %8052 = vmatprep.subr.bf16.mxu1 %v8353_v53  ;;  %7154 = vmatprep.mubr.bf16.mxu0 %v7488_v20  ;;  %v8400_v53 = vld [vmem:[%s9577_s19 + $0x768] sm:$0xff]  }
 0x237   : > { %7195 = vmatprep.mubr.bf16.mxu1 %v7490_v23 }
 0x238   : > { %8031 = vmatpush3.bf16.msra.mxu0 %v8354_v54 }
 0x239   : > { %8053 = vmatpush3.bf16.msra.mxu1 %v8355_v55  ;;  %8032 = vmatprep.subr.bf16.mxu0 %v8356_v56  ;;  %v8401_v55 = vld [vmem:[%s9577_s19 + $0x7e8] sm:$0xff]  }
 0x23a   : > { %8054 = vmatprep.subr.bf16.mxu1 %v8357_v57 }
 0x23c   : > { %8033 = vmatpush3.bf16.msra.mxu0 %v8358_v58  ;;  %v8402_v58 = vld [vmem:[%s9577_s19 + $0x728] sm:$0xff]  }
 0x23d   : > { %8055 = vmatpush3.bf16.msra.mxu1 %v8359_v59  ;;  %8034 = vmatprep.subr.bf16.mxu0 %v8360_v60 }
 0x23e   : > { %8056 = vmatprep.subr.bf16.mxu1 %v8361_v61  ;;  %v8403_v61 = vld [vmem:[%s9577_s19 + $0x7a8] sm:$0xff]  }
 0x240   : > { %8035 = vmatpush3.bf16.msra.mxu0 %v8362_v62 }
 0x241   : > { %8057 = vmatpush3.bf16.msra.mxu1 %v8363_v63  ;;  %8036 = vmatprep.subr.bf16.mxu0 %v8364_v0  ;;  %v8404_v0 = vld [vmem:[%s9577_s19 + $0x770] sm:$0xff]  }
 0x242   : > { %8058 = vmatprep.subr.bf16.mxu1 %v8365_v1  ;;  %v8405_v1 = vld [vmem:[%s9577_s19 + $0x7f0] sm:$0xff]  }
 0x244   : > { %8037 = vmatpush3.bf16.msra.mxu0 %v8366_v2 }
 0x245   : > { %8059 = vmatpush3.bf16.msra.mxu1 %v8367_v3  ;;  %8038 = vmatprep.subr.bf16.mxu0 %v8368_v4  ;;  %v8406_v3 = vld [vmem:[%s9577_s19 + $0x730] sm:$0xff]  }
 0x246   : > { %8060 = vmatprep.subr.bf16.mxu1 %v8369_v5  ;;  %v8407_v4 = vld [vmem:[%s9577_s19 + $0x7b0] sm:$0xff]   ;;  %v8408_v5 = vld [vmem:[%s9577_s19 + $0x778] sm:$0xff]  }
 0x248   : > { %8039 = vmatpush3.bf16.msra.mxu0 %v8370_v6  ;;  %v8409_v6 = vld [vmem:[%s9577_s19 + $0x7f8] sm:$0xff]  }
 0x249   : > { %8061 = vmatpush3.bf16.msra.mxu1 %v8371_v7  ;;  %8040 = vmatprep.subr.bf16.mxu0 %v8372_v8  ;;  %v8410_v7 = vld [vmem:[%s9577_s19 + $0x738] sm:$0xff]  }
 0x24a   : > { %8062 = vmatprep.subr.bf16.mxu1 %v8373_v9  ;;  %v8411_v8 = vld [vmem:[%s9577_s19 + $0x7b8] sm:$0xff]   ;;  %v4397_v9 = vld [vmem:[%s9967_s0 + $0x70] sm:$0xff]  ;;  %s7461_s19 = sshll.u32 %s4340_s30, 3 }
 0x24b   : > { %s4370_s5 = scalar_lea.vmem [#allocation3], %s7461_s19 }
 0x24c   : > { %8041 = vmatpush3.bf16.msra.mxu0 %v8374_v10  ;;  %v4413_v10 = vld [vmem:[%s9967_s0 + $0xf0] sm:$0xff] }
 0x24d   : > { %8063 = vmatpush3.bf16.msra.mxu1 %v8375_v11  ;;  %8042 = vmatprep.subr.bf16.mxu0 %v8376_v12  ;;  %v4398_v11 = vld [vmem:[%s9967_s0 + $0x78] sm:$0xff] }
 0x24e   : > { %8064 = vmatprep.subr.bf16.mxu1 %v8377_v13  ;;  %v4414_v12 = vld [vmem:[%s9967_s0 + $0xf8] sm:$0xff]  ;;  %v7491_v13 = vcombine.low %v4397_v9, %v4413_v10 }
 0x24f   : > { %v7494_v16 = vcombine.high %v4398_v11, %v4414_v12 }
 0x250   : > { %8043 = vmatpush3.bf16.msra.mxu0 %v8378_v14  ;;  %v7492_v14 = vcombine.high %v4397_v9, %v4413_v10 }
 0x251   : > { %8065 = vmatpush3.bf16.msra.mxu1 %v8379_v15  ;;  %8072 = vmatprep.subr.bf16.mxu0 %v8380_v24  ;;  %v7493_v15 = vcombine.low %v4398_v11, %v4414_v12 }
 0x252   : > { %8094 = vmatprep.subr.bf16.mxu1 %v8381_v25 }
 0x253   : > { %7155 = vmatmul.mubr.bf16.vlgmr.msra.gmra.mrb[24].mxu0 %v7487_v19 }
 0x254   : > { %7196 = vmatmul.mubr.bf16.vlgmr.msra.gmra.mrb[24].mxu1 %v7489_v22  ;;  %8073 = vmatpush3.bf16.msra.mxu0 %v8382_v26 }
 0x255   : > { %8095 = vmatpush3.bf16.msra.mxu1 %v8383_v27  ;;  %8074 = vmatprep.subr.bf16.mxu0 %v8384_v28 }
 0x256   : > { %8096 = vmatprep.subr.bf16.mxu1 %v8385_v29  ;;  %7236 = vmatprep.mubr.bf16.mxu0 %v7492_v14 }
 0x257   : > { %7277 = vmatprep.mubr.bf16.mxu1 %v7494_v16 }
 0x258   : > { %8075 = vmatpush3.bf16.msra.mxu0 %v8386_v30 }
 0x259   : > { %8097 = vmatpush3.bf16.msra.mxu1 %v8387_v31  ;;  %8076 = vmatprep.subr.bf16.mxu0 %v8388_v32 }
 0x25a   : > { %8098 = vmatprep.subr.bf16.mxu1 %v8389_v33 }
 0x25c   : > { %8077 = vmatpush3.bf16.msra.mxu0 %v8390_v34 }
 0x25d   : > { %8099 = vmatpush3.bf16.msra.mxu1 %v8391_v35  ;;  %8078 = vmatprep.subr.bf16.mxu0 %v8392_v36 }
 0x25e   : > { %8100 = vmatprep.subr.bf16.mxu1 %v8393_v37 }
 0x260   : > { %8079 = vmatpush3.bf16.msra.mxu0 %v8394_v38 }
 0x261   : > { %8101 = vmatpush3.bf16.msra.mxu1 %v8395_v39  ;;  %8080 = vmatprep.subr.bf16.mxu0 %v8396_v41 }
 0x262   : > { %8102 = vmatprep.subr.bf16.mxu1 %v8397_v43 }
 0x264   : > { %8081 = vmatpush3.bf16.msra.mxu0 %v8398_v45 }
 0x265   : > { %8103 = vmatpush3.bf16.msra.mxu1 %v8399_v48  ;;  %8082 = vmatprep.subr.bf16.mxu0 %v8400_v53 }
 0x266   : > { %v7780_v40 = vpop.f32.mrb[0].mxu0  ;;  %8104 = vmatprep.subr.bf16.mxu1 %v8401_v55 }
 0x267   : > { %v7802_v42 = vpop.f32.mrb[0].mxu1  ;;  %v7781_v44 = vpop.f32.mrb[1].mxu0 }
 0x268   : > { %v7782_v46 = vadd.f32 %v7781_v44, %v7780_v40  ;;  %v7803_v47 = vpop.f32.mrb[1].mxu1  ;;  %v7783_v51 = vpop.f32.mrb[2].mxu0  ;;  %8083 = vmatpush3.bf16.msra.mxu0 %v8402_v58 }
 0x269   : > { %v7804_v50 = vadd.f32 %v7803_v47, %v7802_v42  ;;  %v7805_v54 = vpop.f32.mrb[2].mxu1  ;;  %v7784_v56 = vpop.f32.mrb[3].mxu0  ;;  %8105 = vmatpush3.bf16.msra.mxu1 %v8403_v61  ;;  %8084 = vmatprep.subr.bf16.mxu0 %v8404_v0 }
 0x26a   : > { %v6665_v52 = vadd.f32 %v7782_v46, %v7462_v49  ;;  %v7785_v59 = vadd.f32 %v7784_v56, %v7783_v51  ;;  %v7806_v60 = vpop.f32.mrb[3].mxu1  ;;  %8106 = vmatprep.subr.bf16.mxu1 %v8405_v1 }
 0x26b   : > { %v7807_v62 = vadd.f32 %v7806_v60, %v7805_v54 }
 0x26c   : > { %v6706_v57 = vadd.f32 %v7804_v50, %v6665_v52  ;;  %v6668_v63 = vadd.f32 %v7785_v59, %v7462_v49  ;;  %8085 = vmatpush3.bf16.msra.mxu0 %v8406_v3 }
 0x26d   : > { %8107 = vmatpush3.bf16.msra.mxu1 %v8407_v4  ;;  %8086 = vmatprep.subr.bf16.mxu0 %v8408_v5 }
 0x26e   : > { %v6709_v2 = vadd.f32 %v7807_v62, %v6668_v63  ;;  %8108 = vmatprep.subr.bf16.mxu1 %v8409_v6 }
 0x270   : > { %8087 = vmatpush3.bf16.msra.mxu0 %v8410_v7 }
 0x271   : > { %8109 = vmatpush3.bf16.msra.mxu1 %v8411_v8 }
 0x273   : > { %7237 = vmatmul.mubr.bf16.vlgmr.msra.gmra.mrb[28].mxu0 %v7491_v13 }
 0x274   : > { %7278 = vmatmul.mubr.bf16.vlgmr.msra.gmra.mrb[28].mxu1 %v7493_v15 }
 0x286   : > { %v7824_v17 = vpop.f32.mrb[4].mxu0 }
 0x287   : > { %v7846_v18 = vpop.f32.mrb[4].mxu1  ;;  %v7825_v19 = vpop.f32.mrb[5].mxu0 }
 0x288   : > { %v7826_v20 = vadd.f32 %v7825_v19, %v7824_v17  ;;  %v7847_v21 = vpop.f32.mrb[5].mxu1  ;;  %v7827_v22 = vpop.f32.mrb[6].mxu0 }
 0x289   : > { %v7848_v23 = vadd.f32 %v7847_v21, %v7846_v18  ;;  %v7849_v24 = vpop.f32.mrb[6].mxu1  ;;  %v7828_v25 = vpop.f32.mrb[7].mxu0 }
 0x28a   : > { %v6747_v26 = vadd.f32 %v7826_v20, %v6706_v57  ;;  %v7829_v27 = vadd.f32 %v7828_v25, %v7827_v22  ;;  %v7850_v28 = vpop.f32.mrb[7].mxu1 }
 0x28b   : > { %v7851_v29 = vadd.f32 %v7850_v28, %v7849_v24 }
 0x28c   : > { %v6788_v30 = vadd.f32 %v7848_v23, %v6747_v26  ;;  %v6750_v31 = vadd.f32 %v7829_v27, %v6709_v2 }
 0x28e   : > { %v6791_v32 = vadd.f32 %v7851_v29, %v6750_v31 }
 0x2a6   : > { %v7868_v33 = vpop.f32.mrb[8].mxu0 }
 0x2a7   : > { %v7890_v34 = vpop.f32.mrb[8].mxu1  ;;  %v7869_v35 = vpop.f32.mrb[9].mxu0 }
 0x2a8   : > { %v7891_v36 = vpop.f32.mrb[9].mxu1  ;;  %v7870_v37 = vadd.f32 %v7869_v35, %v7868_v33  ;;  %v7871_v39 = vpop.f32.mrb[10].mxu0 }
 0x2a9   : > { %v7892_v38 = vadd.f32 %v7891_v36, %v7890_v34  ;;  %v7893_v40 = vpop.f32.mrb[10].mxu1  ;;  %v7872_v41 = vpop.f32.mrb[11].mxu0 }
 0x2aa   : > { %v7894_v42 = vpop.f32.mrb[11].mxu1  ;;  %v6829_v43 = vadd.f32 %v7870_v37, %v6788_v30  ;;  %v7873_v44 = vadd.f32 %v7872_v41, %v7871_v39 }
 0x2ab   : > { %v7895_v45 = vadd.f32 %v7894_v42, %v7893_v40 }
 0x2ac   : > { %v6870_v46 = vadd.f32 %v7892_v38, %v6829_v43  ;;  %v6832_v47 = vadd.f32 %v7873_v44, %v6791_v32 }
 0x2ae   : > { %v6873_v48 = vadd.f32 %v7895_v45, %v6832_v47 }
 0x2c6   : > { %v7912_v49 = vpop.f32.mrb[12].mxu0 }
 0x2c7   : > { %v7934_v50 = vpop.f32.mrb[12].mxu1  ;;  %v7913_v51 = vpop.f32.mrb[13].mxu0 }
 0x2c8   : > { %v7914_v52 = vadd.f32 %v7913_v51, %v7912_v49  ;;  %v7935_v53 = vpop.f32.mrb[13].mxu1  ;;  %v7915_v54 = vpop.f32.mrb[14].mxu0 }
 0x2c9   : > { %v7936_v55 = vadd.f32 %v7935_v53, %v7934_v50  ;;  %v7937_v56 = vpop.f32.mrb[14].mxu1  ;;  %v7916_v57 = vpop.f32.mrb[15].mxu0 }
 0x2ca   : > { %v6911_v58 = vadd.f32 %v7914_v52, %v6870_v46  ;;  %v7917_v59 = vadd.f32 %v7916_v57, %v7915_v54  ;;  %v7938_v60 = vpop.f32.mrb[15].mxu1 }
 0x2cb   : > { %v7939_v61 = vadd.f32 %v7938_v60, %v7937_v56 }
 0x2cc   : > { %v6952_v62 = vadd.f32 %v7936_v55, %v6911_v58  ;;  %v6914_v63 = vadd.f32 %v7917_v59, %v6873_v48 }
 0x2ce   : > { %v6955_v0 = vadd.f32 %v7939_v61, %v6914_v63 }
 0x2e6   : > { %v7956_v1 = vpop.f32.mrb[16].mxu0 }
 0x2e7   : > { %v7978_v2 = vpop.f32.mrb[16].mxu1  ;;  %v7957_v3 = vpop.f32.mrb[17].mxu0 }
 0x2e8   : > { %v7958_v4 = vadd.f32 %v7957_v3, %v7956_v1  ;;  %v7979_v5 = vpop.f32.mrb[17].mxu1  ;;  %v7959_v6 = vpop.f32.mrb[18].mxu0 }
 0x2e9   : > { %v7980_v7 = vadd.f32 %v7979_v5, %v7978_v2  ;;  %v7981_v8 = vpop.f32.mrb[18].mxu1  ;;  %v7960_v9 = vpop.f32.mrb[19].mxu0 }
 0x2ea   : > { %v6993_v10 = vadd.f32 %v7958_v4, %v6952_v62  ;;  %v7961_v11 = vadd.f32 %v7960_v9, %v7959_v6  ;;  %v7982_v12 = vpop.f32.mrb[19].mxu1 }
 0x2eb   : > { %v7983_v13 = vadd.f32 %v7982_v12, %v7981_v8 }
 0x2ec   : > { %v7034_v14 = vadd.f32 %v7980_v7, %v6993_v10  ;;  %v6996_v15 = vadd.f32 %v7961_v11, %v6955_v0 }
 0x2ee   : > { %v7037_v16 = vadd.f32 %v7983_v13, %v6996_v15 }
 0x306   : > { %v8000_v17 = vpop.f32.mrb[20].mxu0 }
 0x307   : > { %v8022_v18 = vpop.f32.mrb[20].mxu1  ;;  %v8001_v19 = vpop.f32.mrb[21].mxu0 }
 0x308   : > { %v8023_v20 = vpop.f32.mrb[21].mxu1  ;;  %v8002_v21 = vadd.f32 %v8001_v19, %v8000_v17  ;;  %v8003_v23 = vpop.f32.mrb[22].mxu0 }
 0x309   : > { %v8024_v22 = vadd.f32 %v8023_v20, %v8022_v18  ;;  %v8025_v24 = vpop.f32.mrb[22].mxu1  ;;  %v8004_v25 = vpop.f32.mrb[23].mxu0 }
 0x30a   : > { %v8026_v26 = vpop.f32.mrb[23].mxu1  ;;  %v7075_v27 = vadd.f32 %v8002_v21, %v7034_v14  ;;  %v8005_v28 = vadd.f32 %v8004_v25, %v8003_v23 }
 0x30b   : > { %v8027_v29 = vadd.f32 %v8026_v26, %v8025_v24 }
 0x30c   : > { %v7116_v30 = vadd.f32 %v8024_v22, %v7075_v27  ;;  %v7078_v31 = vadd.f32 %v8005_v28, %v7037_v16 }
 0x30e   : > { %v7119_v32 = vadd.f32 %v8027_v29, %v7078_v31 }
 0x326   : > { %v8044_v33 = vpop.f32.mrb[24].mxu0 }
 0x327   : > { %v8066_v34 = vpop.f32.mrb[24].mxu1  ;;  %v8045_v35 = vpop.f32.mrb[25].mxu0 }
 0x328   : > { %v8046_v36 = vadd.f32 %v8045_v35, %v8044_v33  ;;  %v8067_v37 = vpop.f32.mrb[25].mxu1  ;;  %v8047_v38 = vpop.f32.mrb[26].mxu0 }
 0x329   : > { %v8068_v39 = vadd.f32 %v8067_v37, %v8066_v34  ;;  %v8069_v40 = vpop.f32.mrb[26].mxu1  ;;  %v8048_v41 = vpop.f32.mrb[27].mxu0 }
 0x32a   : > { %v7157_v42 = vadd.f32 %v8046_v36, %v7116_v30  ;;  %v8049_v43 = vadd.f32 %v8048_v41, %v8047_v38  ;;  %v8070_v44 = vpop.f32.mrb[27].mxu1 }
 0x32b   : > { %v8071_v45 = vadd.f32 %v8070_v44, %v8069_v40 }
 0x32c   : > { %v7198_v46 = vadd.f32 %v8068_v39, %v7157_v42  ;;  %v7160_v47 = vadd.f32 %v8049_v43, %v7119_v32 }
 0x32e   : > { %v7201_v48 = vadd.f32 %v8071_v45, %v7160_v47 }
 0x346   : > { %v8088_v49 = vpop.f32.mrb[28].mxu0 }
 0x347   : > { %v8110_v50 = vpop.f32.mrb[28].mxu1  ;;  %v8089_v51 = vpop.f32.mrb[29].mxu0 }
 0x348   : > { %v8111_v52 = vpop.f32.mrb[29].mxu1  ;;  %v8090_v53 = vadd.f32 %v8089_v51, %v8088_v49  ;;  %v8091_v55 = vpop.f32.mrb[30].mxu0 }
 0x349   : > { %v8112_v54 = vadd.f32 %v8111_v52, %v8110_v50  ;;  %v8113_v56 = vpop.f32.mrb[30].mxu1  ;;  %v8092_v57 = vpop.f32.mrb[31].mxu0 }
 0x34a   : > { %v8114_v58 = vpop.f32.mrb[31].mxu1  ;;  %v7239_v59 = vadd.f32 %v8090_v53, %v7198_v46  ;;  %v8093_v60 = vadd.f32 %v8092_v57, %v8091_v55 }
 0x34b   : > { %v8115_v61 = vadd.f32 %v8114_v58, %v8113_v56 }
 0x34c   : > { %v7280_v62 = vadd.f32 %v8112_v54, %v7239_v59  ;;  %v7242_v63 = vadd.f32 %v8093_v60, %v7201_v48 }
 0x34e   : > { %v7283_v0 = vadd.f32 %v8115_v61, %v7242_v63  ;;  %v7286_v1 = vmax.f32 %v7280_v62, 0.0  ;;  %7304 = sbr.rel (!%p8507_p6) target bundleno = 861 (0x35d), region = 88 }
 0x350   : > { %v7287_v2 = vmax.f32 %v7283_v0, 0.0 }
 0x352   : > { %v7762_v3 = vpack.c.bf16 %v7287_v2, %v7286_v1 }
 0x354   : > { %7763 = vst [vmem:[%s4370_s5] sm:$0xff] %v7762_v3  }
 0x35b   : > { %v7325_v4 = vld [vmem:[%s4370_s5] sm:$0xf]  ;;  %v7327_v5 = vld [vmem:[%s4370_s5 + $0x4] sm:$0xf] }
 0x35c   : > { %7326 = vst [vmem:[%s7309_s9] sm:$0xf] %v7325_v4  ;;  %7328 = vst [vmem:[%s7309_s9 + $0x10] sm:$0xf] %v7327_v5 }
 0x35d PF: > { %s13_s16 = sadd.s32 1, %s8450_s16   ;;  %s9972_s12 = smov %s8438_s13 }
 0x35e   : > { %p10_p12 = scmp.ge.s32.totalorder %s13_s16, 6   ;;  %s9973_s13 = smov %s8512_s22 }
 0x35f   : > { %s9974_s14 = smov %s8446_s15  ;;  %s9975_s15 = smov %s9977_s17 }
 0x360   :  { %12 = sbr.rel (!%p10_p12) target bundleno = 3 (0x3), region = 170 }

// kernel: encoder_forward.9
= control target key start
LH: loop header
LB: loop body
LE: loop exit
PB: predicated region body
PF: predicated region fallthrough
CT: control target
= control target key end

     0   :  { %s6420_s21 = smov 0   ;;  %s8301_s0 = inlined_call_operand.vmem [shape: bf16[16,4608], index: 0, kind: input, shape index: {}]   ;;  %s8302_s1 = inlined_call_operand.vmem [shape: bf16[4608,256], index: 1, kind: input, shape index: {}]   ;;  %s8303_s2 = inlined_call_operand.vmem [shape: f32[1,256], index: 2, kind: input, shape index: {}]   ;;  %s8304_s3 = inlined_call_operand.vmem [shape: f32[16,128], index: 3, kind: input, shape index: {}]   ;;  %s8305_s4 = inlined_call_operand.vmem [shape: f32[16,128], index: 4, kind: output, shape index: {0}]   ;;  %s8306_s5 = inlined_call_operand.vmem [shape: f32[16,128], index: 5, kind: output, shape index: {1}]   ;;  %s8307_s6 = inlined_call_operand.vmem [shape: f32[16,128], index: 6, kind: output, shape index: {2}]  }
   0x1 LB: > { %s4774_s22 = sadd.s32 4294967295, %s6383_s21   ;;  %p4778_p0 = scmp.ge.s32.totalorder %s6383_s21, 1  ;;  %s6383_s21 = sphi %s6420_s21, %s17_s21  }
   0x2   : > { %p226_p1 = scmp.lt.s32.totalorder %s6383_s21, 3 }
   0x4   : > { %p227_p2 = pnand %p4778_p0, %p226_p1 }
   0x5   : > { %v5475_v0 = vld [vmem:[%s8302_s1 + $0x4] ss:$8 sps:$4 sm:$0xff] (!%p227_p2)   ;;  %v5479_v2 = vld [vmem:[%s8302_s1] ss:$8 sps:$4 sm:$0xff] (!%p227_p2)   ;;  %v5481_v4 = vld [vmem:[%s8302_s1 + $0x14] ss:$8 sps:$4 sm:$0xff] (!%p227_p2)  }
   0x6   : > { %230 = sbr.rel (%p227_p2) target bundleno = 819 (0x333), region = 36  ;;  %v5477_v1 = vld [vmem:[%s8302_s1 + $0x904] ss:$8 sps:$4 sm:$0xff] (!%p227_p2)   ;;  %3900 = vmatprep.subr.bf16.mxu1 (!%p227_p2), %v5475_v0  ;;  %v5480_v3 = vld [vmem:[%s8302_s1 + $0x900] ss:$8 sps:$4 sm:$0xff] (!%p227_p2)   ;;  %p267_p3 = scmp.lt.s32.totalorder (!%p227_p2), %s4774_s22, 1 }
   0x7   : > { %4269 = vmatprep.subr.bf16.mxu0 (!%p227_p2), %v5477_v1  ;;  %3901 = vmatpush1.bf16.msra.mxu1 (!%p227_p2), %v5479_v2  ;;  %v5483_v5 = vld [vmem:[%s8302_s1 + $0x914] ss:$8 sps:$4 sm:$0xff] (!%p227_p2)   ;;  %v5485_v6 = vld [vmem:[%s8302_s1 + $0x10] ss:$8 sps:$4 sm:$0xff] (!%p227_p2)   ;;  %v5487_v8 = vld [vmem:[%s8302_s1 + $0x24] ss:$8 sps:$4 sm:$0xff] (!%p227_p2)  }
   0x8   : > { %4270 = vmatpush1.bf16.msra.mxu0 (!%p227_p2), %v5480_v3  ;;  %3902 = vmatprep.subr.bf16.mxu1 (!%p227_p2), %v5481_v4  ;;  %v5486_v7 = vld [vmem:[%s8302_s1 + $0x910] ss:$8 sps:$4 sm:$0xff] (!%p227_p2)   ;;  %v5489_v9 = vld [vmem:[%s8302_s1 + $0x924] ss:$8 sps:$4 sm:$0xff] (!%p227_p2)   ;;  %v5491_v10 = vld [vmem:[%s8302_s1 + $0x20] ss:$8 sps:$4 sm:$0xff] (!%p227_p2)  }
   0x9   : > { %4271 = vmatprep.subr.bf16.mxu0 (!%p227_p2), %v5483_v5  ;;  %v5492_v11 = vld [vmem:[%s8302_s1 + $0x920] ss:$8 sps:$4 sm:$0xff] (!%p227_p2)   ;;  %v5493_v12 = vld [vmem:[%s8302_s1 + $0x34] ss:$8 sps:$4 sm:$0xff] (!%p227_p2)   ;;  %v5497_v14 = vld [vmem:[%s8302_s1 + $0x30] ss:$8 sps:$4 sm:$0xff] (!%p227_p2)  }
   0xa   : > { %v5495_v13 = vld [vmem:[%s8302_s1 + $0x934] ss:$8 sps:$4 sm:$0xff] (!%p227_p2)   ;;  %v5498_v15 = vld [vmem:[%s8302_s1 + $0x930] ss:$8 sps:$4 sm:$0xff] (!%p227_p2)   ;;  %v5499_v16 = vld [vmem:[%s8302_s1 + $0x44] ss:$8 sps:$4 sm:$0xff] (!%p227_p2)  }
   0xb   : > { %3903 = vmatpush1.bf16.msra.mxu1 (!%p227_p2), %v5485_v6  ;;  %v5501_v17 = vld [vmem:[%s8302_s1 + $0x944] ss:$8 sps:$4 sm:$0xff] (!%p227_p2)   ;;  %v5503_v18 = vld [vmem:[%s8302_s1 + $0x40] ss:$8 sps:$4 sm:$0xff] (!%p227_p2)   ;;  %v5505_v20 = vld [vmem:[%s8302_s1 + $0x54] ss:$8 sps:$4 sm:$0xff] (!%p227_p2)  }
   0xc   : > { %4272 = vmatpush1.bf16.msra.mxu0 (!%p227_p2), %v5486_v7  ;;  %3904 = vmatprep.subr.bf16.mxu1 (!%p227_p2), %v5487_v8  ;;  %v5504_v19 = vld [vmem:[%s8302_s1 + $0x940] ss:$8 sps:$4 sm:$0xff] (!%p227_p2)   ;;  %v5507_v21 = vld [vmem:[%s8302_s1 + $0x954] ss:$8 sps:$4 sm:$0xff] (!%p227_p2)   ;;  %v5509_v22 = vld [vmem:[%s8302_s1 + $0x50] ss:$8 sps:$4 sm:$0xff] (!%p227_p2)  }
   0xd   : > { %4273 = vmatprep.subr.bf16.mxu0 %v5489_v9  ;;  %v5510_v23 = vld [vmem:[%s8302_s1 + $0x950] ss:$8 sps:$4 sm:$0xff]   ;;  %v5511_v24 = vld [vmem:[%s8302_s1 + $0x64] ss:$8 sps:$4 sm:$0xff]   ;;  %v5515_v26 = vld [vmem:[%s8302_s1 + $0x60] ss:$8 sps:$4 sm:$0xff]  }
   0xe   : > { %v5513_v25 = vld [vmem:[%s8302_s1 + $0x964] ss:$8 sps:$4 sm:$0xff]   ;;  %v5516_v27 = vld [vmem:[%s8302_s1 + $0x960] ss:$8 sps:$4 sm:$0xff]   ;;  %v5517_v28 = vld [vmem:[%s8302_s1 + $0x74] ss:$8 sps:$4 sm:$0xff]  }
   0xf   : > { %3905 = vmatpush1.bf16.msra.mxu1 %v5491_v10  ;;  %v5519_v29 = vld [vmem:[%s8302_s1 + $0x974] ss:$8 sps:$4 sm:$0xff]   ;;  %v5521_v30 = vld [vmem:[%s8302_s1 + $0x70] ss:$8 sps:$4 sm:$0xff]   ;;  %v5523_v32 = vld [vmem:[%s8302_s1 + $0x84] ss:$8 sps:$4 sm:$0xff]  }
  0x10   : > { %4274 = vmatpush1.bf16.msra.mxu0 %v5492_v11  ;;  %3906 = vmatprep.subr.bf16.mxu1 %v5493_v12  ;;  %v5522_v31 = vld [vmem:[%s8302_s1 + $0x970] ss:$8 sps:$4 sm:$0xff]   ;;  %v5525_v33 = vld [vmem:[%s8302_s1 + $0x984] ss:$8 sps:$4 sm:$0xff]   ;;  %v5527_v34 = vld [vmem:[%s8302_s1 + $0x80] ss:$8 sps:$4 sm:$0xff]  }
  0x11   : > { %4275 = vmatprep.subr.bf16.mxu0 %v5495_v13  ;;  %v5528_v35 = vld [vmem:[%s8302_s1 + $0x980] ss:$8 sps:$4 sm:$0xff]   ;;  %s8309_s22 = smov (!%p267_p3, %s4774_s22), 1  ;;  %v5529_v36 = vld [vmem:[%s8302_s1 + $0x94] ss:$8 sps:$4 sm:$0xff]  }
  0x12   : > { %v5531_v37 = vld [vmem:[%s8302_s1 + $0x994] ss:$8 sps:$4 sm:$0xff]   ;;  %v5533_v38 = vld [vmem:[%s8302_s1 + $0x90] ss:$8 sps:$4 sm:$0xff]   ;;  %s5466_s11 = smul.u32 144, %s8309_s22  ;;  %s4780_s13 = sshll.u32 %s8309_s22, 3 }
  0x13   : > { %3907 = vmatpush1.bf16.msra.mxu1 %v5497_v14  ;;  %v5534_v39 = vld [vmem:[%s8302_s1 + $0x990] ss:$8 sps:$4 sm:$0xff]   ;;  %v5535_v40 = vld [vmem:[%s8302_s1 + $0xa4] ss:$8 sps:$4 sm:$0xff]   ;;  %v5539_v42 = vld [vmem:[%s8302_s1 + $0xa0] ss:$8 sps:$4 sm:$0xff]   ;;  %s283_s16 = scalar_lea.vmem %s8306_s5, %s4780_s13  ;;  %s287_s19 = scalar_lea.vmem %s8307_s6, %s4780_s13 }
  0x14   : > { %4276 = vmatpush1.bf16.msra.mxu0 %v5498_v15  ;;  %3908 = vmatprep.subr.bf16.mxu1 %v5499_v16  ;;  %v5537_v41 = vld [vmem:[%s8302_s1 + $0x9a4] ss:$8 sps:$4 sm:$0xff]   ;;  %v5540_v43 = vld [vmem:[%s8302_s1 + $0x9a0] ss:$8 sps:$4 sm:$0xff]   ;;  %s6570_s26 = scalar_lea.vmem %s8301_s0, %s5466_s11  ;;  %v5541_v44 = vld [vmem:[%s8302_s1 + $0xb4] ss:$8 sps:$4 sm:$0xff]   ;;  %s275_s23 = scalar_lea.vmem %s8304_s3, %s4780_s13 }
  0x15   : > { %4277 = vmatprep.subr.bf16.mxu0 %v5501_v17  ;;  %v5543_v45 = vld [vmem:[%s8302_s1 + $0x9b4] ss:$8 sps:$4 sm:$0xff]   ;;  %v288_v46 = vld [vmem:[%s6570_s26] sm:$0xff]  ;;  %v5545_v47 = vld [vmem:[%s8302_s1 + $0xb0] ss:$8 sps:$4 sm:$0xff]   ;;  %s279_s27 = scalar_lea.vmem %s8305_s4, %s4780_s13 }
  0x16   : > { %v4785_v48 = vcombine.high %v288_v46, %v288_v46  ;;  %v5546_v49 = vld [vmem:[%s8302_s1 + $0x9b0] ss:$8 sps:$4 sm:$0xff]   ;;  %v297_v50 = vld [vmem:[%s6570_s26 + $0x48] sm:$0xff]  ;;  %v5553_v56 = vld [vmem:[%s8302_s1 + $0xd4] ss:$8 sps:$4 sm:$0xff]   ;;  %v4784_v6 = vcombine.low %v288_v46, %v288_v46 }
  0x17   : > { %3909 = vmatpush1.bf16.msra.mxu1 %v5503_v18  ;;  %v5547_v51 = vld [vmem:[%s8302_s1 + $0xc4] ss:$8 sps:$4 sm:$0xff]   ;;  %v4803_v53 = vcombine.high %v297_v50, %v297_v50  ;;  %v5551_v54 = vld [vmem:[%s8302_s1 + $0xc0] ss:$8 sps:$4 sm:$0xff]   ;;  %v5555_v57 = vld [vmem:[%s8302_s1 + $0x9d4] ss:$8 sps:$4 sm:$0xff]   ;;  %v4802_v7 = vcombine.low %v297_v50, %v297_v50 }
  0x18   : > { %4278 = vmatpush1.bf16.msra.mxu0 %v5504_v19  ;;  %3910 = vmatprep.subr.bf16.mxu1 %v5505_v20  ;;  %v5549_v52 = vld [vmem:[%s8302_s1 + $0x9c4] ss:$8 sps:$4 sm:$0xff]   ;;  %v5552_v55 = vld [vmem:[%s8302_s1 + $0x9c0] ss:$8 sps:$4 sm:$0xff]   ;;  %v5557_v58 = vld [vmem:[%s8302_s1 + $0xd0] ss:$8 sps:$4 sm:$0xff]  }
  0x19   : > { %4279 = vmatprep.subr.bf16.mxu0 %v5507_v21  ;;  %3932 = vmatprep.mubr.bf16.mxu1 %v4785_v48  ;;  %v5558_v59 = vld [vmem:[%s8302_s1 + $0x9d0] ss:$8 sps:$4 sm:$0xff]   ;;  %v5559_v60 = vld [vmem:[%s8302_s1 + $0xe4] ss:$8 sps:$4 sm:$0xff]   ;;  %v5563_v62 = vld [vmem:[%s8302_s1 + $0xe0] ss:$8 sps:$4 sm:$0xff]  }
  0x1a   : > { %4301 = vmatprep.mubr.bf16.mxu0 %v4803_v53  ;;  %v5561_v61 = vld [vmem:[%s8302_s1 + $0x9e4] ss:$8 sps:$4 sm:$0xff]   ;;  %v5564_v63 = vld [vmem:[%s8302_s1 + $0x9e0] ss:$8 sps:$4 sm:$0xff]   ;;  %v5565_v0 = vld [vmem:[%s8302_s1 + $0xf4] ss:$8 sps:$4 sm:$0xff]  }
  0x1b   : > { %3911 = vmatpush1.bf16.msra.mxu1 %v5509_v22  ;;  %v5567_v1 = vld [vmem:[%s8302_s1 + $0x9f4] ss:$8 sps:$4 sm:$0xff]   ;;  %v5569_v2 = vld [vmem:[%s8302_s1 + $0xf0] ss:$8 sps:$4 sm:$0xff]   ;;  %v5575_v4 = vld [vmem:[%s8302_s1 + $0x104] ss:$8 sps:$4 sm:$0xff]  }
  0x1c   : > { %4280 = vmatpush1.bf16.msra.mxu0 %v5510_v23  ;;  %3912 = vmatprep.subr.bf16.mxu1 %v5511_v24  ;;  %v5570_v3 = vld [vmem:[%s8302_s1 + $0x9f0] ss:$8 sps:$4 sm:$0xff]   ;;  %v5580_v5 = vld [vmem:[%s8302_s1 + $0xa04] ss:$8 sps:$4 sm:$0xff]   ;;  %v5573_v8 = vld [vmem:[%s8302_s1 + $0x100] ss:$8 sps:$4 sm:$0xff]  }
  0x1d   : > { %4281 = vmatprep.subr.bf16.mxu0 %v5513_v25  ;;  %v5578_v9 = vld [vmem:[%s8302_s1 + $0xa00] ss:$8 sps:$4 sm:$0xff]   ;;  %v5583_v10 = vld [vmem:[%s8302_s1 + $0x114] ss:$8 sps:$4 sm:$0xff]   ;;  %v5581_v12 = vld [vmem:[%s8302_s1 + $0x110] ss:$8 sps:$4 sm:$0xff]  }
  0x1e   : > { %v5586_v11 = vld [vmem:[%s8302_s1 + $0xa14] ss:$8 sps:$4 sm:$0xff]   ;;  %v5584_v13 = vld [vmem:[%s8302_s1 + $0xa10] ss:$8 sps:$4 sm:$0xff]   ;;  %v5589_v14 = vld [vmem:[%s8302_s1 + $0x124] ss:$8 sps:$4 sm:$0xff]  }
  0x1f   : > { %3913 = vmatpush1.bf16.msra.mxu1 %v5515_v26  ;;  %v5592_v15 = vld [vmem:[%s8302_s1 + $0xa24] ss:$8 sps:$4 sm:$0xff]   ;;  %v5587_v16 = vld [vmem:[%s8302_s1 + $0x120] ss:$8 sps:$4 sm:$0xff]   ;;  %v5595_v18 = vld [vmem:[%s8302_s1 + $0x134] ss:$8 sps:$4 sm:$0xff]  }
  0x20   : > { %4282 = vmatpush1.bf16.msra.mxu0 %v5516_v27  ;;  %3914 = vmatprep.subr.bf16.mxu1 %v5517_v28  ;;  %v5590_v17 = vld [vmem:[%s8302_s1 + $0xa20] ss:$8 sps:$4 sm:$0xff]   ;;  %v5598_v19 = vld [vmem:[%s8302_s1 + $0xa34] ss:$8 sps:$4 sm:$0xff]   ;;  %v5593_v20 = vld [vmem:[%s8302_s1 + $0x130] ss:$8 sps:$4 sm:$0xff]  }
  0x21   : > { %4283 = vmatprep.subr.bf16.mxu0 %v5519_v29  ;;  %v5596_v21 = vld [vmem:[%s8302_s1 + $0xa30] ss:$8 sps:$4 sm:$0xff]   ;;  %v5601_v22 = vld [vmem:[%s8302_s1 + $0x144] ss:$8 sps:$4 sm:$0xff]   ;;  %v5599_v24 = vld [vmem:[%s8302_s1 + $0x140] ss:$8 sps:$4 sm:$0xff]  }
  0x22   : > { %v5604_v23 = vld [vmem:[%s8302_s1 + $0xa44] ss:$8 sps:$4 sm:$0xff]   ;;  %v5602_v25 = vld [vmem:[%s8302_s1 + $0xa40] ss:$8 sps:$4 sm:$0xff]   ;;  %v5607_v26 = vld [vmem:[%s8302_s1 + $0x154] ss:$8 sps:$4 sm:$0xff]  }
  0x23   : > { %3915 = vmatpush1.bf16.msra.mxu1 %v5521_v30  ;;  %v5610_v27 = vld [vmem:[%s8302_s1 + $0xa54] ss:$8 sps:$4 sm:$0xff]   ;;  %v5605_v28 = vld [vmem:[%s8302_s1 + $0x150] ss:$8 sps:$4 sm:$0xff]   ;;  %v5613_v30 = vld [vmem:[%s8302_s1 + $0x164] ss:$8 sps:$4 sm:$0xff]  }
  0x24   : > { %4284 = vmatpush1.bf16.msra.mxu0 %v5522_v31  ;;  %3916 = vmatprep.subr.bf16.mxu1 %v5523_v32  ;;  %v5608_v29 = vld [vmem:[%s8302_s1 + $0xa50] ss:$8 sps:$4 sm:$0xff]   ;;  %v5616_v31 = vld [vmem:[%s8302_s1 + $0xa64] ss:$8 sps:$4 sm:$0xff]   ;;  %v5631_v46 = vld [vmem:[%s8302_s1 + $0x194] ss:$8 sps:$4 sm:$0xff]  }
  0x25   : > { %4285 = vmatprep.subr.bf16.mxu0 %v5525_v33  ;;  %v6713_v32 = vld [vmem:[%s6570_s26 + $0x8] sm:$0xff]  ;;  %v5629_v48 = vld [vmem:[%s8302_s1 + $0x190] ss:$8 sps:$4 sm:$0xff]  }
  0x26   : > { %v5611_v33 = vld [vmem:[%s8302_s1 + $0x160] ss:$8 sps:$4 sm:$0xff]   ;;  %v5637_v50 = vld [vmem:[%s8302_s1 + $0x1a4] ss:$8 sps:$4 sm:$0xff]  }
  0x27   : > { %3917 = vmatpush1.bf16.msra.mxu1 %v5527_v34  ;;  %v5614_v34 = vld [vmem:[%s8302_s1 + $0xa60] ss:$8 sps:$4 sm:$0xff]  }
  0x28   : > { %4286 = vmatpush1.bf16.msra.mxu0 %v5528_v35  ;;  %3918 = vmatprep.subr.bf16.mxu1 %v5529_v36  ;;  %v4787_v35 = vcombine.high %v6713_v32, %v6713_v32  ;;  %v6724_v36 = vld [vmem:[%s6570_s26 + $0x50] sm:$0xff]  ;;  %v5638_v53 = vld [vmem:[%s8302_s1 + $0xaa0] ss:$8 sps:$4 sm:$0xff]  }
  0x29   : > { %4287 = vmatprep.subr.bf16.mxu0 %v5531_v37  ;;  %v5619_v37 = vld [vmem:[%s8302_s1 + $0x174] ss:$8 sps:$4 sm:$0xff]  }
  0x2b   : > { %3919 = vmatpush1.bf16.msra.mxu1 %v5533_v38  ;;  %v4805_v38 = vcombine.high %v6724_v36, %v6724_v36 }
  0x2c   : > { %4288 = vmatpush1.bf16.msra.mxu0 %v5534_v39  ;;  %3920 = vmatprep.subr.bf16.mxu1 %v5535_v40  ;;  %v5622_v39 = vld [vmem:[%s8302_s1 + $0xa74] ss:$8 sps:$4 sm:$0xff]   ;;  %v5617_v40 = vld [vmem:[%s8302_s1 + $0x170] ss:$8 sps:$4 sm:$0xff]  }
  0x2d   : > { %4289 = vmatprep.subr.bf16.mxu0 %v5537_v41  ;;  %v5620_v41 = vld [vmem:[%s8302_s1 + $0xa70] ss:$8 sps:$4 sm:$0xff]  }
  0x2f   : > { %3921 = vmatpush1.bf16.msra.mxu1 %v5539_v42  ;;  %v5625_v42 = vld [vmem:[%s8302_s1 + $0x184] ss:$8 sps:$4 sm:$0xff]  }
  0x30   : > { %4290 = vmatpush1.bf16.msra.mxu0 %v5540_v43  ;;  %3922 = vmatprep.subr.bf16.mxu1 %v5541_v44  ;;  %v5628_v43 = vld [vmem:[%s8302_s1 + $0xa84] ss:$8 sps:$4 sm:$0xff]   ;;  %v5623_v44 = vld [vmem:[%s8302_s1 + $0x180] ss:$8 sps:$4 sm:$0xff]  }
  0x31   : > { %4291 = vmatprep.subr.bf16.mxu0 %v5543_v45  ;;  %v5626_v45 = vld [vmem:[%s8302_s1 + $0xa80] ss:$8 sps:$4 sm:$0xff]  }
  0x33   : > { %3923 = vmatpush1.bf16.msra.mxu1 %v5545_v47  ;;  %v5634_v47 = vld [vmem:[%s8302_s1 + $0xa94] ss:$8 sps:$4 sm:$0xff]  }
  0x34   : > { %4292 = vmatpush1.bf16.msra.mxu0 %v5546_v49  ;;  %3924 = vmatprep.subr.bf16.mxu1 %v5547_v51  ;;  %v5632_v49 = vld [vmem:[%s8302_s1 + $0xa90] ss:$8 sps:$4 sm:$0xff]   ;;  %v5640_v51 = vld [vmem:[%s8302_s1 + $0xaa4] ss:$8 sps:$4 sm:$0xff]  }
  0x35   : > { %4293 = vmatprep.subr.bf16.mxu0 %v5549_v52  ;;  %v5635_v52 = vld [vmem:[%s8302_s1 + $0x1a0] ss:$8 sps:$4 sm:$0xff]  }
  0x37   : > { %3925 = vmatpush1.bf16.msra.mxu1 %v5551_v54  ;;  %v5643_v54 = vld [vmem:[%s8302_s1 + $0x1b4] ss:$8 sps:$4 sm:$0xff]  }
  0x38   : > { %4294 = vmatpush1.bf16.msra.mxu0 %v5552_v55  ;;  %3926 = vmatprep.subr.bf16.mxu1 %v5553_v56  ;;  %v5646_v55 = vld [vmem:[%s8302_s1 + $0xab4] ss:$8 sps:$4 sm:$0xff]   ;;  %v5641_v56 = vld [vmem:[%s8302_s1 + $0x1b0] ss:$8 sps:$4 sm:$0xff]  }
  0x39   : > { %4295 = vmatprep.subr.bf16.mxu0 %v5555_v57  ;;  %v5644_v57 = vld [vmem:[%s8302_s1 + $0xab0] ss:$8 sps:$4 sm:$0xff]  }
  0x3b   : > { %3927 = vmatpush1.bf16.msra.mxu1 %v5557_v58  ;;  %v5649_v58 = vld [vmem:[%s8302_s1 + $0x1c4] ss:$8 sps:$4 sm:$0xff]  }
  0x3c   : > { %4296 = vmatpush1.bf16.msra.mxu0 %v5558_v59  ;;  %3928 = vmatprep.subr.bf16.mxu1 %v5559_v60  ;;  %v5652_v59 = vld [vmem:[%s8302_s1 + $0xac4] ss:$8 sps:$4 sm:$0xff]   ;;  %v5647_v60 = vld [vmem:[%s8302_s1 + $0x1c0] ss:$8 sps:$4 sm:$0xff]  }
  0x3d   : > { %4297 = vmatprep.subr.bf16.mxu0 %v5561_v61  ;;  %v5650_v61 = vld [vmem:[%s8302_s1 + $0xac0] ss:$8 sps:$4 sm:$0xff]  }
  0x3f   : > { %3929 = vmatpush1.bf16.msra.mxu1 %v5563_v62  ;;  %v5655_v62 = vld [vmem:[%s8302_s1 + $0x1d4] ss:$8 sps:$4 sm:$0xff]  }
  0x40   : > { %4298 = vmatpush1.bf16.msra.mxu0 %v5564_v63  ;;  %3930 = vmatprep.subr.bf16.mxu1 %v5565_v0  ;;  %v5658_v63 = vld [vmem:[%s8302_s1 + $0xad4] ss:$8 sps:$4 sm:$0xff]   ;;  %v5653_v0 = vld [vmem:[%s8302_s1 + $0x1d0] ss:$8 sps:$4 sm:$0xff]  }
  0x41   : > { %4299 = vmatprep.subr.bf16.mxu0 %v5567_v1  ;;  %v5656_v1 = vld [vmem:[%s8302_s1 + $0xad0] ss:$8 sps:$4 sm:$0xff]  }
  0x43   : > { %3931 = vmatpush1.bf16.msra.mxu1 %v5569_v2  ;;  %v5661_v2 = vld [vmem:[%s8302_s1 + $0x1e4] ss:$8 sps:$4 sm:$0xff]  }
  0x44   : > { %4300 = vmatpush1.bf16.msra.mxu0 %v5570_v3  ;;  %3941 = vmatprep.subr.bf16.mxu1 %v5575_v4  ;;  %v5664_v3 = vld [vmem:[%s8302_s1 + $0xae4] ss:$8 sps:$4 sm:$0xff]   ;;  %v5659_v4 = vld [vmem:[%s8302_s1 + $0x1e0] ss:$8 sps:$4 sm:$0xff]  }
  0x45   : > { %4310 = vmatprep.subr.bf16.mxu0 %v5580_v5  ;;  %v5662_v5 = vld [vmem:[%s8302_s1 + $0xae0] ss:$8 sps:$4 sm:$0xff]  }
  0x46   : > { %3933 = vmatmul.mubr.bf16.vlgmr.msra.gmra.mrb[0].mxu1 %v4784_v6  ;;  %v5667_v6 = vld [vmem:[%s8302_s1 + $0x1f4] ss:$8 sps:$4 sm:$0xff]  }
  0x47   : > { %4302 = vmatmul.mubr.bf16.vlgmr.msra.gmra.mrb[0].mxu0 %v4802_v7  ;;  %3942 = vmatpush1.bf16.msra.mxu1 %v5573_v8  ;;  %v5670_v7 = vld [vmem:[%s8302_s1 + $0xaf4] ss:$8 sps:$4 sm:$0xff]   ;;  %v5665_v8 = vld [vmem:[%s8302_s1 + $0x1f0] ss:$8 sps:$4 sm:$0xff]  }
  0x48   : > { %4311 = vmatpush1.bf16.msra.mxu0 %v5578_v9  ;;  %3943 = vmatprep.subr.bf16.mxu1 %v5583_v10  ;;  %v5668_v9 = vld [vmem:[%s8302_s1 + $0xaf0] ss:$8 sps:$4 sm:$0xff]   ;;  %v5675_v10 = vld [vmem:[%s8302_s1 + $0x204] ss:$8 sps:$4 sm:$0xff]  }
  0x49   : > { %4312 = vmatprep.subr.bf16.mxu0 %v5586_v11  ;;  %3973 = vmatprep.mubr.bf16.mxu1 %v4787_v35  ;;  %v5680_v11 = vld [vmem:[%s8302_s1 + $0xb04] ss:$8 sps:$4 sm:$0xff]   ;;  %v5702_v35 = vld [vmem:[%s8302_s1 + $0xb40] ss:$8 sps:$4 sm:$0xff]  }
  0x4a   : > { %4342 = vmatprep.mubr.bf16.mxu0 %v4805_v38  ;;  %v5705_v38 = vld [vmem:[%s8302_s1 + $0x250] ss:$8 sps:$4 sm:$0xff]  }
  0x4b   : > { %3944 = vmatpush1.bf16.msra.mxu1 %v5581_v12  ;;  %v4786_v12 = vcombine.low %v6713_v32, %v6713_v32  ;;  %v5701_v32 = vld [vmem:[%s8302_s1 + $0x244] ss:$8 sps:$4 sm:$0xff]  }
  0x4c   : > { %4313 = vmatpush1.bf16.msra.mxu0 %v5584_v13  ;;  %3945 = vmatprep.subr.bf16.mxu1 %v5589_v14  ;;  %v5673_v13 = vld [vmem:[%s8302_s1 + $0x200] ss:$8 sps:$4 sm:$0xff]   ;;  %v4804_v14 = vcombine.low %v6724_v36, %v6724_v36  ;;  %v5707_v36 = vld [vmem:[%s8302_s1 + $0x254] ss:$8 sps:$4 sm:$0xff]  }
  0x4d   : > { %4314 = vmatprep.subr.bf16.mxu0 %v5592_v15  ;;  %v5678_v15 = vld [vmem:[%s8302_s1 + $0xb00] ss:$8 sps:$4 sm:$0xff]  }
  0x4f   : > { %3946 = vmatpush1.bf16.msra.mxu1 %v5587_v16  ;;  %v5683_v16 = vld [vmem:[%s8302_s1 + $0x214] ss:$8 sps:$4 sm:$0xff]  }
  0x50   : > { %4315 = vmatpush1.bf16.msra.mxu0 %v5590_v17  ;;  %3947 = vmatprep.subr.bf16.mxu1 %v5595_v18  ;;  %v5686_v17 = vld [vmem:[%s8302_s1 + $0xb14] ss:$8 sps:$4 sm:$0xff]  }
  0x51   : > { %4316 = vmatprep.subr.bf16.mxu0 %v5598_v19  ;;  %v6859_v18 = vld [vmem:[%s6570_s26 + $0x10] sm:$0xff] }
  0x52   : > { %v4789_v19 = vcombine.high %v6859_v18, %v6859_v18 }
  0x53   : > { %3948 = vmatpush1.bf16.msra.mxu1 %v5593_v20  ;;  %v6864_v20 = vld [vmem:[%s6570_s26 + $0x58] sm:$0xff] }
  0x54   : > { %4317 = vmatpush1.bf16.msra.mxu0 %v5596_v21  ;;  %3949 = vmatprep.subr.bf16.mxu1 %v5601_v22  ;;  %v5681_v21 = vld [vmem:[%s8302_s1 + $0x210] ss:$8 sps:$4 sm:$0xff]  }
  0x55   : > { %4318 = vmatprep.subr.bf16.mxu0 %v5604_v23  ;;  %v5684_v22 = vld [vmem:[%s8302_s1 + $0xb10] ss:$8 sps:$4 sm:$0xff]   ;;  %v4807_v23 = vcombine.high %v6864_v20, %v6864_v20 }
  0x57   : > { %3950 = vmatpush1.bf16.msra.mxu1 %v5599_v24  ;;  %v5689_v24 = vld [vmem:[%s8302_s1 + $0x224] ss:$8 sps:$4 sm:$0xff]  }
  0x58   : > { %4319 = vmatpush1.bf16.msra.mxu0 %v5602_v25  ;;  %3951 = vmatprep.subr.bf16.mxu1 %v5607_v26  ;;  %v5692_v25 = vld [vmem:[%s8302_s1 + $0xb24] ss:$8 sps:$4 sm:$0xff]   ;;  %v5687_v26 = vld [vmem:[%s8302_s1 + $0x220] ss:$8 sps:$4 sm:$0xff]  }
  0x59   : > { %4320 = vmatprep.subr.bf16.mxu0 %v5610_v27  ;;  %v5690_v27 = vld [vmem:[%s8302_s1 + $0xb20] ss:$8 sps:$4 sm:$0xff]  }
  0x5b   : > { %3952 = vmatpush1.bf16.msra.mxu1 %v5605_v28  ;;  %v5695_v28 = vld [vmem:[%s8302_s1 + $0x234] ss:$8 sps:$4 sm:$0xff]  }
  0x5c   : > { %4321 = vmatpush1.bf16.msra.mxu0 %v5608_v29  ;;  %3953 = vmatprep.subr.bf16.mxu1 %v5613_v30  ;;  %v5698_v29 = vld [vmem:[%s8302_s1 + $0xb34] ss:$8 sps:$4 sm:$0xff]   ;;  %v5693_v30 = vld [vmem:[%s8302_s1 + $0x230] ss:$8 sps:$4 sm:$0xff]  }
  0x5d   : > { %4322 = vmatprep.subr.bf16.mxu0 %v5616_v31  ;;  %v5696_v31 = vld [vmem:[%s8302_s1 + $0xb30] ss:$8 sps:$4 sm:$0xff]  }
  0x5f   : > { %3954 = vmatpush1.bf16.msra.mxu1 %v5611_v33  ;;  %v5704_v33 = vld [vmem:[%s8302_s1 + $0xb44] ss:$8 sps:$4 sm:$0xff]  }
  0x60   : > { %4323 = vmatpush1.bf16.msra.mxu0 %v5614_v34  ;;  %3955 = vmatprep.subr.bf16.mxu1 %v5619_v37  ;;  %v5699_v34 = vld [vmem:[%s8302_s1 + $0x240] ss:$8 sps:$4 sm:$0xff]   ;;  %v5710_v37 = vld [vmem:[%s8302_s1 + $0xb54] ss:$8 sps:$4 sm:$0xff]  }
  0x61   : > { %4324 = vmatprep.subr.bf16.mxu0 %v5622_v39  ;;  %v5708_v39 = vld [vmem:[%s8302_s1 + $0xb50] ss:$8 sps:$4 sm:$0xff]  }
  0x63   : > { %3956 = vmatpush1.bf16.msra.mxu1 %v5617_v40  ;;  %v5713_v40 = vld [vmem:[%s8302_s1 + $0x264] ss:$8 sps:$4 sm:$0xff]  }
  0x64   : > { %4325 = vmatpush1.bf16.msra.mxu0 %v5620_v41  ;;  %3957 = vmatprep.subr.bf16.mxu1 %v5625_v42  ;;  %v5716_v41 = vld [vmem:[%s8302_s1 + $0xb64] ss:$8 sps:$4 sm:$0xff]   ;;  %v5711_v42 = vld [vmem:[%s8302_s1 + $0x260] ss:$8 sps:$4 sm:$0xff]  }
  0x65   : > { %4326 = vmatprep.subr.bf16.mxu0 %v5628_v43  ;;  %v5714_v43 = vld [vmem:[%s8302_s1 + $0xb60] ss:$8 sps:$4 sm:$0xff]  }
  0x67   : > { %3958 = vmatpush1.bf16.msra.mxu1 %v5623_v44  ;;  %v5719_v44 = vld [vmem:[%s8302_s1 + $0x274] ss:$8 sps:$4 sm:$0xff]  }
  0x68   : > { %4327 = vmatpush1.bf16.msra.mxu0 %v5626_v45  ;;  %3959 = vmatprep.subr.bf16.mxu1 %v5631_v46  ;;  %v5722_v45 = vld [vmem:[%s8302_s1 + $0xb74] ss:$8 sps:$4 sm:$0xff]   ;;  %v5717_v46 = vld [vmem:[%s8302_s1 + $0x270] ss:$8 sps:$4 sm:$0xff]  }
  0x69   : > { %4328 = vmatprep.subr.bf16.mxu0 %v5634_v47  ;;  %v5720_v47 = vld [vmem:[%s8302_s1 + $0xb70] ss:$8 sps:$4 sm:$0xff]  }
  0x6b   : > { %3960 = vmatpush1.bf16.msra.mxu1 %v5629_v48  ;;  %v5725_v48 = vld [vmem:[%s8302_s1 + $0x284] ss:$8 sps:$4 sm:$0xff]  }
  0x6c   : > { %4329 = vmatpush1.bf16.msra.mxu0 %v5632_v49  ;;  %3961 = vmatprep.subr.bf16.mxu1 %v5637_v50  ;;  %v5728_v49 = vld [vmem:[%s8302_s1 + $0xb84] ss:$8 sps:$4 sm:$0xff]   ;;  %v5723_v50 = vld [vmem:[%s8302_s1 + $0x280] ss:$8 sps:$4 sm:$0xff]  }
  0x6d   : > { %4330 = vmatprep.subr.bf16.mxu0 %v5640_v51  ;;  %v5726_v51 = vld [vmem:[%s8302_s1 + $0xb80] ss:$8 sps:$4 sm:$0xff]  }
  0x6f   : > { %3962 = vmatpush1.bf16.msra.mxu1 %v5635_v52  ;;  %v5731_v52 = vld [vmem:[%s8302_s1 + $0x294] ss:$8 sps:$4 sm:$0xff]  }
  0x70   : > { %4331 = vmatpush1.bf16.msra.mxu0 %v5638_v53  ;;  %3963 = vmatprep.subr.bf16.mxu1 %v5643_v54  ;;  %v5734_v53 = vld [vmem:[%s8302_s1 + $0xb94] ss:$8 sps:$4 sm:$0xff]   ;;  %v5729_v54 = vld [vmem:[%s8302_s1 + $0x290] ss:$8 sps:$4 sm:$0xff]  }
  0x71   : > { %4332 = vmatprep.subr.bf16.mxu0 %v5646_v55  ;;  %v5732_v55 = vld [vmem:[%s8302_s1 + $0xb90] ss:$8 sps:$4 sm:$0xff]  }
  0x73   : > { %3964 = vmatpush1.bf16.msra.mxu1 %v5641_v56  ;;  %v5737_v56 = vld [vmem:[%s8302_s1 + $0x2a4] ss:$8 sps:$4 sm:$0xff]  }
  0x74   : > { %4333 = vmatpush1.bf16.msra.mxu0 %v5644_v57  ;;  %3965 = vmatprep.subr.bf16.mxu1 %v5649_v58  ;;  %v5740_v57 = vld [vmem:[%s8302_s1 + $0xba4] ss:$8 sps:$4 sm:$0xff]   ;;  %v5735_v58 = vld [vmem:[%s8302_s1 + $0x2a0] ss:$8 sps:$4 sm:$0xff]  }
  0x75   : > { %4334 = vmatprep.subr.bf16.mxu0 %v5652_v59  ;;  %v5738_v59 = vld [vmem:[%s8302_s1 + $0xba0] ss:$8 sps:$4 sm:$0xff]  }
  0x77   : > { %3966 = vmatpush1.bf16.msra.mxu1 %v5647_v60  ;;  %v5743_v60 = vld [vmem:[%s8302_s1 + $0x2b4] ss:$8 sps:$4 sm:$0xff]  }
  0x78   : > { %4335 = vmatpush1.bf16.msra.mxu0 %v5650_v61  ;;  %3967 = vmatprep.subr.bf16.mxu1 %v5655_v62  ;;  %v5746_v61 = vld [vmem:[%s8302_s1 + $0xbb4] ss:$8 sps:$4 sm:$0xff]   ;;  %v5741_v62 = vld [vmem:[%s8302_s1 + $0x2b0] ss:$8 sps:$4 sm:$0xff]  }
  0x79   : > { %4336 = vmatprep.subr.bf16.mxu0 %v5658_v63  ;;  %v5744_v63 = vld [vmem:[%s8302_s1 + $0xbb0] ss:$8 sps:$4 sm:$0xff]  }
  0x7b   : > { %3968 = vmatpush1.bf16.msra.mxu1 %v5653_v0  ;;  %v5749_v0 = vld [vmem:[%s8302_s1 + $0x2c4] ss:$8 sps:$4 sm:$0xff]  }
  0x7c   : > { %4337 = vmatpush1.bf16.msra.mxu0 %v5656_v1  ;;  %3969 = vmatprep.subr.bf16.mxu1 %v5661_v2  ;;  %v5752_v1 = vld [vmem:[%s8302_s1 + $0xbc4] ss:$8 sps:$4 sm:$0xff]   ;;  %v5747_v2 = vld [vmem:[%s8302_s1 + $0x2c0] ss:$8 sps:$4 sm:$0xff]  }
  0x7d   : > { %4338 = vmatprep.subr.bf16.mxu0 %v5664_v3  ;;  %v5750_v3 = vld [vmem:[%s8302_s1 + $0xbc0] ss:$8 sps:$4 sm:$0xff]  }
  0x7f   : > { %3970 = vmatpush1.bf16.msra.mxu1 %v5659_v4  ;;  %v5755_v4 = vld [vmem:[%s8302_s1 + $0x2d4] ss:$8 sps:$4 sm:$0xff]  }
  0x80   : > { %4339 = vmatpush1.bf16.msra.mxu0 %v5662_v5  ;;  %3971 = vmatprep.subr.bf16.mxu1 %v5667_v6  ;;  %v5758_v5 = vld [vmem:[%s8302_s1 + $0xbd4] ss:$8 sps:$4 sm:$0xff]   ;;  %v5753_v6 = vld [vmem:[%s8302_s1 + $0x2d0] ss:$8 sps:$4 sm:$0xff]  }
  0x81   : > { %4340 = vmatprep.subr.bf16.mxu0 %v5670_v7  ;;  %v5756_v7 = vld [vmem:[%s8302_s1 + $0xbd0] ss:$8 sps:$4 sm:$0xff]  }
  0x83   : > { %3972 = vmatpush1.bf16.msra.mxu1 %v5665_v8  ;;  %v5761_v8 = vld [vmem:[%s8302_s1 + $0x2e4] ss:$8 sps:$4 sm:$0xff]  }
  0x84   : > { %4341 = vmatpush1.bf16.msra.mxu0 %v5668_v9  ;;  %3982 = vmatprep.subr.bf16.mxu1 %v5675_v10  ;;  %v5764_v9 = vld [vmem:[%s8302_s1 + $0xbe4] ss:$8 sps:$4 sm:$0xff]   ;;  %v5759_v10 = vld [vmem:[%s8302_s1 + $0x2e0] ss:$8 sps:$4 sm:$0xff]  }
  0x85   : > { %4351 = vmatprep.subr.bf16.mxu0 %v5680_v11  ;;  %v5762_v11 = vld [vmem:[%s8302_s1 + $0xbe0] ss:$8 sps:$4 sm:$0xff]  }
  0x86   : > { %3974 = vmatmul.mubr.bf16.vlgmr.msra.gmra.mrb[0].mxu1 %v4786_v12  ;;  %v5767_v12 = vld [vmem:[%s8302_s1 + $0x2f4] ss:$8 sps:$4 sm:$0xff]  }
  0x87   : > { %4343 = vmatmul.mubr.bf16.vlgmr.msra.gmra.mrb[0].mxu0 %v4804_v14  ;;  %3983 = vmatpush1.bf16.msra.mxu1 %v5673_v13  ;;  %v5770_v13 = vld [vmem:[%s8302_s1 + $0xbf4] ss:$8 sps:$4 sm:$0xff]   ;;  %v5765_v14 = vld [vmem:[%s8302_s1 + $0x2f0] ss:$8 sps:$4 sm:$0xff]  }
  0x88   : > { %4352 = vmatpush1.bf16.msra.mxu0 %v5678_v15  ;;  %3984 = vmatprep.subr.bf16.mxu1 %v5683_v16  ;;  %v5768_v15 = vld [vmem:[%s8302_s1 + $0xbf0] ss:$8 sps:$4 sm:$0xff]   ;;  %v5775_v16 = vld [vmem:[%s8302_s1 + $0x304] ss:$8 sps:$4 sm:$0xff]  }
  0x89   : > { %4353 = vmatprep.subr.bf16.mxu0 %v5686_v17  ;;  %4014 = vmatprep.mubr.bf16.mxu1 %v4789_v19  ;;  %v5780_v17 = vld [vmem:[%s8302_s1 + $0xc04] ss:$8 sps:$4 sm:$0xff]   ;;  %v5773_v19 = vld [vmem:[%s8302_s1 + $0x300] ss:$8 sps:$4 sm:$0xff]  }
  0x8a   : > { %4383 = vmatprep.mubr.bf16.mxu0 %v4807_v23  ;;  %v4806_v23 = vcombine.low %v6864_v20, %v6864_v20 }
  0x8b   : > { %3985 = vmatpush1.bf16.msra.mxu1 %v5681_v21  ;;  %v5778_v21 = vld [vmem:[%s8302_s1 + $0xc00] ss:$8 sps:$4 sm:$0xff]  }
  0x8c   : > { %4354 = vmatpush1.bf16.msra.mxu0 %v5684_v22  ;;  %3986 = vmatprep.subr.bf16.mxu1 %v5689_v24  ;;  %v4788_v22 = vcombine.low %v6859_v18, %v6859_v18  ;;  %v7059_v24 = vld [vmem:[%s6570_s26 + $0x18] sm:$0xff] }
  0x8d   : > { %4355 = vmatprep.subr.bf16.mxu0 %v5692_v25  ;;  %v7062_v25 = vld [vmem:[%s6570_s26 + $0x60] sm:$0xff]  ;;  %v4791_v18 = vcombine.high %v7059_v24, %v7059_v24 }
  0x8e   : > { %v4809_v20 = vcombine.high %v7062_v25, %v7062_v25 }
  0x8f   : > { %3987 = vmatpush1.bf16.msra.mxu1 %v5687_v26  ;;  %v5783_v26 = vld [vmem:[%s8302_s1 + $0x314] ss:$8 sps:$4 sm:$0xff]  }
  0x90   : > { %4356 = vmatpush1.bf16.msra.mxu0 %v5690_v27  ;;  %3988 = vmatprep.subr.bf16.mxu1 %v5695_v28  ;;  %v5786_v27 = vld [vmem:[%s8302_s1 + $0xc14] ss:$8 sps:$4 sm:$0xff]   ;;  %v5781_v28 = vld [vmem:[%s8302_s1 + $0x310] ss:$8 sps:$4 sm:$0xff]  }
  0x91   : > { %4357 = vmatprep.subr.bf16.mxu0 %v5698_v29  ;;  %v5784_v29 = vld [vmem:[%s8302_s1 + $0xc10] ss:$8 sps:$4 sm:$0xff]  }
  0x93   : > { %3989 = vmatpush1.bf16.msra.mxu1 %v5693_v30  ;;  %v5789_v30 = vld [vmem:[%s8302_s1 + $0x324] ss:$8 sps:$4 sm:$0xff]  }
  0x94   : > { %4358 = vmatpush1.bf16.msra.mxu0 %v5696_v31  ;;  %3990 = vmatprep.subr.bf16.mxu1 %v5701_v32  ;;  %v5792_v31 = vld [vmem:[%s8302_s1 + $0xc24] ss:$8 sps:$4 sm:$0xff]   ;;  %v5787_v32 = vld [vmem:[%s8302_s1 + $0x320] ss:$8 sps:$4 sm:$0xff]  }
  0x95   : > { %4359 = vmatprep.subr.bf16.mxu0 %v5704_v33  ;;  %v5790_v33 = vld [vmem:[%s8302_s1 + $0xc20] ss:$8 sps:$4 sm:$0xff]  }
  0x97   : > { %3991 = vmatpush1.bf16.msra.mxu1 %v5699_v34  ;;  %v5795_v34 = vld [vmem:[%s8302_s1 + $0x334] ss:$8 sps:$4 sm:$0xff]  }
  0x98   : > { %4360 = vmatpush1.bf16.msra.mxu0 %v5702_v35  ;;  %3992 = vmatprep.subr.bf16.mxu1 %v5707_v36  ;;  %v5798_v35 = vld [vmem:[%s8302_s1 + $0xc34] ss:$8 sps:$4 sm:$0xff]   ;;  %v5793_v36 = vld [vmem:[%s8302_s1 + $0x330] ss:$8 sps:$4 sm:$0xff]  }
  0x99   : > { %4361 = vmatprep.subr.bf16.mxu0 %v5710_v37  ;;  %v5796_v37 = vld [vmem:[%s8302_s1 + $0xc30] ss:$8 sps:$4 sm:$0xff]  }
  0x9b   : > { %3993 = vmatpush1.bf16.msra.mxu1 %v5705_v38  ;;  %v5801_v38 = vld [vmem:[%s8302_s1 + $0x344] ss:$8 sps:$4 sm:$0xff]  }
  0x9c   : > { %4362 = vmatpush1.bf16.msra.mxu0 %v5708_v39  ;;  %3994 = vmatprep.subr.bf16.mxu1 %v5713_v40  ;;  %v5804_v39 = vld [vmem:[%s8302_s1 + $0xc44] ss:$8 sps:$4 sm:$0xff]   ;;  %v5799_v40 = vld [vmem:[%s8302_s1 + $0x340] ss:$8 sps:$4 sm:$0xff]  }
  0x9d   : > { %4363 = vmatprep.subr.bf16.mxu0 %v5716_v41  ;;  %v5802_v41 = vld [vmem:[%s8302_s1 + $0xc40] ss:$8 sps:$4 sm:$0xff]  }
  0x9f   : > { %3995 = vmatpush1.bf16.msra.mxu1 %v5711_v42  ;;  %v5807_v42 = vld [vmem:[%s8302_s1 + $0x354] ss:$8 sps:$4 sm:$0xff]  }
  0xa0   : > { %4364 = vmatpush1.bf16.msra.mxu0 %v5714_v43  ;;  %3996 = vmatprep.subr.bf16.mxu1 %v5719_v44  ;;  %v5810_v43 = vld [vmem:[%s8302_s1 + $0xc54] ss:$8 sps:$4 sm:$0xff]   ;;  %v5805_v44 = vld [vmem:[%s8302_s1 + $0x350] ss:$8 sps:$4 sm:$0xff]  }
  0xa1   : > { %4365 = vmatprep.subr.bf16.mxu0 %v5722_v45  ;;  %v5808_v45 = vld [vmem:[%s8302_s1 + $0xc50] ss:$8 sps:$4 sm:$0xff]  }
  0xa3   : > { %3997 = vmatpush1.bf16.msra.mxu1 %v5717_v46  ;;  %v5813_v46 = vld [vmem:[%s8302_s1 + $0x364] ss:$8 sps:$4 sm:$0xff]  }
  0xa4   : > { %4366 = vmatpush1.bf16.msra.mxu0 %v5720_v47  ;;  %3998 = vmatprep.subr.bf16.mxu1 %v5725_v48  ;;  %v5816_v47 = vld [vmem:[%s8302_s1 + $0xc64] ss:$8 sps:$4 sm:$0xff]   ;;  %v5811_v48 = vld [vmem:[%s8302_s1 + $0x360] ss:$8 sps:$4 sm:$0xff]  }
  0xa5   : > { %4367 = vmatprep.subr.bf16.mxu0 %v5728_v49  ;;  %v5814_v49 = vld [vmem:[%s8302_s1 + $0xc60] ss:$8 sps:$4 sm:$0xff]  }
  0xa7   : > { %3999 = vmatpush1.bf16.msra.mxu1 %v5723_v50  ;;  %v5819_v50 = vld [vmem:[%s8302_s1 + $0x374] ss:$8 sps:$4 sm:$0xff]  }
  0xa8   : > { %4368 = vmatpush1.bf16.msra.mxu0 %v5726_v51  ;;  %4000 = vmatprep.subr.bf16.mxu1 %v5731_v52  ;;  %v5822_v51 = vld [vmem:[%s8302_s1 + $0xc74] ss:$8 sps:$4 sm:$0xff]   ;;  %v5817_v52 = vld [vmem:[%s8302_s1 + $0x370] ss:$8 sps:$4 sm:$0xff]  }
  0xa9   : > { %4369 = vmatprep.subr.bf16.mxu0 %v5734_v53  ;;  %v5820_v53 = vld [vmem:[%s8302_s1 + $0xc70] ss:$8 sps:$4 sm:$0xff]  }
  0xab   : > { %4001 = vmatpush1.bf16.msra.mxu1 %v5729_v54  ;;  %v5825_v54 = vld [vmem:[%s8302_s1 + $0x384] ss:$8 sps:$4 sm:$0xff]  }
  0xac   : > { %4370 = vmatpush1.bf16.msra.mxu0 %v5732_v55  ;;  %4002 = vmatprep.subr.bf16.mxu1 %v5737_v56  ;;  %v5828_v55 = vld [vmem:[%s8302_s1 + $0xc84] ss:$8 sps:$4 sm:$0xff]   ;;  %v5823_v56 = vld [vmem:[%s8302_s1 + $0x380] ss:$8 sps:$4 sm:$0xff]  }
  0xad   : > { %4371 = vmatprep.subr.bf16.mxu0 %v5740_v57  ;;  %v5826_v57 = vld [vmem:[%s8302_s1 + $0xc80] ss:$8 sps:$4 sm:$0xff]  }
  0xaf   : > { %4003 = vmatpush1.bf16.msra.mxu1 %v5735_v58  ;;  %v5831_v58 = vld [vmem:[%s8302_s1 + $0x394] ss:$8 sps:$4 sm:$0xff]  }
  0xb0   : > { %4372 = vmatpush1.bf16.msra.mxu0 %v5738_v59  ;;  %4004 = vmatprep.subr.bf16.mxu1 %v5743_v60  ;;  %v5834_v59 = vld [vmem:[%s8302_s1 + $0xc94] ss:$8 sps:$4 sm:$0xff]   ;;  %v5829_v60 = vld [vmem:[%s8302_s1 + $0x390] ss:$8 sps:$4 sm:$0xff]  }
  0xb1   : > { %4373 = vmatprep.subr.bf16.mxu0 %v5746_v61  ;;  %v5832_v61 = vld [vmem:[%s8302_s1 + $0xc90] ss:$8 sps:$4 sm:$0xff]  }
  0xb3   : > { %4005 = vmatpush1.bf16.msra.mxu1 %v5741_v62  ;;  %v5837_v62 = vld [vmem:[%s8302_s1 + $0x3a4] ss:$8 sps:$4 sm:$0xff]  }
  0xb4   : > { %4374 = vmatpush1.bf16.msra.mxu0 %v5744_v63  ;;  %4006 = vmatprep.subr.bf16.mxu1 %v5749_v0  ;;  %v5840_v63 = vld [vmem:[%s8302_s1 + $0xca4] ss:$8 sps:$4 sm:$0xff]   ;;  %v5835_v0 = vld [vmem:[%s8302_s1 + $0x3a0] ss:$8 sps:$4 sm:$0xff]  }
  0xb5   : > { %4375 = vmatprep.subr.bf16.mxu0 %v5752_v1  ;;  %v5838_v1 = vld [vmem:[%s8302_s1 + $0xca0] ss:$8 sps:$4 sm:$0xff]  }
  0xb7   : > { %4007 = vmatpush1.bf16.msra.mxu1 %v5747_v2  ;;  %v5843_v2 = vld [vmem:[%s8302_s1 + $0x3b4] ss:$8 sps:$4 sm:$0xff]  }
  0xb8   : > { %4376 = vmatpush1.bf16.msra.mxu0 %v5750_v3  ;;  %4008 = vmatprep.subr.bf16.mxu1 %v5755_v4  ;;  %v5846_v3 = vld [vmem:[%s8302_s1 + $0xcb4] ss:$8 sps:$4 sm:$0xff]   ;;  %v5841_v4 = vld [vmem:[%s8302_s1 + $0x3b0] ss:$8 sps:$4 sm:$0xff]  }
  0xb9   : > { %4377 = vmatprep.subr.bf16.mxu0 %v5758_v5  ;;  %v5844_v5 = vld [vmem:[%s8302_s1 + $0xcb0] ss:$8 sps:$4 sm:$0xff]  }
  0xbb   : > { %4009 = vmatpush1.bf16.msra.mxu1 %v5753_v6  ;;  %v5849_v6 = vld [vmem:[%s8302_s1 + $0x3c4] ss:$8 sps:$4 sm:$0xff]  }
  0xbc   : > { %4378 = vmatpush1.bf16.msra.mxu0 %v5756_v7  ;;  %4010 = vmatprep.subr.bf16.mxu1 %v5761_v8  ;;  %v5852_v7 = vld [vmem:[%s8302_s1 + $0xcc4] ss:$8 sps:$4 sm:$0xff]   ;;  %v5847_v8 = vld [vmem:[%s8302_s1 + $0x3c0] ss:$8 sps:$4 sm:$0xff]  }
  0xbd   : > { %4379 = vmatprep.subr.bf16.mxu0 %v5764_v9  ;;  %v5850_v9 = vld [vmem:[%s8302_s1 + $0xcc0] ss:$8 sps:$4 sm:$0xff]  }
  0xbf   : > { %4011 = vmatpush1.bf16.msra.mxu1 %v5759_v10  ;;  %v5855_v10 = vld [vmem:[%s8302_s1 + $0x3d4] ss:$8 sps:$4 sm:$0xff]  }
  0xc0   : > { %4380 = vmatpush1.bf16.msra.mxu0 %v5762_v11  ;;  %4012 = vmatprep.subr.bf16.mxu1 %v5767_v12  ;;  %v5858_v11 = vld [vmem:[%s8302_s1 + $0xcd4] ss:$8 sps:$4 sm:$0xff]   ;;  %v5853_v12 = vld [vmem:[%s8302_s1 + $0x3d0] ss:$8 sps:$4 sm:$0xff]  }
  0xc1   : > { %4381 = vmatprep.subr.bf16.mxu0 %v5770_v13  ;;  %v5856_v13 = vld [vmem:[%s8302_s1 + $0xcd0] ss:$8 sps:$4 sm:$0xff]  }
  0xc3   : > { %4013 = vmatpush1.bf16.msra.mxu1 %v5765_v14  ;;  %v5861_v14 = vld [vmem:[%s8302_s1 + $0x3e4] ss:$8 sps:$4 sm:$0xff]  }
  0xc4   : > { %4382 = vmatpush1.bf16.msra.mxu0 %v5768_v15  ;;  %4023 = vmatprep.subr.bf16.mxu1 %v5775_v16  ;;  %v5864_v15 = vld [vmem:[%s8302_s1 + $0xce4] ss:$8 sps:$4 sm:$0xff]   ;;  %v5859_v16 = vld [vmem:[%s8302_s1 + $0x3e0] ss:$8 sps:$4 sm:$0xff]  }
  0xc5   : > { %4392 = vmatprep.subr.bf16.mxu0 %v5780_v17  ;;  %v5862_v17 = vld [vmem:[%s8302_s1 + $0xce0] ss:$8 sps:$4 sm:$0xff]  }
  0xc6   : > { %4015 = vmatmul.mubr.bf16.vlgmr.msra.gmra.mrb[0].mxu1 %v4788_v22  ;;  %v5865_v22 = vld [vmem:[%s8302_s1 + $0x3f0] ss:$8 sps:$4 sm:$0xff]  }
  0xc7   : > { %4384 = vmatmul.mubr.bf16.vlgmr.msra.gmra.mrb[0].mxu0 %v4806_v23  ;;  %4024 = vmatpush1.bf16.msra.mxu1 %v5773_v19  ;;  %v5867_v19 = vld [vmem:[%s8302_s1 + $0x3f4] ss:$8 sps:$4 sm:$0xff]   ;;  %v5868_v23 = vld [vmem:[%s8302_s1 + $0xcf0] ss:$8 sps:$4 sm:$0xff]  }
  0xc8   : > { %4393 = vmatpush1.bf16.msra.mxu0 %v5778_v21  ;;  %4025 = vmatprep.subr.bf16.mxu1 %v5783_v26  ;;  %v5870_v21 = vld [vmem:[%s8302_s1 + $0xcf4] ss:$8 sps:$4 sm:$0xff]   ;;  %v5875_v26 = vld [vmem:[%s8302_s1 + $0x404] ss:$8 sps:$4 sm:$0xff]  }
  0xc9   : > { %4394 = vmatprep.subr.bf16.mxu0 %v5786_v27  ;;  %4055 = vmatprep.mubr.bf16.mxu1 %v4791_v18  ;;  %v5880_v27 = vld [vmem:[%s8302_s1 + $0xd04] ss:$8 sps:$4 sm:$0xff]  }
  0xca   : > { %4424 = vmatprep.mubr.bf16.mxu0 %v4809_v20  ;;  %v7255_v18 = vld [vmem:[%s6570_s26 + $0x20] sm:$0xff]  ;;  %v4790_v20 = vcombine.low %v7059_v24, %v7059_v24  ;;  %v5883_v24 = vld [vmem:[%s8302_s1 + $0x414] ss:$8 sps:$4 sm:$0xff]  }
  0xcb   : > { %4026 = vmatpush1.bf16.msra.mxu1 %v5781_v28  ;;  %v4808_v28 = vcombine.low %v7062_v25, %v7062_v25  ;;  %v5886_v25 = vld [vmem:[%s8302_s1 + $0xd14] ss:$8 sps:$4 sm:$0xff]  }
  0xcc   : > { %4395 = vmatpush1.bf16.msra.mxu0 %v5784_v29  ;;  %4027 = vmatprep.subr.bf16.mxu1 %v5789_v30  ;;  %v7262_v29 = vld [vmem:[%s6570_s26 + $0x68] sm:$0xff] }
  0xcd   : > { %4396 = vmatprep.subr.bf16.mxu0 %v5792_v31  ;;  %v5873_v30 = vld [vmem:[%s8302_s1 + $0x400] ss:$8 sps:$4 sm:$0xff]  }
  0xce   : > { %v5878_v31 = vld [vmem:[%s8302_s1 + $0xd00] ss:$8 sps:$4 sm:$0xff]  }
  0xcf   : > { %4028 = vmatpush1.bf16.msra.mxu1 %v5787_v32  ;;  %v4793_v32 = vcombine.high %v7255_v18, %v7255_v18 }
  0xd0   : > { %4397 = vmatpush1.bf16.msra.mxu0 %v5790_v33  ;;  %4029 = vmatprep.subr.bf16.mxu1 %v5795_v34  ;;  %v4811_v33 = vcombine.high %v7262_v29, %v7262_v29  ;;  %v5881_v34 = vld [vmem:[%s8302_s1 + $0x410] ss:$8 sps:$4 sm:$0xff]  }
  0xd1   : > { %4398 = vmatprep.subr.bf16.mxu0 %v5798_v35  ;;  %v5884_v35 = vld [vmem:[%s8302_s1 + $0xd10] ss:$8 sps:$4 sm:$0xff]  }
  0xd3   : > { %4030 = vmatpush1.bf16.msra.mxu1 %v5793_v36  ;;  %v5889_v36 = vld [vmem:[%s8302_s1 + $0x424] ss:$8 sps:$4 sm:$0xff]  }
  0xd4   : > { %4399 = vmatpush1.bf16.msra.mxu0 %v5796_v37  ;;  %4031 = vmatprep.subr.bf16.mxu1 %v5801_v38  ;;  %v5892_v37 = vld [vmem:[%s8302_s1 + $0xd24] ss:$8 sps:$4 sm:$0xff]   ;;  %v5887_v38 = vld [vmem:[%s8302_s1 + $0x420] ss:$8 sps:$4 sm:$0xff]  }
  0xd5   : > { %4400 = vmatprep.subr.bf16.mxu0 %v5804_v39  ;;  %v5890_v39 = vld [vmem:[%s8302_s1 + $0xd20] ss:$8 sps:$4 sm:$0xff]  }
  0xd7   : > { %4032 = vmatpush1.bf16.msra.mxu1 %v5799_v40  ;;  %v5895_v40 = vld [vmem:[%s8302_s1 + $0x434] ss:$8 sps:$4 sm:$0xff]  }
  0xd8   : > { %4401 = vmatpush1.bf16.msra.mxu0 %v5802_v41  ;;  %4033 = vmatprep.subr.bf16.mxu1 %v5807_v42  ;;  %v5898_v41 = vld [vmem:[%s8302_s1 + $0xd34] ss:$8 sps:$4 sm:$0xff]   ;;  %v5893_v42 = vld [vmem:[%s8302_s1 + $0x430] ss:$8 sps:$4 sm:$0xff]  }
  0xd9   : > { %4402 = vmatprep.subr.bf16.mxu0 %v5810_v43  ;;  %v5896_v43 = vld [vmem:[%s8302_s1 + $0xd30] ss:$8 sps:$4 sm:$0xff]  }
  0xdb   : > { %4034 = vmatpush1.bf16.msra.mxu1 %v5805_v44  ;;  %v5901_v44 = vld [vmem:[%s8302_s1 + $0x444] ss:$8 sps:$4 sm:$0xff]  }
  0xdc   : > { %4403 = vmatpush1.bf16.msra.mxu0 %v5808_v45  ;;  %4035 = vmatprep.subr.bf16.mxu1 %v5813_v46  ;;  %v5904_v45 = vld [vmem:[%s8302_s1 + $0xd44] ss:$8 sps:$4 sm:$0xff]   ;;  %v5899_v46 = vld [vmem:[%s8302_s1 + $0x440] ss:$8 sps:$4 sm:$0xff]  }
  0xdd   : > { %4404 = vmatprep.subr.bf16.mxu0 %v5816_v47  ;;  %v5902_v47 = vld [vmem:[%s8302_s1 + $0xd40] ss:$8 sps:$4 sm:$0xff]  }
  0xdf   : > { %4036 = vmatpush1.bf16.msra.mxu1 %v5811_v48  ;;  %v5907_v48 = vld [vmem:[%s8302_s1 + $0x454] ss:$8 sps:$4 sm:$0xff]  }
  0xe0   : > { %4405 = vmatpush1.bf16.msra.mxu0 %v5814_v49  ;;  %4037 = vmatprep.subr.bf16.mxu1 %v5819_v50  ;;  %v5910_v49 = vld [vmem:[%s8302_s1 + $0xd54] ss:$8 sps:$4 sm:$0xff]   ;;  %v5905_v50 = vld [vmem:[%s8302_s1 + $0x450] ss:$8 sps:$4 sm:$0xff]  }
  0xe1   : > { %4406 = vmatprep.subr.bf16.mxu0 %v5822_v51  ;;  %v5908_v51 = vld [vmem:[%s8302_s1 + $0xd50] ss:$8 sps:$4 sm:$0xff]  }
  0xe3   : > { %4038 = vmatpush1.bf16.msra.mxu1 %v5817_v52  ;;  %v5913_v52 = vld [vmem:[%s8302_s1 + $0x464] ss:$8 sps:$4 sm:$0xff]  }
  0xe4   : > { %4407 = vmatpush1.bf16.msra.mxu0 %v5820_v53  ;;  %4039 = vmatprep.subr.bf16.mxu1 %v5825_v54  ;;  %v5916_v53 = vld [vmem:[%s8302_s1 + $0xd64] ss:$8 sps:$4 sm:$0xff]   ;;  %v5911_v54 = vld [vmem:[%s8302_s1 + $0x460] ss:$8 sps:$4 sm:$0xff]  }
  0xe5   : > { %4408 = vmatprep.subr.bf16.mxu0 %v5828_v55  ;;  %v5914_v55 = vld [vmem:[%s8302_s1 + $0xd60] ss:$8 sps:$4 sm:$0xff]  }
  0xe7   : > { %4040 = vmatpush1.bf16.msra.mxu1 %v5823_v56  ;;  %v5919_v56 = vld [vmem:[%s8302_s1 + $0x474] ss:$8 sps:$4 sm:$0xff]  }
  0xe8   : > { %4409 = vmatpush1.bf16.msra.mxu0 %v5826_v57  ;;  %4041 = vmatprep.subr.bf16.mxu1 %v5831_v58  ;;  %v5922_v57 = vld [vmem:[%s8302_s1 + $0xd74] ss:$8 sps:$4 sm:$0xff]   ;;  %v5917_v58 = vld [vmem:[%s8302_s1 + $0x470] ss:$8 sps:$4 sm:$0xff]  }
  0xe9   : > { %4410 = vmatprep.subr.bf16.mxu0 %v5834_v59  ;;  %v5920_v59 = vld [vmem:[%s8302_s1 + $0xd70] ss:$8 sps:$4 sm:$0xff]  }
  0xeb   : > { %4042 = vmatpush1.bf16.msra.mxu1 %v5829_v60  ;;  %v5925_v60 = vld [vmem:[%s8302_s1 + $0x484] ss:$8 sps:$4 sm:$0xff]  }
  0xec   : > { %4411 = vmatpush1.bf16.msra.mxu0 %v5832_v61  ;;  %4043 = vmatprep.subr.bf16.mxu1 %v5837_v62  ;;  %v5928_v61 = vld [vmem:[%s8302_s1 + $0xd84] ss:$8 sps:$4 sm:$0xff]   ;;  %v5923_v62 = vld [vmem:[%s8302_s1 + $0x480] ss:$8 sps:$4 sm:$0xff]  }
  0xed   : > { %4412 = vmatprep.subr.bf16.mxu0 %v5840_v63  ;;  %v5926_v63 = vld [vmem:[%s8302_s1 + $0xd80] ss:$8 sps:$4 sm:$0xff]  }
  0xef   : > { %4044 = vmatpush1.bf16.msra.mxu1 %v5835_v0  ;;  %v5931_v0 = vld [vmem:[%s8302_s1 + $0x494] ss:$8 sps:$4 sm:$0xff]  }
  0xf0   : > { %4413 = vmatpush1.bf16.msra.mxu0 %v5838_v1  ;;  %4045 = vmatprep.subr.bf16.mxu1 %v5843_v2  ;;  %v5934_v1 = vld [vmem:[%s8302_s1 + $0xd94] ss:$8 sps:$4 sm:$0xff]   ;;  %v5929_v2 = vld [vmem:[%s8302_s1 + $0x490] ss:$8 sps:$4 sm:$0xff]  }
  0xf1   : > { %4414 = vmatprep.subr.bf16.mxu0 %v5846_v3  ;;  %v5932_v3 = vld [vmem:[%s8302_s1 + $0xd90] ss:$8 sps:$4 sm:$0xff]  }
  0xf3   : > { %4046 = vmatpush1.bf16.msra.mxu1 %v5841_v4  ;;  %v5937_v4 = vld [vmem:[%s8302_s1 + $0x4a4] ss:$8 sps:$4 sm:$0xff]  }
  0xf4   : > { %4415 = vmatpush1.bf16.msra.mxu0 %v5844_v5  ;;  %4047 = vmatprep.subr.bf16.mxu1 %v5849_v6  ;;  %v5940_v5 = vld [vmem:[%s8302_s1 + $0xda4] ss:$8 sps:$4 sm:$0xff]   ;;  %v5935_v6 = vld [vmem:[%s8302_s1 + $0x4a0] ss:$8 sps:$4 sm:$0xff]  }
  0xf5   : > { %4416 = vmatprep.subr.bf16.mxu0 %v5852_v7  ;;  %v5938_v7 = vld [vmem:[%s8302_s1 + $0xda0] ss:$8 sps:$4 sm:$0xff]  }
  0xf7   : > { %4048 = vmatpush1.bf16.msra.mxu1 %v5847_v8  ;;  %v5943_v8 = vld [vmem:[%s8302_s1 + $0x4b4] ss:$8 sps:$4 sm:$0xff]  }
  0xf8   : > { %4417 = vmatpush1.bf16.msra.mxu0 %v5850_v9  ;;  %4049 = vmatprep.subr.bf16.mxu1 %v5855_v10  ;;  %v5946_v9 = vld [vmem:[%s8302_s1 + $0xdb4] ss:$8 sps:$4 sm:$0xff]   ;;  %v5941_v10 = vld [vmem:[%s8302_s1 + $0x4b0] ss:$8 sps:$4 sm:$0xff]  }
  0xf9   : > { %4418 = vmatprep.subr.bf16.mxu0 %v5858_v11  ;;  %v5944_v11 = vld [vmem:[%s8302_s1 + $0xdb0] ss:$8 sps:$4 sm:$0xff]  }
  0xfb   : > { %4050 = vmatpush1.bf16.msra.mxu1 %v5853_v12  ;;  %v5949_v12 = vld [vmem:[%s8302_s1 + $0x4c4] ss:$8 sps:$4 sm:$0xff]  }
  0xfc   : > { %4419 = vmatpush1.bf16.msra.mxu0 %v5856_v13  ;;  %4051 = vmatprep.subr.bf16.mxu1 %v5861_v14  ;;  %v5952_v13 = vld [vmem:[%s8302_s1 + $0xdc4] ss:$8 sps:$4 sm:$0xff]   ;;  %v5947_v14 = vld [vmem:[%s8302_s1 + $0x4c0] ss:$8 sps:$4 sm:$0xff]  }
  0xfd   : > { %4420 = vmatprep.subr.bf16.mxu0 %v5864_v15  ;;  %v5950_v15 = vld [vmem:[%s8302_s1 + $0xdc0] ss:$8 sps:$4 sm:$0xff]  }
  0xff   : > { %4052 = vmatpush1.bf16.msra.mxu1 %v5859_v16  ;;  %v5955_v16 = vld [vmem:[%s8302_s1 + $0x4d4] ss:$8 sps:$4 sm:$0xff]  }
 0x100   : > { %4421 = vmatpush1.bf16.msra.mxu0 %v5862_v17  ;;  %4053 = vmatprep.subr.bf16.mxu1 %v5867_v19  ;;  %v5958_v17 = vld [vmem:[%s8302_s1 + $0xdd4] ss:$8 sps:$4 sm:$0xff]   ;;  %v5953_v19 = vld [vmem:[%s8302_s1 + $0x4d0] ss:$8 sps:$4 sm:$0xff]  }
 0x101   : > { %4422 = vmatprep.subr.bf16.mxu0 %v5870_v21  ;;  %v5956_v21 = vld [vmem:[%s8302_s1 + $0xdd0] ss:$8 sps:$4 sm:$0xff]  }
 0x103   : > { %4054 = vmatpush1.bf16.msra.mxu1 %v5865_v22  ;;  %v5961_v22 = vld [vmem:[%s8302_s1 + $0x4e4] ss:$8 sps:$4 sm:$0xff]  }
 0x104   : > { %4423 = vmatpush1.bf16.msra.mxu0 %v5868_v23  ;;  %4064 = vmatprep.subr.bf16.mxu1 %v5875_v26  ;;  %v5964_v23 = vld [vmem:[%s8302_s1 + $0xde4] ss:$8 sps:$4 sm:$0xff]   ;;  %v5959_v26 = vld [vmem:[%s8302_s1 + $0x4e0] ss:$8 sps:$4 sm:$0xff]  }
 0x105   : > { %4433 = vmatprep.subr.bf16.mxu0 %v5880_v27  ;;  %v5962_v27 = vld [vmem:[%s8302_s1 + $0xde0] ss:$8 sps:$4 sm:$0xff]  }
 0x106   : > { %4056 = vmatmul.mubr.bf16.vlgmr.msra.gmra.mrb[0].mxu1 %v4790_v20  ;;  %v5967_v20 = vld [vmem:[%s8302_s1 + $0x4f4] ss:$8 sps:$4 sm:$0xff]  }
 0x107   : > { %4425 = vmatmul.mubr.bf16.vlgmr.msra.gmra.mrb[0].mxu0 %v4808_v28  ;;  %4065 = vmatpush1.bf16.msra.mxu1 %v5873_v30  ;;  %v5970_v28 = vld [vmem:[%s8302_s1 + $0xdf4] ss:$8 sps:$4 sm:$0xff]   ;;  %v5965_v30 = vld [vmem:[%s8302_s1 + $0x4f0] ss:$8 sps:$4 sm:$0xff]  }
 0x108   : > { %4434 = vmatpush1.bf16.msra.mxu0 %v5878_v31  ;;  %4066 = vmatprep.subr.bf16.mxu1 %v5883_v24  ;;  %v5968_v31 = vld [vmem:[%s8302_s1 + $0xdf0] ss:$8 sps:$4 sm:$0xff]   ;;  %v5975_v24 = vld [vmem:[%s8302_s1 + $0x504] ss:$8 sps:$4 sm:$0xff]  }
 0x109   : > { %4435 = vmatprep.subr.bf16.mxu0 %v5886_v25  ;;  %4096 = vmatprep.mubr.bf16.mxu1 %v4793_v32  ;;  %v5980_v25 = vld [vmem:[%s8302_s1 + $0xe04] ss:$8 sps:$4 sm:$0xff]  }
 0x10a   : > { %4465 = vmatprep.mubr.bf16.mxu0 %v4811_v33  ;;  %v7461_v32 = vld [vmem:[%s6570_s26 + $0x28] sm:$0xff]  ;;  %v7464_v33 = vld [vmem:[%s6570_s26 + $0x70] sm:$0xff] }
 0x10b   : > { %4067 = vmatpush1.bf16.msra.mxu1 %v5881_v34  ;;  %v4792_v34 = vcombine.low %v7255_v18, %v7255_v18  ;;  %v5986_v18 = vld [vmem:[%s8302_s1 + $0xe14] ss:$8 sps:$4 sm:$0xff]  }
 0x10c   : > { %4436 = vmatpush1.bf16.msra.mxu0 %v5884_v35  ;;  %4068 = vmatprep.subr.bf16.mxu1 %v5889_v36  ;;  %v4810_v35 = vcombine.low %v7262_v29, %v7262_v29  ;;  %v5973_v36 = vld [vmem:[%s8302_s1 + $0x500] ss:$8 sps:$4 sm:$0xff]   ;;  %v4795_v29 = vcombine.high %v7461_v32, %v7461_v32 }
 0x10d   : > { %4437 = vmatprep.subr.bf16.mxu0 %v5892_v37  ;;  %v5978_v37 = vld [vmem:[%s8302_s1 + $0xe00] ss:$8 sps:$4 sm:$0xff]  }
 0x10f   : > { %4069 = vmatpush1.bf16.msra.mxu1 %v5887_v38  ;;  %v5983_v38 = vld [vmem:[%s8302_s1 + $0x514] ss:$8 sps:$4 sm:$0xff]  }
 0x110   : > { %4438 = vmatpush1.bf16.msra.mxu0 %v5890_v39  ;;  %4070 = vmatprep.subr.bf16.mxu1 %v5895_v40  ;;  %v4813_v39 = vcombine.high %v7464_v33, %v7464_v33  ;;  %v5981_v40 = vld [vmem:[%s8302_s1 + $0x510] ss:$8 sps:$4 sm:$0xff]  }
 0x111   : > { %4439 = vmatprep.subr.bf16.mxu0 %v5898_v41  ;;  %v5984_v41 = vld [vmem:[%s8302_s1 + $0xe10] ss:$8 sps:$4 sm:$0xff]  }
 0x113   : > { %4071 = vmatpush1.bf16.msra.mxu1 %v5893_v42  ;;  %v5989_v42 = vld [vmem:[%s8302_s1 + $0x524] ss:$8 sps:$4 sm:$0xff]  }
 0x114   : > { %4440 = vmatpush1.bf16.msra.mxu0 %v5896_v43  ;;  %4072 = vmatprep.subr.bf16.mxu1 %v5901_v44  ;;  %v5992_v43 = vld [vmem:[%s8302_s1 + $0xe24] ss:$8 sps:$4 sm:$0xff]   ;;  %v5987_v44 = vld [vmem:[%s8302_s1 + $0x520] ss:$8 sps:$4 sm:$0xff]  }
 0x115   : > { %4441 = vmatprep.subr.bf16.mxu0 %v5904_v45  ;;  %v5990_v45 = vld [vmem:[%s8302_s1 + $0xe20] ss:$8 sps:$4 sm:$0xff]  }
 0x117   : > { %4073 = vmatpush1.bf16.msra.mxu1 %v5899_v46  ;;  %v5995_v46 = vld [vmem:[%s8302_s1 + $0x534] ss:$8 sps:$4 sm:$0xff]  }
 0x118   : > { %4442 = vmatpush1.bf16.msra.mxu0 %v5902_v47  ;;  %4074 = vmatprep.subr.bf16.mxu1 %v5907_v48  ;;  %v5998_v47 = vld [vmem:[%s8302_s1 + $0xe34] ss:$8 sps:$4 sm:$0xff]   ;;  %v5993_v48 = vld [vmem:[%s8302_s1 + $0x530] ss:$8 sps:$4 sm:$0xff]  }
 0x119   : > { %4443 = vmatprep.subr.bf16.mxu0 %v5910_v49  ;;  %v5996_v49 = vld [vmem:[%s8302_s1 + $0xe30] ss:$8 sps:$4 sm:$0xff]  }
 0x11b   : > { %4075 = vmatpush1.bf16.msra.mxu1 %v5905_v50  ;;  %v6001_v50 = vld [vmem:[%s8302_s1 + $0x544] ss:$8 sps:$4 sm:$0xff]  }
 0x11c   : > { %4444 = vmatpush1.bf16.msra.mxu0 %v5908_v51  ;;  %4076 = vmatprep.subr.bf16.mxu1 %v5913_v52  ;;  %v6004_v51 = vld [vmem:[%s8302_s1 + $0xe44] ss:$8 sps:$4 sm:$0xff]   ;;  %v5999_v52 = vld [vmem:[%s8302_s1 + $0x540] ss:$8 sps:$4 sm:$0xff]  }
 0x11d   : > { %4445 = vmatprep.subr.bf16.mxu0 %v5916_v53  ;;  %v6002_v53 = vld [vmem:[%s8302_s1 + $0xe40] ss:$8 sps:$4 sm:$0xff]  }
 0x11f   : > { %4077 = vmatpush1.bf16.msra.mxu1 %v5911_v54  ;;  %v6007_v54 = vld [vmem:[%s8302_s1 + $0x554] ss:$8 sps:$4 sm:$0xff]  }
 0x120   : > { %4446 = vmatpush1.bf16.msra.mxu0 %v5914_v55  ;;  %4078 = vmatprep.subr.bf16.mxu1 %v5919_v56  ;;  %v6010_v55 = vld [vmem:[%s8302_s1 + $0xe54] ss:$8 sps:$4 sm:$0xff]   ;;  %v6005_v56 = vld [vmem:[%s8302_s1 + $0x550] ss:$8 sps:$4 sm:$0xff]  }
 0x121   : > { %4447 = vmatprep.subr.bf16.mxu0 %v5922_v57  ;;  %v6008_v57 = vld [vmem:[%s8302_s1 + $0xe50] ss:$8 sps:$4 sm:$0xff]  }
 0x123   : > { %4079 = vmatpush1.bf16.msra.mxu1 %v5917_v58  ;;  %v6013_v58 = vld [vmem:[%s8302_s1 + $0x564] ss:$8 sps:$4 sm:$0xff]  }
 0x124   : > { %4448 = vmatpush1.bf16.msra.mxu0 %v5920_v59  ;;  %4080 = vmatprep.subr.bf16.mxu1 %v5925_v60  ;;  %v6016_v59 = vld [vmem:[%s8302_s1 + $0xe64] ss:$8 sps:$4 sm:$0xff]   ;;  %v6011_v60 = vld [vmem:[%s8302_s1 + $0x560] ss:$8 sps:$4 sm:$0xff]  }
 0x125   : > { %4449 = vmatprep.subr.bf16.mxu0 %v5928_v61  ;;  %v6014_v61 = vld [vmem:[%s8302_s1 + $0xe60] ss:$8 sps:$4 sm:$0xff]  }
 0x127   : > { %4081 = vmatpush1.bf16.msra.mxu1 %v5923_v62  ;;  %v6019_v62 = vld [vmem:[%s8302_s1 + $0x574] ss:$8 sps:$4 sm:$0xff]  }
 0x128   : > { %4450 = vmatpush1.bf16.msra.mxu0 %v5926_v63  ;;  %4082 = vmatprep.subr.bf16.mxu1 %v5931_v0  ;;  %v6022_v63 = vld [vmem:[%s8302_s1 + $0xe74] ss:$8 sps:$4 sm:$0xff]   ;;  %v6017_v0 = vld [vmem:[%s8302_s1 + $0x570] ss:$8 sps:$4 sm:$0xff]  }
 0x129   : > { %4451 = vmatprep.subr.bf16.mxu0 %v5934_v1  ;;  %v6020_v1 = vld [vmem:[%s8302_s1 + $0xe70] ss:$8 sps:$4 sm:$0xff]  }
 0x12b   : > { %4083 = vmatpush1.bf16.msra.mxu1 %v5929_v2  ;;  %v6025_v2 = vld [vmem:[%s8302_s1 + $0x584] ss:$8 sps:$4 sm:$0xff]  }
 0x12c   : > { %4452 = vmatpush1.bf16.msra.mxu0 %v5932_v3  ;;  %4084 = vmatprep.subr.bf16.mxu1 %v5937_v4  ;;  %v6028_v3 = vld [vmem:[%s8302_s1 + $0xe84] ss:$8 sps:$4 sm:$0xff]   ;;  %v6023_v4 = vld [vmem:[%s8302_s1 + $0x580] ss:$8 sps:$4 sm:$0xff]  }
 0x12d   : > { %4453 = vmatprep.subr.bf16.mxu0 %v5940_v5  ;;  %v6026_v5 = vld [vmem:[%s8302_s1 + $0xe80] ss:$8 sps:$4 sm:$0xff]  }
 0x12f   : > { %4085 = vmatpush1.bf16.msra.mxu1 %v5935_v6  ;;  %v6031_v6 = vld [vmem:[%s8302_s1 + $0x594] ss:$8 sps:$4 sm:$0xff]  }
 0x130   : > { %4454 = vmatpush1.bf16.msra.mxu0 %v5938_v7  ;;  %4086 = vmatprep.subr.bf16.mxu1 %v5943_v8  ;;  %v6034_v7 = vld [vmem:[%s8302_s1 + $0xe94] ss:$8 sps:$4 sm:$0xff]   ;;  %v6029_v8 = vld [vmem:[%s8302_s1 + $0x590] ss:$8 sps:$4 sm:$0xff]  }
 0x131   : > { %4455 = vmatprep.subr.bf16.mxu0 %v5946_v9  ;;  %v6032_v9 = vld [vmem:[%s8302_s1 + $0xe90] ss:$8 sps:$4 sm:$0xff]  }
 0x133   : > { %4087 = vmatpush1.bf16.msra.mxu1 %v5941_v10  ;;  %v6037_v10 = vld [vmem:[%s8302_s1 + $0x5a4] ss:$8 sps:$4 sm:$0xff]  }
 0x134   : > { %4456 = vmatpush1.bf16.msra.mxu0 %v5944_v11  ;;  %4088 = vmatprep.subr.bf16.mxu1 %v5949_v12  ;;  %v6040_v11 = vld [vmem:[%s8302_s1 + $0xea4] ss:$8 sps:$4 sm:$0xff]   ;;  %v6035_v12 = vld [vmem:[%s8302_s1 + $0x5a0] ss:$8 sps:$4 sm:$0xff]  }
 0x135   : > { %4457 = vmatprep.subr.bf16.mxu0 %v5952_v13  ;;  %v6038_v13 = vld [vmem:[%s8302_s1 + $0xea0] ss:$8 sps:$4 sm:$0xff]  }
 0x137   : > { %4089 = vmatpush1.bf16.msra.mxu1 %v5947_v14  ;;  %v6043_v14 = vld [vmem:[%s8302_s1 + $0x5b4] ss:$8 sps:$4 sm:$0xff]  }
 0x138   : > { %4458 = vmatpush1.bf16.msra.mxu0 %v5950_v15  ;;  %4090 = vmatprep.subr.bf16.mxu1 %v5955_v16  ;;  %v6046_v15 = vld [vmem:[%s8302_s1 + $0xeb4] ss:$8 sps:$4 sm:$0xff]   ;;  %v6041_v16 = vld [vmem:[%s8302_s1 + $0x5b0] ss:$8 sps:$4 sm:$0xff]  }
 0x139   : > { %4459 = vmatprep.subr.bf16.mxu0 %v5958_v17  ;;  %v6044_v17 = vld [vmem:[%s8302_s1 + $0xeb0] ss:$8 sps:$4 sm:$0xff]  }
 0x13b   : > { %4091 = vmatpush1.bf16.msra.mxu1 %v5953_v19  ;;  %v6049_v19 = vld [vmem:[%s8302_s1 + $0x5c4] ss:$8 sps:$4 sm:$0xff]  }
 0x13c   : > { %4460 = vmatpush1.bf16.msra.mxu0 %v5956_v21  ;;  %4092 = vmatprep.subr.bf16.mxu1 %v5961_v22  ;;  %v6052_v21 = vld [vmem:[%s8302_s1 + $0xec4] ss:$8 sps:$4 sm:$0xff]   ;;  %v6047_v22 = vld [vmem:[%s8302_s1 + $0x5c0] ss:$8 sps:$4 sm:$0xff]  }
 0x13d   : > { %4461 = vmatprep.subr.bf16.mxu0 %v5964_v23  ;;  %v6050_v23 = vld [vmem:[%s8302_s1 + $0xec0] ss:$8 sps:$4 sm:$0xff]  }
 0x13f   : > { %4093 = vmatpush1.bf16.msra.mxu1 %v5959_v26  ;;  %v6055_v26 = vld [vmem:[%s8302_s1 + $0x5d4] ss:$8 sps:$4 sm:$0xff]  }
 0x140   : > { %4462 = vmatpush1.bf16.msra.mxu0 %v5962_v27  ;;  %4094 = vmatprep.subr.bf16.mxu1 %v5967_v20  ;;  %v6058_v27 = vld [vmem:[%s8302_s1 + $0xed4] ss:$8 sps:$4 sm:$0xff]   ;;  %v6053_v20 = vld [vmem:[%s8302_s1 + $0x5d0] ss:$8 sps:$4 sm:$0xff]  }
 0x141   : > { %4463 = vmatprep.subr.bf16.mxu0 %v5970_v28  ;;  %v6056_v28 = vld [vmem:[%s8302_s1 + $0xed0] ss:$8 sps:$4 sm:$0xff]  }
 0x143   : > { %4095 = vmatpush1.bf16.msra.mxu1 %v5965_v30  ;;  %v6061_v30 = vld [vmem:[%s8302_s1 + $0x5e4] ss:$8 sps:$4 sm:$0xff]  }
 0x144   : > { %4464 = vmatpush1.bf16.msra.mxu0 %v5968_v31  ;;  %4105 = vmatprep.subr.bf16.mxu1 %v5975_v24  ;;  %v6064_v31 = vld [vmem:[%s8302_s1 + $0xee4] ss:$8 sps:$4 sm:$0xff]   ;;  %v6059_v24 = vld [vmem:[%s8302_s1 + $0x5e0] ss:$8 sps:$4 sm:$0xff]  }
 0x145   : > { %4474 = vmatprep.subr.bf16.mxu0 %v5980_v25  ;;  %v6062_v25 = vld [vmem:[%s8302_s1 + $0xee0] ss:$8 sps:$4 sm:$0xff]  }
 0x146   : > { %4097 = vmatmul.mubr.bf16.vlgmr.msra.gmra.mrb[0].mxu1 %v4792_v34  ;;  %v6067_v34 = vld [vmem:[%s8302_s1 + $0x5f4] ss:$8 sps:$4 sm:$0xff]  }
 0x147   : > { %4466 = vmatmul.mubr.bf16.vlgmr.msra.gmra.mrb[0].mxu0 %v4810_v35  ;;  %4106 = vmatpush1.bf16.msra.mxu1 %v5973_v36  ;;  %v6070_v35 = vld [vmem:[%s8302_s1 + $0xef4] ss:$8 sps:$4 sm:$0xff]   ;;  %v6065_v36 = vld [vmem:[%s8302_s1 + $0x5f0] ss:$8 sps:$4 sm:$0xff]  }
 0x148   : > { %4475 = vmatpush1.bf16.msra.mxu0 %v5978_v37  ;;  %4107 = vmatprep.subr.bf16.mxu1 %v5983_v38  ;;  %v6068_v37 = vld [vmem:[%s8302_s1 + $0xef0] ss:$8 sps:$4 sm:$0xff]   ;;  %v6075_v38 = vld [vmem:[%s8302_s1 + $0x604] ss:$8 sps:$4 sm:$0xff]  }
 0x149   : > { %4476 = vmatprep.subr.bf16.mxu0 %v5986_v18  ;;  %4137 = vmatprep.mubr.bf16.mxu1 %v4795_v29  ;;  %v6080_v18 = vld [vmem:[%s8302_s1 + $0xf04] ss:$8 sps:$4 sm:$0xff]   ;;  %v4794_v29 = vcombine.low %v7461_v32, %v7461_v32  ;;  %v6083_v32 = vld [vmem:[%s8302_s1 + $0x614] ss:$8 sps:$4 sm:$0xff]  }
 0x14a   : > { %4506 = vmatprep.mubr.bf16.mxu0 %v4813_v39  ;;  %v4812_v39 = vcombine.low %v7464_v33, %v7464_v33  ;;  %v6086_v33 = vld [vmem:[%s8302_s1 + $0xf14] ss:$8 sps:$4 sm:$0xff]  }
 0x14b   : > { %4108 = vmatpush1.bf16.msra.mxu1 %v5981_v40  ;;  %v7671_v40 = vld [vmem:[%s6570_s26 + $0x30] sm:$0xff] }
 0x14c   : > { %4477 = vmatpush1.bf16.msra.mxu0 %v5984_v41  ;;  %4109 = vmatprep.subr.bf16.mxu1 %v5989_v42  ;;  %v7674_v41 = vld [vmem:[%s6570_s26 + $0x78] sm:$0xff]  ;;  %v6073_v42 = vld [vmem:[%s8302_s1 + $0x600] ss:$8 sps:$4 sm:$0xff]  }
 0x14d   : > { %4478 = vmatprep.subr.bf16.mxu0 %v5992_v43  ;;  %v6078_v43 = vld [vmem:[%s8302_s1 + $0xf00] ss:$8 sps:$4 sm:$0xff]  }
 0x14f   : > { %4110 = vmatpush1.bf16.msra.mxu1 %v5987_v44  ;;  %v4797_v44 = vcombine.high %v7671_v40, %v7671_v40 }
 0x150   : > { %4479 = vmatpush1.bf16.msra.mxu0 %v5990_v45  ;;  %4111 = vmatprep.subr.bf16.mxu1 %v5995_v46  ;;  %v4815_v45 = vcombine.high %v7674_v41, %v7674_v41  ;;  %v6081_v46 = vld [vmem:[%s8302_s1 + $0x610] ss:$8 sps:$4 sm:$0xff]  }
 0x151   : > { %4480 = vmatprep.subr.bf16.mxu0 %v5998_v47  ;;  %v6084_v47 = vld [vmem:[%s8302_s1 + $0xf10] ss:$8 sps:$4 sm:$0xff]  }
 0x153   : > { %4112 = vmatpush1.bf16.msra.mxu1 %v5993_v48  ;;  %v6089_v48 = vld [vmem:[%s8302_s1 + $0x624] ss:$8 sps:$4 sm:$0xff]  }
 0x154   : > { %4481 = vmatpush1.bf16.msra.mxu0 %v5996_v49  ;;  %4113 = vmatprep.subr.bf16.mxu1 %v6001_v50  ;;  %v6092_v49 = vld [vmem:[%s8302_s1 + $0xf24] ss:$8 sps:$4 sm:$0xff]   ;;  %v6087_v50 = vld [vmem:[%s8302_s1 + $0x620] ss:$8 sps:$4 sm:$0xff]  }
 0x155   : > { %4482 = vmatprep.subr.bf16.mxu0 %v6004_v51  ;;  %v6090_v51 = vld [vmem:[%s8302_s1 + $0xf20] ss:$8 sps:$4 sm:$0xff]  }
 0x157   : > { %4114 = vmatpush1.bf16.msra.mxu1 %v5999_v52  ;;  %v6095_v52 = vld [vmem:[%s8302_s1 + $0x634] ss:$8 sps:$4 sm:$0xff]  }
 0x158   : > { %4483 = vmatpush1.bf16.msra.mxu0 %v6002_v53  ;;  %4115 = vmatprep.subr.bf16.mxu1 %v6007_v54  ;;  %v6098_v53 = vld [vmem:[%s8302_s1 + $0xf34] ss:$8 sps:$4 sm:$0xff]   ;;  %v6093_v54 = vld [vmem:[%s8302_s1 + $0x630] ss:$8 sps:$4 sm:$0xff]  }
 0x159   : > { %4484 = vmatprep.subr.bf16.mxu0 %v6010_v55  ;;  %v6096_v55 = vld [vmem:[%s8302_s1 + $0xf30] ss:$8 sps:$4 sm:$0xff]  }
 0x15b   : > { %4116 = vmatpush1.bf16.msra.mxu1 %v6005_v56  ;;  %v6101_v56 = vld [vmem:[%s8302_s1 + $0x644] ss:$8 sps:$4 sm:$0xff]  }
 0x15c   : > { %4485 = vmatpush1.bf16.msra.mxu0 %v6008_v57  ;;  %4117 = vmatprep.subr.bf16.mxu1 %v6013_v58  ;;  %v6104_v57 = vld [vmem:[%s8302_s1 + $0xf44] ss:$8 sps:$4 sm:$0xff]   ;;  %v6099_v58 = vld [vmem:[%s8302_s1 + $0x640] ss:$8 sps:$4 sm:$0xff]  }
 0x15d   : > { %4486 = vmatprep.subr.bf16.mxu0 %v6016_v59  ;;  %v6102_v59 = vld [vmem:[%s8302_s1 + $0xf40] ss:$8 sps:$4 sm:$0xff]  }
 0x15f   : > { %4118 = vmatpush1.bf16.msra.mxu1 %v6011_v60  ;;  %v6107_v60 = vld [vmem:[%s8302_s1 + $0x654] ss:$8 sps:$4 sm:$0xff]  }
 0x160   : > { %4487 = vmatpush1.bf16.msra.mxu0 %v6014_v61  ;;  %4119 = vmatprep.subr.bf16.mxu1 %v6019_v62  ;;  %v6110_v61 = vld [vmem:[%s8302_s1 + $0xf54] ss:$8 sps:$4 sm:$0xff]   ;;  %v6105_v62 = vld [vmem:[%s8302_s1 + $0x650] ss:$8 sps:$4 sm:$0xff]  }
 0x161   : > { %4488 = vmatprep.subr.bf16.mxu0 %v6022_v63  ;;  %v6108_v63 = vld [vmem:[%s8302_s1 + $0xf50] ss:$8 sps:$4 sm:$0xff]  }
 0x163   : > { %4120 = vmatpush1.bf16.msra.mxu1 %v6017_v0  ;;  %v6113_v0 = vld [vmem:[%s8302_s1 + $0x664] ss:$8 sps:$4 sm:$0xff]  }
 0x164   : > { %4489 = vmatpush1.bf16.msra.mxu0 %v6020_v1  ;;  %4121 = vmatprep.subr.bf16.mxu1 %v6025_v2  ;;  %v6116_v1 = vld [vmem:[%s8302_s1 + $0xf64] ss:$8 sps:$4 sm:$0xff]   ;;  %v6111_v2 = vld [vmem:[%s8302_s1 + $0x660] ss:$8 sps:$4 sm:$0xff]  }
 0x165   : > { %4490 = vmatprep.subr.bf16.mxu0 %v6028_v3  ;;  %v6114_v3 = vld [vmem:[%s8302_s1 + $0xf60] ss:$8 sps:$4 sm:$0xff]  }
 0x167   : > { %4122 = vmatpush1.bf16.msra.mxu1 %v6023_v4  ;;  %v6119_v4 = vld [vmem:[%s8302_s1 + $0x674] ss:$8 sps:$4 sm:$0xff]  }
 0x168   : > { %4491 = vmatpush1.bf16.msra.mxu0 %v6026_v5  ;;  %4123 = vmatprep.subr.bf16.mxu1 %v6031_v6  ;;  %v6122_v5 = vld [vmem:[%s8302_s1 + $0xf74] ss:$8 sps:$4 sm:$0xff]   ;;  %v6117_v6 = vld [vmem:[%s8302_s1 + $0x670] ss:$8 sps:$4 sm:$0xff]  }
 0x169   : > { %4492 = vmatprep.subr.bf16.mxu0 %v6034_v7  ;;  %v6120_v7 = vld [vmem:[%s8302_s1 + $0xf70] ss:$8 sps:$4 sm:$0xff]  }
 0x16b   : > { %4124 = vmatpush1.bf16.msra.mxu1 %v6029_v8  ;;  %v6125_v8 = vld [vmem:[%s8302_s1 + $0x684] ss:$8 sps:$4 sm:$0xff]  }
 0x16c   : > { %4493 = vmatpush1.bf16.msra.mxu0 %v6032_v9  ;;  %4125 = vmatprep.subr.bf16.mxu1 %v6037_v10  ;;  %v6128_v9 = vld [vmem:[%s8302_s1 + $0xf84] ss:$8 sps:$4 sm:$0xff]   ;;  %v6123_v10 = vld [vmem:[%s8302_s1 + $0x680] ss:$8 sps:$4 sm:$0xff]  }
 0x16d   : > { %4494 = vmatprep.subr.bf16.mxu0 %v6040_v11  ;;  %v6126_v11 = vld [vmem:[%s8302_s1 + $0xf80] ss:$8 sps:$4 sm:$0xff]  }
 0x16f   : > { %4126 = vmatpush1.bf16.msra.mxu1 %v6035_v12  ;;  %v6131_v12 = vld [vmem:[%s8302_s1 + $0x694] ss:$8 sps:$4 sm:$0xff]  }
 0x170   : > { %4495 = vmatpush1.bf16.msra.mxu0 %v6038_v13  ;;  %4127 = vmatprep.subr.bf16.mxu1 %v6043_v14  ;;  %v6134_v13 = vld [vmem:[%s8302_s1 + $0xf94] ss:$8 sps:$4 sm:$0xff]   ;;  %v6129_v14 = vld [vmem:[%s8302_s1 + $0x690] ss:$8 sps:$4 sm:$0xff]  }
 0x171   : > { %4496 = vmatprep.subr.bf16.mxu0 %v6046_v15  ;;  %v6132_v15 = vld [vmem:[%s8302_s1 + $0xf90] ss:$8 sps:$4 sm:$0xff]  }
 0x173   : > { %4128 = vmatpush1.bf16.msra.mxu1 %v6041_v16  ;;  %v6137_v16 = vld [vmem:[%s8302_s1 + $0x6a4] ss:$8 sps:$4 sm:$0xff]  }
 0x174   : > { %4497 = vmatpush1.bf16.msra.mxu0 %v6044_v17  ;;  %4129 = vmatprep.subr.bf16.mxu1 %v6049_v19  ;;  %v6140_v17 = vld [vmem:[%s8302_s1 + $0xfa4] ss:$8 sps:$4 sm:$0xff]   ;;  %v6135_v19 = vld [vmem:[%s8302_s1 + $0x6a0] ss:$8 sps:$4 sm:$0xff]  }
 0x175   : > { %4498 = vmatprep.subr.bf16.mxu0 %v6052_v21  ;;  %v6138_v21 = vld [vmem:[%s8302_s1 + $0xfa0] ss:$8 sps:$4 sm:$0xff]  }
 0x177   : > { %4130 = vmatpush1.bf16.msra.mxu1 %v6047_v22  ;;  %v6143_v22 = vld [vmem:[%s8302_s1 + $0x6b4] ss:$8 sps:$4 sm:$0xff]  }
 0x178   : > { %4499 = vmatpush1.bf16.msra.mxu0 %v6050_v23  ;;  %4131 = vmatprep.subr.bf16.mxu1 %v6055_v26  ;;  %v6146_v23 = vld [vmem:[%s8302_s1 + $0xfb4] ss:$8 sps:$4 sm:$0xff]   ;;  %v6141_v26 = vld [vmem:[%s8302_s1 + $0x6b0] ss:$8 sps:$4 sm:$0xff]  }
 0x179   : > { %4500 = vmatprep.subr.bf16.mxu0 %v6058_v27  ;;  %v6144_v27 = vld [vmem:[%s8302_s1 + $0xfb0] ss:$8 sps:$4 sm:$0xff]  }
 0x17b   : > { %4132 = vmatpush1.bf16.msra.mxu1 %v6053_v20  ;;  %v6149_v20 = vld [vmem:[%s8302_s1 + $0x6c4] ss:$8 sps:$4 sm:$0xff]  }
 0x17c   : > { %4501 = vmatpush1.bf16.msra.mxu0 %v6056_v28  ;;  %4133 = vmatprep.subr.bf16.mxu1 %v6061_v30  ;;  %v6152_v28 = vld [vmem:[%s8302_s1 + $0xfc4] ss:$8 sps:$4 sm:$0xff]   ;;  %v6147_v30 = vld [vmem:[%s8302_s1 + $0x6c0] ss:$8 sps:$4 sm:$0xff]  }
 0x17d   : > { %4502 = vmatprep.subr.bf16.mxu0 %v6064_v31  ;;  %v6150_v31 = vld [vmem:[%s8302_s1 + $0xfc0] ss:$8 sps:$4 sm:$0xff]  }
 0x17f   : > { %4134 = vmatpush1.bf16.msra.mxu1 %v6059_v24  ;;  %v6155_v24 = vld [vmem:[%s8302_s1 + $0x6d4] ss:$8 sps:$4 sm:$0xff]  }
 0x180   : > { %4503 = vmatpush1.bf16.msra.mxu0 %v6062_v25  ;;  %4135 = vmatprep.subr.bf16.mxu1 %v6067_v34  ;;  %v6158_v25 = vld [vmem:[%s8302_s1 + $0xfd4] ss:$8 sps:$4 sm:$0xff]   ;;  %v6153_v34 = vld [vmem:[%s8302_s1 + $0x6d0] ss:$8 sps:$4 sm:$0xff]  }
 0x181   : > { %4504 = vmatprep.subr.bf16.mxu0 %v6070_v35  ;;  %v6156_v35 = vld [vmem:[%s8302_s1 + $0xfd0] ss:$8 sps:$4 sm:$0xff]  }
 0x183   : > { %4136 = vmatpush1.bf16.msra.mxu1 %v6065_v36  ;;  %v6161_v36 = vld [vmem:[%s8302_s1 + $0x6e4] ss:$8 sps:$4 sm:$0xff]  }
 0x184   : > { %4505 = vmatpush1.bf16.msra.mxu0 %v6068_v37  ;;  %4146 = vmatprep.subr.bf16.mxu1 %v6075_v38  ;;  %v6164_v37 = vld [vmem:[%s8302_s1 + $0xfe4] ss:$8 sps:$4 sm:$0xff]   ;;  %v6159_v38 = vld [vmem:[%s8302_s1 + $0x6e0] ss:$8 sps:$4 sm:$0xff]  }
 0x185   : > { %4515 = vmatprep.subr.bf16.mxu0 %v6080_v18  ;;  %v6162_v18 = vld [vmem:[%s8302_s1 + $0xfe0] ss:$8 sps:$4 sm:$0xff]  }
 0x186   : > { %4138 = vmatmul.mubr.bf16.vlgmr.msra.gmra.mrb[0].mxu1 %v4794_v29  ;;  %v6167_v29 = vld [vmem:[%s8302_s1 + $0x6f4] ss:$8 sps:$4 sm:$0xff]  }
 0x187   : > { %4507 = vmatmul.mubr.bf16.vlgmr.msra.gmra.mrb[0].mxu0 %v4812_v39  ;;  %4147 = vmatpush1.bf16.msra.mxu1 %v6073_v42  ;;  %v6170_v39 = vld [vmem:[%s8302_s1 + $0xff4] ss:$8 sps:$4 sm:$0xff]   ;;  %v6165_v42 = vld [vmem:[%s8302_s1 + $0x6f0] ss:$8 sps:$4 sm:$0xff]  }
 0x188   : > { %4516 = vmatpush1.bf16.msra.mxu0 %v6078_v43  ;;  %4148 = vmatprep.subr.bf16.mxu1 %v6083_v32  ;;  %v6168_v43 = vld [vmem:[%s8302_s1 + $0xff0] ss:$8 sps:$4 sm:$0xff]   ;;  %v6175_v32 = vld [vmem:[%s8302_s1 + $0x704] ss:$8 sps:$4 sm:$0xff]  }
 0x189   : > { %4517 = vmatprep.subr.bf16.mxu0 %v6086_v33  ;;  %4178 = vmatprep.mubr.bf16.mxu1 %v4797_v44  ;;  %v6180_v33 = vld [vmem:[%s8302_s1 + $0x1004] ss:$8 sps:$4 sm:$0xff]   ;;  %v4796_v44 = vcombine.low %v7671_v40, %v7671_v40  ;;  %v6183_v40 = vld [vmem:[%s8302_s1 + $0x714] ss:$8 sps:$4 sm:$0xff]  }
 0x18a   : > { %4547 = vmatprep.mubr.bf16.mxu0 %v4815_v45  ;;  %v4814_v45 = vcombine.low %v7674_v41, %v7674_v41  ;;  %v6186_v41 = vld [vmem:[%s8302_s1 + $0x1014] ss:$8 sps:$4 sm:$0xff]  }
 0x18b   : > { %4149 = vmatpush1.bf16.msra.mxu1 %v6081_v46  ;;  %v7877_v46 = vld [vmem:[%s6570_s26 + $0x38] sm:$0xff] }
 0x18c   : > { %4518 = vmatpush1.bf16.msra.mxu0 %v6084_v47  ;;  %4150 = vmatprep.subr.bf16.mxu1 %v6089_v48  ;;  %v7880_v47 = vld [vmem:[%s6570_s26 + $0x80] sm:$0xff] }
 0x18d   : > { %4519 = vmatprep.subr.bf16.mxu0 %v6092_v49  ;;  %v6173_v48 = vld [vmem:[%s8302_s1 + $0x700] ss:$8 sps:$4 sm:$0xff]  }
 0x18e   : > { %v6178_v49 = vld [vmem:[%s8302_s1 + $0x1000] ss:$8 sps:$4 sm:$0xff]  }
 0x18f   : > { %4151 = vmatpush1.bf16.msra.mxu1 %v6087_v50  ;;  %v4799_v50 = vcombine.high %v7877_v46, %v7877_v46 }
 0x190   : > { %4520 = vmatpush1.bf16.msra.mxu0 %v6090_v51  ;;  %4152 = vmatprep.subr.bf16.mxu1 %v6095_v52  ;;  %v4817_v51 = vcombine.high %v7880_v47, %v7880_v47  ;;  %v6181_v52 = vld [vmem:[%s8302_s1 + $0x710] ss:$8 sps:$4 sm:$0xff]  }
 0x191   : > { %4521 = vmatprep.subr.bf16.mxu0 %v6098_v53  ;;  %v6184_v53 = vld [vmem:[%s8302_s1 + $0x1010] ss:$8 sps:$4 sm:$0xff]  }
 0x193   : > { %4153 = vmatpush1.bf16.msra.mxu1 %v6093_v54  ;;  %v6189_v54 = vld [vmem:[%s8302_s1 + $0x724] ss:$8 sps:$4 sm:$0xff]  }
 0x194   : > { %4522 = vmatpush1.bf16.msra.mxu0 %v6096_v55  ;;  %4154 = vmatprep.subr.bf16.mxu1 %v6101_v56  ;;  %v6192_v55 = vld [vmem:[%s8302_s1 + $0x1024] ss:$8 sps:$4 sm:$0xff]   ;;  %v6187_v56 = vld [vmem:[%s8302_s1 + $0x720] ss:$8 sps:$4 sm:$0xff]  }
 0x195   : > { %4523 = vmatprep.subr.bf16.mxu0 %v6104_v57  ;;  %v6190_v57 = vld [vmem:[%s8302_s1 + $0x1020] ss:$8 sps:$4 sm:$0xff]  }
 0x197   : > { %4155 = vmatpush1.bf16.msra.mxu1 %v6099_v58  ;;  %v6195_v58 = vld [vmem:[%s8302_s1 + $0x734] ss:$8 sps:$4 sm:$0xff]  }
 0x198   : > { %4524 = vmatpush1.bf16.msra.mxu0 %v6102_v59  ;;  %4156 = vmatprep.subr.bf16.mxu1 %v6107_v60  ;;  %v6198_v59 = vld [vmem:[%s8302_s1 + $0x1034] ss:$8 sps:$4 sm:$0xff]   ;;  %v6193_v60 = vld [vmem:[%s8302_s1 + $0x730] ss:$8 sps:$4 sm:$0xff]  }
 0x199   : > { %4525 = vmatprep.subr.bf16.mxu0 %v6110_v61  ;;  %v6196_v61 = vld [vmem:[%s8302_s1 + $0x1030] ss:$8 sps:$4 sm:$0xff]  }
 0x19b   : > { %4157 = vmatpush1.bf16.msra.mxu1 %v6105_v62  ;;  %v6201_v62 = vld [vmem:[%s8302_s1 + $0x744] ss:$8 sps:$4 sm:$0xff]  }
 0x19c   : > { %4526 = vmatpush1.bf16.msra.mxu0 %v6108_v63  ;;  %4158 = vmatprep.subr.bf16.mxu1 %v6113_v0  ;;  %v6204_v63 = vld [vmem:[%s8302_s1 + $0x1044] ss:$8 sps:$4 sm:$0xff]   ;;  %v6199_v0 = vld [vmem:[%s8302_s1 + $0x740] ss:$8 sps:$4 sm:$0xff]  }
 0x19d   : > { %4527 = vmatprep.subr.bf16.mxu0 %v6116_v1  ;;  %v6202_v1 = vld [vmem:[%s8302_s1 + $0x1040] ss:$8 sps:$4 sm:$0xff]  }
 0x19f   : > { %4159 = vmatpush1.bf16.msra.mxu1 %v6111_v2  ;;  %v6207_v2 = vld [vmem:[%s8302_s1 + $0x754] ss:$8 sps:$4 sm:$0xff]  }
 0x1a0   : > { %4528 = vmatpush1.bf16.msra.mxu0 %v6114_v3  ;;  %4160 = vmatprep.subr.bf16.mxu1 %v6119_v4  ;;  %v6210_v3 = vld [vmem:[%s8302_s1 + $0x1054] ss:$8 sps:$4 sm:$0xff]   ;;  %v6205_v4 = vld [vmem:[%s8302_s1 + $0x750] ss:$8 sps:$4 sm:$0xff]  }
 0x1a1   : > { %4529 = vmatprep.subr.bf16.mxu0 %v6122_v5  ;;  %v6208_v5 = vld [vmem:[%s8302_s1 + $0x1050] ss:$8 sps:$4 sm:$0xff]  }
 0x1a3   : > { %4161 = vmatpush1.bf16.msra.mxu1 %v6117_v6  ;;  %v6213_v6 = vld [vmem:[%s8302_s1 + $0x764] ss:$8 sps:$4 sm:$0xff]  }
 0x1a4   : > { %4530 = vmatpush1.bf16.msra.mxu0 %v6120_v7  ;;  %4162 = vmatprep.subr.bf16.mxu1 %v6125_v8  ;;  %v6216_v7 = vld [vmem:[%s8302_s1 + $0x1064] ss:$8 sps:$4 sm:$0xff]   ;;  %v6211_v8 = vld [vmem:[%s8302_s1 + $0x760] ss:$8 sps:$4 sm:$0xff]  }
 0x1a5   : > { %4531 = vmatprep.subr.bf16.mxu0 %v6128_v9  ;;  %v6214_v9 = vld [vmem:[%s8302_s1 + $0x1060] ss:$8 sps:$4 sm:$0xff]  }
 0x1a7   : > { %4163 = vmatpush1.bf16.msra.mxu1 %v6123_v10  ;;  %v6219_v10 = vld [vmem:[%s8302_s1 + $0x774] ss:$8 sps:$4 sm:$0xff]  }
 0x1a8   : > { %4532 = vmatpush1.bf16.msra.mxu0 %v6126_v11  ;;  %4164 = vmatprep.subr.bf16.mxu1 %v6131_v12  ;;  %v6222_v11 = vld [vmem:[%s8302_s1 + $0x1074] ss:$8 sps:$4 sm:$0xff]   ;;  %v6217_v12 = vld [vmem:[%s8302_s1 + $0x770] ss:$8 sps:$4 sm:$0xff]  }
 0x1a9   : > { %4533 = vmatprep.subr.bf16.mxu0 %v6134_v13  ;;  %v6220_v13 = vld [vmem:[%s8302_s1 + $0x1070] ss:$8 sps:$4 sm:$0xff]  }
 0x1ab   : > { %4165 = vmatpush1.bf16.msra.mxu1 %v6129_v14  ;;  %v6225_v14 = vld [vmem:[%s8302_s1 + $0x784] ss:$8 sps:$4 sm:$0xff]  }
 0x1ac   : > { %4534 = vmatpush1.bf16.msra.mxu0 %v6132_v15  ;;  %4166 = vmatprep.subr.bf16.mxu1 %v6137_v16  ;;  %v6228_v15 = vld [vmem:[%s8302_s1 + $0x1084] ss:$8 sps:$4 sm:$0xff]   ;;  %v6223_v16 = vld [vmem:[%s8302_s1 + $0x780] ss:$8 sps:$4 sm:$0xff]  }
 0x1ad   : > { %4535 = vmatprep.subr.bf16.mxu0 %v6140_v17  ;;  %v6226_v17 = vld [vmem:[%s8302_s1 + $0x1080] ss:$8 sps:$4 sm:$0xff]  }
 0x1af   : > { %4167 = vmatpush1.bf16.msra.mxu1 %v6135_v19  ;;  %v6231_v19 = vld [vmem:[%s8302_s1 + $0x794] ss:$8 sps:$4 sm:$0xff]  }
 0x1b0   : > { %4536 = vmatpush1.bf16.msra.mxu0 %v6138_v21  ;;  %4168 = vmatprep.subr.bf16.mxu1 %v6143_v22  ;;  %v6234_v21 = vld [vmem:[%s8302_s1 + $0x1094] ss:$8 sps:$4 sm:$0xff]   ;;  %v6229_v22 = vld [vmem:[%s8302_s1 + $0x790] ss:$8 sps:$4 sm:$0xff]  }
 0x1b1   : > { %4537 = vmatprep.subr.bf16.mxu0 %v6146_v23  ;;  %v6232_v23 = vld [vmem:[%s8302_s1 + $0x1090] ss:$8 sps:$4 sm:$0xff]  }
 0x1b3   : > { %4169 = vmatpush1.bf16.msra.mxu1 %v6141_v26  ;;  %v6237_v26 = vld [vmem:[%s8302_s1 + $0x7a4] ss:$8 sps:$4 sm:$0xff]  }
 0x1b4   : > { %4538 = vmatpush1.bf16.msra.mxu0 %v6144_v27  ;;  %4170 = vmatprep.subr.bf16.mxu1 %v6149_v20  ;;  %v6240_v27 = vld [vmem:[%s8302_s1 + $0x10a4] ss:$8 sps:$4 sm:$0xff]   ;;  %v6235_v20 = vld [vmem:[%s8302_s1 + $0x7a0] ss:$8 sps:$4 sm:$0xff]  }
 0x1b5   : > { %4539 = vmatprep.subr.bf16.mxu0 %v6152_v28  ;;  %v6238_v28 = vld [vmem:[%s8302_s1 + $0x10a0] ss:$8 sps:$4 sm:$0xff]  }
 0x1b7   : > { %4171 = vmatpush1.bf16.msra.mxu1 %v6147_v30  ;;  %v6243_v30 = vld [vmem:[%s8302_s1 + $0x7b4] ss:$8 sps:$4 sm:$0xff]  }
 0x1b8   : > { %4540 = vmatpush1.bf16.msra.mxu0 %v6150_v31  ;;  %4172 = vmatprep.subr.bf16.mxu1 %v6155_v24  ;;  %v6246_v31 = vld [vmem:[%s8302_s1 + $0x10b4] ss:$8 sps:$4 sm:$0xff]   ;;  %v6241_v24 = vld [vmem:[%s8302_s1 + $0x7b0] ss:$8 sps:$4 sm:$0xff]  }
 0x1b9   : > { %4541 = vmatprep.subr.bf16.mxu0 %v6158_v25  ;;  %v6244_v25 = vld [vmem:[%s8302_s1 + $0x10b0] ss:$8 sps:$4 sm:$0xff]  }
 0x1bb   : > { %4173 = vmatpush1.bf16.msra.mxu1 %v6153_v34  ;;  %v6249_v34 = vld [vmem:[%s8302_s1 + $0x7c4] ss:$8 sps:$4 sm:$0xff]  }
 0x1bc   : > { %4542 = vmatpush1.bf16.msra.mxu0 %v6156_v35  ;;  %4174 = vmatprep.subr.bf16.mxu1 %v6161_v36  ;;  %v6252_v35 = vld [vmem:[%s8302_s1 + $0x10c4] ss:$8 sps:$4 sm:$0xff]   ;;  %v6247_v36 = vld [vmem:[%s8302_s1 + $0x7c0] ss:$8 sps:$4 sm:$0xff]  }
 0x1bd   : > { %4543 = vmatprep.subr.bf16.mxu0 %v6164_v37  ;;  %v6250_v37 = vld [vmem:[%s8302_s1 + $0x10c0] ss:$8 sps:$4 sm:$0xff]  }
 0x1bf   : > { %4175 = vmatpush1.bf16.msra.mxu1 %v6159_v38  ;;  %v6255_v38 = vld [vmem:[%s8302_s1 + $0x7d4] ss:$8 sps:$4 sm:$0xff]  }
 0x1c0   : > { %4544 = vmatpush1.bf16.msra.mxu0 %v6162_v18  ;;  %4176 = vmatprep.subr.bf16.mxu1 %v6167_v29  ;;  %v6258_v18 = vld [vmem:[%s8302_s1 + $0x10d4] ss:$8 sps:$4 sm:$0xff]   ;;  %v6253_v29 = vld [vmem:[%s8302_s1 + $0x7d0] ss:$8 sps:$4 sm:$0xff]  }
 0x1c1   : > { %4545 = vmatprep.subr.bf16.mxu0 %v6170_v39  ;;  %v6256_v39 = vld [vmem:[%s8302_s1 + $0x10d0] ss:$8 sps:$4 sm:$0xff]  }
 0x1c3   : > { %4177 = vmatpush1.bf16.msra.mxu1 %v6165_v42  ;;  %v6261_v42 = vld [vmem:[%s8302_s1 + $0x7e4] ss:$8 sps:$4 sm:$0xff]  }
 0x1c4   : > { %4546 = vmatpush1.bf16.msra.mxu0 %v6168_v43  ;;  %4187 = vmatprep.subr.bf16.mxu1 %v6175_v32  ;;  %v6264_v43 = vld [vmem:[%s8302_s1 + $0x10e4] ss:$8 sps:$4 sm:$0xff]   ;;  %v6259_v32 = vld [vmem:[%s8302_s1 + $0x7e0] ss:$8 sps:$4 sm:$0xff]  }
 0x1c5   : > { %4556 = vmatprep.subr.bf16.mxu0 %v6180_v33  ;;  %v6262_v33 = vld [vmem:[%s8302_s1 + $0x10e0] ss:$8 sps:$4 sm:$0xff]  }
 0x1c6   : > { %4179 = vmatmul.mubr.bf16.vlgmr.msra.gmra.mrb[0].mxu1 %v4796_v44  ;;  %v6267_v44 = vld [vmem:[%s8302_s1 + $0x7f4] ss:$8 sps:$4 sm:$0xff]  }
 0x1c7   : > { %4548 = vmatmul.mubr.bf16.vlgmr.msra.gmra.mrb[0].mxu0 %v4814_v45  ;;  %4188 = vmatpush1.bf16.msra.mxu1 %v6173_v48  ;;  %v6270_v45 = vld [vmem:[%s8302_s1 + $0x10f4] ss:$8 sps:$4 sm:$0xff]   ;;  %v6265_v48 = vld [vmem:[%s8302_s1 + $0x7f0] ss:$8 sps:$4 sm:$0xff]  }
 0x1c8   : > { %4557 = vmatpush1.bf16.msra.mxu0 %v6178_v49  ;;  %4189 = vmatprep.subr.bf16.mxu1 %v6183_v40  ;;  %v6268_v49 = vld [vmem:[%s8302_s1 + $0x10f0] ss:$8 sps:$4 sm:$0xff]   ;;  %v6275_v40 = vld [vmem:[%s8302_s1 + $0x804] ss:$8 sps:$4 sm:$0xff]  }
 0x1c9   : > { %4558 = vmatprep.subr.bf16.mxu0 %v6186_v41  ;;  %4219 = vmatprep.mubr.bf16.mxu1 %v4799_v50  ;;  %v6280_v41 = vld [vmem:[%s8302_s1 + $0x1104] ss:$8 sps:$4 sm:$0xff]   ;;  %v4798_v50 = vcombine.low %v7877_v46, %v7877_v46  ;;  %v6283_v46 = vld [vmem:[%s8302_s1 + $0x814] ss:$8 sps:$4 sm:$0xff]  }
 0x1ca   : > { %4588 = vmatprep.mubr.bf16.mxu0 %v4817_v51  ;;  %v4816_v51 = vcombine.low %v7880_v47, %v7880_v47  ;;  %v6286_v47 = vld [vmem:[%s8302_s1 + $0x1114] ss:$8 sps:$4 sm:$0xff]  }
 0x1cb   : > { %4190 = vmatpush1.bf16.msra.mxu1 %v6181_v52  ;;  %v8083_v52 = vld [vmem:[%s6570_s26 + $0x40] sm:$0xff] }
 0x1cc   : > { %4559 = vmatpush1.bf16.msra.mxu0 %v6184_v53  ;;  %4191 = vmatprep.subr.bf16.mxu1 %v6189_v54  ;;  %v8086_v53 = vld [vmem:[%s6570_s26 + $0x88] sm:$0xff] }
 0x1cd   : > { %4560 = vmatprep.subr.bf16.mxu0 %v6192_v55  ;;  %v6273_v54 = vld [vmem:[%s8302_s1 + $0x800] ss:$8 sps:$4 sm:$0xff]  }
 0x1ce   : > { %v6278_v55 = vld [vmem:[%s8302_s1 + $0x1100] ss:$8 sps:$4 sm:$0xff]  }
 0x1cf   : > { %4192 = vmatpush1.bf16.msra.mxu1 %v6187_v56  ;;  %v4801_v56 = vcombine.high %v8083_v52, %v8083_v52 }
 0x1d0   : > { %4561 = vmatpush1.bf16.msra.mxu0 %v6190_v57  ;;  %4193 = vmatprep.subr.bf16.mxu1 %v6195_v58  ;;  %v4819_v57 = vcombine.high %v8086_v53, %v8086_v53  ;;  %v6281_v58 = vld [vmem:[%s8302_s1 + $0x810] ss:$8 sps:$4 sm:$0xff]  }
 0x1d1   : > { %4562 = vmatprep.subr.bf16.mxu0 %v6198_v59  ;;  %v6284_v59 = vld [vmem:[%s8302_s1 + $0x1110] ss:$8 sps:$4 sm:$0xff]  }
 0x1d3   : > { %4194 = vmatpush1.bf16.msra.mxu1 %v6193_v60  ;;  %v6289_v60 = vld [vmem:[%s8302_s1 + $0x824] ss:$8 sps:$4 sm:$0xff]  }
 0x1d4   : > { %4563 = vmatpush1.bf16.msra.mxu0 %v6196_v61  ;;  %4195 = vmatprep.subr.bf16.mxu1 %v6201_v62  ;;  %v6292_v61 = vld [vmem:[%s8302_s1 + $0x1124] ss:$8 sps:$4 sm:$0xff]   ;;  %v6287_v62 = vld [vmem:[%s8302_s1 + $0x820] ss:$8 sps:$4 sm:$0xff]  }
 0x1d5   : > { %4564 = vmatprep.subr.bf16.mxu0 %v6204_v63  ;;  %v6290_v63 = vld [vmem:[%s8302_s1 + $0x1120] ss:$8 sps:$4 sm:$0xff]  }
 0x1d7   : > { %4196 = vmatpush1.bf16.msra.mxu1 %v6199_v0  ;;  %v6295_v0 = vld [vmem:[%s8302_s1 + $0x834] ss:$8 sps:$4 sm:$0xff]  }
 0x1d8   : > { %4565 = vmatpush1.bf16.msra.mxu0 %v6202_v1  ;;  %4197 = vmatprep.subr.bf16.mxu1 %v6207_v2  ;;  %v6298_v1 = vld [vmem:[%s8302_s1 + $0x1134] ss:$8 sps:$4 sm:$0xff]   ;;  %v6293_v2 = vld [vmem:[%s8302_s1 + $0x830] ss:$8 sps:$4 sm:$0xff]  }
 0x1d9   : > { %4566 = vmatprep.subr.bf16.mxu0 %v6210_v3  ;;  %v6296_v3 = vld [vmem:[%s8302_s1 + $0x1130] ss:$8 sps:$4 sm:$0xff]  }
 0x1db   : > { %4198 = vmatpush1.bf16.msra.mxu1 %v6205_v4  ;;  %v6301_v4 = vld [vmem:[%s8302_s1 + $0x844] ss:$8 sps:$4 sm:$0xff]  }
 0x1dc   : > { %4567 = vmatpush1.bf16.msra.mxu0 %v6208_v5  ;;  %4199 = vmatprep.subr.bf16.mxu1 %v6213_v6  ;;  %v6304_v5 = vld [vmem:[%s8302_s1 + $0x1144] ss:$8 sps:$4 sm:$0xff]   ;;  %v6299_v6 = vld [vmem:[%s8302_s1 + $0x840] ss:$8 sps:$4 sm:$0xff]  }
 0x1dd   : > { %4568 = vmatprep.subr.bf16.mxu0 %v6216_v7  ;;  %v6302_v7 = vld [vmem:[%s8302_s1 + $0x1140] ss:$8 sps:$4 sm:$0xff]  }
 0x1df   : > { %4200 = vmatpush1.bf16.msra.mxu1 %v6211_v8  ;;  %v6307_v8 = vld [vmem:[%s8302_s1 + $0x854] ss:$8 sps:$4 sm:$0xff]  }
 0x1e0   : > { %4569 = vmatpush1.bf16.msra.mxu0 %v6214_v9  ;;  %4201 = vmatprep.subr.bf16.mxu1 %v6219_v10  ;;  %v6310_v9 = vld [vmem:[%s8302_s1 + $0x1154] ss:$8 sps:$4 sm:$0xff]   ;;  %v6305_v10 = vld [vmem:[%s8302_s1 + $0x850] ss:$8 sps:$4 sm:$0xff]  }
 0x1e1   : > { %4570 = vmatprep.subr.bf16.mxu0 %v6222_v11  ;;  %v6308_v11 = vld [vmem:[%s8302_s1 + $0x1150] ss:$8 sps:$4 sm:$0xff]  }
 0x1e3   : > { %4202 = vmatpush1.bf16.msra.mxu1 %v6217_v12  ;;  %v6313_v12 = vld [vmem:[%s8302_s1 + $0x864] ss:$8 sps:$4 sm:$0xff]  }
 0x1e4   : > { %4571 = vmatpush1.bf16.msra.mxu0 %v6220_v13  ;;  %4203 = vmatprep.subr.bf16.mxu1 %v6225_v14  ;;  %v6316_v13 = vld [vmem:[%s8302_s1 + $0x1164] ss:$8 sps:$4 sm:$0xff]   ;;  %v6311_v14 = vld [vmem:[%s8302_s1 + $0x860] ss:$8 sps:$4 sm:$0xff]  }
 0x1e5   : > { %4572 = vmatprep.subr.bf16.mxu0 %v6228_v15  ;;  %v6314_v15 = vld [vmem:[%s8302_s1 + $0x1160] ss:$8 sps:$4 sm:$0xff]  }
 0x1e7   : > { %4204 = vmatpush1.bf16.msra.mxu1 %v6223_v16  ;;  %v6319_v16 = vld [vmem:[%s8302_s1 + $0x874] ss:$8 sps:$4 sm:$0xff]  }
 0x1e8   : > { %4573 = vmatpush1.bf16.msra.mxu0 %v6226_v17  ;;  %4205 = vmatprep.subr.bf16.mxu1 %v6231_v19  ;;  %v6322_v17 = vld [vmem:[%s8302_s1 + $0x1174] ss:$8 sps:$4 sm:$0xff]   ;;  %v6317_v19 = vld [vmem:[%s8302_s1 + $0x870] ss:$8 sps:$4 sm:$0xff]  }
 0x1e9   : > { %4574 = vmatprep.subr.bf16.mxu0 %v6234_v21  ;;  %v6320_v21 = vld [vmem:[%s8302_s1 + $0x1170] ss:$8 sps:$4 sm:$0xff]  }
 0x1eb   : > { %4206 = vmatpush1.bf16.msra.mxu1 %v6229_v22  ;;  %v6325_v22 = vld [vmem:[%s8302_s1 + $0x884] ss:$8 sps:$4 sm:$0xff]  }
 0x1ec   : > { %4575 = vmatpush1.bf16.msra.mxu0 %v6232_v23  ;;  %4207 = vmatprep.subr.bf16.mxu1 %v6237_v26  ;;  %v6328_v23 = vld [vmem:[%s8302_s1 + $0x1184] ss:$8 sps:$4 sm:$0xff]   ;;  %v6323_v26 = vld [vmem:[%s8302_s1 + $0x880] ss:$8 sps:$4 sm:$0xff]  }
 0x1ed   : > { %4576 = vmatprep.subr.bf16.mxu0 %v6240_v27  ;;  %v6326_v27 = vld [vmem:[%s8302_s1 + $0x1180] ss:$8 sps:$4 sm:$0xff]  }
 0x1ef   : > { %4208 = vmatpush1.bf16.msra.mxu1 %v6235_v20  ;;  %v6331_v20 = vld [vmem:[%s8302_s1 + $0x894] ss:$8 sps:$4 sm:$0xff]  }
 0x1f0   : > { %4577 = vmatpush1.bf16.msra.mxu0 %v6238_v28  ;;  %4209 = vmatprep.subr.bf16.mxu1 %v6243_v30  ;;  %v6334_v28 = vld [vmem:[%s8302_s1 + $0x1194] ss:$8 sps:$4 sm:$0xff]   ;;  %v6329_v30 = vld [vmem:[%s8302_s1 + $0x890] ss:$8 sps:$4 sm:$0xff]  }
 0x1f1   : > { %4578 = vmatprep.subr.bf16.mxu0 %v6246_v31  ;;  %v6332_v31 = vld [vmem:[%s8302_s1 + $0x1190] ss:$8 sps:$4 sm:$0xff]  }
 0x1f3   : > { %4210 = vmatpush1.bf16.msra.mxu1 %v6241_v24  ;;  %v6337_v24 = vld [vmem:[%s8302_s1 + $0x8a4] ss:$8 sps:$4 sm:$0xff]  }
 0x1f4   : > { %4579 = vmatpush1.bf16.msra.mxu0 %v6244_v25  ;;  %4211 = vmatprep.subr.bf16.mxu1 %v6249_v34  ;;  %v6340_v25 = vld [vmem:[%s8302_s1 + $0x11a4] ss:$8 sps:$4 sm:$0xff]   ;;  %v6335_v34 = vld [vmem:[%s8302_s1 + $0x8a0] ss:$8 sps:$4 sm:$0xff]  }
 0x1f5   : > { %4580 = vmatprep.subr.bf16.mxu0 %v6252_v35  ;;  %v6338_v35 = vld [vmem:[%s8302_s1 + $0x11a0] ss:$8 sps:$4 sm:$0xff]  }
 0x1f7   : > { %4212 = vmatpush1.bf16.msra.mxu1 %v6247_v36  ;;  %v6343_v36 = vld [vmem:[%s8302_s1 + $0x8b4] ss:$8 sps:$4 sm:$0xff]  }
 0x1f8   : > { %4581 = vmatpush1.bf16.msra.mxu0 %v6250_v37  ;;  %4213 = vmatprep.subr.bf16.mxu1 %v6255_v38  ;;  %v6346_v37 = vld [vmem:[%s8302_s1 + $0x11b4] ss:$8 sps:$4 sm:$0xff]   ;;  %v6341_v38 = vld [vmem:[%s8302_s1 + $0x8b0] ss:$8 sps:$4 sm:$0xff]  }
 0x1f9   : > { %4582 = vmatprep.subr.bf16.mxu0 %v6258_v18  ;;  %v6344_v18 = vld [vmem:[%s8302_s1 + $0x11b0] ss:$8 sps:$4 sm:$0xff]  }
 0x1fb   : > { %4214 = vmatpush1.bf16.msra.mxu1 %v6253_v29  ;;  %v6349_v29 = vld [vmem:[%s8302_s1 + $0x8c4] ss:$8 sps:$4 sm:$0xff]  }
 0x1fc   : > { %4583 = vmatpush1.bf16.msra.mxu0 %v6256_v39  ;;  %4215 = vmatprep.subr.bf16.mxu1 %v6261_v42  ;;  %v6352_v39 = vld [vmem:[%s8302_s1 + $0x11c4] ss:$8 sps:$4 sm:$0xff]   ;;  %v6347_v42 = vld [vmem:[%s8302_s1 + $0x8c0] ss:$8 sps:$4 sm:$0xff]  }
 0x1fd   : > { %4584 = vmatprep.subr.bf16.mxu0 %v6264_v43  ;;  %v6350_v43 = vld [vmem:[%s8302_s1 + $0x11c0] ss:$8 sps:$4 sm:$0xff]  }
 0x1ff   : > { %4216 = vmatpush1.bf16.msra.mxu1 %v6259_v32  ;;  %v6355_v32 = vld [vmem:[%s8302_s1 + $0x8d4] ss:$8 sps:$4 sm:$0xff]  }
 0x200   : > { %4585 = vmatpush1.bf16.msra.mxu0 %v6262_v33  ;;  %4217 = vmatprep.subr.bf16.mxu1 %v6267_v44  ;;  %v6358_v33 = vld [vmem:[%s8302_s1 + $0x11d4] ss:$8 sps:$4 sm:$0xff]   ;;  %v6353_v44 = vld [vmem:[%s8302_s1 + $0x8d0] ss:$8 sps:$4 sm:$0xff]  }
 0x201   : > { %4586 = vmatprep.subr.bf16.mxu0 %v6270_v45  ;;  %v6356_v45 = vld [vmem:[%s8302_s1 + $0x11d0] ss:$8 sps:$4 sm:$0xff]  }
 0x203   : > { %4218 = vmatpush1.bf16.msra.mxu1 %v6265_v48  ;;  %v6361_v48 = vld [vmem:[%s8302_s1 + $0x8e4] ss:$8 sps:$4 sm:$0xff]  }
 0x204   : > { %4587 = vmatpush1.bf16.msra.mxu0 %v6268_v49  ;;  %4228 = vmatprep.subr.bf16.mxu1 %v6275_v40  ;;  %v6364_v49 = vld [vmem:[%s8302_s1 + $0x11e4] ss:$8 sps:$4 sm:$0xff]   ;;  %v6359_v40 = vld [vmem:[%s8302_s1 + $0x8e0] ss:$8 sps:$4 sm:$0xff]  }
 0x205   : > { %4597 = vmatprep.subr.bf16.mxu0 %v6280_v41  ;;  %v6362_v41 = vld [vmem:[%s8302_s1 + $0x11e0] ss:$8 sps:$4 sm:$0xff]  }
 0x206   : > { %4220 = vmatmul.mubr.bf16.vlgmr.msra.gmra.mrb[0].mxu1 %v4798_v50  ;;  %v6367_v50 = vld [vmem:[%s8302_s1 + $0x8f4] ss:$8 sps:$4 sm:$0xff]  }
 0x207   : > { %4589 = vmatmul.mubr.bf16.vlgmr.msra.gmra.mrb[0].mxu0 %v4816_v51  ;;  %4229 = vmatpush1.bf16.msra.mxu1 %v6273_v54  ;;  %v6370_v51 = vld [vmem:[%s8302_s1 + $0x11f4] ss:$8 sps:$4 sm:$0xff]   ;;  %v6365_v54 = vld [vmem:[%s8302_s1 + $0x8f0] ss:$8 sps:$4 sm:$0xff]  }
 0x208   : > { %4598 = vmatpush1.bf16.msra.mxu0 %v6278_v55  ;;  %4230 = vmatprep.subr.bf16.mxu1 %v6283_v46  ;;  %v6368_v55 = vld [vmem:[%s8302_s1 + $0x11f0] ss:$8 sps:$4 sm:$0xff]   ;;  %v4800_v46 = vcombine.low %v8083_v52, %v8083_v52 }
 0x209   : > { %4599 = vmatprep.subr.bf16.mxu0 %v6286_v47  ;;  %4260 = vmatprep.mubr.bf16.mxu1 %v4801_v56  ;;  %v4818_v47 = vcombine.low %v8086_v53, %v8086_v53  ;;  %v884_v56 = vlaneseq }
 0x20a   : > { %4629 = vmatprep.mubr.bf16.mxu0 %v4819_v57 }
 0x20b   : > { %4231 = vmatpush1.bf16.msra.mxu1 %v6281_v58  ;;  %v885_v57 = vshrl.u32 %v884_v56, 7 }
 0x20c   : > { %4600 = vmatpush1.bf16.msra.mxu0 %v6284_v59  ;;  %4232 = vmatprep.subr.bf16.mxu1 %v6289_v60  ;;  %v882_v59 = vld [vmem:[%s8303_s2] sm:$0x3] }
 0x20d   : > { %4601 = vmatprep.subr.bf16.mxu0 %v6292_v61  ;;  %v886_v58 = vsub.s32 0, %v885_v57  ;;  %v890_v60 = vsub.s32 1, %v885_v57 }
 0x20f   : > { %4233 = vmatpush1.bf16.msra.mxu1 %v6287_v62  ;;  %v887_v61 = vrot.slane %v882_v59, %v886_v58  ;;  %v891_v62 = vrot.slane %v882_v59, %v890_v60 }
 0x210   : > { %4602 = vmatpush1.bf16.msra.mxu0 %v6290_v63  ;;  %4234 = vmatprep.subr.bf16.mxu1 %v6295_v0 }
 0x211   : > { %4603 = vmatprep.subr.bf16.mxu0 %v6298_v1 }
 0x213   : > { %4235 = vmatpush1.bf16.msra.mxu1 %v6293_v2 }
 0x214   : > { %4604 = vmatpush1.bf16.msra.mxu0 %v6296_v3  ;;  %4236 = vmatprep.subr.bf16.mxu1 %v6301_v4 }
 0x215   : > { %4605 = vmatprep.subr.bf16.mxu0 %v6304_v5 }
 0x217   : > { %4237 = vmatpush1.bf16.msra.mxu1 %v6299_v6 }
 0x218   : > { %4606 = vmatpush1.bf16.msra.mxu0 %v6302_v7  ;;  %4238 = vmatprep.subr.bf16.mxu1 %v6307_v8 }
 0x219   : > { %4607 = vmatprep.subr.bf16.mxu0 %v6310_v9 }
 0x21b   : > { %4239 = vmatpush1.bf16.msra.mxu1 %v6305_v10 }
 0x21c   : > { %4608 = vmatpush1.bf16.msra.mxu0 %v6308_v11  ;;  %4240 = vmatprep.subr.bf16.mxu1 %v6313_v12  ;;  %v4640_v11 = vld [vmem:[%s275_s23] sm:$0xff] }
 0x21d   : > { %4609 = vmatprep.subr.bf16.mxu0 %v6316_v13 }
 0x21f   : > { %4241 = vmatpush1.bf16.msra.mxu1 %v6311_v14 }
 0x220   : > { %4610 = vmatpush1.bf16.msra.mxu0 %v6314_v15  ;;  %4242 = vmatprep.subr.bf16.mxu1 %v6319_v16 }
 0x221   : > { %4611 = vmatprep.subr.bf16.mxu0 %v6322_v17 }
 0x223   : > { %4243 = vmatpush1.bf16.msra.mxu1 %v6317_v19 }
 0x224   : > { %4612 = vmatpush1.bf16.msra.mxu0 %v6320_v21  ;;  %4244 = vmatprep.subr.bf16.mxu1 %v6325_v22 }
 0x225   : > { %4613 = vmatprep.subr.bf16.mxu0 %v6328_v23 }
 0x227   : > { %4245 = vmatpush1.bf16.msra.mxu1 %v6323_v26 }
 0x228   : > { %4614 = vmatpush1.bf16.msra.mxu0 %v6326_v27  ;;  %4246 = vmatprep.subr.bf16.mxu1 %v6331_v20 }
 0x229   : > { %4615 = vmatprep.subr.bf16.mxu0 %v6334_v28 }
 0x22b   : > { %4247 = vmatpush1.bf16.msra.mxu1 %v6329_v30 }
 0x22c   : > { %4616 = vmatpush1.bf16.msra.mxu0 %v6332_v31  ;;  %4248 = vmatprep.subr.bf16.mxu1 %v6337_v24 }
 0x22d   : > { %4617 = vmatprep.subr.bf16.mxu0 %v6340_v25 }
 0x22f   : > { %4249 = vmatpush1.bf16.msra.mxu1 %v6335_v34 }
 0x230   : > { %4618 = vmatpush1.bf16.msra.mxu0 %v6338_v35  ;;  %4250 = vmatprep.subr.bf16.mxu1 %v6343_v36 }
 0x231   : > { %4619 = vmatprep.subr.bf16.mxu0 %v6346_v37 }
 0x233   : > { %4251 = vmatpush1.bf16.msra.mxu1 %v6341_v38 }
 0x234   : > { %4620 = vmatpush1.bf16.msra.mxu0 %v6344_v18  ;;  %4252 = vmatprep.subr.bf16.mxu1 %v6349_v29 }
 0x235   : > { %4621 = vmatprep.subr.bf16.mxu0 %v6352_v39 }
 0x237   : > { %4253 = vmatpush1.bf16.msra.mxu1 %v6347_v42 }
 0x238   : > { %4622 = vmatpush1.bf16.msra.mxu0 %v6350_v43  ;;  %4254 = vmatprep.subr.bf16.mxu1 %v6355_v32 }
 0x239   : > { %4623 = vmatprep.subr.bf16.mxu0 %v6358_v33 }
 0x23b   : > { %4255 = vmatpush1.bf16.msra.mxu1 %v6353_v44 }
 0x23c   : > { %4624 = vmatpush1.bf16.msra.mxu0 %v6356_v45  ;;  %4256 = vmatprep.subr.bf16.mxu1 %v6361_v48 }
 0x23d   : > { %4625 = vmatprep.subr.bf16.mxu0 %v6364_v49 }
 0x23f   : > { %4257 = vmatpush1.bf16.msra.mxu1 %v6359_v40 }
 0x240   : > { %4626 = vmatpush1.bf16.msra.mxu0 %v6362_v41  ;;  %4258 = vmatprep.subr.bf16.mxu1 %v6367_v50 }
 0x241   : > { %4627 = vmatprep.subr.bf16.mxu0 %v6370_v51 }
 0x243   : > { %4259 = vmatpush1.bf16.msra.mxu1 %v6365_v54 }
 0x244   : > { %4628 = vmatpush1.bf16.msra.mxu0 %v6368_v55 }
 0x246   : > { %4261 = vmatmul.mubr.bf16.vlgmr.msra.gmra.mrb[0].mxu1 %v4800_v46 }
 0x247   : > { %4630 = vmatmul.mubr.bf16.vlgmr.msra.gmra.mrb[0].mxu0 %v4818_v47 }
 0x319   : > { %v4262_v63 = vpop.f32.mrb[0].mxu1 }
 0x31a   : > { %v4631_v52 = vpop.f32.mrb[0].mxu0  ;;  %v5398_v0 = vadd.f32 %v4262_v63, %v887_v61  ;;  %v4264_v1 = vpop.f32.mrb[1].mxu1 }
 0x31b   : > { %v4633_v53 = vpop.f32.mrb[1].mxu0  ;;  %v5400_v2 = vadd.f32 %v4264_v1, %v891_v62  ;;  %v4266_v3 = vpop.f32.mrb[2].mxu1 }
 0x31c   : > { %v4635_v4 = vpop.f32.mrb[2].mxu0  ;;  %v5399_v5 = vadd.f32 %v5398_v0, %v4631_v52  ;;  %v4267_v6 = vpop.f32.mrb[3].mxu1 }
 0x31d   : > { %v4636_v7 = vpop.f32.mrb[3].mxu0  ;;  %v5401_v8 = vadd.f32 %v5400_v2, %v4633_v53 }
 0x31e   : > { %4638 = vst [vmem:[%s283_s16] sm:$0xff] %v5399_v5 }
 0x31f   : > { %4639 = vst [vmem:[%s287_s19] sm:$0xff] %v5401_v8  ;;  %v4641_v9 = vmul.f32 0.5, %v5401_v8 }
 0x321   : > { %v4642_v10 = vmul.f32 1.442695, %v4641_v9 }
 0x323   : > { %6375 = vpow2.f32 %v4642_v10 }
 0x32d   : > { %v6376_v12 = vpop.eup %6375 }
 0x32e   : > { %v4644_v13 = vmul.f32 %v6376_v12, %v4640_v11 }
 0x330   : > { %v4645_v14 = vadd.f32 %v5399_v5, %v4644_v13 }
 0x332   : > { %4646 = vst [vmem:[%s279_s27] sm:$0xff] %v4645_v14 }
 0x333 PF: > { %s17_s21 = sadd.s32 1, %s6383_s21  }
 0x334   : > { %p14_p4 = scmp.ge.s32.totalorder %s17_s21, 4  }
 0x336   :  { %16 = sbr.rel (!%p14_p4) target bundleno = 1 (0x1), region = 93 }

</bundles_post_ra>
